<compile_context>
chip_gen: v5e
topology: v5e:2x2
jax: 0.10.0
libtpu: 0.0.40
codegen_flags: <defaults>
</compile_context>

<pallas_src>
import jax
import jax.numpy as jnp
from jax.experimental import pallas as pl
from jax.experimental.pallas import tpu as pltpu


# ----------------------------------------------------------------------------
# Pallas kernel: TB batch elements per grid step.
# ----------------------------------------------------------------------------
def ptupcdr_kernel(ufea_ref, maskb_ref, uid_ref, iid_ref,
                   w1_ref, b1_ref, w2_ref,            # MetaNet.event_K
                   w3_ref, b3_ref,                    # MetaNet.decoder layer 1
                   w4a_ref,                           # decoder layer 2 (w4 re-laid-out, b4 folded)
                   out_ref):
    TB, S, D = ufea_ref.shape
    M = w3_ref.shape[1]

    ufea3 = ufea_ref[...].astype(jnp.float32)           # (TB, S, D)
    maskb = maskb_ref[...]                              # (TB, S, 1) additive -1e8 bias
    u     = uid_ref[...].astype(jnp.float32)            # (TB, D)
    iid   = iid_ref[...].astype(jnp.float32)            # (TB, D)

    # ---- MetaNet.event_K over all TB*S history rows at once ----
    # (reshape is layout-preserving when S == 8, the f32 sublane count)
    uf2 = ufea3.reshape(TB * S, D)
    h1 = jnp.maximum(
        jnp.dot(uf2, w1_ref[...], preferred_element_type=jnp.float32) + b1_ref[...],
        0.0)                                             # (TB*S, D)
    # N=1 output head: VPU multiply + lane reduction instead of an MXU dot.
    ek = jnp.sum(h1 * w2_ref[...], axis=-1, keepdims=True)        # (TB*S, 1)

    # ---- masked softmax over the history axis, per batch element ----
    logits = ek.reshape(TB, S, 1) + maskb                # mask pre-scaled in wrapper
    mmax = jnp.max(logits, axis=1, keepdims=True)        # (TB, 1, 1)
    p = jnp.exp(logits - mmax)
    att = p * pl.reciprocal(jnp.sum(p, axis=1, keepdims=True), approx=True)
    his = jnp.sum(att * ufea3, axis=1)                   # (TB, D)

    # ---- MetaNet.decoder layer 1 ----
    h2 = jnp.maximum(
        jnp.dot(his, w3_ref[...], preferred_element_type=jnp.float32) + b3_ref[...],
        0.0)                                             # (TB, M)

    # ---- score = u @ reshape(h2 @ w4 + b4, D, D) @ iid^T, without D*D or broadcasts ----
    #   gflat[:, m*D:(m+1)*D] = u @ W_m   (W_M = b4 reshaped, coefficient 1)
    #   y = gflat_b4 + sum_m h2[:, m] * gflat_m  ==  u @ mapping           (TB, D)
    gflat = jnp.dot(u, w4a_ref[...], preferred_element_type=jnp.float32)   # (TB, (M+1)*D)
    y = gflat[:, M * D:(M + 1) * D]                      # b4 chunk
    for m in range(M):                                   # static unroll; narrow VPU MACs
        y = y + h2[:, m:m + 1] * gflat[:, m * D:(m + 1) * D]

    # ---- final reduce: (TB,1) column, then transpose only that tiny column ----
    score_col = jnp.sum(y * iid, axis=-1, keepdims=True)            # (TB, 1)
    out_ref[...] = jnp.transpose(score_col).reshape(1, 1, TB)       # lane-dense (1,1,TB)


# ----------------------------------------------------------------------------
# Wrapper: parameter re-layout + batch padding in plain JAX, hot path in Pallas.
# ----------------------------------------------------------------------------
def ptupcdr_forward(ufea, mask, uid_src, iid_emb, params, *, tb=128,
                    activation_dtype=jnp.float32):
    # tb: target batch tile.  The kernel is nowhere near VMEM-bound on v5e/v6e/v7x,
    # so TB is chosen to minimize batch padding and keep nb even (>=2) so both v7x
    # TensorCores get work.  activation_dtype=jnp.bfloat16 halves the ufea DMA
    # (kernel upcasts before the f32 softmax math); default f32 preserves tolerance.
    B, S, D = ufea.shape
    M = params["w3"].shape[1]

    # Derived, layout-friendly parameter views (one-time, free, plain JAX).
    # W4t_aug[d, m*D+e] = w4[m, d*D+e] for m < M ;  W4t_aug[d, M*D+e] = b4[d*D+e]
    w4t = params["w4"].reshape(M, D, D).transpose(1, 0, 2).reshape(D, M * D)  # (D, M*D)
    b4r = params["b4"].reshape(D, D)                                          # (D, D)
    w4t_aug = jnp.concatenate([w4t, b4r], axis=1)                             # (D, (M+1)*D)

    uid2 = uid_src.reshape(B, D)
    iid2 = iid_emb.reshape(B, D)
    mask_bias = mask.astype(jnp.float32) * jnp.float32(-1e8)   # additive bias, pre-scaled
    ufea = ufea.astype(activation_dtype)

    # --- batch tiling: minimize padding; nb even so both v7x cores get a step ---
    nb = max(2, -(-B // tb))
    if nb % 2:
        nb += 1
    TB = ((-(-B // nb) + 7) // 8) * 8
    Bp = nb * TB
    if Bp != B:
        pad = lambda a: jnp.pad(a, ((0, Bp - B),) + ((0, 0),) * (a.ndim - 1))
        ufea, mask_bias, uid2, iid2 = pad(ufea), pad(mask_bias), pad(uid2), pad(iid2)

    out = pl.pallas_call(
        ptupcdr_kernel,
        out_shape=jax.ShapeDtypeStruct((nb, 1, TB), jnp.float32),
        grid=(nb,),
        in_specs=[
            pl.BlockSpec((TB, S, D), lambda b: (b, 0, 0)),        # ufea
            pl.BlockSpec((TB, S, 1), lambda b: (b, 0, 0)),        # mask bias (-1e8 * mask)
            pl.BlockSpec((TB, D),    lambda b: (b, 0)),           # uid_src
            pl.BlockSpec((TB, D),    lambda b: (b, 0)),           # iid_emb
            pl.BlockSpec((D, D),     lambda b: (0, 0)),           # w1
            pl.BlockSpec((1, D),     lambda b: (0, 0)),           # b1
            pl.BlockSpec((1, D),     lambda b: (0, 0)),           # w2 (row form)
            pl.BlockSpec((D, M),     lambda b: (0, 0)),           # w3
            pl.BlockSpec((1, M),     lambda b: (0, 0)),           # b3
            pl.BlockSpec((D, (M + 1) * D), lambda b: (0, 0)),     # W4t_aug (w4 + b4 folded)
        ],
        out_specs=pl.BlockSpec((1, 1, TB), lambda b: (b, 0, 0)),
        compiler_params=pltpu.CompilerParams(
            dimension_semantics=("parallel",)),
    )(ufea, mask_bias, uid2, iid2,
      params["w1"], params["b1"], params["w2"],
      params["w3"], params["b3"], w4t_aug)
    return out.reshape(Bp)[:B]


# ----------------------------------------------------------------------------
# Pure-JAX reference (mirrors the PyTorch forward exactly).
# ----------------------------------------------------------------------------
def ptupcdr_reference(ufea, mask, uid_src, iid_emb, params):
    B, S, D = ufea.shape
    h1 = jax.nn.relu(ufea @ params["w1"] + params["b1"])            # (B,S,D)
    ek = h1 @ params["w2"].T                                        # (B,S,1)
    t = ek - mask * 1e8
    att = jax.nn.softmax(t, axis=1)
    his = jnp.sum(att * ufea, axis=1)                               # (B,D)
    h2 = jax.nn.relu(his @ params["w3"] + params["b3"])             # (B,M)
    mflat = h2 @ params["w4"] + params["b4"]                        # (B,D*D)
    mapping = mflat.reshape(B, D, D)
    uid_emb = jnp.einsum("bkd,bde->bke", uid_src, mapping)          # (B,1,D)
    emb = jnp.concatenate([uid_emb, iid_emb], axis=1)               # (B,2,D)
    return jnp.sum(emb[:, 0, :] * emb[:, 1, :], axis=1)             # (B,)


if __name__ == "__main__":
    # ---- config (small, consistent with the module) ----
    B = 200
    num_fields = 10
    S = num_fields - 2          # history length
    D = 32                      # latent_dim
    M = 16                      # meta_dim
    uid_all = 50
    iid_all = 50

    key = jax.random.PRNGKey(0)
    ks = jax.random.split(key, 16)

    # ---- deterministic "checkpoint": embeddings + MetaNet parameters ----
    src_user_emb = jax.random.normal(ks[0], (uid_all, D), jnp.float32) * 0.1
    src_item_emb = jax.random.normal(ks[1], (iid_all, D), jnp.float32) * 0.1
    tgt_item_emb = jax.random.normal(ks[2], (iid_all, D), jnp.float32) * 0.1

    params = {
        "w1": jax.random.normal(ks[3], (D, D), jnp.float32) * 0.1,
        "b1": jax.random.normal(ks[4], (1, D), jnp.float32) * 0.1,
        "w2": jax.random.normal(ks[5], (1, D), jnp.float32) * 0.1,   # Linear(D,1,bias=False), row form
        "w3": jax.random.normal(ks[6], (D, M), jnp.float32) * 0.1,
        "b3": jax.random.normal(ks[7], (1, M), jnp.float32) * 0.1,
        "w4": jax.random.normal(ks[8], (M, D * D), jnp.float32) * 0.1,
        "b4": jax.random.normal(ks[9], (1, D * D), jnp.float32) * 0.1,
    }

    # ---- input ids x: [:,0]=src uid, [:,1]=tgt iid, [:,2:]=history (0 = padding) ----
    x_uid = jax.random.randint(ks[10], (B, 1), 0, uid_all)
    x_iid = jax.random.randint(ks[11], (B, 1), 0, iid_all)
    hist = jax.random.randint(ks[12], (B, S), 0, iid_all)
    keep = (jax.random.uniform(ks[13], (B, S)) > 0.25).astype(jnp.int32)
    x = jnp.concatenate([x_uid, x_iid, hist * keep], axis=1).astype(jnp.int32)
    assert x.shape == (B, num_fields)

    # ---- embedding lookups (glue; data-dependent gather stays in plain JAX) ----
    # TODO(synk): embedding-table gather has no clean rectangular-BlockSpec Pallas form.
    iid_emb = tgt_item_emb[x[:, 1]][:, None, :]            # (B,1,D)
    uid_src = src_user_emb[x[:, 0]][:, None, :]            # (B,1,D)
    ufea = src_item_emb[x[:, 2:]]                          # (B,S,D)
    mask = (x[:, 2:] == 0).astype(jnp.float32)[..., None]  # (B,S,1)

    # ---- run kernel + reference ----
    out = ptupcdr_forward(ufea, mask, uid_src, iid_emb, params)
    out = jax.block_until_ready(out)
    ref = ptupcdr_reference(ufea, mask, uid_src, iid_emb, params)

    assert out.shape == (B,)
    # Tolerance accounts for default (single-pass bf16) MXU precision on both the kernel
    # and the XLA reference, plus the different (but exact) contraction ordering.
    assert jnp.allclose(out, ref, rtol=2e-2, atol=2e-3), (out, ref)
    print("KERNEL_OK")
</pallas_src>

<mosaic_0001>
module attributes {stable_mosaic.version = 11 : i64} {
  func.func @ptupcdr_kernel(%arg0: i32, %arg1: memref<104x8x32xf32, #tpu.memory_space<vmem>>, %arg2: memref<104x8x1xf32, #tpu.memory_space<vmem>>, %arg3: memref<104x32xf32, #tpu.memory_space<vmem>>, %arg4: memref<104x32xf32, #tpu.memory_space<vmem>>, %arg5: memref<32x32xf32, #tpu.memory_space<vmem>>, %arg6: memref<1x32xf32, #tpu.memory_space<vmem>>, %arg7: memref<1x32xf32, #tpu.memory_space<vmem>>, %arg8: memref<32x16xf32, #tpu.memory_space<vmem>>, %arg9: memref<1x16xf32, #tpu.memory_space<vmem>>, %arg10: memref<32x544xf32, #tpu.memory_space<vmem>>, %arg11: memref<1x1x104xf32, #tpu.memory_space<vmem>>) attributes {dimension_semantics = [#tpu.dimension_semantics<parallel>], iteration_bounds = array<i64: 2>, scalar_prefetch = 0 : i64, scratch_operands = 0 : i64, tpu.core_type = #tpu.core_type<tc>, window_params = [{transform_indices = @transform_0, window_bounds = array<i64: 104, 8, 32>}, {transform_indices = @transform_1, window_bounds = array<i64: 104, 8, 1>}, {transform_indices = @transform_2, window_bounds = array<i64: 104, 32>}, {transform_indices = @transform_3, window_bounds = array<i64: 104, 32>}, {pipeline_mode = #tpu.pipeline_mode<synchronous>, transform_indices = @transform_4, window_bounds = array<i64: 32, 32>}, {pipeline_mode = #tpu.pipeline_mode<synchronous>, transform_indices = @transform_5, window_bounds = array<i64: 1, 32>}, {pipeline_mode = #tpu.pipeline_mode<synchronous>, transform_indices = @transform_6, window_bounds = array<i64: 1, 32>}, {pipeline_mode = #tpu.pipeline_mode<synchronous>, transform_indices = @transform_7, window_bounds = array<i64: 32, 16>}, {pipeline_mode = #tpu.pipeline_mode<synchronous>, transform_indices = @transform_8, window_bounds = array<i64: 1, 16>}, {pipeline_mode = #tpu.pipeline_mode<synchronous>, transform_indices = @transform_9, window_bounds = array<i64: 32, 544>}, {transform_indices = @transform_10, window_bounds = array<i64: 1, 1, 104>}]} {
    %c0 = arith.constant 0 : index
    %c0_0 = arith.constant 0 : index
    %c0_1 = arith.constant 0 : index
    %0 = vector.load %arg1[%c0, %c0_0, %c0_1] : memref<104x8x32xf32, #tpu.memory_space<vmem>>, vector<104x8x32xf32>
    %c0_2 = arith.constant 0 : index
    %c0_3 = arith.constant 0 : index
    %c0_4 = arith.constant 0 : index
    %1 = vector.load %arg2[%c0_2, %c0_3, %c0_4] : memref<104x8x1xf32, #tpu.memory_space<vmem>>, vector<104x8x1xf32>
    %c0_5 = arith.constant 0 : index
    %c0_6 = arith.constant 0 : index
    %2 = vector.load %arg3[%c0_5, %c0_6] : memref<104x32xf32, #tpu.memory_space<vmem>>, vector<104x32xf32>
    %c0_7 = arith.constant 0 : index
    %c0_8 = arith.constant 0 : index
    %3 = vector.load %arg4[%c0_7, %c0_8] : memref<104x32xf32, #tpu.memory_space<vmem>>, vector<104x32xf32>
    %4 = vector.shape_cast %0 : vector<104x8x32xf32> to vector<832x32xf32>
    %c0_9 = arith.constant 0 : index
    %c0_10 = arith.constant 0 : index
    %5 = vector.load %arg5[%c0_9, %c0_10] : memref<32x32xf32, #tpu.memory_space<vmem>>, vector<32x32xf32>
    %cst = arith.constant dense<0.000000e+00> : vector<832x32xf32>
    %6 = tpu.matmul %4, %5, %cst {dimension_numbers = #tpu.dot_dimension_numbers<[1], [0], [0], [1], [0, 0, 1, 1], [], []>} : vector<832x32xf32>, vector<32x32xf32>, vector<832x32xf32> -> vector<832x32xf32>
    %c0_11 = arith.constant 0 : index
    %c0_12 = arith.constant 0 : index
    %7 = vector.load %arg6[%c0_11, %c0_12] : memref<1x32xf32, #tpu.memory_space<vmem>>, vector<1x32xf32>
    %8 = vector.broadcast %7 : vector<1x32xf32> to vector<832x32xf32>
    %9 = arith.addf %6, %8 : vector<832x32xf32>
    %cst_13 = arith.constant 0.000000e+00 : f32
    %10 = vector.broadcast %cst_13 : f32 to vector<832x32xf32>
    %11 = arith.maximumf %9, %10 : vector<832x32xf32>
    %c0_14 = arith.constant 0 : index
    %c0_15 = arith.constant 0 : index
    %12 = vector.load %arg7[%c0_14, %c0_15] : memref<1x32xf32, #tpu.memory_space<vmem>>, vector<1x32xf32>
    %13 = vector.broadcast %12 : vector<1x32xf32> to vector<832x32xf32>
    %14 = arith.mulf %11, %13 : vector<832x32xf32>
    %cst_16 = arith.constant dense<0.000000e+00> : vector<832xf32>
    %15 = vector.multi_reduction <add>, %14, %cst_16 [1] : vector<832x32xf32> to vector<832xf32>
    %16 = vector.shape_cast %15 : vector<832xf32> to vector<832x1xf32>
    %17 = vector.shape_cast %16 : vector<832x1xf32> to vector<104x8x1xf32>
    %18 = arith.addf %17, %1 : vector<104x8x1xf32>
    %cst_17 = arith.constant dense<0xFF800000> : vector<104x1xf32>
    %19 = vector.multi_reduction <maximumf>, %18, %cst_17 [1] : vector<104x8x1xf32> to vector<104x1xf32>
    %20 = vector.shape_cast %19 : vector<104x1xf32> to vector<104x1x1xf32>
    %21 = vector.broadcast %20 : vector<104x1x1xf32> to vector<104x8x1xf32>
    %22 = arith.subf %18, %21 : vector<104x8x1xf32>
    %23 = math.exp %22 : vector<104x8x1xf32>
    %cst_18 = arith.constant dense<0.000000e+00> : vector<104x1xf32>
    %24 = vector.multi_reduction <add>, %23, %cst_18 [1] : vector<104x8x1xf32> to vector<104x1xf32>
    %25 = vector.shape_cast %24 : vector<104x1xf32> to vector<104x1x1xf32>
    %26 = tpu.reciprocal %25 {approx = true} : vector<104x1x1xf32> -> vector<104x1x1xf32>
    %27 = vector.broadcast %26 : vector<104x1x1xf32> to vector<104x8x1xf32>
    %28 = arith.mulf %23, %27 : vector<104x8x1xf32>
    %29 = vector.broadcast %28 : vector<104x8x1xf32> to vector<104x8x32xf32>
    %30 = arith.mulf %29, %0 : vector<104x8x32xf32>
    %cst_19 = arith.constant dense<0.000000e+00> : vector<104x32xf32>
    %31 = vector.multi_reduction <add>, %30, %cst_19 [1] : vector<104x8x32xf32> to vector<104x32xf32>
    %c0_20 = arith.constant 0 : index
    %c0_21 = arith.constant 0 : index
    %32 = vector.load %arg8[%c0_20, %c0_21] : memref<32x16xf32, #tpu.memory_space<vmem>>, vector<32x16xf32>
    %cst_22 = arith.constant dense<0.000000e+00> : vector<104x16xf32>
    %33 = tpu.matmul %31, %32, %cst_22 {dimension_numbers = #tpu.dot_dimension_numbers<[1], [0], [0], [1], [0, 0, 1, 1], [], []>} : vector<104x32xf32>, vector<32x16xf32>, vector<104x16xf32> -> vector<104x16xf32>
    %c0_23 = arith.constant 0 : index
    %c0_24 = arith.constant 0 : index
    %34 = vector.load %arg9[%c0_23, %c0_24] : memref<1x16xf32, #tpu.memory_space<vmem>>, vector<1x16xf32>
    %35 = vector.broadcast %34 : vector<1x16xf32> to vector<104x16xf32>
    %36 = arith.addf %33, %35 : vector<104x16xf32>
    %cst_25 = arith.constant 0.000000e+00 : f32
    %37 = vector.broadcast %cst_25 : f32 to vector<104x16xf32>
    %38 = arith.maximumf %36, %37 : vector<104x16xf32>
    %c0_26 = arith.constant 0 : index
    %c0_27 = arith.constant 0 : index
    %39 = vector.load %arg10[%c0_26, %c0_27] : memref<32x544xf32, #tpu.memory_space<vmem>>, vector<32x544xf32>
    %cst_28 = arith.constant dense<0.000000e+00> : vector<104x544xf32>
    %40 = tpu.matmul %2, %39, %cst_28 {dimension_numbers = #tpu.dot_dimension_numbers<[1], [0], [0], [1], [0, 0, 1, 1], [], []>} : vector<104x32xf32>, vector<32x544xf32>, vector<104x544xf32> -> vector<104x544xf32>
    %41 = vector.extract_strided_slice %40 {offsets = [0, 512], sizes = [104, 32], strides = [1, 1]} : vector<104x544xf32> to vector<104x32xf32>
    %42 = vector.extract_strided_slice %38 {offsets = [0, 0], sizes = [104, 1], strides = [1, 1]} : vector<104x16xf32> to vector<104x1xf32>
    %43 = vector.extract_strided_slice %40 {offsets = [0, 0], sizes = [104, 32], strides = [1, 1]} : vector<104x544xf32> to vector<104x32xf32>
    %44 = vector.broadcast %42 : vector<104x1xf32> to vector<104x32xf32>
    %45 = arith.mulf %44, %43 : vector<104x32xf32>
    %46 = arith.addf %41, %45 : vector<104x32xf32>
    %47 = vector.extract_strided_slice %38 {offsets = [0, 1], sizes = [104, 1], strides = [1, 1]} : vector<104x16xf32> to vector<104x1xf32>
    %48 = vector.extract_strided_slice %40 {offsets = [0, 32], sizes = [104, 32], strides = [1, 1]} : vector<104x544xf32> to vector<104x32xf32>
    %49 = vector.broadcast %47 : vector<104x1xf32> to vector<104x32xf32>
    %50 = arith.mulf %49, %48 : vector<104x32xf32>
    %51 = arith.addf %46, %50 : vector<104x32xf32>
    %52 = vector.extract_strided_slice %38 {offsets = [0, 2], sizes = [104, 1], strides = [1, 1]} : vector<104x16xf32> to vector<104x1xf32>
    %53 = vector.extract_strided_slice %40 {offsets = [0, 64], sizes = [104, 32], strides = [1, 1]} : vector<104x544xf32> to vector<104x32xf32>
    %54 = vector.broadcast %52 : vector<104x1xf32> to vector<104x32xf32>
    %55 = arith.mulf %54, %53 : vector<104x32xf32>
    %56 = arith.addf %51, %55 : vector<104x32xf32>
    %57 = vector.extract_strided_slice %38 {offsets = [0, 3], sizes = [104, 1], strides = [1, 1]} : vector<104x16xf32> to vector<104x1xf32>
    %58 = vector.extract_strided_slice %40 {offsets = [0, 96], sizes = [104, 32], strides = [1, 1]} : vector<104x544xf32> to vector<104x32xf32>
    %59 = vector.broadcast %57 : vector<104x1xf32> to vector<104x32xf32>
    %60 = arith.mulf %59, %58 : vector<104x32xf32>
    %61 = arith.addf %56, %60 : vector<104x32xf32>
    %62 = vector.extract_strided_slice %38 {offsets = [0, 4], sizes = [104, 1], strides = [1, 1]} : vector<104x16xf32> to vector<104x1xf32>
    %63 = vector.extract_strided_slice %40 {offsets = [0, 128], sizes = [104, 32], strides = [1, 1]} : vector<104x544xf32> to vector<104x32xf32>
    %64 = vector.broadcast %62 : vector<104x1xf32> to vector<104x32xf32>
    %65 = arith.mulf %64, %63 : vector<104x32xf32>
    %66 = arith.addf %61, %65 : vector<104x32xf32>
    %67 = vector.extract_strided_slice %38 {offsets = [0, 5], sizes = [104, 1], strides = [1, 1]} : vector<104x16xf32> to vector<104x1xf32>
    %68 = vector.extract_strided_slice %40 {offsets = [0, 160], sizes = [104, 32], strides = [1, 1]} : vector<104x544xf32> to vector<104x32xf32>
    %69 = vector.broadcast %67 : vector<104x1xf32> to vector<104x32xf32>
    %70 = arith.mulf %69, %68 : vector<104x32xf32>
    %71 = arith.addf %66, %70 : vector<104x32xf32>
    %72 = vector.extract_strided_slice %38 {offsets = [0, 6], sizes = [104, 1], strides = [1, 1]} : vector<104x16xf32> to vector<104x1xf32>
    %73 = vector.extract_strided_slice %40 {offsets = [0, 192], sizes = [104, 32], strides = [1, 1]} : vector<104x544xf32> to vector<104x32xf32>
    %74 = vector.broadcast %72 : vector<104x1xf32> to vector<104x32xf32>
    %75 = arith.mulf %74, %73 : vector<104x32xf32>
    %76 = arith.addf %71, %75 : vector<104x32xf32>
    %77 = vector.extract_strided_slice %38 {offsets = [0, 7], sizes = [104, 1], strides = [1, 1]} : vector<104x16xf32> to vector<104x1xf32>
    %78 = vector.extract_strided_slice %40 {offsets = [0, 224], sizes = [104, 32], strides = [1, 1]} : vector<104x544xf32> to vector<104x32xf32>
    %79 = vector.broadcast %77 : vector<104x1xf32> to vector<104x32xf32>
    %80 = arith.mulf %79, %78 : vector<104x32xf32>
    %81 = arith.addf %76, %80 : vector<104x32xf32>
    %82 = vector.extract_strided_slice %38 {offsets = [0, 8], sizes = [104, 1], strides = [1, 1]} : vector<104x16xf32> to vector<104x1xf32>
    %83 = vector.extract_strided_slice %40 {offsets = [0, 256], sizes = [104, 32], strides = [1, 1]} : vector<104x544xf32> to vector<104x32xf32>
    %84 = vector.broadcast %82 : vector<104x1xf32> to vector<104x32xf32>
    %85 = arith.mulf %84, %83 : vector<104x32xf32>
    %86 = arith.addf %81, %85 : vector<104x32xf32>
    %87 = vector.extract_strided_slice %38 {offsets = [0, 9], sizes = [104, 1], strides = [1, 1]} : vector<104x16xf32> to vector<104x1xf32>
    %88 = vector.extract_strided_slice %40 {offsets = [0, 288], sizes = [104, 32], strides = [1, 1]} : vector<104x544xf32> to vector<104x32xf32>
    %89 = vector.broadcast %87 : vector<104x1xf32> to vector<104x32xf32>
    %90 = arith.mulf %89, %88 : vector<104x32xf32>
    %91 = arith.addf %86, %90 : vector<104x32xf32>
    %92 = vector.extract_strided_slice %38 {offsets = [0, 10], sizes = [104, 1], strides = [1, 1]} : vector<104x16xf32> to vector<104x1xf32>
    %93 = vector.extract_strided_slice %40 {offsets = [0, 320], sizes = [104, 32], strides = [1, 1]} : vector<104x544xf32> to vector<104x32xf32>
    %94 = vector.broadcast %92 : vector<104x1xf32> to vector<104x32xf32>
    %95 = arith.mulf %94, %93 : vector<104x32xf32>
    %96 = arith.addf %91, %95 : vector<104x32xf32>
    %97 = vector.extract_strided_slice %38 {offsets = [0, 11], sizes = [104, 1], strides = [1, 1]} : vector<104x16xf32> to vector<104x1xf32>
    %98 = vector.extract_strided_slice %40 {offsets = [0, 352], sizes = [104, 32], strides = [1, 1]} : vector<104x544xf32> to vector<104x32xf32>
    %99 = vector.broadcast %97 : vector<104x1xf32> to vector<104x32xf32>
    %100 = arith.mulf %99, %98 : vector<104x32xf32>
    %101 = arith.addf %96, %100 : vector<104x32xf32>
    %102 = vector.extract_strided_slice %38 {offsets = [0, 12], sizes = [104, 1], strides = [1, 1]} : vector<104x16xf32> to vector<104x1xf32>
    %103 = vector.extract_strided_slice %40 {offsets = [0, 384], sizes = [104, 32], strides = [1, 1]} : vector<104x544xf32> to vector<104x32xf32>
    %104 = vector.broadcast %102 : vector<104x1xf32> to vector<104x32xf32>
    %105 = arith.mulf %104, %103 : vector<104x32xf32>
    %106 = arith.addf %101, %105 : vector<104x32xf32>
    %107 = vector.extract_strided_slice %38 {offsets = [0, 13], sizes = [104, 1], strides = [1, 1]} : vector<104x16xf32> to vector<104x1xf32>
    %108 = vector.extract_strided_slice %40 {offsets = [0, 416], sizes = [104, 32], strides = [1, 1]} : vector<104x544xf32> to vector<104x32xf32>
    %109 = vector.broadcast %107 : vector<104x1xf32> to vector<104x32xf32>
    %110 = arith.mulf %109, %108 : vector<104x32xf32>
    %111 = arith.addf %106, %110 : vector<104x32xf32>
    %112 = vector.extract_strided_slice %38 {offsets = [0, 14], sizes = [104, 1], strides = [1, 1]} : vector<104x16xf32> to vector<104x1xf32>
    %113 = vector.extract_strided_slice %40 {offsets = [0, 448], sizes = [104, 32], strides = [1, 1]} : vector<104x544xf32> to vector<104x32xf32>
    %114 = vector.broadcast %112 : vector<104x1xf32> to vector<104x32xf32>
    %115 = arith.mulf %114, %113 : vector<104x32xf32>
    %116 = arith.addf %111, %115 : vector<104x32xf32>
    %117 = vector.extract_strided_slice %38 {offsets = [0, 15], sizes = [104, 1], strides = [1, 1]} : vector<104x16xf32> to vector<104x1xf32>
    %118 = vector.extract_strided_slice %40 {offsets = [0, 480], sizes = [104, 32], strides = [1, 1]} : vector<104x544xf32> to vector<104x32xf32>
    %119 = vector.broadcast %117 : vector<104x1xf32> to vector<104x32xf32>
    %120 = arith.mulf %119, %118 : vector<104x32xf32>
    %121 = arith.addf %116, %120 : vector<104x32xf32>
    %122 = arith.mulf %121, %3 : vector<104x32xf32>
    %cst_29 = arith.constant dense<0.000000e+00> : vector<104xf32>
    %123 = vector.multi_reduction <add>, %122, %cst_29 [1] : vector<104x32xf32> to vector<104xf32>
    %124 = vector.shape_cast %123 : vector<104xf32> to vector<104x1xf32>
    %125 = tpu.transpose %124, [1, 0] : vector<104x1xf32> -> vector<1x104xf32>
    %126 = vector.shape_cast %125 : vector<1x104xf32> to vector<1x1x104xf32>
    %c0_30 = arith.constant 0 : index
    %c0_31 = arith.constant 0 : index
    %c0_32 = arith.constant 0 : index
    %127 = vector.load %arg11[%c0_30, %c0_31, %c0_32] : memref<1x1x104xf32, #tpu.memory_space<vmem>>, vector<1x1x104xf32>
    tpu.vector_store %arg11[%c0_30, %c0_31, %c0_32], %126 {strides = array<i32>} : memref<1x1x104xf32, #tpu.memory_space<vmem>>, vector<1x1x104xf32>,
    return
  }
  func.func @transform_0(%arg0: i32) -> (i32, i32, i32) {
    %c0_i32 = arith.constant 0 : i32
    %c0_i32_0 = arith.constant 0 : i32
    %c0_i32_1 = arith.constant 0 : i32
    return %arg0, %c0_i32, %c0_i32_0 : i32, i32, i32
  }
  func.func @transform_1(%arg0: i32) -> (i32, i32, i32) {
    %c0_i32 = arith.constant 0 : i32
    %c0_i32_0 = arith.constant 0 : i32
    %c0_i32_1 = arith.constant 0 : i32
    return %arg0, %c0_i32, %c0_i32_0 : i32, i32, i32
  }
  func.func @transform_2(%arg0: i32) -> (i32, i32) {
    %c0_i32 = arith.constant 0 : i32
    %c0_i32_0 = arith.constant 0 : i32
    return %arg0, %c0_i32 : i32, i32
  }
  func.func @transform_3(%arg0: i32) -> (i32, i32) {
    %c0_i32 = arith.constant 0 : i32
    %c0_i32_0 = arith.constant 0 : i32
    return %arg0, %c0_i32 : i32, i32
  }
  func.func @transform_4(%arg0: i32) -> (i32, i32) {
    %c0_i32 = arith.constant 0 : i32
    %c0_i32_0 = arith.constant 0 : i32
    %c0_i32_1 = arith.constant 0 : i32
    return %c0_i32, %c0_i32_0 : i32, i32
  }
  func.func @transform_5(%arg0: i32) -> (i32, i32) {
    %c0_i32 = arith.constant 0 : i32
    %c0_i32_0 = arith.constant 0 : i32
    %c0_i32_1 = arith.constant 0 : i32
    return %c0_i32, %c0_i32_0 : i32, i32
  }
  func.func @transform_6(%arg0: i32) -> (i32, i32) {
    %c0_i32 = arith.constant 0 : i32
    %c0_i32_0 = arith.constant 0 : i32
    %c0_i32_1 = arith.constant 0 : i32
    return %c0_i32, %c0_i32_0 : i32, i32
  }
  func.func @transform_7(%arg0: i32) -> (i32, i32) {
    %c0_i32 = arith.constant 0 : i32
    %c0_i32_0 = arith.constant 0 : i32
    %c0_i32_1 = arith.constant 0 : i32
    return %c0_i32, %c0_i32_0 : i32, i32
  }
  func.func @transform_8(%arg0: i32) -> (i32, i32) {
    %c0_i32 = arith.constant 0 : i32
    %c0_i32_0 = arith.constant 0 : i32
    %c0_i32_1 = arith.constant 0 : i32
    return %c0_i32, %c0_i32_0 : i32, i32
  }
  func.func @transform_9(%arg0: i32) -> (i32, i32) {
    %c0_i32 = arith.constant 0 : i32
    %c0_i32_0 = arith.constant 0 : i32
    %c0_i32_1 = arith.constant 0 : i32
    return %c0_i32, %c0_i32_0 : i32, i32
  }
  func.func @transform_10(%arg0: i32) -> (i32, i32, i32) {
    %c0_i32 = arith.constant 0 : i32
    %c0_i32_0 = arith.constant 0 : i32
    %c0_i32_1 = arith.constant 0 : i32
    return %arg0, %c0_i32, %c0_i32_0 : i32, i32, i32
  }
}

</mosaic_0001>

<bundles_post_ra>
// kernel: tpu_custom_call.1
= control target key start
LH: loop header
LB: loop body
LE: loop exit
PB: predicated region body
PF: predicated region fallthrough
CT: control target
= control target key end

     0   :  { %s13792_s0 = inlined_call_operand.vmem [shape: f32[208,8,32], index: 0, kind: input, shape index: {}]   ;;  %s13793_s1 = inlined_call_operand.vmem [shape: f32[208,8,1], index: 1, kind: input, shape index: {}]   ;;  %s13794_s2 = inlined_call_operand.vmem [shape: f32[208,32], index: 2, kind: input, shape index: {}]   ;;  %s13795_s3 = inlined_call_operand.vmem [shape: f32[208,32], index: 3, kind: input, shape index: {}]   ;;  %s13796_s4 = inlined_call_operand.vmem [shape: f32[32,32], index: 4, kind: input, shape index: {}]   ;;  %s13797_s5 = inlined_call_operand.vmem [shape: f32[1,32], index: 5, kind: input, shape index: {}]   ;;  %s13798_s6 = inlined_call_operand.vmem [shape: f32[1,32], index: 6, kind: input, shape index: {}]   ;;  %s13799_s7 = inlined_call_operand.vmem [shape: f32[32,16], index: 7, kind: input, shape index: {}]   ;;  %s13800_s8 = inlined_call_operand.vmem [shape: f32[1,16], index: 8, kind: input, shape index: {}]   ;;  %s13801_s9 = inlined_call_operand.vmem [shape: f32[32,544], index: 9, kind: input, shape index: {}]   ;;  %s13802_s10 = inlined_call_operand.hbm [shape: f32[2,1,104], index: 10, kind: output, shape index: {}]  }
   0x1   :  { %13873 = sst [smem:[#allocation138_spill]] %s13792_s0 }
   0x2   :  { %15 = vsyncpa [#allocation3], 0 }
   0x3   :  { %17 = vsyncpa [#allocation3 + $0x1], 0  ;;  %s9089_s13 = smov 0   ;;  %s9091_s14 = smov 0  }
   0x4   :  { %s9093_s15 = smov 0   ;;  %s9095_s16 = smov 0  }
   0x5 LB: > { %s9110_s17 = sadd.s32 4294967295, %s9013_s16   ;;  %s7985_s18 = sadd.s32 4294967294, %s9013_s16   ;;  %s9013_s16 = sphi %s9095_s16, %s14370_s16   ;;  %s9009_s15 = sphi %s9093_s15, %s14369_s15   ;;  %s9005_s14 = sphi %s9091_s14, %s14368_s14   ;;  %s9001_s13 = sphi %s9089_s13, %s14367_s13  }
   0x6   : > { %s9114_s19 = sadd.s32 1, %s9013_s16   ;;  %s260_s20 = sadd.s32 1, %s9009_s15 }
   0x7   : > { %s257_s21 = ssub.s32 %s9013_s16, %s9114_s19  ;;  %p270_p0 = scmp.ne.s32.totalorder %s9009_s15, %s9005_s14 }
   0x8   : > { %p258_p1 = scmp.eq.s32.totalorder %s257_s21, 0  ;;  %p271_p2 = scmp.eq.s32.totalorder %s9110_s17, 1 }
   0x9   : > { %p276_p3 = scmp.ne.s32.totalorder %s9005_s14, %s9001_s13  ;;  %p277_p4 = scmp.eq.s32.totalorder %s7985_s18, 1 }
   0xa   : > { %s9125_s22 = scalar_select %p258_p1, %s9009_s15, %s260_s20  }
   0xb   : > { %p9127_p5 = por %p271_p2, %p270_p0  ;;  %p9131_p6 = por %p277_p4, %p276_p3 }
   0xc   : > { %p7988_p7 = scmp.ge.s32.totalorder %s9013_s16, 1  ;;  %p349_p8 = scmp.lt.s32.totalorder %s9013_s16, 3 }
   0xe   : > { %p350_p9 = pnand %p7988_p7, %p349_p8 }
  0x10   : > { %353 = sbr.rel (%p350_p9) target bundleno = 3178 (0xc6a), region = 60 }
  0x15   : > { %v662_v0 = vld [vmem:[%s13796_s4 + $0x18] sm:$0xff]  ;;  %v661_v1 = vld [vmem:[%s13796_s4 + $0x10] sm:$0xff]  ;;  %s401_s29 = smul.u32 104, %s9110_s17  ;;  %v660_v2 = vld [vmem:[%s13796_s4 + $0x8] sm:$0xff]  ;;  %vm667_vm0 = vcmask 261120   ;;  %s13876_s0 = sld [smem:[#allocation138_spill]] }
  0x16   : > { %992 = vmatpush.msra.mxu0 %v662_v0  ;;  %8177 = vmatpush.msra.mxu1 %v662_v0  ;;  %v659_v3 = vld [vmem:[%s13796_s4] sm:$0xff]  ;;  %vm1937_vm1 = vcmask 7168   ;;  %vm5378_vm2 = vcmask 1041409   ;;  %vm5380_vm3 = vcmask 1042434   ;;  %vm5382_vm4 = vcmask 1043459   ;;  %s413_s18 = smul.u32 13, %s9110_s17  ;;  %s7890_s28 = scalar_lea.hbm %s13802_s10, %s9110_s17 }
  0x17   : > { %8178 = vmatpush.msra.mxu2 %v662_v0  ;;  %8179 = vmatpush.msra.mxu3 %v662_v0  ;;  %p402_p10 = scmp.lt.s32.totalorder %s401_s29, 207  ;;  %v9283_v0 = vld [vmem:[%s13797_s5] ss:$0 sm:$0xff]  ;;  %vm5384_vm5 = vcmask 1044484   ;;  %vm5386_vm6 = vcmask 1045509   ;;  %vm5388_vm7 = vcmask 1046534  }
  0x18   : > { %993 = vmatpush.msra.mxu0 %v661_v1  ;;  %8180 = vmatpush.msra.mxu1 %v661_v1  ;;  %vm5390_vm8 = vcmask 1047559   ;;  %p10991_p11 = scmp.lt.s32.totalorder %s413_s18, 25  ;;  %s9026_s25 = smov 32   ;;  %vm7879_vm9 = vcmask 843776  }
  0x19   : > { %8181 = vmatpush.msra.mxu2 %v661_v1  ;;  %8182 = vmatpush.msra.mxu3 %v661_v1  ;;  %s14372_s29 = smov (!%p402_p10, %s401_s29), 207  ;;  %s7894_s12 = sshll.u32 %s7890_s28, 4  ;;  %s7895_s12 = int_to_ptr.hbm [resolvable:$true] %s7894_s12 }
  0x1a   : > { %994 = vmatpush.msra.mxu0 %v660_v2  ;;  %8183 = vmatpush.msra.mxu1 %v660_v2  ;;  %s7989_s20 = sshll.u32 %s14372_s29, 3  ;;  %s14374_s18 = smov (!%p10991_p11, %s413_s18), 25 }
  0x1b   : > { %8184 = vmatpush.msra.mxu2 %v660_v2  ;;  %8185 = vmatpush.msra.mxu3 %v660_v2  ;;  %s9158_s26 = scalar_lea.vmem %s13876_s0, %s7989_s20  ;;  %s9553_s21 = scalar_lea.vmem %s13793_s1, %s7989_s20 }
  0x1c   : > { %995 = vmatpush.msra.mxu0 %v659_v3  ;;  %8186 = vmatpush.msra.mxu1 %v659_v3  ;;  %v425_v4 = vld [vmem:[%s9158_s26] sm:$0xff]  ;;  %v471_v5 = vld [vmem:[%s9158_s26 + $0x170] sm:$0xff]  ;;  %v426_v8 = vld [vmem:[%s9158_s26 + $0x8] sm:$0xff]  ;;  %s13865_s20 = sshll.u32 %s14374_s18, 3  ;;  %s9025_s29 = smov 64  }
  0x1d   : > { %8187 = vmatpush.msra.mxu2 %v659_v3  ;;  %8188 = vmatpush.msra.mxu3 %v659_v3  ;;  %v491_v6 = vld [vmem:[%s9158_s26 + $0x210] sm:$0xff]  ;;  %v472_v9 = vld [vmem:[%s9158_s26 + $0x178] sm:$0xff]  ;;  %v473_v13 = vld [vmem:[%s9158_s26 + $0x180] sm:$0xff]  ;;  %s11042_s27 = scalar_lea.vmem %s13794_s2, %s13865_s20  ;;  %s14366_s20 = sshll.u32 %s14374_s18, 3 }
  0x1e   : > { %7993 = vmatmul.msk.f32.vlgmr.msra.gmra.mxu0 %vm667_vm0, %v425_v4  ;;  %8039 = vmatmul.msk.f32.vlgmr.msra.gmra.mxu1 %vm667_vm0, %v471_v5  ;;  %v511_v7 = vld [vmem:[%s9158_s26 + $0x2b0] sm:$0xff]  ;;  %v492_v10 = vld [vmem:[%s9158_s26 + $0x218] sm:$0xff]  ;;  %v493_v14 = vld [vmem:[%s9158_s26 + $0x220] sm:$0xff]  ;;  %s399_s18 = sand.u32 1, %s9005_s14   ;;  %s8971_s17 = scalar_lea.hbm %s13802_s10, 2 }
  0x1f   : > { %8059 = vmatmul.msk.f32.vlgmr.msra.gmra.mxu2 %vm667_vm0, %v491_v6  ;;  %8079 = vmatmul.msk.f32.vlgmr.msra.gmra.mxu3 %vm667_vm0, %v511_v7  ;;  %v512_v11 = vld [vmem:[%s9158_s26 + $0x2b8] sm:$0xff]  ;;  %v427_v12 = vld [vmem:[%s9158_s26 + $0x10] sm:$0xff]  ;;  %v513_v15 = vld [vmem:[%s9158_s26 + $0x2c0] sm:$0xff]  ;;  %s400_s30 = scalar_lea.vmem [#allocation2], %s399_s18 }
  0x20   : > { %v428_v16 = vld [vmem:[%s9158_s26 + $0x18] sm:$0xff]  ;;  %v474_v17 = vld [vmem:[%s9158_s26 + $0x188] sm:$0xff]  ;;  %v429_v20 = vld [vmem:[%s9158_s26 + $0x20] sm:$0xff]  ;;  %s7892_s11 = sshll.u32 %s400_s30, 4  ;;  %s7893_s11 = int_to_ptr.vmem [resolvable:$true] %s7892_s11 }
  0x21   : > { %v514_v18 = vld [vmem:[%s9158_s26 + $0x2c8] sm:$0xff]  ;;  %v475_v21 = vld [vmem:[%s9158_s26 + $0x190] sm:$0xff]  ;;  %v476_v25 = vld [vmem:[%s9158_s26 + $0x198] sm:$0xff] }
  0x22   : > { %v494_v19 = vld [vmem:[%s9158_s26 + $0x228] sm:$0xff]  ;;  %v515_v22 = vld [vmem:[%s9158_s26 + $0x2d0] sm:$0xff]  ;;  %v496_v26 = vld [vmem:[%s9158_s26 + $0x238] sm:$0xff] }
  0x23   : > { %v495_v23 = vld [vmem:[%s9158_s26 + $0x230] sm:$0xff]  ;;  %v430_v24 = vld [vmem:[%s9158_s26 + $0x28] sm:$0xff]  ;;  %v516_v27 = vld [vmem:[%s9158_s26 + $0x2d8] sm:$0xff] }
  0x24   : > { %v431_v28 = vld [vmem:[%s9158_s26 + $0x30] sm:$0xff]  ;;  %v477_v29 = vld [vmem:[%s9158_s26 + $0x1a0] sm:$0xff]  ;;  %v432_v32 = vld [vmem:[%s9158_s26 + $0x38] sm:$0xff] }
  0x25   : > { %v517_v30 = vld [vmem:[%s9158_s26 + $0x2e0] sm:$0xff]  ;;  %v478_v33 = vld [vmem:[%s9158_s26 + $0x1a8] sm:$0xff]  ;;  %v479_v37 = vld [vmem:[%s9158_s26 + $0x1b0] sm:$0xff] }
  0x26   : > { %7994 = vmatmul.msk.f32.gmra.mxu0 %vm667_vm0, %v426_v8  ;;  %8040 = vmatmul.msk.f32.gmra.mxu1 %vm667_vm0, %v472_v9  ;;  %v497_v31 = vld [vmem:[%s9158_s26 + $0x240] sm:$0xff]  ;;  %v518_v34 = vld [vmem:[%s9158_s26 + $0x2e8] sm:$0xff]  ;;  %v499_v38 = vld [vmem:[%s9158_s26 + $0x250] sm:$0xff] }
  0x27   : > { %8060 = vmatmul.msk.f32.gmra.mxu2 %vm667_vm0, %v492_v10  ;;  %8080 = vmatmul.msk.f32.gmra.mxu3 %vm667_vm0, %v512_v11  ;;  %v498_v35 = vld [vmem:[%s9158_s26 + $0x248] sm:$0xff]  ;;  %v433_v36 = vld [vmem:[%s9158_s26 + $0x40] sm:$0xff]  ;;  %v519_v39 = vld [vmem:[%s9158_s26 + $0x2f0] sm:$0xff] }
  0x28   : > { %v434_v40 = vld [vmem:[%s9158_s26 + $0x48] sm:$0xff]  ;;  %v480_v41 = vld [vmem:[%s9158_s26 + $0x1b8] sm:$0xff]  ;;  %v435_v44 = vld [vmem:[%s9158_s26 + $0x50] sm:$0xff] }
  0x29   : > { %v520_v42 = vld [vmem:[%s9158_s26 + $0x2f8] sm:$0xff]  ;;  %v481_v45 = vld [vmem:[%s9158_s26 + $0x1c0] sm:$0xff]  ;;  %v482_v49 = vld [vmem:[%s9158_s26 + $0x1c8] sm:$0xff] }
  0x2a   : > { %v500_v43 = vld [vmem:[%s9158_s26 + $0x258] sm:$0xff]  ;;  %v521_v46 = vld [vmem:[%s9158_s26 + $0x300] sm:$0xff]  ;;  %v502_v50 = vld [vmem:[%s9158_s26 + $0x268] sm:$0xff] }
  0x2b   : > { %v501_v47 = vld [vmem:[%s9158_s26 + $0x260] sm:$0xff]  ;;  %v436_v48 = vld [vmem:[%s9158_s26 + $0x58] sm:$0xff]  ;;  %v522_v51 = vld [vmem:[%s9158_s26 + $0x308] sm:$0xff] }
  0x2c   : > { %v437_v52 = vld [vmem:[%s9158_s26 + $0x60] sm:$0xff]  ;;  %v523_v53 = vld [vmem:[%s9158_s26 + $0x310] sm:$0xff]  ;;  %v524_v56 = vld [vmem:[%s9158_s26 + $0x318] sm:$0xff] }
  0x2d   : > { %v503_v54 = vld [vmem:[%s9158_s26 + $0x270] sm:$0xff]  ;;  %v438_v57 = vld [vmem:[%s9158_s26 + $0x68] sm:$0xff]  ;;  %v484_v58 = vld [vmem:[%s9158_s26 + $0x1d8] sm:$0xff] }
  0x2e   : > { %7995 = vmatmul.msk.f32.gmra.mxu0 %vm667_vm0, %v427_v12  ;;  %8041 = vmatmul.msk.f32.gmra.mxu1 %vm667_vm0, %v473_v13  ;;  %v483_v55 = vld [vmem:[%s9158_s26 + $0x1d0] sm:$0xff]  ;;  %v504_v59 = vld [vmem:[%s9158_s26 + $0x278] sm:$0xff]  ;;  %v485_v61 = vld [vmem:[%s9158_s26 + $0x1e0] sm:$0xff] }
  0x2f   : > { %8061 = vmatmul.msk.f32.gmra.mxu2 %vm667_vm0, %v493_v14  ;;  %8081 = vmatmul.msk.f32.gmra.mxu3 %vm667_vm0, %v513_v15  ;;  %v439_v60 = vld [vmem:[%s9158_s26 + $0x70] sm:$0xff]  ;;  %v505_v62 = vld [vmem:[%s9158_s26 + $0x280] sm:$0xff]  ;;  %v440_v6 = vld [vmem:[%s9158_s26 + $0x78] sm:$0xff] }
  0x30   : > { %v525_v63 = vld [vmem:[%s9158_s26 + $0x320] sm:$0xff]  ;;  %v526_v7 = vld [vmem:[%s9158_s26 + $0x328] sm:$0xff] }
  0x31   : > { %v9290_v5 = vld [vmem:[%s13798_s6] ss:$0 sm:$0xff]  ;;  %v506_v8 = vld [vmem:[%s9158_s26 + $0x288] sm:$0xff] }
  0x36   : > { %7996 = vmatmul.msk.f32.gmra.mxu0 %vm667_vm0, %v428_v16  ;;  %8042 = vmatmul.msk.f32.gmra.mxu1 %vm667_vm0, %v474_v17 }
  0x37   : > { %8082 = vmatmul.msk.f32.gmra.mxu3 %vm667_vm0, %v514_v18  ;;  %8062 = vmatmul.msk.f32.gmra.mxu2 %vm667_vm0, %v494_v19 }
  0x3e   : > { %7997 = vmatmul.msk.f32.gmra.mxu0 %vm667_vm0, %v429_v20  ;;  %8043 = vmatmul.msk.f32.gmra.mxu1 %vm667_vm0, %v475_v21  ;;  %v486_v21 = vld [vmem:[%s9158_s26 + $0x1e8] sm:$0xff] }
  0x3f   : > { %8083 = vmatmul.msk.f32.gmra.mxu3 %vm667_vm0, %v515_v22  ;;  %8063 = vmatmul.msk.f32.gmra.mxu2 %vm667_vm0, %v495_v23  ;;  %v441_v22 = vld [vmem:[%s9158_s26 + $0x80] sm:$0xff] }
  0x46   : > { %7998 = vmatmul.msk.f32.gmra.mxu0 %vm667_vm0, %v430_v24  ;;  %8044 = vmatmul.msk.f32.gmra.mxu1 %vm667_vm0, %v476_v25  ;;  %v527_v24 = vld [vmem:[%s9158_s26 + $0x330] sm:$0xff] }
  0x47   : > { %8064 = vmatmul.msk.f32.gmra.mxu2 %vm667_vm0, %v496_v26  ;;  %8084 = vmatmul.msk.f32.gmra.mxu3 %vm667_vm0, %v516_v27 }
  0x4e   : > { %7999 = vmatmul.msk.f32.gmra.mxu0 %vm667_vm0, %v431_v28  ;;  %8045 = vmatmul.msk.f32.gmra.mxu1 %vm667_vm0, %v477_v29 }
  0x4f   : > { %8085 = vmatmul.msk.f32.gmra.mxu3 %vm667_vm0, %v517_v30  ;;  %8065 = vmatmul.msk.f32.gmra.mxu2 %vm667_vm0, %v497_v31 }
  0x56   : > { %8000 = vmatmul.msk.f32.gmra.mxu0 %vm667_vm0, %v432_v32  ;;  %8046 = vmatmul.msk.f32.gmra.mxu1 %vm667_vm0, %v478_v33 }
  0x57   : > { %8086 = vmatmul.msk.f32.gmra.mxu3 %vm667_vm0, %v518_v34  ;;  %8066 = vmatmul.msk.f32.gmra.mxu2 %vm667_vm0, %v498_v35 }
  0x5e   : > { %8001 = vmatmul.msk.f32.gmra.mxu0 %vm667_vm0, %v433_v36  ;;  %8047 = vmatmul.msk.f32.gmra.mxu1 %vm667_vm0, %v479_v37 }
  0x5f   : > { %8067 = vmatmul.msk.f32.gmra.mxu2 %vm667_vm0, %v499_v38  ;;  %8087 = vmatmul.msk.f32.gmra.mxu3 %vm667_vm0, %v519_v39  ;;  %v487_v39 = vld [vmem:[%s9158_s26 + $0x1f0] sm:$0xff] }
  0x66   : > { %8002 = vmatmul.msk.f32.gmra.mxu0 %vm667_vm0, %v434_v40  ;;  %8048 = vmatmul.msk.f32.gmra.mxu1 %vm667_vm0, %v480_v41  ;;  %v442_v40 = vld [vmem:[%s9158_s26 + $0x88] sm:$0xff]  ;;  %v507_v41 = vld [vmem:[%s9158_s26 + $0x290] sm:$0xff] }
  0x67   : > { %8088 = vmatmul.msk.f32.gmra.mxu3 %vm667_vm0, %v520_v42  ;;  %8068 = vmatmul.msk.f32.gmra.mxu2 %vm667_vm0, %v500_v43 }
  0x6e   : > { %8003 = vmatmul.msk.f32.gmra.mxu0 %vm667_vm0, %v435_v44  ;;  %8049 = vmatmul.msk.f32.gmra.mxu1 %vm667_vm0, %v481_v45 }
  0x6f   : > { %8089 = vmatmul.msk.f32.gmra.mxu3 %vm667_vm0, %v521_v46  ;;  %8069 = vmatmul.msk.f32.gmra.mxu2 %vm667_vm0, %v501_v47 }
  0x76   : > { %8004 = vmatmul.msk.f32.gmra.mxu0 %vm667_vm0, %v436_v48  ;;  %8050 = vmatmul.msk.f32.gmra.mxu1 %vm667_vm0, %v482_v49 }
  0x77   : > { %8070 = vmatmul.msk.f32.gmra.mxu2 %vm667_vm0, %v502_v50  ;;  %8090 = vmatmul.msk.f32.gmra.mxu3 %vm667_vm0, %v522_v51 }
  0x7e   : > { %8005 = vmatmul.msk.f32.gmra.mxu0 %vm667_vm0, %v437_v52  ;;  %8051 = vmatmul.msk.f32.gmra.mxu1 %vm667_vm0, %v483_v55 }
  0x7f   : > { %8091 = vmatmul.msk.f32.gmra.mxu3 %vm667_vm0, %v523_v53  ;;  %8071 = vmatmul.msk.f32.gmra.mxu2 %vm667_vm0, %v503_v54 }
  0x86   : > { %8006 = vmatmul.msk.f32.gmra.mxu0 %vm667_vm0, %v438_v57  ;;  %8052 = vmatmul.msk.f32.gmra.mxu1 %vm667_vm0, %v484_v58 }
  0x87   : > { %8092 = vmatmul.msk.f32.gmra.mxu3 %vm667_vm0, %v524_v56  ;;  %8072 = vmatmul.msk.f32.gmra.mxu2 %vm667_vm0, %v504_v59  ;;  %v488_v59 = vld [vmem:[%s9158_s26 + $0x1f8] sm:$0xff] }
  0x8e   : > { %8007 = vmatmul.msk.f32.gmra.mxu0 %vm667_vm0, %v439_v60  ;;  %8053 = vmatmul.msk.f32.gmra.mxu1 %vm667_vm0, %v485_v61  ;;  %v443_v60 = vld [vmem:[%s9158_s26 + $0x90] sm:$0xff]  ;;  %v508_v61 = vld [vmem:[%s9158_s26 + $0x298] sm:$0xff] }
  0x8f   : > { %8073 = vmatmul.msk.f32.gmra.mxu2 %vm667_vm0, %v505_v62  ;;  %8093 = vmatmul.msk.f32.gmra.mxu3 %vm667_vm0, %v525_v63  ;;  %v528_v63 = vld [vmem:[%s9158_s26 + $0x338] sm:$0xff] }
  0x96   : > { %8008 = vmatmul.msk.f32.gmra.mxu0 %vm667_vm0, %v440_v6  ;;  %8054 = vmatmul.msk.f32.gmra.mxu1 %vm667_vm0, %v486_v21 }
  0x97   : > { %8074 = vmatmul.msk.f32.gmra.mxu2 %vm667_vm0, %v506_v8  ;;  %8094 = vmatmul.msk.f32.gmra.mxu3 %vm667_vm0, %v526_v7 }
  0x9b   : > { %v997_v1 = vpop.f32.mrf.mxu0  ;;  %v1135_v2 = vpop.f32.mrf.mxu1 }
  0x9c   : > { %v998_v3 = vadd.f32 %v9283_v0, %v997_v1  ;;  %v1136_v4 = vadd.f32 %v9283_v0, %v1135_v2 }
  0x9e   : > { %v1309_v9 = vmax.f32 %v998_v3, 0.0  ;;  %v1355_v10 = vmax.f32 %v1136_v4, 0.0  ;;  %8009 = vmatmul.msk.f32.gmra.mxu0 %vm667_vm0, %v441_v22  ;;  %8055 = vmatmul.msk.f32.gmra.mxu1 %vm667_vm0, %v487_v39 }
  0x9f   : > { %8095 = vmatmul.msk.f32.gmra.mxu3 %vm667_vm0, %v527_v24  ;;  %8075 = vmatmul.msk.f32.gmra.mxu2 %vm667_vm0, %v507_v41 }
  0xa0   : > { %v1463_v11 = vmul.f32 %v9290_v5, %v1355_v10  ;;  %v1417_v12 = vmul.f32 %v9290_v5, %v1309_v9 }
  0xa2   : > { %v1195_v13 = vpop.f32.mrf.mxu2  ;;  %v1255_v14 = vpop.f32.mrf.mxu3  ;;  %v1659_v15 = vsel %vm667_vm0, %v1463_v11, 0.0  ;;  %v1521_v16 = vsel %vm667_vm0, %v1417_v12, 0.0 }
  0xa3   : > { %v1196_v17 = vadd.f32 %v9283_v0, %v1195_v13  ;;  %v1256_v18 = vadd.f32 %v9283_v0, %v1255_v14  ;;  %1660 = vadd.xlane.f32.xlu1 %v1659_v15  ;;  %1522 = vadd.xlane.f32.xlu0 %v1521_v16  ;;  %v1000_v19 = vpop.f32.mrf.mxu0  ;;  %v1138_v20 = vpop.f32.mrf.mxu1 }
  0xa4   : > { %v1139_v23 = vadd.f32 %v9283_v0, %v1138_v20  ;;  %v1001_v27 = vadd.f32 %v9283_v0, %v1000_v19  ;;  %v509_v19 = vld [vmem:[%s9158_s26 + $0x2a0] sm:$0xff] }
  0xa5   : > { %v1375_v25 = vmax.f32 %v1196_v17, 0.0  ;;  %v1395_v26 = vmax.f32 %v1256_v18, 0.0  ;;  %v489_v17 = vld [vmem:[%s9158_s26 + $0x200] sm:$0xff]  ;;  %v444_v18 = vld [vmem:[%s9158_s26 + $0x98] sm:$0xff] }
  0xa6   : > { %v1356_v29 = vmax.f32 %v1139_v23, 0.0  ;;  %v1310_v33 = vmax.f32 %v1001_v27, 0.0  ;;  %8010 = vmatmul.msk.f32.gmra.mxu0 %vm667_vm0, %v442_v40  ;;  %8056 = vmatmul.msk.f32.gmra.mxu1 %vm667_vm0, %v488_v59 }
  0xa7   : > { %v1503_v28 = vmul.f32 %v9290_v5, %v1395_v26  ;;  %v1483_v30 = vmul.f32 %v9290_v5, %v1375_v25  ;;  %8076 = vmatmul.msk.f32.gmra.mxu2 %vm667_vm0, %v508_v61  ;;  %8096 = vmatmul.msk.f32.gmra.mxu3 %vm667_vm0, %v528_v63 }
  0xa8   : > { %v1464_v37 = vmul.f32 %v9290_v5, %v1356_v29  ;;  %v1418_v46 = vmul.f32 %v9290_v5, %v1310_v33 }
  0xa9   : > { %v1779_v31 = vsel %vm667_vm0, %v1503_v28, 0.0  ;;  %v1719_v35 = vsel %vm667_vm0, %v1483_v30, 0.0 }
  0xaa   : > { %v1258_v32 = vpop.f32.mrf.mxu3  ;;  %1780 = vadd.xlane.f32.xlu2 %v1779_v31  ;;  %v1198_v34 = vpop.f32.mrf.mxu2  ;;  %v1662_v47 = vsel %vm667_vm0, %v1464_v37, 0.0  ;;  %v1524_v54 = vsel %vm667_vm0, %v1418_v46, 0.0  ;;  %v490_v37 = vld [vmem:[%s9158_s26 + $0x208] sm:$0xff] }
  0xab   : > { %v1199_v36 = vadd.f32 %v9283_v0, %v1198_v34  ;;  %1720 = vadd.xlane.f32.xlu0 %v1719_v35  ;;  %v1003_v38 = vpop.f32.mrf.mxu0  ;;  %v1141_v43 = vpop.f32.mrf.mxu1  ;;  %v1259_v45 = vadd.f32 %v9283_v0, %v1258_v32 }
  0xac   : > { %v1004_v42 = vadd.f32 %v9283_v0, %v1003_v38  ;;  %v1142_v62 = vadd.f32 %v9283_v0, %v1141_v43  ;;  %v445_v38 = vld [vmem:[%s9158_s26 + $0xa0] sm:$0xff] }
  0xad   : > { %v1376_v44 = vmax.f32 %v1199_v36, 0.0  ;;  %v1396_v51 = vmax.f32 %v1259_v45, 0.0 }
  0xae   : > { %v1311_v49 = vmax.f32 %v1004_v42, 0.0  ;;  %8011 = vmatmul.msk.f32.gmra.mxu0 %vm667_vm0, %v443_v60  ;;  %v1357_v8 = vmax.f32 %v1142_v62, 0.0  ;;  %8057 = vmatmul.msk.f32.gmra.mxu1 %vm667_vm0, %v489_v17 }
  0xaf   : > { %v1484_v48 = vmul.f32 %v9290_v5, %v1376_v44  ;;  %v1504_v2 = vmul.f32 %v9290_v5, %v1396_v51  ;;  %8077 = vmatmul.msk.f32.gmra.mxu2 %vm667_vm0, %v509_v19 }
  0xb0   : > { %v1419_v58 = vmul.f32 %v9290_v5, %v1311_v49  ;;  %v1465_v22 = vmul.f32 %v9290_v5, %v1357_v8 }
  0xb1   : > { %v1722_v50 = vsel %vm667_vm0, %v1484_v48, 0.0  ;;  %v1782_v11 = vsel %vm667_vm0, %v1504_v2, 0.0 }
  0xb2   : > { %v1201_v52 = vpop.f32.mrf.mxu2  ;;  %v1261_v53 = vpop.f32.mrf.mxu3  ;;  %1663 = vadd.xlane.f32.xlu2 %v1662_v47  ;;  %1723 = vadd.xlane.f32.xlu1 %v1722_v50  ;;  %v1527_v7 = vsel %vm667_vm0, %v1419_v58, 0.0  ;;  %v1665_v29 = vsel %vm667_vm0, %v1465_v22, 0.0 }
  0xb3   : > { %v1202_v55 = vadd.f32 %v9283_v0, %v1201_v52  ;;  %v1262_v56 = vadd.f32 %v9283_v0, %v1261_v53  ;;  %1525 = vadd.xlane.f32.xlu0 %v1524_v54  ;;  %v1006_v57 = vpop.f32.mrf.mxu0  ;;  %v1144_v3 = vpop.f32.mrf.mxu1  ;;  %v446_v54 = vld [vmem:[%s9158_s26 + $0xa8] sm:$0xff] }
  0xb4   : > { %v1007_v14 = vadd.f32 %v9283_v0, %v1006_v57  ;;  %v1145_v33 = vadd.f32 %v9283_v0, %v1144_v3 }
  0xb5   : > { %v1377_v1 = vmax.f32 %v1202_v55, 0.0  ;;  %v1397_v4 = vmax.f32 %v1262_v56, 0.0  ;;  %v510_v55 = vld [vmem:[%s9158_s26 + $0x2a8] sm:$0xff] }
  0xb6   : > { %8012 = vmatmul.msk.f32.gmra.mxu0 %vm667_vm0, %v444_v18  ;;  %v1312_v24 = vmax.f32 %v1007_v14, 0.0  ;;  %8058 = vmatmul.msk.f32.gmra.mxu1 %vm667_vm0, %v490_v37  ;;  %v1358_v42 = vmax.f32 %v1145_v33, 0.0 }
  0xb7   : > { %v1485_v6 = vmul.f32 %v9290_v5, %v1377_v1  ;;  %v1505_v16 = vmul.f32 %v9290_v5, %v1397_v4  ;;  %8078 = vmatmul.msk.f32.gmra.mxu2 %vm667_vm0, %v510_v55 }
  0xb8   : > { %v1420_v36 = vmul.f32 %v9290_v5, %v1312_v24  ;;  %v1466_v53 = vmul.f32 %v9290_v5, %v1358_v42 }
  0xb9   : > { %v1725_v9 = vsel %vm667_vm0, %v1485_v6, 0.0  ;;  %v1785_v27 = vsel %vm667_vm0, %v1505_v16, 0.0 }
  0xba   : > { %v1264_v10 = vpop.f32.mrf.mxu3  ;;  %1726 = vadd.xlane.f32.xlu2 %v1725_v9  ;;  %1528 = vadd.xlane.f32.xlu1 %v1527_v7  ;;  %v1204_v12 = vpop.f32.mrf.mxu2  ;;  %v1530_v45 = vsel %vm667_vm0, %v1420_v36, 0.0  ;;  %v1668_v62 = vsel %vm667_vm0, %v1466_v53, 0.0 }
  0xbb   : > { %v1265_v13 = vadd.f32 %v9283_v0, %v1264_v10  ;;  %1783 = vadd.xlane.f32.xlu0 %v1782_v11  ;;  %v1009_v15 = vpop.f32.mrf.mxu0  ;;  %v1205_v21 = vadd.f32 %v9283_v0, %v1204_v12  ;;  %v1147_v30 = vpop.f32.mrf.mxu1 }
  0xbc   : > { %v1010_v20 = vadd.f32 %v9283_v0, %v1009_v15  ;;  %v1148_v34 = vadd.f32 %v9283_v0, %v1147_v30 }
  0xbd   : > { %v1398_v23 = vmax.f32 %v1265_v13, 0.0  ;;  %v1378_v28 = vmax.f32 %v1205_v21, 0.0 }
  0xbe   : > { %v1313_v26 = vmax.f32 %v1010_v20, 0.0  ;;  %8013 = vmatmul.msk.f32.gmra.mxu0 %vm667_vm0, %v445_v38  ;;  %v1359_v43 = vmax.f32 %v1148_v34, 0.0 }
  0xbf   : > { %v1506_v25 = vmul.f32 %v9290_v5, %v1398_v23  ;;  %v1486_v40 = vmul.f32 %v9290_v5, %v1378_v28 }
  0xc0   : > { %v1421_v35 = vmul.f32 %v9290_v5, %v1313_v26  ;;  %v1467_v52 = vmul.f32 %v9290_v5, %v1359_v43 }
  0xc1   : > { %v1788_v31 = vsel %vm667_vm0, %v1506_v25, 0.0  ;;  %v1728_v47 = vsel %vm667_vm0, %v1486_v40, 0.0 }
  0xc2   : > { %1789 = vadd.xlane.f32.xlu2 %v1788_v31  ;;  %1786 = vadd.xlane.f32.xlu1 %v1785_v27  ;;  %v1267_v32 = vpop.f32.mrf.mxu3  ;;  %v1207_v41 = vpop.f32.mrf.mxu2  ;;  %v1533_v44 = vsel %vm667_vm0, %v1421_v35, 0.0  ;;  %v1671_v61 = vsel %vm667_vm0, %v1467_v52, 0.0 }
  0xc3   : > { %1666 = vadd.xlane.f32.xlu0 %v1665_v29  ;;  %v1268_v39 = vadd.f32 %v9283_v0, %v1267_v32  ;;  %v1012_v48 = vpop.f32.mrf.mxu0  ;;  %v1150_v49 = vpop.f32.mrf.mxu1  ;;  %v1208_v51 = vadd.f32 %v9283_v0, %v1207_v41 }
  0xc4   : > { %v1013_v50 = vadd.f32 %v9283_v0, %v1012_v48  ;;  %v1151_v56 = vadd.f32 %v9283_v0, %v1150_v49 }
  0xc5   : > { %v1399_v46 = vmax.f32 %v1268_v39, 0.0  ;;  %v1379_v60 = vmax.f32 %v1208_v51, 0.0 }
  0xc6   : > { %8014 = vmatmul.msk.f32.gmra.mxu0 %vm667_vm0, %v446_v54  ;;  %v1314_v59 = vmax.f32 %v1013_v50, 0.0  ;;  %v1360_v63 = vmax.f32 %v1151_v56, 0.0 }
  0xc7   : > { %v1507_v57 = vmul.f32 %v9290_v5, %v1399_v46  ;;  %v1487_v8 = vmul.f32 %v9290_v5, %v1379_v60 }
  0xc8   : > { %v1422_v7 = vmul.f32 %v9290_v5, %v1314_v59  ;;  %v1468_v10 = vmul.f32 %v9290_v5, %v1360_v63 }
  0xc9   : > { %v1791_v1 = vsel %vm667_vm0, %v1507_v57, 0.0  ;;  %v1731_v15 = vsel %vm667_vm0, %v1487_v8, 0.0 }
  0xca   : > { %1534 = vadd.xlane.f32.xlu2 %v1533_v44  ;;  %1531 = vadd.xlane.f32.xlu1 %v1530_v45  ;;  %v1270_v58 = vpop.f32.mrf.mxu3  ;;  %v1210_v2 = vpop.f32.mrf.mxu2  ;;  %v1536_v14 = vsel %vm667_vm0, %v1422_v7, 0.0  ;;  %v1674_v17 = vsel %vm667_vm0, %v1468_v10, 0.0 }
  0xcb   : > { %1729 = vadd.xlane.f32.xlu0 %v1728_v47  ;;  %v1015_v3 = vpop.f32.mrf.mxu0  ;;  %v1211_v4 = vadd.f32 %v9283_v0, %v1210_v2  ;;  %v1271_v6 = vadd.f32 %v9283_v0, %v1270_v58  ;;  %v1153_v11 = vpop.f32.mrf.mxu1 }
  0xcc   : > { %v1016_v9 = vadd.f32 %v9283_v0, %v1015_v3  ;;  %v1154_v20 = vadd.f32 %v9283_v0, %v1153_v11 }
  0xcd   : > { %v1380_v12 = vmax.f32 %v1211_v4, 0.0  ;;  %v1400_v13 = vmax.f32 %v1271_v6, 0.0 }
  0xce   : > { %v1315_v16 = vmax.f32 %v1016_v9, 0.0  ;;  %v1361_v27 = vmax.f32 %v1154_v20, 0.0 }
  0xcf   : > { %v1488_v22 = vmul.f32 %v9290_v5, %v1380_v12  ;;  %v1508_v23 = vmul.f32 %v9290_v5, %v1400_v13 }
  0xd0   : > { %v1423_v25 = vmul.f32 %v9290_v5, %v1315_v16  ;;  %v1469_v38 = vmul.f32 %v9290_v5, %v1361_v27 }
  0xd1   : > { %v1734_v29 = vsel %vm667_vm0, %v1488_v22, 0.0  ;;  %v1794_v30 = vsel %vm667_vm0, %v1508_v23, 0.0 }
  0xd2   : > { %1672 = vadd.xlane.f32.xlu2 %v1671_v61  ;;  %1669 = vadd.xlane.f32.xlu1 %v1668_v62  ;;  %v1273_v18 = vpop.f32.mrf.mxu3  ;;  %v1213_v19 = vpop.f32.mrf.mxu2  ;;  %v1539_v32 = vsel %vm667_vm0, %v1423_v25, 0.0  ;;  %v1677_v45 = vsel %vm667_vm0, %v1469_v38, 0.0 }
  0xd3   : > { %1792 = vadd.xlane.f32.xlu0 %v1791_v1  ;;  %v1274_v21 = vadd.f32 %v9283_v0, %v1273_v18  ;;  %v1214_v24 = vadd.f32 %v9283_v0, %v1213_v19  ;;  %v1018_v26 = vpop.f32.mrf.mxu0  ;;  %v1156_v33 = vpop.f32.mrf.mxu1 }
  0xd4   : > { %v1019_v35 = vadd.f32 %v9283_v0, %v1018_v26  ;;  %v1157_v36 = vadd.f32 %v9283_v0, %v1156_v33 }
  0xd5   : > { %v1401_v28 = vmax.f32 %v1274_v21, 0.0  ;;  %v1381_v31 = vmax.f32 %v1214_v24, 0.0 }
  0xd6   : > { %v1316_v42 = vmax.f32 %v1019_v35, 0.0  ;;  %v1362_v43 = vmax.f32 %v1157_v36, 0.0 }
  0xd7   : > { %v1509_v37 = vmul.f32 %v9290_v5, %v1401_v28  ;;  %v1489_v40 = vmul.f32 %v9290_v5, %v1381_v31 }
  0xd8   : > { %v1470_v52 = vmul.f32 %v9290_v5, %v1362_v43  ;;  %v1424_v53 = vmul.f32 %v9290_v5, %v1316_v42 }
  0xd9   : > { %v1797_v44 = vsel %vm667_vm0, %v1509_v37, 0.0  ;;  %v1737_v47 = vsel %vm667_vm0, %v1489_v40, 0.0 }
  0xda   : > { %1537 = vadd.xlane.f32.xlu2 %v1536_v14  ;;  %1732 = vadd.xlane.f32.xlu1 %v1731_v15  ;;  %v1276_v34 = vpop.f32.mrf.mxu3  ;;  %v1216_v41 = vpop.f32.mrf.mxu2  ;;  %v1680_v59 = vsel %vm667_vm0, %v1470_v52, 0.0  ;;  %v1542_v60 = vsel %vm667_vm0, %v1424_v53, 0.0 }
  0xdb   : > { %1675 = vadd.xlane.f32.xlu0 %v1674_v17  ;;  %v1277_v39 = vadd.f32 %v9283_v0, %v1276_v34  ;;  %v1021_v48 = vpop.f32.mrf.mxu0  ;;  %v1159_v49 = vpop.f32.mrf.mxu1  ;;  %v1217_v51 = vadd.f32 %v9283_v0, %v1216_v41 }
  0xdc   : > { %v1022_v50 = vadd.f32 %v9283_v0, %v1021_v48  ;;  %v1160_v54 = vadd.f32 %v9283_v0, %v1159_v49 }
  0xdd   : > { %v1402_v46 = vmax.f32 %v1277_v39, 0.0  ;;  %v1382_v58 = vmax.f32 %v1217_v51, 0.0 }
  0xde   : > { %v1317_v57 = vmax.f32 %v1022_v50, 0.0  ;;  %v1363_v61 = vmax.f32 %v1160_v54, 0.0 }
  0xdf   : > { %v1510_v55 = vmul.f32 %v9290_v5, %v1402_v46  ;;  %v1490_v6 = vmul.f32 %v9290_v5, %v1382_v58 }
  0xe0   : > { %v1425_v4 = vmul.f32 %v9290_v5, %v1317_v57  ;;  %v1471_v8 = vmul.f32 %v9290_v5, %v1363_v61 }
  0xe1   : > { %v1800_v62 = vsel %vm667_vm0, %v1510_v55, 0.0  ;;  %v1740_v13 = vsel %vm667_vm0, %v1490_v6, 0.0 }
  0xe2   : > { %1735 = vadd.xlane.f32.xlu2 %v1734_v29  ;;  %1795 = vadd.xlane.f32.xlu1 %v1794_v30  ;;  %v1279_v56 = vpop.f32.mrf.mxu3  ;;  %v1219_v63 = vpop.f32.mrf.mxu2  ;;  %v1545_v12 = vsel %vm667_vm0, %v1425_v4, 0.0  ;;  %v1683_v15 = vsel %vm667_vm0, %v1471_v8, 0.0 }
  0xe3   : > { %1540 = vadd.xlane.f32.xlu0 %v1539_v32  ;;  %v1024_v1 = vpop.f32.mrf.mxu0  ;;  %v1220_v2 = vadd.f32 %v9283_v0, %v1219_v63  ;;  %v1280_v3 = vadd.f32 %v9283_v0, %v1279_v56  ;;  %v1162_v9 = vpop.f32.mrf.mxu1 }
  0xe4   : > { %v1025_v7 = vadd.f32 %v9283_v0, %v1024_v1  ;;  %v1163_v18 = vadd.f32 %v9283_v0, %v1162_v9 }
  0xe5   : > { %v1383_v10 = vmax.f32 %v1220_v2, 0.0  ;;  %v1403_v11 = vmax.f32 %v1280_v3, 0.0 }
  0xe6   : > { %v1318_v14 = vmax.f32 %v1025_v7, 0.0  ;;  %v1364_v25 = vmax.f32 %v1163_v18, 0.0 }
  0xe7   : > { %v1491_v20 = vmul.f32 %v9290_v5, %v1383_v10  ;;  %v1511_v21 = vmul.f32 %v9290_v5, %v1403_v11 }
  0xe8   : > { %v1426_v23 = vmul.f32 %v9290_v5, %v1318_v14  ;;  %v1472_v36 = vmul.f32 %v9290_v5, %v1364_v25 }
  0xe9   : > { %v1743_v27 = vsel %vm667_vm0, %v1491_v20, 0.0  ;;  %v1803_v28 = vsel %vm667_vm0, %v1511_v21, 0.0 }
  0xea   : > { %1798 = vadd.xlane.f32.xlu2 %v1797_v44  ;;  %1678 = vadd.xlane.f32.xlu1 %v1677_v45  ;;  %v1282_v16 = vpop.f32.mrf.mxu3  ;;  %v1222_v17 = vpop.f32.mrf.mxu2  ;;  %v1548_v30 = vsel %vm667_vm0, %v1426_v23, 0.0  ;;  %v1686_v43 = vsel %vm667_vm0, %v1472_v36, 0.0 }
  0xeb   : > { %1738 = vadd.xlane.f32.xlu0 %v1737_v47  ;;  %v1283_v19 = vadd.f32 %v9283_v0, %v1282_v16  ;;  %v1223_v22 = vadd.f32 %v9283_v0, %v1222_v17  ;;  %v1027_v24 = vpop.f32.mrf.mxu0  ;;  %v1165_v31 = vpop.f32.mrf.mxu1  ;;  %v447_v17 = vld [vmem:[%s9158_s26 + $0xb0] sm:$0xff] }
  0xec   : > { %v1028_v33 = vadd.f32 %v9283_v0, %v1027_v24  ;;  %v1166_v34 = vadd.f32 %v9283_v0, %v1165_v31  ;;  %8015 = vmatmul.msk.f32.gmra.mxu0 %vm667_vm0, %v447_v17 }
  0xed   : > { %v1404_v26 = vmax.f32 %v1283_v19, 0.0  ;;  %v1384_v29 = vmax.f32 %v1223_v22, 0.0 }
  0xee   : > { %v1319_v40 = vmax.f32 %v1028_v33, 0.0  ;;  %v1365_v41 = vmax.f32 %v1166_v34, 0.0 }
  0xef   : > { %v1512_v35 = vmul.f32 %v9290_v5, %v1404_v26  ;;  %v1492_v38 = vmul.f32 %v9290_v5, %v1384_v29 }
  0xf0   : > { %v1473_v50 = vmul.f32 %v9290_v5, %v1365_v41  ;;  %v1427_v51 = vmul.f32 %v9290_v5, %v1319_v40 }
  0xf1   : > { %v1806_v42 = vsel %vm667_vm0, %v1512_v35, 0.0  ;;  %v1746_v45 = vsel %vm667_vm0, %v1492_v38, 0.0  ;;  %v448_v38 = vld [vmem:[%s9158_s26 + $0xb8] sm:$0xff] }
  0xf2   : > { %1681 = vadd.xlane.f32.xlu2 %v1680_v59  ;;  %1543 = vadd.xlane.f32.xlu1 %v1542_v60  ;;  %v1285_v32 = vpop.f32.mrf.mxu3  ;;  %v1225_v39 = vpop.f32.mrf.mxu2  ;;  %v1689_v57 = vsel %vm667_vm0, %v1473_v50, 0.0  ;;  %v1551_v58 = vsel %vm667_vm0, %v1427_v51, 0.0 }
  0xf3   : > { %1801 = vadd.xlane.f32.xlu0 %v1800_v62  ;;  %v1286_v37 = vadd.f32 %v9283_v0, %v1285_v32  ;;  %v1030_v46 = vpop.f32.mrf.mxu0  ;;  %v1168_v47 = vpop.f32.mrf.mxu1  ;;  %v1226_v49 = vadd.f32 %v9283_v0, %v1225_v39 }
  0xf4   : > { %v1031_v48 = vadd.f32 %v9283_v0, %v1030_v46  ;;  %v1169_v52 = vadd.f32 %v9283_v0, %v1168_v47  ;;  %8016 = vmatmul.msk.f32.gmra.mxu0 %vm667_vm0, %v448_v38 }
  0xf5   : > { %v1405_v44 = vmax.f32 %v1286_v37, 0.0  ;;  %v1385_v56 = vmax.f32 %v1226_v49, 0.0 }
  0xf6   : > { %v1320_v55 = vmax.f32 %v1031_v48, 0.0  ;;  %v1366_v60 = vmax.f32 %v1169_v52, 0.0 }
  0xf7   : > { %v1513_v53 = vmul.f32 %v9290_v5, %v1405_v44  ;;  %v1493_v3 = vmul.f32 %v9290_v5, %v1385_v56 }
  0xf8   : > { %v1428_v2 = vmul.f32 %v9290_v5, %v1320_v55  ;;  %v1474_v6 = vmul.f32 %v9290_v5, %v1366_v60 }
  0xf9   : > { %v1809_v61 = vsel %vm667_vm0, %v1513_v53, 0.0  ;;  %v1749_v11 = vsel %vm667_vm0, %v1493_v3, 0.0  ;;  %v449_v3 = vld [vmem:[%s9158_s26 + $0xc0] sm:$0xff] }
  0xfa   : > { %1546 = vadd.xlane.f32.xlu2 %v1545_v12  ;;  %1741 = vadd.xlane.f32.xlu1 %v1740_v13  ;;  %v1288_v54 = vpop.f32.mrf.mxu3  ;;  %v1228_v59 = vpop.f32.mrf.mxu2  ;;  %v1554_v10 = vsel %vm667_vm0, %v1428_v2, 0.0  ;;  %v1692_v13 = vsel %vm667_vm0, %v1474_v6, 0.0 }
  0xfb   : > { %1684 = vadd.xlane.f32.xlu0 %v1683_v15  ;;  %v1033_v62 = vpop.f32.mrf.mxu0  ;;  %v1229_v63 = vadd.f32 %v9283_v0, %v1228_v59  ;;  %v1289_v1 = vadd.f32 %v9283_v0, %v1288_v54  ;;  %v1171_v8 = vpop.f32.mrf.mxu1 }
  0xfc   : > { %v1034_v4 = vadd.f32 %v9283_v0, %v1033_v62  ;;  %v1172_v18 = vadd.f32 %v9283_v0, %v1171_v8  ;;  %8017 = vmatmul.msk.f32.gmra.mxu0 %vm667_vm0, %v449_v3 }
  0xfd   : > { %v1386_v7 = vmax.f32 %v1229_v63, 0.0  ;;  %v1406_v9 = vmax.f32 %v1289_v1, 0.0 }
  0xfe   : > { %v1321_v12 = vmax.f32 %v1034_v4, 0.0  ;;  %v1367_v24 = vmax.f32 %v1172_v18, 0.0 }
  0xff   : > { %v1494_v16 = vmul.f32 %v9290_v5, %v1386_v7  ;;  %v1514_v20 = vmul.f32 %v9290_v5, %v1406_v9 }
 0x100   : > { %v1429_v22 = vmul.f32 %v9290_v5, %v1321_v12  ;;  %v1475_v35 = vmul.f32 %v9290_v5, %v1367_v24 }
 0x101   : > { %v1752_v26 = vsel %vm667_vm0, %v1494_v16, 0.0 }
 0x102   : > { %1744 = vadd.xlane.f32.xlu2 %v1743_v27  ;;  %1804 = vadd.xlane.f32.xlu1 %v1803_v28  ;;  %v1291_v14 = vpop.f32.mrf.mxu3  ;;  %v1231_v15 = vpop.f32.mrf.mxu2  ;;  %v1812_v27 = vsel %vm667_vm0, %v1514_v20, 0.0  ;;  %v1557_v29 = vsel %vm667_vm0, %v1429_v22, 0.0 }
 0x103   : > { %1549 = vadd.xlane.f32.xlu0 %v1548_v30  ;;  %v1292_v19 = vadd.f32 %v9283_v0, %v1291_v14  ;;  %v1232_v21 = vadd.f32 %v9283_v0, %v1231_v15  ;;  %v1036_v23 = vpop.f32.mrf.mxu0  ;;  %v1174_v30 = vpop.f32.mrf.mxu1 }
 0x104   : > { %v1037_v32 = vadd.f32 %v9283_v0, %v1036_v23  ;;  %v1175_v33 = vadd.f32 %v9283_v0, %v1174_v30 }
 0x105   : > { %v1407_v25 = vmax.f32 %v1292_v19, 0.0  ;;  %v1387_v28 = vmax.f32 %v1232_v21, 0.0 }
 0x106   : > { %v1322_v39 = vmax.f32 %v1037_v32, 0.0  ;;  %v1368_v40 = vmax.f32 %v1175_v33, 0.0 }
 0x107   : > { %v1515_v34 = vmul.f32 %v9290_v5, %v1407_v25  ;;  %v1495_v37 = vmul.f32 %v9290_v5, %v1387_v28 }
 0x108   : > { %v1476_v50 = vmul.f32 %v9290_v5, %v1368_v40  ;;  %v1430_v51 = vmul.f32 %v9290_v5, %v1322_v39 }
 0x109   : > { %v1815_v41 = vsel %vm667_vm0, %v1515_v34, 0.0  ;;  %v1755_v44 = vsel %vm667_vm0, %v1495_v37, 0.0 }
 0x10a   : > { %1807 = vadd.xlane.f32.xlu2 %v1806_v42  ;;  %1687 = vadd.xlane.f32.xlu1 %v1686_v43  ;;  %v1294_v31 = vpop.f32.mrf.mxu3  ;;  %v1695_v42 = vsel %vm667_vm0, %v1475_v35, 0.0  ;;  %v1234_v46 = vpop.f32.mrf.mxu2  ;;  %v1698_v56 = vsel %vm667_vm0, %v1476_v50, 0.0 }
 0x10b   : > { %1747 = vadd.xlane.f32.xlu0 %v1746_v45  ;;  %v1295_v36 = vadd.f32 %v9283_v0, %v1294_v31  ;;  %v1039_v45 = vpop.f32.mrf.mxu0  ;;  %v1177_v47 = vpop.f32.mrf.mxu1  ;;  %v1235_v49 = vadd.f32 %v9283_v0, %v1234_v46 }
 0x10c   : > { %v1040_v48 = vadd.f32 %v9283_v0, %v1039_v45  ;;  %v1178_v52 = vadd.f32 %v9283_v0, %v1177_v47 }
 0x10d   : > { %v1408_v43 = vmax.f32 %v1295_v36, 0.0  ;;  %v1388_v55 = vmax.f32 %v1235_v49, 0.0 }
 0x10e   : > { %v1323_v54 = vmax.f32 %v1040_v48, 0.0 }
 0x10f   : > { %v1516_v53 = vmul.f32 %v9290_v5, %v1408_v43 }
 0x110   : > { %v1431_v60 = vmul.f32 %v9290_v5, %v1323_v54 }
 0x111   : > { %v1818_v59 = vsel %vm667_vm0, %v1516_v53, 0.0 }
 0x112   : > { %1690 = vadd.xlane.f32.xlu2 %v1689_v57  ;;  %1552 = vadd.xlane.f32.xlu1 %v1551_v58  ;;  %v1560_v57 = vsel %vm667_vm0, %v1430_v51, 0.0  ;;  %v1369_v58 = vmax.f32 %v1178_v52, 0.0  ;;  %v1563_v63 = vsel %vm667_vm0, %v1431_v60, 0.0  ;;  %v1237_v4 = vpop.f32.mrf.mxu2  ;;  %v1297_v7 = vpop.f32.mrf.mxu3 }
 0x113   : > { %1810 = vadd.xlane.f32.xlu0 %v1809_v61  ;;  %v1496_v61 = vmul.f32 %v9290_v5, %v1388_v55  ;;  %v1238_v6 = vadd.f32 %v9283_v0, %v1237_v4  ;;  %v1298_v9 = vadd.f32 %v9283_v0, %v1297_v7  ;;  %v1180_v18 = vpop.f32.mrf.mxu1 }
 0x114   : > { %v1477_v62 = vmul.f32 %v9290_v5, %v1369_v58  ;;  %v1181_v21 = vadd.f32 %v9283_v0, %v1180_v18 }
 0x115   : > { %v1758_v1 = vsel %vm667_vm0, %v1496_v61, 0.0  ;;  %v1389_v8 = vmax.f32 %v1238_v6, 0.0 }
 0x116   : > { %v1701_v2 = vsel %vm667_vm0, %v1477_v62, 0.0  ;;  %v1523_v62 = vpop.xlane.xlu0 %1522 }
 0x11a   : > { %1555 = vadd.xlane.f32.xlu2 %v1554_v10  ;;  %1750 = vadd.xlane.f32.xlu1 %v1749_v11  ;;  %v1042_v10 = vpop.f32.mrf.mxu0  ;;  %v1409_v11 = vmax.f32 %v1298_v9, 0.0  ;;  %v1300_v14 = vpop.f32.mrf.mxu3 }
 0x11b   : > { %1693 = vadd.xlane.f32.xlu0 %v1692_v13  ;;  %v1043_v12 = vadd.f32 %v9283_v0, %v1042_v10  ;;  %v1497_v13 = vmul.f32 %v9290_v5, %v1389_v8  ;;  %v1301_v19 = vadd.f32 %v9283_v0, %v1300_v14  ;;  %v1240_v23 = vpop.f32.mrf.mxu2  ;;  %v1183_v33 = vpop.f32.mrf.mxu1 }
 0x11c   : > { %v1517_v17 = vmul.f32 %v9290_v5, %v1409_v11  ;;  %v1184_v38 = vadd.f32 %v9283_v0, %v1183_v33 }
 0x11d   : > { %v1324_v15 = vmax.f32 %v1043_v12, 0.0  ;;  %v1761_v16 = vsel %vm667_vm0, %v1497_v13, 0.0  ;;  %v1410_v24 = vmax.f32 %v1301_v19, 0.0  ;;  %v615_v12 = vld [vmem:[%s9553_s21 + $0x2b0] sm:$0xff]  ;;  %v1781_v13 = vpop.xlane.xlu2 %1780 }
 0x11e   : > { %v1821_v20 = vsel %vm667_vm0, %v1517_v17, 0.0 }
 0x11f   : > { %v1432_v22 = vmul.f32 %v9290_v5, %v1324_v15  ;;  %v1518_v28 = vmul.f32 %v9290_v5, %v1410_v24  ;;  %v9557_v15 = vadd.f32 %v1781_v13, %v615_v12 }
 0x121   : > { %v1566_v25 = vsel %vm667_vm0, %v1432_v22, 0.0  ;;  %v1824_v30 = vsel %vm667_vm0, %v1518_v28, 0.0  ;;  %v2540_v24 = vsel %vm1937_vm1, %v9557_v15, -inf }
 0x122   : > { %1753 = vadd.xlane.f32.xlu2 %v1752_v26  ;;  %1813 = vadd.xlane.f32.xlu1 %v1812_v27  ;;  %v1370_v26 = vmax.f32 %v1181_v21, 0.0  ;;  %v1241_v27 = vadd.f32 %v9283_v0, %v1240_v23  ;;  %v1303_v35 = vpop.f32.mrf.mxu3  ;;  %v1045_v37 = vpop.f32.mrf.mxu0 }
 0x123   : > { %1558 = vadd.xlane.f32.xlu0 %v1557_v29  ;;  %v1046_v39 = vadd.f32 %v9283_v0, %v1045_v37  ;;  %v1304_v40 = vadd.f32 %v9283_v0, %v1303_v35  ;;  %v1243_v50 = vpop.f32.mrf.mxu2  ;;  %v1186_v54 = vpop.f32.mrf.mxu1 }
 0x124   : > { %v1390_v29 = vmax.f32 %v1241_v27, 0.0  ;;  %v1478_v31 = vmul.f32 %v9290_v5, %v1370_v26  ;;  %v1244_v53 = vadd.f32 %v9283_v0, %v1243_v50  ;;  %v1187_v55 = vadd.f32 %v9283_v0, %v1186_v54 }
 0x125   : > { %v1411_v43 = vmax.f32 %v1304_v40, 0.0  ;;  %v1664_v12 = vpop.xlane.xlu2 %1663 }
 0x126   : > { %v1704_v32 = vsel %vm667_vm0, %v1478_v31, 0.0  ;;  %v1498_v34 = vmul.f32 %v9290_v5, %v1390_v29  ;;  %v1372_v58 = vmax.f32 %v1187_v55, 0.0  ;;  %v2541_v29 = vrot.slane %v2540_v24, 4 }
 0x127   : > { %v1519_v47 = vmul.f32 %v9290_v5, %v1411_v43 }
 0x128   : > { %v1764_v36 = vsel %vm667_vm0, %v1498_v34, 0.0  ;;  %v1480_v6 = vmul.f32 %v9290_v5, %v1372_v58  ;;  %v530_v34 = vld [vmem:[%s9553_s21 + $0x8] sm:$0xff] }
 0x129   : > { %v1827_v49 = vsel %vm667_vm0, %v1519_v47, 0.0 }
 0x12a   : > { %1816 = vadd.xlane.f32.xlu2 %v1815_v41  ;;  %1696 = vadd.xlane.f32.xlu1 %v1695_v42  ;;  %v1371_v41 = vmax.f32 %v1184_v38, 0.0  ;;  %v1325_v42 = vmax.f32 %v1046_v39, 0.0  ;;  %v1048_v51 = vpop.f32.mrf.mxu0  ;;  %v1710_v8 = vsel %vm667_vm0, %v1480_v6, 0.0  ;;  %v9606_v6 = vld [vmem:[%s13797_s5] ss:$0 sm:$0xff] }
 0x12b   : > { %1756 = vadd.xlane.f32.xlu0 %v1755_v44  ;;  %v1049_v52 = vadd.f32 %v9283_v0, %v1048_v51  ;;  %v1189_v9 = vpop.f32.mrf.mxu1 }
 0x12c   : > { %v1479_v44 = vmul.f32 %v9290_v5, %v1371_v41  ;;  %v1433_v45 = vmul.f32 %v9290_v5, %v1325_v42  ;;  %v1190_v33 = vadd.f32 %v9283_v0, %v1189_v9  ;;  %v595_v42 = vld [vmem:[%s9553_s21 + $0x210] sm:$0xff] }
 0x12e   : > { %v1707_v46 = vsel %vm667_vm0, %v1479_v44, 0.0  ;;  %v1569_v48 = vsel %vm667_vm0, %v1433_v45, 0.0  ;;  %v1373_v41 = vmax.f32 %v1190_v33, 0.0  ;;  %v575_v45 = vld [vmem:[%s9553_s21 + $0x170] sm:$0xff] }
 0x132   : > { %1699 = vadd.xlane.f32.xlu2 %v1698_v56  ;;  %1561 = vadd.xlane.f32.xlu1 %v1560_v57  ;;  %v1326_v56 = vmax.f32 %v1049_v52, 0.0  ;;  %v1391_v57 = vmax.f32 %v1244_v53, 0.0 }
 0x133   : > { %1819 = vadd.xlane.f32.xlu0 %v1818_v59  ;;  %v1246_v59 = vpop.f32.mrf.mxu2  ;;  %v1192_v27 = vpop.f32.mrf.mxu1 }
 0x134   : > { %v1434_v60 = vmul.f32 %v9290_v5, %v1326_v56  ;;  %v1499_v61 = vmul.f32 %v9290_v5, %v1391_v57  ;;  %v1247_v3 = vadd.f32 %v9283_v0, %v1246_v59  ;;  %v1193_v31 = vadd.f32 %v9283_v0, %v1192_v27 }
 0x136   : > { %v1767_v4 = vsel %vm667_vm0, %v1499_v61, 0.0  ;;  %v1392_v11 = vmax.f32 %v1247_v3, 0.0  ;;  %v1374_v38 = vmax.f32 %v1193_v31, 0.0 }
 0x138   : > { %v1500_v18 = vmul.f32 %v9290_v5, %v1392_v11  ;;  %v576_v11 = vld [vmem:[%s9553_s21 + $0x178] sm:$0xff] }
 0x13a   : > { %1564 = vadd.xlane.f32.xlu2 %v1563_v63  ;;  %1759 = vadd.xlane.f32.xlu1 %v1758_v1  ;;  %v1306_v63 = vpop.f32.mrf.mxu3  ;;  %v1572_v1 = vsel %vm667_vm0, %v1434_v60, 0.0  ;;  %v1770_v22 = vsel %vm667_vm0, %v1500_v18, 0.0  ;;  %v450_v60 = vld [vmem:[%s9158_s26 + $0xc8] sm:$0xff]  ;;  %v616_v18 = vld [vmem:[%s9553_s21 + $0x2b8] sm:$0xff] }
 0x13b   : > { %1702 = vadd.xlane.f32.xlu0 %v1701_v2  ;;  %v1051_v2 = vpop.f32.mrf.mxu0  ;;  %v1307_v7 = vadd.f32 %v9283_v0, %v1306_v63  ;;  %8018 = vmatmul.msk.f32.gmra.mxu0 %vm667_vm0, %v450_v60 }
 0x13c   : > { %v1052_v10 = vadd.f32 %v9283_v0, %v1051_v2 }
 0x13d   : > { %v1412_v14 = vmax.f32 %v1307_v7, 0.0 }
 0x13e   : > { %v1327_v17 = vmax.f32 %v1052_v10, 0.0 }
 0x13f   : > { %v1520_v19 = vmul.f32 %v9290_v5, %v1412_v14 }
 0x141   : > { %v1830_v23 = vsel %vm667_vm0, %v1520_v19, 0.0 }
 0x142   : > { %1762 = vadd.xlane.f32.xlu2 %v1761_v16  ;;  %1822 = vadd.xlane.f32.xlu1 %v1821_v20  ;;  %v1721_v16 = vpop.xlane.xlu0 %1720  ;;  %v529_v20 = vld [vmem:[%s9553_s21] sm:$0xff] }
 0x143   : > { %1567 = vadd.xlane.f32.xlu0 %v1566_v25  ;;  %v1054_v21 = vpop.f32.mrf.mxu0  ;;  %v1435_v25 = vmul.f32 %v9290_v5, %v1327_v17  ;;  %v9567_v26 = vadd.f32 %v1523_v62, %v529_v20 }
 0x145   : > { %v1575_v28 = vsel %vm667_vm0, %v1435_v25, 0.0 }
 0x14a   : > { %1825 = vadd.xlane.f32.xlu2 %v1824_v30  ;;  %1705 = vadd.xlane.f32.xlu1 %v1704_v32  ;;  %v1249_v30 = vpop.f32.mrf.mxu2  ;;  %v1938_v32 = vsel %vm1937_vm1, %v9567_v26, -inf  ;;  %v1526_v35 = vpop.xlane.xlu0 %1525 }
 0x14b   : > { %1765 = vadd.xlane.f32.xlu0 %v1764_v36  ;;  %v1250_v5 = vadd.f32 %v9283_v0, %v1249_v30  ;;  %v2542_v36 = vmax.f32 %v2540_v24, %v2541_v29  ;;  %v1939_v37 = vrot.slane %v1938_v32, 4  ;;  %v1057_v39 = vpop.f32.mrf.mxu0  ;;  %v9576_v40 = vadd.f32 %v1526_v35, %v530_v34 }
 0x14c   : > { %v1058_v7 = vadd.f32 %v9606_v6, %v1057_v39 }
 0x14d   : > { %v1393_v43 = vmax.f32 %v1250_v5, 0.0  ;;  %v2543_v44 = vrot.slane %v2542_v36, 2  ;;  %v1940_v47 = vmax.f32 %v1938_v32, %v1939_v37  ;;  %v1945_v50 = vsel %vm1937_vm1, %v9576_v40, -inf }
 0x14e   : > { %v1946_v58 = vrot.slane %v1945_v50, 4  ;;  %v1329_v20 = vmax.f32 %v1058_v7, 0.0 }
 0x14f   : > { %v2544_v55 = vmax.f32 %v2542_v36, %v2543_v44  ;;  %v1941_v57 = vrot.slane %v1940_v47, 2 }
 0x151   : > { %v1942_v2 = vmax.f32 %v1940_v47, %v1941_v57  ;;  %v1727_v47 = vpop.xlane.xlu2 %1726 }
 0x152   : > { %1708 = vadd.xlane.f32.xlu2 %v1707_v46  ;;  %1570 = vadd.xlane.f32.xlu1 %v1569_v48  ;;  %v1661_v46 = vpop.xlane.xlu1 %1660  ;;  %v9583_v48 = vld [vmem:[%s13798_s6] ss:$0 sm:$0xff]  ;;  %v1784_v19 = vpop.xlane.xlu0 %1783 }
 0x153   : > { %1828 = vadd.xlane.f32.xlu0 %v1827_v49  ;;  %v1482_v0 = vmul.f32 %v9583_v48, %v1374_v38  ;;  %v9586_v49 = vadd.f32 %v1721_v16, %v595_v42  ;;  %v1481_v51 = vmul.f32 %v9583_v48, %v1373_v41  ;;  %v1501_v53 = vmul.f32 %v9583_v48, %v1393_v43  ;;  %v1060_v62 = vpop.f32.mrf.mxu0  ;;  %v1252_v27 = vpop.f32.mrf.mxu2 }
 0x154   : > { %v9593_v54 = vadd.f32 %v1661_v46, %v575_v45  ;;  %v1061_v9 = vadd.f32 %v9606_v6, %v1060_v62  ;;  %v1943_v14 = vrot.slane %v1942_v2, 1  ;;  %v1437_v32 = vmul.f32 %v9583_v48, %v1329_v20  ;;  %v597_v46 = vld [vmem:[%s9553_s21 + $0x220] sm:$0xff] }
 0x155   : > { %v1716_v52 = vsel %vm667_vm0, %v1482_v0, 0.0  ;;  %v1713_v56 = vsel %vm667_vm0, %v1481_v51, 0.0  ;;  %v1773_v59 = vsel %vm667_vm0, %v1501_v53, 0.0  ;;  %v2400_v61 = vsel %vm1937_vm1, %v9586_v49, -inf }
 0x156   : > { %v2260_v63 = vsel %vm1937_vm1, %v9593_v54, -inf  ;;  %v2401_v3 = vrot.slane %v2400_v61, 4  ;;  %v1330_v24 = vmax.f32 %v1061_v9, 0.0  ;;  %v1944_v29 = vmax.f32 %v1942_v2, %v1943_v14 }
 0x157   : > { %v2261_v10 = vrot.slane %v2260_v63, 4  ;;  %v1253_v34 = vadd.f32 %v9606_v6, %v1252_v27 }
 0x158   : > { %v2402_v16 = vmax.f32 %v2400_v61, %v2401_v3  ;;  %v1438_v5 = vmul.f32 %v9583_v48, %v1330_v24  ;;  %v2666_v42 = vsub.f32 %v9567_v26, %v1944_v29 }
 0x159   : > { %v2262_v25 = vmax.f32 %v2260_v63, %v2261_v10  ;;  %v1394_v0 = vmax.f32 %v1253_v34, 0.0 }
 0x15a   : > { %1573 = vadd.xlane.f32.xlu2 %v1572_v1  ;;  %1768 = vadd.xlane.f32.xlu1 %v1767_v4  ;;  %v2545_v1 = vrot.slane %v2544_v55, 1  ;;  %v1947_v4 = vmax.f32 %v1945_v50, %v1946_v58  ;;  %v2403_v30 = vrot.slane %v2402_v16, 2  ;;  %v1584_v41 = vsel %vm667_vm0, %v1438_v5, 0.0  ;;  %v577_v58 = vld [vmem:[%s9553_s21 + $0x180] sm:$0xff]  ;;  %v1667_v26 = vpop.xlane.xlu0 %1666 }
 0x15b   : > { %1711 = vadd.xlane.f32.xlu0 %v1710_v8  ;;  %v1055_v8 = vadd.f32 %v9606_v6, %v1054_v21  ;;  %v2263_v36 = vrot.slane %v2262_v25, 2  ;;  %v2770_v53 = vmul.f32 1.442695, %v2666_v42  ;;  %v9637_v63 = vadd.f32 %v1667_v26, %v577_v58 }
 0x15c   : > { %v2546_v13 = vmax.f32 %v2544_v55, %v2545_v1  ;;  %v1948_v17 = vrot.slane %v1947_v4, 2  ;;  %v2404_v43 = vmax.f32 %v2402_v16, %v2403_v30 }
 0x15d   : > { %v2264_v51 = vmax.f32 %v2262_v25, %v2263_v36 }
 0x15e   : > { %v2752_v21 = vsub.f32 %v9557_v15, %v2546_v13  ;;  %v1949_v31 = vmax.f32 %v1947_v4, %v1948_v17  ;;  %v1581_v15 = vsel %vm667_vm0, %v1437_v32, 0.0  ;;  %v2405_v55 = vrot.slane %v2404_v43, 1 }
 0x15f   : > { %v2265_v61 = vrot.slane %v2264_v51, 1 }
 0x160   : > { %v2942_v37 = vmul.f32 1.442695, %v2752_v21  ;;  %v1950_v45 = vrot.slane %v1949_v31, 1  ;;  %v2406_v2 = vmax.f32 %v2404_v43, %v2405_v55 }
 0x161   : > { %v2266_v10 = vmax.f32 %v2264_v51, %v2265_v61  ;;  %v451_v51 = vld [vmem:[%s9158_s26 + $0xd0] sm:$0xff] }
 0x162   : > { %1771 = vadd.xlane.f32.xlu2 %v1770_v22  ;;  %1831 = vadd.xlane.f32.xlu1 %v1830_v23  ;;  %v9613_v22 = vadd.f32 %v1664_v12, %v576_v11  ;;  %v1328_v23 = vmax.f32 %v1055_v8, 0.0  ;;  %8388 = vpow2.f32 %v2942_v37  ;;  %v1951_v57 = vmax.f32 %v1949_v31, %v1950_v45 }
 0x163   : > { %1576 = vadd.xlane.f32.xlu0 %v1575_v28  ;;  %v9616_v28 = vadd.f32 %v1784_v19, %v616_v18  ;;  %8390 = vpow2.f32 %v2770_v53  ;;  %v2274_v11 = vsel %vm1937_vm1, %v9637_v63, -inf  ;;  %v2732_v13 = vsub.f32 %v9586_v49, %v2406_v2  ;;  %8019 = vmatmul.msk.f32.gmra.mxu0 %vm667_vm0, %v451_v51 }
 0x164   : > { %v2267_v33 = vsel %vm1937_vm1, %v9613_v22, -inf  ;;  %v1436_v35 = vmul.f32 %v9583_v48, %v1328_v23  ;;  %v2667_v4 = vsub.f32 %v9576_v40, %v1951_v57  ;;  %v2275_v19 = vrot.slane %v2274_v11, 4 }
 0x165   : > { %v2547_v38 = vsel %vm1937_vm1, %v9616_v28, -inf  ;;  %v2268_v44 = vrot.slane %v2267_v33, 4  ;;  %v2712_v23 = vsub.f32 %v9593_v54, %v2266_v10  ;;  %v2902_v24 = vmul.f32 1.442695, %v2732_v13 }
 0x166   : > { %v1578_v39 = vsel %vm667_vm0, %v1436_v35, 0.0  ;;  %v2548_v50 = vrot.slane %v2547_v38, 4  ;;  %v2772_v16 = vmul.f32 1.442695, %v2667_v4  ;;  %v2276_v30 = vmax.f32 %v2274_v11, %v2275_v19 }
 0x167   : > { %v2862_v31 = vmul.f32 1.442695, %v2712_v23  ;;  %v452_v23 = vld [vmem:[%s9158_s26 + $0xd8] sm:$0xff] }
 0x168   : > { %v2549_v60 = vmax.f32 %v2547_v38, %v2548_v50  ;;  %v9641_v7 = vpop.eup %8388  ;;  %8392 = vpow2.f32 %v2772_v16  ;;  %v2277_v36 = vrot.slane %v2276_v30, 2 }
 0x169   : > { %v3580_v12 = vsel %vm1937_vm1, %v9641_v7, 0.0  ;;  %v9648_v17 = vpop.eup %8390  ;;  %8394 = vpow2.f32 %v2902_v24 }
 0x16a   : > { %1717 = vadd.xlane.f32.xlu2 %v1716_v52  ;;  %1714 = vadd.xlane.f32.xlu1 %v1713_v56  ;;  %v9631_v52 = vadd.f32 %v1727_v47, %v597_v46  ;;  %v2269_v56 = vmax.f32 %v2267_v33, %v2268_v44  ;;  %v2550_v9 = vrot.slane %v2549_v60, 2  ;;  %v3581_v20 = vrot.slane %v3580_v12, 4 }
 0x16b   : > { %1774 = vadd.xlane.f32.xlu0 %v1773_v59  ;;  %v1502_v59 = vmul.f32 %v9583_v48, %v1394_v0  ;;  %v2978_v27 = vsel %vm1937_vm1, %v9648_v17, 0.0  ;;  %8396 = vpow2.f32 %v2862_v31  ;;  %v2278_v44 = vmax.f32 %v2276_v30, %v2277_v36  ;;  %8020 = vmatmul.msk.f32.gmra.mxu0 %vm667_vm0, %v452_v23 }
 0x16c   : > { %v2414_v62 = vsel %vm1937_vm1, %v9631_v52, -inf  ;;  %v2270_v3 = vrot.slane %v2269_v56, 2  ;;  %v2551_v40 = vmax.f32 %v2549_v60, %v2550_v9  ;;  %v3582_v49 = vadd.f32 %v3581_v20, %v3580_v12 }
 0x16d   : > { %v1776_v1 = vsel %vm667_vm0, %v1502_v59, 0.0  ;;  %v2415_v8 = vrot.slane %v2414_v62, 4  ;;  %v2979_v32 = vrot.slane %v2978_v27, 4 }
 0x16e   : > { %v2271_v14 = vmax.f32 %v2269_v56, %v2270_v3  ;;  %v2552_v29 = vrot.slane %v2551_v40, 1  ;;  %v9653_v34 = vpop.eup %8392  ;;  %v3583_v54 = vrot.slane %v3582_v49, 2  ;;  %v2279_v56 = vrot.slane %v2278_v44, 1 }
 0x16f   : > { %v2416_v18 = vmax.f32 %v2414_v62, %v2415_v8  ;;  %v2980_v37 = vadd.f32 %v2979_v32, %v2978_v27 }
 0x170   : > { %v2272_v25 = vrot.slane %v2271_v14, 1  ;;  %v2553_v5 = vmax.f32 %v2551_v40, %v2552_v29  ;;  %v3584_v45 = vadd.f32 %v3583_v54, %v3582_v49  ;;  %v2280_v62 = vmax.f32 %v2278_v44, %v2279_v56 }
 0x171   : > { %v2417_v21 = vrot.slane %v2416_v18, 2  ;;  %v2981_v46 = vrot.slane %v2980_v37, 2 }
 0x172   : > { %1582 = vadd.xlane.f32.xlu2 %v1581_v15  ;;  %1579 = vadd.xlane.f32.xlu1 %v1578_v39  ;;  %v2273_v33 = vmax.f32 %v2271_v14, %v2272_v25  ;;  %v13803_v15 = vmov 0   ;;  %v2985_v39 = vsel %vm1937_vm1, %v9653_v34, 0.0  ;;  %v2753_v43 = vsub.f32 %v9616_v28, %v2553_v5 }
 0x173   : > { %1585 = vadd.xlane.f32.xlu0 %v1584_v41  ;;  %v2418_v35 = vmax.f32 %v2416_v18, %v2417_v21  ;;  %8248 = vset.pattern.permute.xlu2 %v13803_v15  ;;  %v9661_v41 = vpop.eup %8394  ;;  %v2986_v0 = vrot.slane %v2985_v39, 4  ;;  %v3585_v57 = vrot.slane %v3584_v45, 1  ;;  %v2982_v26 = vadd.f32 %v2981_v46, %v2980_v37 }
 0x174   : > { %8250 = vset.pattern.permute.xlu0 %v13803_v15  ;;  %v2713_v38 = vsub.f32 %v9613_v22, %v2273_v33  ;;  %8249 = vset.pattern.permute.xlu1 %v13803_v15  ;;  %v3440_v50 = vsel %vm1937_vm1, %v9661_v41, 0.0  ;;  %v9667_v22 = vpop.eup %8396  ;;  %v2944_v55 = vmul.f32 1.442695, %v2753_v43  ;;  %v2714_v11 = vsub.f32 %v9637_v63, %v2280_v62 }
 0x175   : > { %v2419_v42 = vrot.slane %v2418_v35, 1  ;;  %v3441_v58 = vrot.slane %v3440_v50, 4  ;;  %v2987_v28 = vadd.f32 %v2986_v0, %v2985_v39  ;;  %v3300_v59 = vsel %vm1937_vm1, %v9667_v22, 0.0 }
 0x176   : > { %v2864_v47 = vmul.f32 1.442695, %v2713_v38  ;;  %v3586_v60 = vadd.f32 %v3585_v57, %v3584_v45  ;;  %v3301_v2 = vrot.slane %v3300_v59, 4  ;;  %v2866_v40 = vmul.f32 1.442695, %v2714_v11  ;;  %v1724_v45 = vpop.xlane.xlu1 %1723 }
 0x177   : > { %v2420_v53 = vmax.f32 %v2418_v35, %v2419_v42  ;;  %v3442_v3 = vadd.f32 %v3441_v58, %v3440_v50  ;;  %v2988_v4 = vrot.slane %v2987_v28, 2  ;;  %v596_v50 = vld [vmem:[%s9553_s21 + $0x218] sm:$0xff] }
 0x178   : > { %8398 = vpow2.f32 %v2864_v47  ;;  %v3302_v13 = vadd.f32 %v3301_v2, %v3300_v59  ;;  %v1790_v2 = vpop.xlane.xlu2 %1789 }
 0x179   : > { %v2734_v61 = vsub.f32 %v9631_v52, %v2420_v53  ;;  %8400 = vpow2.f32 %v2944_v55  ;;  %v3443_v14 = vrot.slane %v3442_v3, 2  ;;  %v2989_v52 = vadd.f32 %v2988_v4, %v2987_v28 }
 0x17a   : > { %1777 = vadd.xlane.f32.xlu1 %v1776_v1  ;;  %v2983_v1 = vrot.slane %v2982_v26, 1  ;;  %8402 = vrcp.f32 %v3586_v60  ;;  %v3303_v24 = vrot.slane %v3302_v13, 2 }
 0x17b   : > { %v2906_v10 = vmul.f32 1.442695, %v2734_v61  ;;  %v2990_v25 = vrot.slane %v2989_v52, 1  ;;  %v3444_v27 = vadd.f32 %v3443_v14, %v3442_v3 }
 0x17c   : > { %v2984_v8 = vadd.f32 %v2983_v1, %v2982_v26  ;;  %v3304_v33 = vadd.f32 %v3303_v24, %v3302_v13  ;;  %v9697_v26 = vadd.f32 %v1724_v45, %v596_v50 }
 0x17d   : > { %v2991_v49 = vadd.f32 %v2990_v25, %v2989_v52  ;;  %v3445_v31 = vrot.slane %v3444_v27, 1  ;;  %v618_v25 = vld [vmem:[%s9553_s21 + $0x2c8] sm:$0xff] }
 0x17e   : > { %v9673_v9 = vpop.eup %8398  ;;  %8404 = vrcp.f32 %v2984_v8  ;;  %v3305_v36 = vrot.slane %v3304_v33, 1  ;;  %v2407_v1 = vsel %vm1937_vm1, %v9697_v26, -inf  ;;  %v531_v8 = vld [vmem:[%s9553_s21 + $0x10] sm:$0xff] }
 0x17f   : > { %v9676_v12 = vpop.eup %8400  ;;  %v3307_v18 = vsel %vm1937_vm1, %v9673_v9, 0.0  ;;  %8406 = vpow2.f32 %v2906_v10  ;;  %v3446_v5 = vadd.f32 %v3445_v31, %v3444_v27  ;;  %v2408_v11 = vrot.slane %v2407_v1, 4 }
 0x180   : > { %v8403_v16 = vpop.eup %8402  ;;  %v3587_v20 = vsel %vm1937_vm1, %v9676_v12, 0.0  ;;  %v3308_v63 = vrot.slane %v3307_v18, 4  ;;  %8408 = vpow2.f32 %v2866_v40  ;;  %v9706_v24 = vpop.xlane.xlu2 %1534 }
 0x181   : > { %v3896_v19 = vmul.f32 %v8403_v16, %v9641_v7  ;;  %v3588_v29 = vrot.slane %v3587_v20, 4  ;;  %8410 = vrcp.f32 %v2991_v49 }
 0x182   : > { %v3309_v7 = vadd.f32 %v3308_v63, %v3307_v18  ;;  %8412 = vrcp.f32 %v3446_v5  ;;  %v2409_v18 = vmax.f32 %v2407_v1, %v2408_v11 }
 0x183   : > { %v3589_v35 = vadd.f32 %v3588_v29, %v3587_v20  ;;  %v9709_v29 = vadd.f32 %v1790_v2, %v618_v25 }
 0x184   : > { %v8405_v21 = vpop.eup %8404  ;;  %v3310_v38 = vrot.slane %v3309_v7, 2  ;;  %v2410_v63 = vrot.slane %v2409_v18, 2 }
 0x185   : > { %v3810_v30 = vmul.f32 %v8405_v21, %v9648_v17  ;;  %v9686_v32 = vpop.eup %8406  ;;  %v3306_v17 = vadd.f32 %v3305_v36, %v3304_v33  ;;  %v3590_v42 = vrot.slane %v3589_v35, 2  ;;  %v2561_v31 = vsel %vm1937_vm1, %v9709_v29, -inf }
 0x186   : > { %v3454_v54 = vsel %vm1937_vm1, %v9686_v32, 0.0  ;;  %v9690_v37 = vpop.eup %8408  ;;  %v3311_v47 = vadd.f32 %v3310_v38, %v3309_v7  ;;  %v2562_v38 = vrot.slane %v2561_v31, 4 }
 0x187   : > { %4346 = vperm.xlu0 %8250, %v3896_v19   ;;  %v3455_v39 = vrot.slane %v3454_v54, 4  ;;  %8414 = vrcp.f32 %v3306_v17  ;;  %v8411_v43 = vpop.eup %8410  ;;  %v3314_v44 = vsel %vm1937_vm1, %v9690_v37, 0.0  ;;  %v3591_v56 = vadd.f32 %v3590_v42, %v3589_v35  ;;  %v532_v17 = vld [vmem:[%s9553_s21 + $0x18] sm:$0xff] }
 0x188   : > { %v3811_v46 = vmul.f32 %v8411_v43, %v9653_v34  ;;  %v8413_v0 = vpop.eup %8412  ;;  %v3315_v53 = vrot.slane %v3314_v44, 4  ;;  %v3312_v55 = vrot.slane %v3311_v47, 1  ;;  %v1673_v36 = vpop.xlane.xlu2 %1672  ;;  %v2563_v45 = vmax.f32 %v2561_v31, %v2562_v38 }
 0x189   : > { %v3456_v51 = vadd.f32 %v3455_v39, %v3454_v54  ;;  %v3876_v57 = vmul.f32 %v8413_v0, %v9661_v41  ;;  %v3592_v60 = vrot.slane %v3591_v56, 1  ;;  %v1529_v41 = vpop.xlane.xlu1 %1528 }
 0x18a   : > { %3916 = vperm.xlu2 %8248, %v3810_v30   ;;  %v3313_v28 = vadd.f32 %v3312_v55, %v3311_v47  ;;  %v3316_v61 = vadd.f32 %v3315_v53, %v3314_v44  ;;  %v1835_v13 = vadd.f32 %v1529_v41, %v531_v8  ;;  %v2411_v30 = vmax.f32 %v2409_v18, %v2410_v63  ;;  %v617_v47 = vld [vmem:[%s9553_s21 + $0x2c0] sm:$0xff]  ;;  %v1063_v18 = vpop.f32.mrf.mxu0 }
 0x18b   : > { %v3457_v34 = vrot.slane %v3456_v51, 2  ;;  %v3593_v62 = vadd.f32 %v3592_v60, %v3591_v56  ;;  %v2564_v50 = vrot.slane %v2563_v45, 2 }
 0x18c   : > { %8416 = vrcp.f32 %v3313_v28  ;;  %v3317_v3 = vrot.slane %v3316_v61, 2  ;;  %v1952_v19 = vsel %vm1937_vm1, %v1835_v13, -inf  ;;  %v2412_v35 = vrot.slane %v2411_v30, 1 }
 0x18d   : > { %v8415_v58 = vpop.eup %8414  ;;  %8418 = vrcp.f32 %v3593_v62  ;;  %v3458_v4 = vadd.f32 %v3457_v34, %v3456_v51  ;;  %v1953_v21 = vrot.slane %v1952_v19, 4  ;;  %v1730_v62 = vpop.xlane.xlu0 %1729 }
 0x18e   : > { %v3856_v59 = vmul.f32 %v8415_v58, %v9667_v22  ;;  %v3318_v52 = vadd.f32 %v3317_v3, %v3316_v61  ;;  %v2413_v42 = vmax.f32 %v2411_v30, %v2412_v35  ;;  %v2565_v58 = vmax.f32 %v2563_v45, %v2564_v50  ;;  %v598_v61 = vld [vmem:[%s9553_s21 + $0x228] sm:$0xff]  ;;  %v600_v45 = vld [vmem:[%s9553_s21 + $0x238] sm:$0xff] }
 0x18f   : > { %3921 = vperm.xlu0 %8250, %v3811_v46   ;;  %v3459_v14 = vrot.slane %v3458_v4, 1  ;;  %v1954_v49 = vmax.f32 %v1952_v19, %v1953_v21 }
 0x190   : > { %v3319_v23 = vrot.slane %v3318_v52, 1  ;;  %v2566_v34 = vrot.slane %v2565_v58, 1 }
 0x191   : > { %v3460_v20 = vadd.f32 %v3459_v14, %v3458_v4  ;;  %v1787_v27 = vpop.xlane.xlu1 %1786  ;;  %v1955_v5 = vrot.slane %v1954_v49, 2  ;;  %v9734_v4 = vadd.f32 %v1730_v62, %v598_v61 }
 0x192   : > { %4246 = vperm.xlu2 %8248, %v3876_v57   ;;  %v8417_v10 = vpop.eup %8416  ;;  %v9724_v53 = vadd.f32 %v1787_v27, %v617_v47  ;;  %v579_v57 = vld [vmem:[%s9553_s21 + $0x190] sm:$0xff]  ;;  %v2567_v11 = vmax.f32 %v2565_v58, %v2566_v34  ;;  %v1064_v27 = vadd.f32 %v9606_v6, %v1063_v18 }
 0x193   : > { %4146 = vperm.xlu1 %8249, %v3856_v59   ;;  %v3857_v22 = vmul.f32 %v8417_v10, %v9673_v9  ;;  %v8419_v16 = vpop.eup %8418  ;;  %8420 = vrcp.f32 %v3460_v20  ;;  %v3320_v9 = vadd.f32 %v3319_v23, %v3318_v52  ;;  %v1956_v43 = vmax.f32 %v1954_v49, %v1955_v5  ;;  %v578_v52 = vld [vmem:[%s9553_s21 + $0x188] sm:$0xff] }
 0x194   : > { %v3897_v40 = vmul.f32 %v8419_v16, %v9676_v12  ;;  %v2554_v28 = vsel %vm1937_vm1, %v9724_v53, -inf  ;;  %v9729_v59 = vadd.f32 %v1673_v36, %v579_v57  ;;  %v2421_v19 = vsel %vm1937_vm1, %v9734_v4, -inf }
 0x195   : > { %8422 = vrcp.f32 %v3320_v9  ;;  %v1957_v46 = vrot.slane %v1956_v43, 1  ;;  %v2555_v1 = vrot.slane %v2554_v28, 4  ;;  %v2755_v20 = vsub.f32 %v9709_v29, %v2567_v11 }
 0x196   : > { %v2288_v41 = vsel %vm1937_vm1, %v9729_v59, -inf  ;;  %v2422_v30 = vrot.slane %v2421_v19, 4  ;;  %v1331_v29 = vmax.f32 %v1064_v27, 0.0  ;;  %v619_v27 = vld [vmem:[%s9553_s21 + $0x2d0] sm:$0xff] }
 0x197   : > { %4151 = vperm.xlu0 %8250, %v3857_v22   ;;  %v1958_v56 = vmax.f32 %v1956_v43, %v1957_v46  ;;  %v2556_v22 = vmax.f32 %v2554_v28, %v2555_v1  ;;  %v2289_v14 = vrot.slane %v2288_v41, 4  ;;  %v2948_v49 = vmul.f32 1.442695, %v2755_v20 }
 0x199   : > { %v8421_v12 = vpop.eup %8420  ;;  %v1532_v39 = vpop.xlane.xlu1 %1531  ;;  %v2668_v60 = vsub.f32 %v1835_v13, %v1958_v56  ;;  %v2557_v63 = vrot.slane %v2556_v22, 2  ;;  %v2290_v25 = vmax.f32 %v2288_v41, %v2289_v14 }
 0x19a   : > { %4351 = vperm.xlu2 %8248, %v3897_v40   ;;  %v3878_v7 = vmul.f32 %v8421_v12, %v9686_v32  ;;  %v9716_v44 = vadd.f32 %v1532_v39, %v532_v17  ;;  %v2733_v32 = vsub.f32 %v9697_v26, %v2413_v42  ;;  %v1066_v39 = vpop.f32.mrf.mxu0 }
 0x19b   : > { %v8423_v33 = vpop.eup %8422  ;;  %v2774_v3 = vmul.f32 1.442695, %v2668_v60 }
 0x19c   : > { %v3858_v54 = vmul.f32 %v8423_v33, %v9690_v37  ;;  %v1959_v0 = vsel %vm1937_vm1, %v9716_v44, -inf  ;;  %v9722_v37 = vpop.xlane.xlu2 %1537  ;;  %v2904_v51 = vmul.f32 1.442695, %v2733_v32  ;;  %v2291_v33 = vrot.slane %v2290_v25, 2 }
 0x19d   : > { %v1960_v55 = vrot.slane %v1959_v0, 4  ;;  %v1439_v32 = vmul.f32 %v9583_v48, %v1331_v29 }
 0x19e   : > { %8424 = vpow2.f32 %v2904_v51  ;;  %v2292_v43 = vmax.f32 %v2290_v25, %v2291_v33 }
 0x19f   : > { %4256 = vperm.xlu0 %8250, %v3878_v7   ;;  %v1961_v26 = vmax.f32 %v1959_v0, %v1960_v55  ;;  %8426 = vpow2.f32 %v2774_v3  ;;  %v2558_v7 = vmax.f32 %v2556_v22, %v2557_v63  ;;  %v1587_v55 = vsel %vm667_vm0, %v1439_v32, 0.0 }
 0x1a0   : > { %8428 = vpow2.f32 %v2948_v49  ;;  %v2293_v58 = vrot.slane %v2292_v43, 1 }
 0x1a1   : > { %v1962_v2 = vrot.slane %v1961_v26, 2  ;;  %v1670_v16 = vpop.xlane.xlu1 %1669  ;;  %v2559_v42 = vrot.slane %v2558_v7, 1 }
 0x1a2   : > { %4156 = vperm.xlu2 %8248, %v3858_v54   ;;  %v9744_v23 = vadd.f32 %v1670_v16, %v578_v52  ;;  %v2423_v54 = vmax.f32 %v2421_v19, %v2422_v30  ;;  %v1069_v22 = vpop.f32.mrf.mxu0  ;;  %v533_v16 = vld [vmem:[%s9553_s21 + $0x20] sm:$0xff] }
 0x1a3   : > { %v1963_v13 = vmax.f32 %v1961_v26, %v1962_v2  ;;  %v2560_v57 = vmax.f32 %v2558_v7, %v2559_v42  ;;  %v1070_v63 = vadd.f32 %v9606_v6, %v1069_v22  ;;  %v9776_v25 = vadd.f32 %v9706_v24, %v533_v16 }
 0x1a4   : > { %v1736_v8 = vpop.xlane.xlu2 %1735  ;;  %v9736_v10 = vpop.eup %8424  ;;  %v2281_v12 = vsel %vm1937_vm1, %v9744_v23, -inf  ;;  %v2424_v0 = vrot.slane %v2423_v54, 2 }
 0x1a5   : > { %v3447_v40 = vsel %vm1937_vm1, %v9736_v10, 0.0  ;;  %v1964_v21 = vrot.slane %v1963_v13, 1  ;;  %v9749_v31 = vpop.eup %8426  ;;  %v2282_v38 = vrot.slane %v2281_v12, 4  ;;  %v9759_v56 = vadd.f32 %v1736_v8, %v600_v45 }
 0x1a6   : > { %v3448_v9 = vrot.slane %v3447_v40, 4  ;;  %v2992_v17 = vsel %vm1937_vm1, %v9749_v31, 0.0  ;;  %v9761_v28 = vpop.eup %8428  ;;  %v2425_v60 = vmax.f32 %v2423_v54, %v2424_v0  ;;  %v2754_v3 = vsub.f32 %v9724_v53, %v2560_v57 }
 0x1a7   : > { %v1965_v36 = vmax.f32 %v1963_v13, %v1964_v21  ;;  %v2993_v50 = vrot.slane %v2992_v17, 4  ;;  %v2283_v51 = vmax.f32 %v2281_v12, %v2282_v38  ;;  %v2435_v2 = vsel %vm1937_vm1, %v9759_v56, -inf }
 0x1a8   : > { %v3449_v5 = vadd.f32 %v3448_v9, %v3447_v40  ;;  %v3601_v41 = vsel %vm1937_vm1, %v9761_v28, 0.0  ;;  %v2294_v8 = vmax.f32 %v2292_v43, %v2293_v58  ;;  %v2426_v11 = vrot.slane %v2425_v60, 1  ;;  %v1793_v9 = vpop.xlane.xlu0 %1792 }
 0x1a9   : > { %v2669_v47 = vsub.f32 %v9716_v44, %v1965_v36  ;;  %v9763_v34 = vpop.xlane.xlu1 %1732  ;;  %v2994_v62 = vadd.f32 %v2993_v50, %v2992_v17  ;;  %v2284_v44 = vrot.slane %v2283_v51, 2  ;;  %v2436_v18 = vrot.slane %v2435_v2, 4 }
 0x1aa   : > { %v3450_v46 = vrot.slane %v3449_v5, 2  ;;  %v3602_v40 = vrot.slane %v3601_v41, 4  ;;  %v2946_v19 = vmul.f32 1.442695, %v2754_v3  ;;  %v2716_v20 = vsub.f32 %v9729_v59, %v2294_v8 }
 0x1ab   : > { %v2776_v26 = vmul.f32 1.442695, %v2669_v47  ;;  %v2995_v52 = vrot.slane %v2994_v62, 2  ;;  %v2285_v13 = vmax.f32 %v2283_v51, %v2284_v44  ;;  %v2427_v53 = vmax.f32 %v2425_v60, %v2426_v11 }
 0x1ac   : > { %v9751_v35 = vpop.xlane.xlu2 %1798  ;;  %v3451_v61 = vadd.f32 %v3450_v46, %v3449_v5  ;;  %v2437_v49 = vmax.f32 %v2435_v2, %v2436_v18  ;;  %v3603_v33 = vadd.f32 %v3602_v40, %v3601_v41  ;;  %v1067_v5 = vadd.f32 %v9606_v6, %v1066_v39 }
 0x1ad   : > { %8430 = vpow2.f32 %v2776_v26  ;;  %v2286_v30 = vrot.slane %v2285_v13, 1  ;;  %v2996_v12 = vadd.f32 %v2995_v52, %v2994_v62  ;;  %v2870_v59 = vmul.f32 1.442695, %v2716_v20 }
 0x1ae   : > { %v3452_v14 = vrot.slane %v3451_v61, 1  ;;  %8432 = vpow2.f32 %v2946_v19  ;;  %v9784_v36 = vadd.f32 %v1793_v9, %v619_v27  ;;  %v1333_v54 = vmax.f32 %v1070_v63, 0.0 }
 0x1af   : > { %v1966_v38 = vsel %vm1937_vm1, %v9776_v25, -inf  ;;  %v2735_v17 = vsub.f32 %v9734_v4, %v2427_v53  ;;  %v2287_v43 = vmax.f32 %v2285_v13, %v2286_v30  ;;  %v2438_v45 = vrot.slane %v2437_v49, 2  ;;  %v580_v53 = vld [vmem:[%s9553_s21 + $0x198] sm:$0xff] }
 0x1b0   : > { %v3453_v21 = vadd.f32 %v3452_v14, %v3451_v61  ;;  %v2997_v32 = vrot.slane %v2996_v12, 1  ;;  %v3604_v6 = vrot.slane %v3603_v33, 2  ;;  %v1332_v39 = vmax.f32 %v1067_v5, 0.0  ;;  %v1676_v27 = vpop.xlane.xlu0 %1675 }
 0x1b1   : > { %v9781_v29 = vpop.xlane.xlu1 %1795  ;;  %v1967_v46 = vrot.slane %v1966_v38, 4  ;;  %v2568_v47 = vsel %vm1937_vm1, %v9784_v36, -inf  ;;  %v1441_v0 = vmul.f32 %v9583_v48, %v1333_v54  ;;  %v2908_v51 = vmul.f32 1.442695, %v2735_v17 }
 0x1b2   : > { %13877 = vst [vmem:[#allocation5_spill] sm:$0xff] %v9781_v29  ;;  %8434 = vrcp.f32 %v3453_v21  ;;  %v2715_v4 = vsub.f32 %v9744_v23, %v2287_v43  ;;  %v2439_v57 = vmax.f32 %v2437_v49, %v2438_v45  ;;  %v2998_v26 = vadd.f32 %v2997_v32, %v2996_v12 }
 0x1b3   : > { %v9779_v7 = vpop.eup %8430  ;;  %8436 = vpow2.f32 %v2870_v59  ;;  %v1593_v58 = vsel %vm667_vm0, %v1441_v0, 0.0  ;;  %v2569_v61 = vrot.slane %v2568_v47, 4  ;;  %v1440_v62 = vmul.f32 %v9583_v48, %v1332_v39 }
 0x1b4   : > { %v9765_v1 = vpop.xlane.xlu2 %1681  ;;  %v2999_v42 = vsel %vm1937_vm1, %v9779_v7, 0.0  ;;  %v3605_v44 = vadd.f32 %v3604_v6, %v3603_v33  ;;  %v1968_v2 = vmax.f32 %v1966_v38, %v1967_v46  ;;  %8438 = vpow2.f32 %v2908_v51 }
 0x1b5   : > { %v3000_v50 = vrot.slane %v2999_v42, 4  ;;  %v1590_v23 = vsel %vm667_vm0, %v1440_v62, 0.0  ;;  %v2868_v22 = vmul.f32 1.442695, %v2715_v4  ;;  %v2440_v14 = vrot.slane %v2439_v57, 1 }
 0x1b6   : > { %8440 = vrcp.f32 %v2998_v26  ;;  %v2570_v16 = vmax.f32 %v2568_v47, %v2569_v61  ;;  %v3606_v13 = vrot.slane %v3605_v44, 1  ;;  %v1969_v40 = vrot.slane %v1968_v2, 2 }
 0x1b7   : > { %v3001_v3 = vadd.f32 %v3000_v50, %v2999_v42  ;;  %8442 = vpow2.f32 %v2868_v22  ;;  %v2441_v9 = vmax.f32 %v2439_v57, %v2440_v14  ;;  %v9816_v5 = vadd.f32 %v1676_v27, %v580_v53 }
 0x1b8   : > { %v3607_v20 = vadd.f32 %v3606_v13, %v3605_v44  ;;  %v2571_v30 = vrot.slane %v2570_v16, 2  ;;  %v1970_v33 = vmax.f32 %v1968_v2, %v1969_v40 }
 0x1b9   : > { %v9803_v8 = vpop.xlane.xlu1 %1678  ;;  %v3002_v63 = vrot.slane %v3001_v3, 2  ;;  %v2737_v54 = vsub.f32 %v9759_v56, %v2441_v9  ;;  %v2295_v0 = vsel %vm1937_vm1, %v9816_v5, -inf }
 0x1ba   : > { %8444 = vrcp.f32 %v3607_v20  ;;  %v2572_v42 = vmax.f32 %v2570_v16, %v2571_v30  ;;  %v1971_v50 = vrot.slane %v1970_v33, 1  ;;  %v2296_v26 = vrot.slane %v2295_v0, 4 }
 0x1bb   : > { %v3003_v17 = vadd.f32 %v3002_v63, %v3001_v3  ;;  %v2912_v51 = vmul.f32 1.442695, %v2737_v54 }
 0x1bc   : > { %v9786_v24 = vpop.xlane.xlu2 %1546  ;;  %v2573_v57 = vrot.slane %v2572_v42, 1  ;;  %v1972_v2 = vmax.f32 %v1970_v33, %v1971_v50 }
 0x1bd   : > { %1588 = vadd.xlane.f32.xlu1 %v1587_v55  ;;  %v9796_v55 = vpop.eup %8432  ;;  %v3004_v39 = vrot.slane %v3003_v17, 1  ;;  %8446 = vpow2.f32 %v2912_v51 }
 0x1be   : > { %v8435_v60 = vpop.eup %8434  ;;  %v3594_v41 = vsel %vm1937_vm1, %v9796_v55, 0.0  ;;  %v2574_v3 = vmax.f32 %v2572_v42, %v2573_v57  ;;  %v2670_v13 = vsub.f32 %v9776_v25, %v1972_v2  ;;  %v599_v42 = vld [vmem:[%s9553_s21 + $0x230] sm:$0xff]  ;;  %v582_v57 = vld [vmem:[%s9553_s21 + $0x1a8] sm:$0xff] }
 0x1bf   : > { %v9806_v11 = vpop.eup %8436  ;;  %v3877_v48 = vmul.f32 %v8435_v60, %v9736_v10  ;;  %v3595_v18 = vrot.slane %v3594_v41, 4  ;;  %v3005_v60 = vadd.f32 %v3004_v39, %v3003_v17 }
 0x1c0   : > { %v3328_v19 = vsel %vm1937_vm1, %v9806_v11, 0.0  ;;  %v9814_v21 = vpop.eup %8438  ;;  %v2778_v30 = vmul.f32 1.442695, %v2670_v13 }
 0x1c1   : > { %v8441_v49 = vpop.eup %8440  ;;  %v3329_v10 = vrot.slane %v3328_v19, 4  ;;  %v3596_v12 = vadd.f32 %v3595_v18, %v3594_v41  ;;  %v3461_v59 = vsel %vm1937_vm1, %v9814_v21, 0.0  ;;  %v9822_v43 = vpop.xlane.xlu1 %1543  ;;  %8448 = vrcp.f32 %v3005_v60 }
 0x1c2   : > { %v3812_v38 = vmul.f32 %v8441_v49, %v9749_v31  ;;  %v9824_v45 = vpop.eup %8442  ;;  %v3462_v47 = vrot.slane %v3461_v59, 4  ;;  %v453_v31 = vld [vmem:[%s9158_s26 + $0xe0] sm:$0xff] }
 0x1c3   : > { %v3330_v32 = vadd.f32 %v3329_v10, %v3328_v19  ;;  %v3597_v46 = vrot.slane %v3596_v12, 2  ;;  %v8445_v56 = vpop.eup %8444  ;;  %v3321_v4 = vsel %vm1937_vm1, %v9824_v45, 0.0  ;;  %8021 = vmatmul.msk.f32.gmra.mxu0 %vm667_vm0, %v453_v31 }
 0x1c4   : > { %v9808_v52 = vpop.xlane.xlu2 %1744  ;;  %v3463_v61 = vadd.f32 %v3462_v47, %v3461_v59  ;;  %v3899_v62 = vmul.f32 %v8445_v56, %v9761_v28  ;;  %v3322_v41 = vrot.slane %v3321_v4, 4  ;;  %v2756_v28 = vsub.f32 %v9784_v36, %v2574_v3  ;;  %v9841_v20 = vpop.eup %8446  ;;  %v454_v59 = vld [vmem:[%s9158_s26 + $0xe8] sm:$0xff] }
 0x1c5   : > { %v3598_v44 = vadd.f32 %v3597_v46, %v3596_v12  ;;  %v3475_v33 = vsel %vm1937_vm1, %v9841_v20, 0.0  ;;  %v9854_v56 = vadd.f32 %v9763_v34, %v599_v42 }
 0x1c6   : > { %v3464_v14 = vrot.slane %v3463_v61, 2  ;;  %v3323_v18 = vadd.f32 %v3322_v41, %v3321_v4  ;;  %v2950_v12 = vmul.f32 1.442695, %v2756_v28 }
 0x1c7   : > { %v3599_v16 = vrot.slane %v3598_v44, 1  ;;  %v8449_v27 = vpop.eup %8448 }
 0x1c8   : > { %v3465_v9 = vadd.f32 %v3464_v14, %v3463_v61  ;;  %v3324_v49 = vrot.slane %v3323_v18, 2  ;;  %v3813_v10 = vmul.f32 %v8449_v27, %v9779_v7 }
 0x1c9   : > { %1594 = vadd.xlane.f32.xlu0 %v1593_v58  ;;  %v3331_v58 = vrot.slane %v3330_v32, 2  ;;  %v3600_v19 = vadd.f32 %v3599_v16, %v3598_v44 }
 0x1ca   : > { %v3466_v54 = vrot.slane %v3465_v9, 1  ;;  %v3325_v17 = vadd.f32 %v3324_v49, %v3323_v18 }
 0x1cb   : > { %1591 = vadd.xlane.f32.xlu2 %v1590_v23  ;;  %v2297_v23 = vmax.f32 %v2295_v0, %v2296_v26  ;;  %v3332_v22 = vadd.f32 %v3331_v58, %v3330_v32  ;;  %8450 = vrcp.f32 %v3600_v19  ;;  %8022 = vmatmul.msk.f32.gmra.mxu0 %vm667_vm0, %v454_v59  ;;  %v3476_v32 = vrot.slane %v3475_v33, 4  ;;  %v534_v26 = vld [vmem:[%s9553_s21 + $0x28] sm:$0xff] }
 0x1cc   : > { %v9826_v6 = vpop.xlane.xlu2 %1807  ;;  %8452 = vpow2.f32 %v2778_v30  ;;  %v3326_v0 = vrot.slane %v3325_v17, 1 }
 0x1cd   : > { %13878 = vst [vmem:[#allocation6_spill] sm:$0xff] %v9826_v6  ;;  %v2298_v63 = vrot.slane %v2297_v23, 2  ;;  %v3333_v53 = vrot.slane %v3332_v22, 1  ;;  %8454 = vpow2.f32 %v2950_v12  ;;  %v3477_v51 = vadd.f32 %v3476_v32, %v3475_v33  ;;  %v9890_v33 = vpop.xlane.xlu0 %1540 }
 0x1ce   : > { %v3327_v60 = vadd.f32 %v3326_v0, %v3325_v17 }
 0x1cf   : > { %v2299_v25 = vmax.f32 %v2297_v23, %v2298_v63  ;;  %v3334_v36 = vadd.f32 %v3333_v53, %v3332_v22  ;;  %v3478_v44 = vrot.slane %v3477_v51, 2  ;;  %v9874_v23 = vadd.f32 %v9722_v37, %v534_v26  ;;  %v537_v63 = vld [vmem:[%s9553_s21 + $0x40] sm:$0xff]  ;;  %v455_v53 = vld [vmem:[%s9158_s26 + $0xf0] sm:$0xff]  ;;  %v536_v26 = vld [vmem:[%s9553_s21 + $0x38] sm:$0xff] }
 0x1d0   : > { %v9893_v59 = vadd.f32 %v9786_v24, %v537_v63  ;;  %v603_v24 = vld [vmem:[%s9553_s21 + $0x250] sm:$0xff] }
 0x1d1   : > { %v2300_v39 = vrot.slane %v2299_v25, 1  ;;  %8456 = vrcp.f32 %v3334_v36  ;;  %v8451_v47 = vpop.eup %8450  ;;  %v3479_v37 = vadd.f32 %v3478_v44, %v3477_v51 }
 0x1d2   : > { %v3898_v50 = vmul.f32 %v8451_v47, %v9796_v55  ;;  %v9857_v31 = vpop.eup %8452  ;;  %v9868_v55 = vadd.f32 %v9765_v1, %v582_v57  ;;  %v1994_v0 = vsel %vm1937_vm1, %v9893_v59, -inf }
 0x1d3   : > { %v2301_v4 = vmax.f32 %v2299_v25, %v2300_v39  ;;  %v9860_v58 = vpop.eup %8454  ;;  %v3006_v34 = vsel %vm1937_vm1, %v9857_v31, 0.0  ;;  %8023 = vmatmul.msk.f32.gmra.mxu0 %vm667_vm0, %v455_v53  ;;  %v3480_v49 = vrot.slane %v3479_v37, 1 }
 0x1d4   : > { %v9838_v40 = vpop.xlane.xlu2 %1690  ;;  %v3608_v3 = vsel %vm1937_vm1, %v9860_v58, 0.0  ;;  %v2309_v28 = vsel %vm1937_vm1, %v9868_v55, -inf }
 0x1d5   : > { %v2717_v22 = vsub.f32 %v9816_v5, %v2301_v4  ;;  %v3609_v18 = vrot.slane %v3608_v3, 4  ;;  %v1973_v5 = vsel %vm1937_vm1, %v9874_v23, -inf  ;;  %v2310_v30 = vrot.slane %v2309_v28, 4 }
 0x1d6   : > { %4251 = vperm.xlu1 %8249, %v3877_v48   ;;  %v9835_v48 = vpop.xlane.xlu1 %1741  ;;  %v1974_v25 = vrot.slane %v1973_v5, 4  ;;  %v3481_v32 = vadd.f32 %v3480_v49, %v3479_v37 }
 0x1d7   : > { %v8457_v61 = vpop.eup %8456  ;;  %v2872_v19 = vmul.f32 1.442695, %v2717_v22  ;;  %v3610_v12 = vadd.f32 %v3609_v18, %v3608_v3  ;;  %v2311_v42 = vmax.f32 %v2309_v28, %v2310_v30 }
 0x1d8   : > { %v3860_v2 = vmul.f32 %v8457_v61, %v9806_v11  ;;  %v3007_v11 = vrot.slane %v3006_v34, 4  ;;  %v1975_v47 = vmax.f32 %v1973_v5, %v1974_v25 }
 0x1d9   : > { %v3611_v39 = vrot.slane %v3610_v12, 2  ;;  %v2312_v57 = vrot.slane %v2311_v42, 2 }
 0x1db   : > { %v3612_v44 = vadd.f32 %v3611_v39, %v3610_v12 }
 0x1dc   : > { %v9851_v46 = vpop.xlane.xlu2 %1555 }
 0x1dd   : > { %4361 = vperm.xlu0 %8250, %v3899_v62   ;;  %v2428_v62 = vsel %vm1937_vm1, %v9854_v56, -inf }
 0x1de   : > { %3926 = vperm.xlu1 %8249, %v3812_v38   ;;  %v3467_v38 = vadd.f32 %v3466_v54, %v3465_v9  ;;  %v9849_v7 = vpop.xlane.xlu1 %1804  ;;  %v2429_v14 = vrot.slane %v2428_v62, 4  ;;  %v581_v9 = vld [vmem:[%s9553_s21 + $0x1a0] sm:$0xff] }
 0x1df   : > { %13879 = vst [vmem:[#allocation7_spill] sm:$0xff] %v9849_v7 }
 0x1e0   : > { %8458 = vrcp.f32 %v3467_v38  ;;  %v2430_v27 = vmax.f32 %v2428_v62, %v2429_v14  ;;  %v9897_v38 = vadd.f32 %v9803_v8, %v581_v9  ;;  %v1976_v62 = vrot.slane %v1975_v47, 2  ;;  %v1739_v14 = vpop.xlane.xlu0 %1738 }
 0x1e1   : > { %8460 = vrcp.f32 %v3327_v60  ;;  %v1995_v60 = vrot.slane %v1994_v0, 4 }
 0x1e2   : > { %8462 = vpow2.f32 %v2872_v19  ;;  %v2431_v54 = vrot.slane %v2430_v27, 2  ;;  %v2302_v8 = vsel %vm1937_vm1, %v9897_v38, -inf  ;;  %v1977_v37 = vmax.f32 %v1975_v47, %v1976_v62 }
 0x1e3   : > { %3931 = vperm.xlu2 %8248, %v3813_v10   ;;  %8464 = vrcp.f32 %v3481_v32  ;;  %v1996_v18 = vmax.f32 %v1994_v0, %v1995_v60  ;;  %v3613_v19 = vrot.slane %v3612_v44, 1 }
 0x1e4   : > { %v9880_v13 = vpop.xlane.xlu2 %1753  ;;  %v1978_v25 = vrot.slane %v1977_v37, 1 }
 0x1e5   : > { %4166 = vperm.xlu0 %8250, %v3860_v2   ;;  %v2303_v2 = vrot.slane %v2302_v8, 4  ;;  %v1997_v49 = vrot.slane %v1996_v18, 2 }
 0x1e6   : > { %4356 = vperm.xlu1 %8249, %v3898_v50   ;;  %v8459_v41 = vpop.eup %8458  ;;  %v9877_v16 = vpop.xlane.xlu1 %1687 }
 0x1e7   : > { %v3879_v1 = vmul.f32 %v8459_v41, %v9814_v21  ;;  %v3008_v21 = vadd.f32 %v3007_v11, %v3006_v34  ;;  %v8461_v10 = vpop.eup %8460  ;;  %v9912_v34 = vadd.f32 %v9808_v52, %v603_v24  ;;  %v2313_v11 = vmax.f32 %v2311_v42, %v2312_v57 }
 0x1e8   : > { %v3859_v36 = vmul.f32 %v8461_v10, %v9824_v45  ;;  %v2432_v45 = vmax.f32 %v2430_v27, %v2431_v54  ;;  %v9908_v4 = vpop.eup %8462  ;;  %v2304_v53 = vmax.f32 %v2302_v8, %v2303_v2  ;;  %v1998_v0 = vmax.f32 %v1996_v18, %v1997_v49  ;;  %v9933_v57 = vpop.xlane.xlu0 %1801 }
 0x1e9   : > { %v3009_v17 = vrot.slane %v3008_v21, 2  ;;  %v3335_v22 = vsel %vm1937_vm1, %v9908_v4, 0.0  ;;  %v8465_v28 = vpop.eup %8464  ;;  %v2456_v5 = vsel %vm1937_vm1, %v9912_v34, -inf  ;;  %v2314_v30 = vrot.slane %v2313_v11, 1  ;;  %13881 = vst [vmem:[#allocation9_spill] sm:$0xff] %v9933_v57 }
 0x1ea   : > { %v2433_v3 = vrot.slane %v2432_v45, 1  ;;  %v3336_v63 = vrot.slane %v3335_v22, 4  ;;  %v2457_v10 = vrot.slane %v2456_v5, 4  ;;  %v2305_v42 = vrot.slane %v2304_v53, 2 }
 0x1eb   : > { %4261 = vperm.xlu2 %8248, %v3879_v1   ;;  %v3010_v61 = vadd.f32 %v3009_v17, %v3008_v21  ;;  %v9917_v1 = vadd.f32 %v9822_v43, %v536_v26  ;;  %v3881_v43 = vmul.f32 %v8465_v28, %v9841_v20  ;;  %v535_v17 = vld [vmem:[%s9553_s21 + $0x30] sm:$0xff]  ;;  %v2315_v47 = vmax.f32 %v2313_v11, %v2314_v30  ;;  %v601_v28 = vld [vmem:[%s9553_s21 + $0x240] sm:$0xff] }
 0x1ec   : > { %v9904_v51 = vpop.xlane.xlu2 %1816  ;;  %v2434_v27 = vmax.f32 %v2432_v45, %v2433_v3  ;;  %v3337_v54 = vadd.f32 %v3336_v63, %v3335_v22  ;;  %v2458_v24 = vmax.f32 %v2456_v5, %v2457_v10  ;;  %v1979_v20 = vmax.f32 %v1977_v37, %v1978_v25  ;;  %v1072_v3 = vpop.f32.mrf.mxu0 }
 0x1ed   : > { %13880 = vst [vmem:[#allocation8_spill] sm:$0xff] %v9904_v51  ;;  %v3011_v41 = vrot.slane %v3010_v61, 1  ;;  %v1987_v21 = vsel %vm1937_vm1, %v9917_v1, -inf  ;;  %4271 = vperm.xlu0 %8250, %v3881_v43   ;;  %v9931_v8 = vadd.f32 %v9890_v33, %v535_v17  ;;  %v2306_v60 = vmax.f32 %v2304_v53, %v2305_v42 }
 0x1ee   : > { %4161 = vperm.xlu1 %8249, %v3859_v36   ;;  %v9901_v50 = vpop.xlane.xlu1 %1552  ;;  %v3614_v36 = vadd.f32 %v3613_v19, %v3612_v44  ;;  %v1988_v32 = vrot.slane %v1987_v21, 4  ;;  %v2736_v39 = vsub.f32 %v9854_v56, %v2434_v27  ;;  %v3338_v26 = vrot.slane %v3337_v54, 2 }
 0x1ef   : > { %v3012_v52 = vadd.f32 %v3011_v41, %v3010_v61  ;;  %v2719_v56 = vsub.f32 %v9868_v55, %v2315_v47  ;;  %v1999_v2 = vrot.slane %v1998_v0, 1  ;;  %v2459_v41 = vrot.slane %v2458_v24, 2 }
 0x1f0   : > { %v1989_v61 = vmax.f32 %v1987_v21, %v1988_v32  ;;  %v2910_v44 = vmul.f32 1.442695, %v2736_v39  ;;  %v2671_v22 = vsub.f32 %v9874_v23, %v1979_v20  ;;  %v1980_v11 = vsel %vm1937_vm1, %v9931_v8, -inf  ;;  %v456_v21 = vld [vmem:[%s9158_s26 + $0xf8] sm:$0xff]  ;;  %v1685_v25 = vpop.xlane.xlu0 %1684 }
 0x1f1   : > { %8466 = vrcp.f32 %v3012_v52  ;;  %v2307_v18 = vrot.slane %v2306_v60, 1  ;;  %v2876_v55 = vmul.f32 1.442695, %v2719_v56  ;;  %v2000_v19 = vmax.f32 %v1998_v0, %v1999_v2  ;;  %8024 = vmatmul.msk.f32.gmra.mxu0 %vm667_vm0, %v456_v21 }
 0x1f2   : > { %8468 = vrcp.f32 %v3614_v36  ;;  %v1990_v37 = vrot.slane %v1989_v61, 2  ;;  %v2460_v63 = vmax.f32 %v2458_v24, %v2459_v41  ;;  %v2780_v53 = vmul.f32 1.442695, %v2671_v22  ;;  %v457_v24 = vld [vmem:[%s9158_s26 + $0x100] sm:$0xff] }
 0x1f3   : > { %8470 = vpow2.f32 %v2910_v44  ;;  %v1981_v27 = vrot.slane %v1980_v11, 4  ;;  %v9945_v23 = vadd.f32 %v1739_v14, %v601_v28  ;;  %v2308_v43 = vmax.f32 %v2306_v60, %v2307_v18 }
 0x1f4   : > { %v9926_v12 = vpop.xlane.xlu2 %1699  ;;  %v1991_v30 = vmax.f32 %v1989_v61, %v1990_v37  ;;  %8472 = vpow2.f32 %v2876_v55  ;;  %v2674_v36 = vsub.f32 %v9893_v59, %v2000_v19  ;;  %v9951_v17 = vpop.f32.mrf.mxu0 }
 0x1f5   : > { %8474 = vpow2.f32 %v2780_v53  ;;  %v1982_v14 = vmax.f32 %v1980_v11, %v1981_v27  ;;  %v2718_v32 = vsub.f32 %v9897_v38, %v2308_v43  ;;  %v9969_v38 = vld [vmem:[%s13797_s5] ss:$0 sm:$0xff] }
 0x1f6   : > { %v9923_v9 = vpop.xlane.xlu1 %1750  ;;  %v1992_v39 = vrot.slane %v1991_v30, 1  ;;  %v1073_v44 = vadd.f32 %v9969_v38, %v1072_v3 }
 0x1f7   : > { %v8467_v45 = vpop.eup %8466  ;;  %v1983_v60 = vrot.slane %v1982_v14, 2  ;;  %v2874_v2 = vmul.f32 1.442695, %v2718_v32 }
 0x1f8   : > { %v3814_v62 = vmul.f32 %v8467_v45, %v9857_v31  ;;  %v3339_v31 = vadd.f32 %v3338_v26, %v3337_v54  ;;  %v8469_v52 = vpop.eup %8468  ;;  %v2461_v54 = vrot.slane %v2460_v63, 1  ;;  %v2786_v45 = vmul.f32 1.442695, %v2674_v36  ;;  %v9982_v3 = vpop.xlane.xlu0 %1549 }
 0x1f9   : > { %v3900_v49 = vmul.f32 %v8469_v52, %v9860_v58  ;;  %v9953_v42 = vpop.eup %8470  ;;  %v2442_v58 = vsel %vm1937_vm1, %v9945_v23, -inf  ;;  %v1993_v41 = vmax.f32 %v1991_v30, %v1992_v39  ;;  %8025 = vmatmul.msk.f32.gmra.mxu0 %vm667_vm0, %v457_v24  ;;  %v1984_v37 = vmax.f32 %v1982_v14, %v1983_v60 }
 0x1fa   : > { %3936 = vperm.xlu2 %8248, %v3814_v62   ;;  %v3340_v10 = vrot.slane %v3339_v31, 1  ;;  %v3468_v59 = vsel %vm1937_vm1, %v9953_v42, 0.0  ;;  %v2462_v20 = vmax.f32 %v2460_v63, %v2461_v54  ;;  %v2443_v61 = vrot.slane %v2442_v58, 4  ;;  %v583_v62 = vld [vmem:[%s9553_s21 + $0x1b0] sm:$0xff]  ;;  %v9972_v56 = vpop.eup %8472 }
 0x1fb   : > { %v9975_v22 = vpop.eup %8474  ;;  %v3469_v11 = vrot.slane %v3468_v59, 4  ;;  %v9977_v18 = vadd.f32 %v1685_v25, %v583_v62  ;;  %v3349_v52 = vsel %vm1937_vm1, %v9972_v56, 0.0  ;;  %v1334_v55 = vmax.f32 %v1073_v44, 0.0 }
 0x1fc   : > { %v9943_v5 = vpop.xlane.xlu2 %1564  ;;  %v3341_v47 = vadd.f32 %v3340_v10, %v3339_v31  ;;  %v2740_v28 = vsub.f32 %v9912_v34, %v2462_v20  ;;  %v2444_v31 = vmax.f32 %v2442_v58, %v2443_v61  ;;  %v1078_v19 = vpop.f32.mrf.mxu0  ;;  %v2673_v53 = vsub.f32 %v9917_v1, %v1993_v41  ;;  %v9996_v1 = vld [vmem:[%s13798_s6] ss:$0 sm:$0xff] }
 0x1fd   : > { %v3013_v27 = vsel %vm1937_vm1, %v9975_v22, 0.0  ;;  %v3470_v21 = vadd.f32 %v3469_v11, %v3468_v59  ;;  %v3350_v34 = vrot.slane %v3349_v52, 4  ;;  %v2316_v30 = vsel %vm1937_vm1, %v9977_v18, -inf }
 0x1fe   : > { %v9938_v33 = vpop.xlane.xlu1 %1813  ;;  %8476 = vrcp.f32 %v3341_v47  ;;  %v1079_v10 = vadd.f32 %v9969_v38, %v1078_v19  ;;  %v1985_v25 = vrot.slane %v1984_v37, 1  ;;  %v2445_v36 = vrot.slane %v2444_v31, 2 }
 0x1ff   : > { %13882 = vst [vmem:[#allocation10_spill] sm:$0xff] %v9938_v33  ;;  %8478 = vpow2.f32 %v2786_v45  ;;  %v1442_v14 = vmul.f32 %v9996_v1, %v1334_v55  ;;  %v3014_v32 = vrot.slane %v3013_v27, 4  ;;  %v2784_v58 = vmul.f32 1.442695, %v2673_v53 }
 0x200   : > { %8480 = vpow2.f32 %v2874_v2  ;;  %v2317_v47 = vrot.slane %v2316_v30, 4  ;;  %v3471_v45 = vrot.slane %v3470_v21, 2  ;;  %v3351_v20 = vadd.f32 %v3350_v34, %v3349_v52 }
 0x201   : > { %v1596_v24 = vsel %vm667_vm0, %v1442_v14, 0.0  ;;  %v1336_v60 = vmax.f32 %v1079_v10, 0.0  ;;  %v1986_v61 = vmax.f32 %v1984_v37, %v1985_v25  ;;  %v2446_v62 = vmax.f32 %v2444_v31, %v2445_v36 }
 0x202   : > { %4366 = vperm.xlu2 %8248, %v3900_v49   ;;  %v2918_v49 = vmul.f32 1.442695, %v2740_v28  ;;  %v3015_v2 = vadd.f32 %v3014_v32, %v3013_v27  ;;  %v2318_v11 = vmax.f32 %v2316_v30, %v2317_v47  ;;  %v10010_v28 = vpop.xlane.xlu0 %1747  ;;  %v3352_v55 = vrot.slane %v3351_v20, 2  ;;  %v458_v27 = vld [vmem:[%s9158_s26 + $0x108] sm:$0xff] }
 0x203   : > { %v1444_v52 = vmul.f32 %v9996_v1, %v1336_v60  ;;  %v2672_v37 = vsub.f32 %v9931_v8, %v1986_v61  ;;  %v2447_v31 = vrot.slane %v2446_v62, 1  ;;  %8026 = vmatmul.msk.f32.gmra.mxu0 %vm667_vm0, %v458_v27 }
 0x204   : > { %v9963_v26 = vpop.xlane.xlu2 %1762  ;;  %v8477_v63 = vpop.eup %8476  ;;  %8482 = vpow2.f32 %v2918_v49  ;;  %v2319_v10 = vrot.slane %v2318_v11, 2  ;;  %v3353_v8 = vadd.f32 %v3352_v55, %v3351_v20 }
 0x205   : > { %v3861_v43 = vmul.f32 %v8477_v63, %v9908_v4  ;;  %v9999_v4 = vpop.eup %8478  ;;  %8484 = vpow2.f32 %v2784_v58  ;;  %v3472_v63 = vadd.f32 %v3471_v45, %v3470_v21  ;;  %v1602_v21 = vsel %vm667_vm0, %v1444_v52, 0.0 }
 0x206   : > { %v9958_v0 = vpop.xlane.xlu1 %1696  ;;  %v10004_v59 = vpop.eup %8480  ;;  %v3034_v44 = vsel %vm1937_vm1, %v9999_v4, 0.0  ;;  %v2782_v32 = vmul.f32 1.442695, %v2672_v37  ;;  %v2448_v58 = vmax.f32 %v2446_v62, %v2447_v31  ;;  %v2320_v27 = vmax.f32 %v2318_v11, %v2319_v10 }
 0x207   : > { %v3342_v41 = vsel %vm1937_vm1, %v10004_v59, 0.0  ;;  %v3035_v19 = vrot.slane %v3034_v44, 4  ;;  %v3473_v49 = vrot.slane %v3472_v63, 1 }
 0x208   : > { %v3343_v34 = vrot.slane %v3342_v41, 4  ;;  %8486 = vpow2.f32 %v2782_v32  ;;  %v2738_v52 = vsub.f32 %v9945_v23, %v2448_v58 }
 0x209   : > { %v3036_v36 = vadd.f32 %v3035_v19, %v3034_v44  ;;  %v3474_v45 = vadd.f32 %v3473_v49, %v3472_v63  ;;  %v3354_v19 = vrot.slane %v3353_v8, 1  ;;  %v2321_v63 = vrot.slane %v2320_v27, 1 }
 0x20a   : > { %4171 = vperm.xlu2 %8248, %v3861_v43   ;;  %v10014_v53 = vpop.eup %8482  ;;  %v3016_v43 = vrot.slane %v3015_v2, 2  ;;  %v10030_v20 = vpop.xlane.xlu0 %1810 }
 0x20b   : > { %v10020_v30 = vpop.eup %8484  ;;  %v3496_v47 = vsel %vm1937_vm1, %v10014_v53, 0.0  ;;  %v3037_v15 = vrot.slane %v3036_v36, 2  ;;  %13884 = vst [vmem:[#allocation12_spill] sm:$0xff] %v10030_v20  ;;  %8488 = vrcp.f32 %v3474_v45  ;;  %v3355_v37 = vadd.f32 %v3354_v19, %v3353_v8  ;;  %v585_v45 = vld [vmem:[%s9553_s21 + $0x1c0] sm:$0xff] }
 0x20c   : > { %v10001_v39 = vpop.xlane.xlu2 %1825  ;;  %v3017_v60 = vadd.f32 %v3016_v43, %v3015_v2  ;;  %v3027_v61 = vsel %vm1937_vm1, %v10020_v30, 0.0  ;;  %v3497_v44 = vrot.slane %v3496_v47, 4  ;;  %v2914_v43 = vmul.f32 1.442695, %v2738_v52 }
 0x20d   : > { %13883 = vst [vmem:[#allocation11_spill] sm:$0xff] %v10001_v39  ;;  %v3028_v55 = vrot.slane %v3027_v61, 4  ;;  %v3038_v31 = vadd.f32 %v3037_v15, %v3036_v36  ;;  %v2322_v32 = vmax.f32 %v2320_v27, %v2321_v63  ;;  %8490 = vrcp.f32 %v3355_v37 }
 0x20e   : > { %v9991_v54 = vpop.xlane.xlu1 %1561  ;;  %v3498_v2 = vadd.f32 %v3497_v44, %v3496_v47  ;;  %v10036_v23 = vpop.eup %8486  ;;  %8492 = vpow2.f32 %v2914_v43 }
 0x20f   : > { %v3039_v33 = vrot.slane %v3038_v31, 1  ;;  %v3020_v15 = vsel %vm1937_vm1, %v10036_v23, 0.0  ;;  %v2720_v47 = vsub.f32 %v9977_v18, %v2322_v32  ;;  %v602_v18 = vld [vmem:[%s9553_s21 + $0x248] sm:$0xff]  ;;  %v540_v32 = vld [vmem:[%s9553_s21 + $0x58] sm:$0xff] }
 0x210   : > { %v3499_v39 = vrot.slane %v3498_v2, 2  ;;  %v3021_v52 = vrot.slane %v3020_v15, 4 }
 0x211   : > { %v8489_v58 = vpop.eup %8488  ;;  %v3040_v44 = vadd.f32 %v3039_v33, %v3038_v31  ;;  %v10062_v31 = vadd.f32 %v9835_v48, %v602_v18  ;;  %v606_v18 = vld [vmem:[%s9553_s21 + $0x268] sm:$0xff] }
 0x212   : > { %v3880_v27 = vmul.f32 %v8489_v58, %v9953_v42  ;;  %v3500_v19 = vadd.f32 %v3499_v39, %v3498_v2  ;;  %v3022_v39 = vadd.f32 %v3021_v52, %v3020_v15  ;;  %v10065_v58 = vadd.f32 %v9851_v46, %v540_v32  ;;  %v584_v52 = vld [vmem:[%s9553_s21 + $0x1b8] sm:$0xff] }
 0x214   : > { %v10022_v14 = vpop.xlane.xlu2 %1708  ;;  %v3501_v33 = vrot.slane %v3500_v19, 1 }
 0x216   : > { %v10017_v25 = vpop.xlane.xlu1 %1759  ;;  %v3502_v15 = vadd.f32 %v3501_v33, %v3500_v19 }
 0x217   : > { %1603 = vadd.xlane.f32.xlu0 %v1602_v21 }
 0x218   : > { %1597 = vadd.xlane.f32.xlu1 %v1596_v24  ;;  %v3344_v24 = vadd.f32 %v3343_v34, %v3342_v41  ;;  %v3018_v41 = vrot.slane %v3017_v60, 1  ;;  %v3029_v34 = vadd.f32 %v3028_v55, %v3027_v61  ;;  %v1076_v61 = vadd.f32 %v9969_v38, %v9951_v17 }
 0x21a   : > { %v3345_v62 = vrot.slane %v3344_v24, 2  ;;  %v3019_v10 = vadd.f32 %v3018_v41, %v3017_v60  ;;  %v3030_v36 = vrot.slane %v3029_v34, 2  ;;  %v10045_v60 = vpop.xlane.xlu0 %1693  ;;  %v1335_v17 = vmax.f32 %v1076_v61, 0.0 }
 0x21c   : > { %v10034_v49 = vpop.xlane.xlu2 %1573  ;;  %v3346_v21 = vadd.f32 %v3345_v62, %v3344_v24  ;;  %8494 = vrcp.f32 %v3019_v10  ;;  %v10043_v24 = vadd.f32 %v9838_v40, %v585_v45  ;;  %v8491_v62 = vpop.eup %8490  ;;  %v3031_v41 = vadd.f32 %v3030_v36, %v3029_v34 }
 0x21d   : > { %v10050_v63 = vpop.eup %8492  ;;  %v2878_v40 = vmul.f32 1.442695, %v2720_v47  ;;  %8496 = vrcp.f32 %v3040_v44  ;;  %v3863_v2 = vmul.f32 %v8491_v62, %v9972_v56  ;;  %v1443_v45 = vmul.f32 %v9996_v1, %v1335_v17 }
 0x21e   : > { %v10032_v11 = vpop.xlane.xlu1 %1822  ;;  %v3347_v8 = vrot.slane %v3346_v21, 1  ;;  %v2330_v37 = vsel %vm1937_vm1, %v10043_v24, -inf  ;;  %v3482_v56 = vsel %vm1937_vm1, %v10050_v63, 0.0  ;;  %v2449_v47 = vsel %vm1937_vm1, %v10062_v31, -inf }
 0x21f   : > { %13885 = vst [vmem:[#allocation13_spill] sm:$0xff] %v10032_v11  ;;  %v2331_v34 = vrot.slane %v2330_v37, 4  ;;  %v3483_v44 = vrot.slane %v3482_v56, 4  ;;  %v2015_v62 = vsel %vm1937_vm1, %v10065_v58, -inf }
 0x220   : > { %v3348_v55 = vadd.f32 %v3347_v8, %v3346_v21  ;;  %v3032_v21 = vrot.slane %v3031_v41, 1  ;;  %v2016_v32 = vrot.slane %v2015_v62, 4 }
 0x221   : > { %v2332_v61 = vmax.f32 %v2330_v37, %v2331_v34  ;;  %v10091_v34 = vadd.f32 %v9880_v13, %v606_v18 }
 0x222   : > { %v8495_v10 = vpop.eup %8494  ;;  %8498 = vrcp.f32 %v3348_v55  ;;  %v10071_v48 = vpop.xlane.xlu0 %1558  ;;  %v3033_v46 = vadd.f32 %v3032_v21, %v3031_v41  ;;  %v10086_v41 = vadd.f32 %v9877_v16, %v584_v52  ;;  %v2017_v52 = vmax.f32 %v2015_v62, %v2016_v32 }
 0x223   : > { %8500 = vpow2.f32 %v2878_v40  ;;  %v3815_v36 = vmul.f32 %v8495_v10, %v9975_v22  ;;  %v8497_v8 = vpop.eup %8496  ;;  %v1599_v22 = vsel %vm667_vm0, %v1443_v45, 0.0  ;;  %v2450_v40 = vrot.slane %v2449_v47, 4 }
 0x224   : > { %v10058_v42 = vpop.xlane.xlu2 %1771  ;;  %8502 = vrcp.f32 %v3502_v15  ;;  %v3818_v10 = vmul.f32 %v8497_v8, %v9999_v4  ;;  %v2333_v37 = vrot.slane %v2332_v61, 2  ;;  %v2323_v15 = vsel %vm1937_vm1, %v10086_v41, -inf }
 0x225   : > { %8504 = vrcp.f32 %v3033_v46  ;;  %v2451_v16 = vmax.f32 %v2449_v47, %v2450_v40  ;;  %v2477_v13 = vsel %vm1937_vm1, %v10091_v34, -inf }
 0x226   : > { %v10055_v43 = vpop.xlane.xlu1 %1705  ;;  %v2334_v8 = vmax.f32 %v2332_v61, %v2333_v37  ;;  %v2018_v61 = vrot.slane %v2017_v52, 2  ;;  %v2478_v62 = vrot.slane %v2477_v13, 4 }
 0x228   : > { %v8499_v55 = vpop.eup %8498  ;;  %v2335_v18 = vrot.slane %v2334_v8, 1 }
 0x229   : > { %v10080_v19 = vpop.eup %8500  ;;  %v3862_v21 = vmul.f32 %v8499_v55, %v10004_v59  ;;  %v2324_v55 = vrot.slane %v2323_v15, 4 }
 0x22a   : > { %v3356_v4 = vsel %vm1937_vm1, %v10080_v19, 0.0 }
 0x22b   : > { %4181 = vperm.xlu0 %8250, %v3863_v2   ;;  %v3484_v2 = vadd.f32 %v3483_v44, %v3482_v56  ;;  %v3357_v56 = vrot.slane %v3356_v4, 4  ;;  %v539_v44 = vld [vmem:[%s9553_s21 + $0x50] sm:$0xff]  ;;  %v2325_v20 = vmax.f32 %v2323_v15, %v2324_v55 }
 0x22c   : > { %v10088_v33 = vpop.xlane.xlu2 %1717  ;;  %v10105_v40 = vadd.f32 %v9901_v50, %v539_v44  ;;  %v2479_v44 = vmax.f32 %v2477_v13, %v2478_v62 }
 0x22d   : > { %v3485_v46 = vrot.slane %v3484_v2, 2 }
 0x22e   : > { %v10082_v17 = vpop.xlane.xlu1 %1570  ;;  %v2008_v50 = vsel %vm1937_vm1, %v10105_v40, -inf  ;;  %v2480_v15 = vrot.slane %v2479_v44, 2 }
 0x22f   : > { %v3486_v11 = vadd.f32 %v3485_v46, %v3484_v2  ;;  %v538_v2 = vld [vmem:[%s9553_s21 + $0x48] sm:$0xff] }
 0x230   : > { %v10121_v13 = vadd.f32 %v9982_v3, %v538_v2 }
 0x231   : > { %4266 = vperm.xlu1 %8249, %v3880_v27   ;;  %v3023_v27 = vrot.slane %v3022_v39, 2 }
 0x233   : > { %1600 = vadd.xlane.f32.xlu2 %v1599_v22  ;;  %3956 = vperm.xlu0 %8250, %v3818_v10   ;;  %v3024_v45 = vadd.f32 %v3023_v27, %v3022_v39  ;;  %v10101_v22 = vpop.xlane.xlu0 %1756  ;;  %v2452_v27 = vrot.slane %v2451_v16, 2  ;;  %v3358_v10 = vadd.f32 %v3357_v56, %v3356_v4  ;;  %v3487_v56 = vrot.slane %v3486_v11, 1 }
 0x234   : > { %v10110_v51 = vpop.xlane.xlu2 %1582 }
 0x235   : > { %v3025_v59 = vrot.slane %v3024_v45, 1  ;;  %13886 = vst [vmem:[#allocation14_spill] sm:$0xff] %v10110_v51  ;;  %v2453_v7 = vmax.f32 %v2451_v16, %v2452_v27  ;;  %v3359_v4 = vrot.slane %v3358_v10, 2 }
 0x236   : > { %v10107_v37 = vpop.xlane.xlu1 %1768 }
 0x237   : > { %v3026_v32 = vadd.f32 %v3025_v59, %v3024_v45  ;;  %v2326_v45 = vrot.slane %v2325_v20, 2  ;;  %v2009_v59 = vrot.slane %v2008_v50, 4 }
 0x239   : > { %3941 = vperm.xlu1 %8249, %v3815_v36   ;;  %v8503_v36 = vpop.eup %8502  ;;  %8506 = vrcp.f32 %v3026_v32 }
 0x23a   : > { %v8505_v39 = vpop.eup %8504  ;;  %v3884_v47 = vmul.f32 %v8503_v36, %v10014_v53  ;;  %v2336_v53 = vmax.f32 %v2334_v8, %v2335_v18  ;;  %v2019_v36 = vmax.f32 %v2017_v52, %v2018_v61  ;;  %v3360_v8 = vadd.f32 %v3359_v4, %v3358_v10  ;;  %v604_v4 = vld [vmem:[%s9553_s21 + $0x258] sm:$0xff] }
 0x23b   : > { %v2327_v18 = vmax.f32 %v2325_v20, %v2326_v45  ;;  %v2010_v61 = vmax.f32 %v2008_v50, %v2009_v59  ;;  %v10136_v45 = vadd.f32 %v10010_v28, %v604_v4 }
 0x23c   : > { %4286 = vperm.xlu0 %8250, %v3884_v47   ;;  %v2454_v47 = vrot.slane %v2453_v7, 1  ;;  %v2722_v46 = vsub.f32 %v10043_v24, %v2336_v53  ;;  %v2020_v16 = vrot.slane %v2019_v36, 1  ;;  %v10125_v24 = vpop.permute.xlu2 %3916 }
 0x23d   : > { %v2328_v3 = vrot.slane %v2327_v18, 1  ;;  %v2011_v20 = vrot.slane %v2010_v61, 2  ;;  %v2463_v28 = vsel %vm1937_vm1, %v10136_v45, -inf }
 0x23e   : > { %v2455_v52 = vmax.f32 %v2453_v7, %v2454_v47  ;;  %v10123_v62 = vpop.xlane.xlu1 %1831  ;;  %v2882_v32 = vmul.f32 1.442695, %v2722_v46  ;;  %v2001_v7 = vsel %vm1937_vm1, %v10121_v13, -inf }
 0x23f   : > { %v8507_v55 = vpop.eup %8506  ;;  %13888 = vst [vmem:[#allocation16_spill] sm:$0xff] %v10123_v62  ;;  %v2002_v47 = vrot.slane %v2001_v7, 4  ;;  %v2329_v59 = vmax.f32 %v2327_v18, %v2328_v3  ;;  %v2012_v2 = vmax.f32 %v2010_v61, %v2011_v20 }
 0x240   : > { %v10118_v27 = vpop.f32.mrf.mxu0  ;;  %v3816_v10 = vmul.f32 %v8507_v55, %v10036_v23  ;;  %v2739_v53 = vsub.f32 %v10062_v31, %v2455_v52 }
 0x241   : > { %4176 = vperm.xlu1 %8249, %v3862_v21   ;;  %v3817_v21 = vmul.f32 %v8505_v39, %v10020_v30  ;;  %v10114_v30 = vpop.xlane.xlu0 %1819  ;;  %v3488_v39 = vadd.f32 %v3487_v56, %v3486_v11  ;;  %v3361_v11 = vrot.slane %v3360_v8, 1  ;;  %v2721_v18 = vsub.f32 %v10086_v41, %v2329_v59 }
 0x242   : > { %13887 = vst [vmem:[#allocation15_spill] sm:$0xff] %v10114_v30  ;;  %v2481_v30 = vmax.f32 %v2479_v44, %v2480_v15  ;;  %v2916_v31 = vmul.f32 1.442695, %v2739_v53  ;;  %v2013_v61 = vrot.slane %v2012_v2, 1 }
 0x243   : > { %8508 = vrcp.f32 %v3488_v39  ;;  %v3362_v44 = vadd.f32 %v3361_v11, %v3360_v8  ;;  %v2003_v8 = vmax.f32 %v2001_v7, %v2002_v47  ;;  %v2464_v11 = vrot.slane %v2463_v28, 4 }
 0x244   : > { %8510 = vpow2.f32 %v2882_v32  ;;  %v2482_v56 = vrot.slane %v2481_v30, 1  ;;  %v10146_v55 = vpop.permute.xlu2 %4246  ;;  %v459_v32 = vld [vmem:[%s9158_s26 + $0x110] sm:$0xff]  ;;  %v2880_v41 = vmul.f32 1.442695, %v2721_v18  ;;  %v2014_v3 = vmax.f32 %v2012_v2, %v2013_v61 }
 0x245   : > { %8512 = vrcp.f32 %v3362_v44  ;;  %13890 = vst [vmem:[#allocation18_spill] sm:$0xff] %v10146_v55  ;;  %8027 = vmatmul.msk.f32.gmra.mxu0 %vm667_vm0, %v459_v32  ;;  %v2004_v53 = vrot.slane %v2003_v8, 2  ;;  %v460_v44 = vld [vmem:[%s9158_s26 + $0x118] sm:$0xff] }
 0x246   : > { %8514 = vpow2.f32 %v2916_v31 }
 0x248   : > { %v10138_v15 = vpop.f32.mrf.mxu0 }
 0x249   : > { %3951 = vperm.xlu1 %8249, %v3817_v21   ;;  %v2021_v21 = vmax.f32 %v2019_v36, %v2020_v16  ;;  %v10133_v36 = vpop.xlane.xlu0 %1702  ;;  %v8509_v23 = vpop.eup %8508  ;;  %v2483_v16 = vmax.f32 %v2481_v30, %v2482_v56  ;;  %v586_v30 = vld [vmem:[%s9553_s21 + $0x1c8] sm:$0xff] }
 0x24a   : > { %v10142_v39 = vpop.eup %8510  ;;  %v3882_v52 = vmul.f32 %v8509_v23, %v10050_v63  ;;  %v10157_v63 = vadd.f32 %v10045_v60, %v586_v30  ;;  %v2005_v23 = vmax.f32 %v2003_v8, %v2004_v53  ;;  %v1082_v60 = vadd.f32 %v9969_v38, %v10118_v27 }
 0x24b   : > { %v2677_v50 = vsub.f32 %v10065_v58, %v2021_v21  ;;  %3946 = vperm.xlu2 %8248, %v3816_v10   ;;  %v10140_v58 = vpop.xlane.xlu1 %1714  ;;  %v2743_v21 = vsub.f32 %v10091_v34, %v2483_v16  ;;  %v3370_v10 = vsel %vm1937_vm1, %v10142_v39, 0.0  ;;  %v8513_v7 = vpop.eup %8512  ;;  %v2465_v34 = vmax.f32 %v2463_v28, %v2464_v11 }
 0x24c   : > { %13889 = vst [vmem:[#allocation17_spill] sm:$0xff] %v10140_v58  ;;  %v3371_v20 = vrot.slane %v3370_v10, 4  ;;  %v10161_v56 = vpop.eup %8514  ;;  %v2337_v31 = vsel %vm1937_vm1, %v10157_v63, -inf  ;;  %v3864_v59 = vmul.f32 %v8513_v7, %v10080_v19  ;;  %v10177_v18 = vpop.permute.xlu2 %4351  ;;  %v2006_v30 = vrot.slane %v2005_v23, 1 }
 0x24d   : > { %v2792_v46 = vmul.f32 1.442695, %v2677_v50  ;;  %v2924_v50 = vmul.f32 1.442695, %v2743_v21  ;;  %13892 = vst [vmem:[#allocation20_spill] sm:$0xff] %v10177_v18  ;;  %8028 = vmatmul.msk.f32.gmra.mxu0 %vm667_vm0, %v460_v44  ;;  %v2466_v19 = vrot.slane %v2465_v34, 2 }
 0x24e   : > { %v3372_v8 = vadd.f32 %v3371_v20, %v3370_v10  ;;  %v1337_v32 = vmax.f32 %v1082_v60, 0.0  ;;  %v461_v44 = vld [vmem:[%s9158_s26 + $0x120] sm:$0xff] }
 0x24f   : > { %8516 = vpow2.f32 %v2792_v46  ;;  %v2676_v46 = vsub.f32 %v10105_v40, %v2014_v3  ;;  %v2338_v40 = vrot.slane %v2337_v31, 4  ;;  %v2467_v3 = vmax.f32 %v2465_v34, %v2466_v19 }
 0x250   : > { %v1087_v2 = vpop.f32.mrf.mxu0  ;;  %8518 = vpow2.f32 %v2880_v41  ;;  %v3373_v53 = vrot.slane %v3372_v8, 2 }
 0x251   : > { %v10159_v4 = vpop.xlane.xlu0 %1567  ;;  %v1088_v28 = vadd.f32 %v9969_v38, %v1087_v2  ;;  %8520 = vpow2.f32 %v2924_v50  ;;  %v2790_v11 = vmul.f32 1.442695, %v2676_v46  ;;  %v2339_v20 = vmax.f32 %v2337_v31, %v2338_v40 }
 0x252   : > { %v2007_v2 = vmax.f32 %v2005_v23, %v2006_v30  ;;  %v3374_v55 = vadd.f32 %v3373_v53, %v3372_v8  ;;  %v2468_v34 = vrot.slane %v2467_v3, 1 }
 0x253   : > { %4276 = vperm.xlu2 %8248, %v3882_v52   ;;  %v10172_v16 = vpop.xlane.xlu1 %1579  ;;  %v3489_v52 = vsel %vm1937_vm1, %v10161_v56, 0.0  ;;  %v1339_v61 = vmax.f32 %v1088_v28, 0.0  ;;  %v1445_v28 = vmul.f32 %v9996_v1, %v1337_v32  ;;  %8522 = vpow2.f32 %v2790_v11 }
 0x254   : > { %13891 = vst [vmem:[#allocation19_spill] sm:$0xff] %v10172_v16  ;;  %v3490_v21 = vrot.slane %v3489_v52, 4  ;;  %v2340_v31 = vrot.slane %v2339_v20, 2  ;;  %v2675_v23 = vsub.f32 %v10121_v13, %v2007_v2  ;;  %v3375_v11 = vrot.slane %v3374_v55, 1 }
 0x255   : > { %v10164_v47 = vpop.eup %8516  ;;  %v1447_v10 = vmul.f32 %v9996_v1, %v1339_v61  ;;  %8029 = vmatmul.msk.f32.gmra.mxu0 %vm667_vm0, %v461_v44  ;;  %v1605_v30 = vsel %vm667_vm0, %v1445_v28, 0.0 }
 0x256   : > { %v3055_v27 = vsel %vm1937_vm1, %v10164_v47, 0.0  ;;  %v10183_v41 = vpop.eup %8518  ;;  %v3491_v18 = vadd.f32 %v3490_v21, %v3489_v52  ;;  %v10200_v52 = vpop.permute.xlu2 %4156  ;;  %v2788_v44 = vmul.f32 1.442695, %v2675_v23 }
 0x257   : > { %v3056_v7 = vrot.slane %v3055_v27, 4  ;;  %v3363_v60 = vsel %vm1937_vm1, %v10183_v41, 0.0  ;;  %v1611_v61 = vsel %vm667_vm0, %v1447_v10, 0.0  ;;  %13894 = vst [vmem:[#allocation22_spill] sm:$0xff] %v10200_v52  ;;  %v2341_v10 = vmax.f32 %v2339_v20, %v2340_v31 }
 0x258   : > { %v3492_v32 = vrot.slane %v3491_v18, 2  ;;  %v3376_v52 = vadd.f32 %v3375_v11, %v3374_v55  ;;  %8524 = vpow2.f32 %v2788_v44  ;;  %v588_v44 = vld [vmem:[%s9553_s21 + $0x1d8] sm:$0xff] }
 0x259   : > { %v10185_v50 = vpop.xlane.xlu0 %1765  ;;  %v3057_v46 = vadd.f32 %v3056_v7, %v3055_v27  ;;  %v3364_v27 = vrot.slane %v3363_v60, 4  ;;  %v2469_v7 = vmax.f32 %v2467_v3, %v2468_v34  ;;  %v2342_v6 = vrot.slane %v2341_v10, 1 }
 0x25a   : > { %v3493_v13 = vadd.f32 %v3492_v32, %v3491_v18  ;;  %8526 = vrcp.f32 %v3376_v52 }
 0x25b   : > { %4186 = vperm.xlu2 %8248, %v3864_v59   ;;  %v10188_v59 = vpop.eup %8520  ;;  %v10197_v40 = vpop.xlane.xlu1 %1777  ;;  %v3058_v21 = vrot.slane %v3057_v46, 2  ;;  %v3365_v62 = vadd.f32 %v3364_v27, %v3363_v60  ;;  %v2741_v29 = vsub.f32 %v10136_v45, %v2469_v7 }
 0x25c   : > { %v3517_v19 = vsel %vm1937_vm1, %v10188_v59, 0.0  ;;  %13893 = vst [vmem:[#allocation21_spill] sm:$0xff] %v10197_v40  ;;  %v10203_v53 = vpop.eup %8522  ;;  %v3494_v34 = vrot.slane %v3493_v13, 1 }
 0x25d   : > { %v3518_v8 = vrot.slane %v3517_v19, 4  ;;  %v3048_v2 = vsel %vm1937_vm1, %v10203_v53, 0.0  ;;  %v3366_v20 = vrot.slane %v3365_v62, 2  ;;  %v2920_v23 = vmul.f32 1.442695, %v2741_v29 }
 0x25e   : > { %v10212_v3 = vpop.xlane.xlu2 %1591  ;;  %v3049_v60 = vrot.slane %v3048_v2, 4  ;;  %v10215_v45 = vpop.eup %8524 }
 0x25f   : > { %v3519_v28 = vadd.f32 %v3518_v8, %v3517_v19  ;;  %13897 = vst [vmem:[#allocation25_spill] sm:$0xff] %v10212_v3  ;;  %v2343_v19 = vmax.f32 %v2341_v10, %v2342_v6  ;;  %v3367_v32 = vadd.f32 %v3366_v20, %v3365_v62  ;;  %8528 = vpow2.f32 %v2920_v23  ;;  %v587_v23 = vld [vmem:[%s9553_s21 + $0x1d0] sm:$0xff] }
 0x260   : > { %v3050_v55 = vadd.f32 %v3049_v60, %v3048_v2  ;;  %v8527_v29 = vpop.eup %8526  ;;  %v1085_v6 = vadd.f32 %v9969_v38, %v10138_v15  ;;  %v3041_v62 = vsel %vm1937_vm1, %v10215_v45, 0.0 }
 0x261   : > { %v10205_v40 = vpop.xlane.xlu0 %1828  ;;  %v3520_v31 = vrot.slane %v3519_v28, 2  ;;  %v2723_v11 = vsub.f32 %v10157_v63, %v2343_v19  ;;  %v3866_v38 = vmul.f32 %v8527_v29, %v10142_v39  ;;  %v3042_v15 = vrot.slane %v3041_v62, 4 }
 0x262   : > { %13895 = vst [vmem:[#allocation23_spill] sm:$0xff] %v10205_v40  ;;  %v3051_v10 = vrot.slane %v3050_v55, 2  ;;  %v1338_v20 = vmax.f32 %v1085_v6, 0.0 }
 0x263   : > { %v10210_v57 = vpop.permute.xlu1 %4146  ;;  %v3521_v8 = vadd.f32 %v3520_v31, %v3519_v28  ;;  %v2884_v28 = vmul.f32 1.442695, %v2723_v11  ;;  %v3043_v11 = vadd.f32 %v3042_v15, %v3041_v62 }
 0x264   : > { %13896 = vst [vmem:[#allocation24_spill] sm:$0xff] %v10210_v57 }
 0x265   : > { %v3522_v2 = vrot.slane %v3521_v8, 1  ;;  %v10238_v60 = vpop.eup %8528 }
 0x266   : > { %1612 = vadd.xlane.f32.xlu0 %v1611_v61  ;;  %v3059_v61 = vadd.f32 %v3058_v21, %v3057_v46  ;;  %v3495_v46 = vadd.f32 %v3494_v34, %v3493_v13  ;;  %v10232_v63 = vpop.permute.xlu2 %3931  ;;  %v3503_v29 = vsel %vm1937_vm1, %v10238_v60, 0.0 }
 0x268   : > { %v3060_v18 = vrot.slane %v3059_v61, 1  ;;  %8530 = vrcp.f32 %v3495_v46 }
 0x269   : > { %v10221_v7 = vpop.xlane.xlu0 %1711 }
 0x26a   : > { %v3061_v21 = vadd.f32 %v3060_v18, %v3059_v61  ;;  %v10235_v61 = vadd.f32 %v9926_v12, %v588_v44  ;;  %v3052_v18 = vadd.f32 %v3051_v10, %v3050_v55  ;;  %v543_v12 = vld [vmem:[%s9553_s21 + $0x70] sm:$0xff]  ;;  %v1446_v44 = vmul.f32 %v9996_v1, %v1338_v20 }
 0x26b   : > { %v10223_v52 = vpop.xlane.xlu1 %1588  ;;  %v10251_v55 = vadd.f32 %v9958_v0, %v587_v23 }
 0x26c   : > { %13898 = vst [vmem:[#allocation26_spill] sm:$0xff] %v10223_v52  ;;  %8532 = vrcp.f32 %v3061_v21  ;;  %v2351_v46 = vsel %vm1937_vm1, %v10235_v61, -inf  ;;  %v3053_v10 = vrot.slane %v3052_v18, 1  ;;  %v1608_v15 = vsel %vm667_vm0, %v1446_v44, 0.0 }
 0x26d   : > { %8534 = vpow2.f32 %v2884_v28  ;;  %v3504_v28 = vrot.slane %v3503_v29, 4 }
 0x26e   : > { %v8531_v19 = vpop.eup %8530 }
 0x26f   : > { %v3883_v62 = vmul.f32 %v8531_v19, %v10161_v56  ;;  %v3054_v56 = vadd.f32 %v3053_v10, %v3052_v18  ;;  %v609_v19 = vld [vmem:[%s9553_s21 + $0x280] sm:$0xff] }
 0x272   : > { %v8533_v39 = vpop.eup %8532 }
 0x273   : > { %1606 = vadd.xlane.f32.xlu1 %v1605_v30  ;;  %v605_v30 = vld [vmem:[%s9553_s21 + $0x260] sm:$0xff]  ;;  %v10244_v21 = vpop.permute.xlu1 %4251  ;;  %v3821_v1 = vmul.f32 %v8533_v39, %v10164_v47  ;;  %v10266_v20 = vpop.eup %8534 }
 0x274   : > { %v10218_v27 = vadd.f32 %v9923_v9, %v605_v30  ;;  %v3368_v9 = vrot.slane %v3367_v32, 1  ;;  %v3523_v30 = vadd.f32 %v3522_v2, %v3521_v8  ;;  %13899 = vst [vmem:[#allocation27_spill] sm:$0xff] %v10244_v21  ;;  %v10253_v8 = vpop.xlane.xlu0 %1576  ;;  %v10256_v2 = vadd.f32 %v9943_v5, %v543_v12 }
 0x275   : > { %13900 = vst [vmem:[#allocation28_spill] sm:$0xff] %v10253_v8  ;;  %v2344_v5 = vsel %vm1937_vm1, %v10251_v55, -inf  ;;  %v3377_v39 = vsel %vm1937_vm1, %v10266_v20, 0.0 }
 0x276   : > { %v2470_v13 = vsel %vm1937_vm1, %v10218_v27, -inf  ;;  %v3369_v31 = vadd.f32 %v3368_v9, %v3367_v32  ;;  %v541_v32 = vld [vmem:[%s9553_s21 + $0x60] sm:$0xff]  ;;  %v2352_v9 = vrot.slane %v2351_v46, 4 }
 0x277   : > { %v2471_v34 = vrot.slane %v2470_v13, 4  ;;  %v10261_v0 = vadd.f32 %v10071_v48, %v541_v32  ;;  %v2036_v48 = vsel %vm1937_vm1, %v10256_v2, -inf  ;;  %v2345_v32 = vrot.slane %v2344_v5, 4 }
 0x278   : > { %8536 = vrcp.f32 %v3369_v31  ;;  %v2353_v47 = vmax.f32 %v2351_v46, %v2352_v9  ;;  %v542_v31 = vld [vmem:[%s9553_s21 + $0x68] sm:$0xff]  ;;  %v2037_v10 = vrot.slane %v2036_v48, 4 }
 0x279   : > { %v2472_v6 = vmax.f32 %v2470_v13, %v2471_v34  ;;  %8538 = vrcp.f32 %v3523_v30  ;;  %v3044_v13 = vrot.slane %v3043_v11, 2  ;;  %v3505_v30 = vadd.f32 %v3504_v28, %v3503_v29 }
 0x27a   : > { %4196 = vperm.xlu0 %8250, %v3866_v38   ;;  %v10263_v38 = vpop.permute.xlu2 %4261  ;;  %v2022_v44 = vsel %vm1937_vm1, %v10261_v0, -inf  ;;  %v10280_v46 = vadd.f32 %v9991_v54, %v542_v31  ;;  %8540 = vrcp.f32 %v3054_v56  ;;  %v2354_v28 = vrot.slane %v2353_v47, 2 }
 0x27b   : > { %13901 = vst [vmem:[#allocation29_spill] sm:$0xff] %v10263_v38  ;;  %v2473_v34 = vrot.slane %v2472_v6, 2  ;;  %v3045_v18 = vadd.f32 %v3044_v13, %v3043_v11  ;;  %v10282_v9 = vpop.permute.xlu1 %3926  ;;  %v3378_v38 = vrot.slane %v3377_v39, 4  ;;  %v2023_v21 = vrot.slane %v2022_v44, 4 }
 0x27c   : > { %v10291_v11 = vpop.xlane.xlu0 %1774  ;;  %v3506_v13 = vrot.slane %v3505_v30, 2  ;;  %v2346_v31 = vmax.f32 %v2344_v5, %v2345_v32 }
 0x27d   : > { %v2474_v29 = vmax.f32 %v2472_v6, %v2473_v34  ;;  %13902 = vst [vmem:[#allocation30_spill] sm:$0xff] %v10291_v11  ;;  %v3046_v56 = vrot.slane %v3045_v18, 1  ;;  %v2029_v6 = vsel %vm1937_vm1, %v10280_v46, -inf  ;;  %v2024_v40 = vmax.f32 %v2022_v44, %v2023_v21 }
 0x27e   : > { %v8537_v23 = vpop.eup %8536  ;;  %v2347_v5 = vrot.slane %v2346_v31, 2 }
 0x27f   : > { %v8539_v12 = vpop.eup %8538  ;;  %v2475_v34 = vrot.slane %v2474_v29, 1  ;;  %v3047_v32 = vadd.f32 %v3046_v56, %v3045_v18  ;;  %v2025_v3 = vrot.slane %v2024_v40, 2 }
 0x280   : > { %v3887_v54 = vmul.f32 %v8539_v12, %v10188_v59  ;;  %v2030_v12 = vrot.slane %v2029_v6, 4  ;;  %v2348_v21 = vmax.f32 %v2346_v31, %v2347_v5 }
 0x281   : > { %8542 = vrcp.f32 %v3047_v32  ;;  %v2026_v56 = vmax.f32 %v2024_v40, %v2025_v3 }
 0x282   : > { %3971 = vperm.xlu0 %8250, %v3821_v1   ;;  %v10285_v1 = vadd.f32 %v9963_v26, %v609_v19  ;;  %v2038_v26 = vmax.f32 %v2036_v48, %v2037_v10  ;;  %v8541_v19 = vpop.eup %8540  ;;  %v2476_v10 = vmax.f32 %v2474_v29, %v2475_v34 }
 0x284   : > { %1609 = vadd.xlane.f32.xlu2 %v1608_v15  ;;  %v3865_v15 = vmul.f32 %v8537_v23, %v10183_v41  ;;  %v2355_v41 = vmax.f32 %v2353_v47, %v2354_v28  ;;  %v2498_v23 = vsel %vm1937_vm1, %v10285_v1, -inf  ;;  %v2039_v52 = vrot.slane %v2038_v26, 2  ;;  %v10303_v8 = vpop.xlane.xlu0 %1585 }
 0x285   : > { %v2499_v48 = vrot.slane %v2498_v23, 4  ;;  %v3820_v47 = vmul.f32 %v8541_v19, %v10203_v53  ;;  %13903 = vst [vmem:[#allocation31_spill] sm:$0xff] %v10303_v8  ;;  %v2349_v53 = vrot.slane %v2348_v21, 1 }
 0x286   : > { %v2040_v18 = vmax.f32 %v2038_v26, %v2039_v52 }
 0x287   : > { %v8543_v31 = vpop.eup %8542  ;;  %v2350_v26 = vmax.f32 %v2348_v21, %v2349_v53  ;;  %v1090_v21 = vpop.f32.mrf.mxu0 }
 0x288   : > { %v2041_v51 = vrot.slane %v2040_v18, 1 }
 0x28a   : > { %4301 = vperm.xlu0 %8250, %v3887_v54   ;;  %v2356_v54 = vrot.slane %v2355_v41, 1  ;;  %v2042_v40 = vmax.f32 %v2040_v18, %v2041_v51 }
 0x28c   : > { %4281 = vperm.xlu1 %8249, %v3883_v62   ;;  %v607_v62 = vld [vmem:[%s9553_s21 + $0x270] sm:$0xff]  ;;  %v2357_v29 = vmax.f32 %v2355_v41, %v2356_v54 }
 0x28d   : > { %v10289_v57 = vadd.f32 %v10101_v22, %v607_v62  ;;  %v10298_v22 = vpop.permute.xlu2 %3936  ;;  %v3379_v62 = vadd.f32 %v3378_v38, %v3377_v39  ;;  %v10305_v38 = vpop.permute.xlu1 %4356  ;;  %v2031_v39 = vmax.f32 %v2029_v6, %v2030_v12  ;;  %v2027_v12 = vrot.slane %v2026_v56, 1 }
 0x28e   : > { %13904 = vst [vmem:[#allocation32_spill] sm:$0xff] %v10305_v38  ;;  %v2725_v5 = vsub.f32 %v10235_v61, %v2357_v29  ;;  %v2724_v61 = vsub.f32 %v10251_v55, %v2350_v26 }
 0x28f   : > { %v2484_v59 = vsel %vm1937_vm1, %v10289_v57, -inf  ;;  %v3380_v28 = vrot.slane %v3379_v62, 2  ;;  %v2032_v19 = vrot.slane %v2031_v39, 2  ;;  %v2028_v32 = vmax.f32 %v2026_v56, %v2027_v12 }
 0x290   : > { %v2485_v11 = vrot.slane %v2484_v59, 4 }
 0x291   : > { %v3381_v8 = vadd.f32 %v3380_v28, %v3379_v62  ;;  %v3819_v62 = vmul.f32 %v8543_v31, %v10215_v45 }
 0x292   : > { %v2486_v34 = vmax.f32 %v2484_v59, %v2485_v11  ;;  %v10311_v11 = vpop.permute.xlu0 %4346  ;;  %v2888_v59 = vmul.f32 1.442695, %v2725_v5  ;;  %v8808_v5 = vld [vmem:[%s9158_s26 + $0x8] sm:$0xff] }
 0x293   : > { %13906 = vst [vmem:[#allocation34_spill] sm:$0xff] %v10311_v11 }
 0x294   : > { %4191 = vperm.xlu1 %8249, %v3865_v15   ;;  %v3507_v15 = vadd.f32 %v3506_v13, %v3505_v30  ;;  %v2500_v30 = vmax.f32 %v2498_v23, %v2499_v48  ;;  %v2742_v13 = vsub.f32 %v10218_v27, %v2476_v10  ;;  %v2487_v52 = vrot.slane %v2486_v34, 2 }
 0x295   : > { %v10308_v16 = vpop.permute.xlu2 %4366  ;;  %v2033_v23 = vmax.f32 %v2031_v39, %v2032_v19  ;;  %v3382_v27 = vrot.slane %v3381_v8, 1  ;;  %v10313_v41 = vpop.permute.xlu1 %4161 }
 0x296   : > { %v3508_v44 = vrot.slane %v3507_v15, 1  ;;  %13905 = vst [vmem:[#allocation33_spill] sm:$0xff] %v10308_v16  ;;  %v2501_v38 = vrot.slane %v2500_v30, 2  ;;  %v2922_v6 = vmul.f32 1.442695, %v2742_v13 }
 0x297   : > { %13907 = vst [vmem:[#allocation35_spill] sm:$0xff] %v10313_v41  ;;  %v2034_v48 = vrot.slane %v2033_v23, 1  ;;  %v3383_v10 = vadd.f32 %v3382_v27, %v3381_v8 }
 0x298   : > { %v3509_v58 = vadd.f32 %v3508_v44, %v3507_v15  ;;  %v2502_v3 = vmax.f32 %v2500_v30, %v2501_v38  ;;  %v2488_v15 = vmax.f32 %v2486_v34, %v2487_v52  ;;  %v2678_v38 = vsub.f32 %v10261_v0, %v2028_v32 }
 0x299   : > { %v2886_v44 = vmul.f32 1.442695, %v2724_v61  ;;  %v2035_v18 = vmax.f32 %v2033_v23, %v2034_v48 }
 0x29a   : > { %8544 = vrcp.f32 %v3509_v58  ;;  %v2680_v58 = vsub.f32 %v10256_v2, %v2042_v40  ;;  %v2503_v51 = vrot.slane %v2502_v3, 1  ;;  %v2489_v45 = vrot.slane %v2488_v15, 1  ;;  %v3922_v34 = vpop.permute.xlu0 %3921 }
 0x29b   : > { %8546 = vpow2.f32 %v2922_v6  ;;  %v2794_v29 = vmul.f32 1.442695, %v2678_v38  ;;  %v4435_v12 = vmul.f32 %v8808_v5, %v3922_v34 }
 0x29c   : > { %3966 = vperm.xlu1 %8249, %v3820_v47   ;;  %3961 = vperm.xlu2 %8248, %v3819_v62   ;;  %8548 = vpow2.f32 %v2888_v59  ;;  %v589_v47 = vld [vmem:[%s9553_s21 + $0x1e0] sm:$0xff]  ;;  %v2798_v55 = vmul.f32 1.442695, %v2680_v58  ;;  %v2504_v2 = vmax.f32 %v2502_v3, %v2503_v51  ;;  %v2490_v56 = vmax.f32 %v2488_v15, %v2489_v45  ;;  %v8810_v62 = vld [vmem:[%s9158_s26 + $0x10] sm:$0xff]  ;;  %v10350_v15 = vpop.f32.mrf.mxu0  ;;  %v8812_v45 = vld [vmem:[%s9158_s26 + $0x18] sm:$0xff] }
 0x29d   : > { %v10319_v28 = vpop.permute.xlu2 %4171  ;;  %8550 = vrcp.f32 %v3383_v10  ;;  %v10325_v8 = vadd.f32 %v10133_v36, %v589_v47  ;;  %v10327_v30 = vpop.xlane.xlu1 %1597  ;;  %v2679_v36 = vsub.f32 %v10280_v46, %v2035_v18  ;;  %v8809_v46 = vld [vmem:[%s9158_s26] sm:$0xff]  ;;  %v4545_v10 = vsel %vm667_vm0, %v4435_v12, 0.0  ;;  %v462_v47 = vld [vmem:[%s9158_s26 + $0x128] sm:$0xff] }
 0x29e   : > { %13908 = vst [vmem:[#allocation36_spill] sm:$0xff] %v10319_v28  ;;  %8552 = vpow2.f32 %v2886_v44  ;;  %v2744_v26 = vsub.f32 %v10289_v57, %v2490_v56  ;;  %v4434_v27 = vmul.f32 %v8809_v46, %v10125_v24  ;;  %v4437_v44 = vmul.f32 %v8812_v45, %v10232_v63  ;;  %8030 = vmatmul.msk.f32.gmra.mxu0 %vm667_vm0, %v462_v47 }
 0x29f   : > { %13909 = vst [vmem:[#allocation37_spill] sm:$0xff] %v10327_v30  ;;  %8554 = vpow2.f32 %v2798_v55  ;;  %v2358_v19 = vsel %vm1937_vm1, %v10325_v8, -inf  ;;  %v2796_v40 = vmul.f32 1.442695, %v2679_v36 }
 0x2a0   : > { %v8545_v54 = vpop.eup %8544  ;;  %8556 = vpow2.f32 %v2794_v29  ;;  %v2359_v3 = vrot.slane %v2358_v19, 4  ;;  %v2926_v51 = vmul.f32 1.442695, %v2744_v26  ;;  %v5268_v29 = vld [vmem:[%s13799_s7 + $0x10] sm:$0xff]  ;;  %v4559_v12 = vsel %vm667_vm0, %v4437_v44, 0.0 }
 0x2a1   : > { %v10322_v39 = vpop.eup %8546  ;;  %v3885_v13 = vmul.f32 %v8545_v54, %v10238_v60  ;;  %v2746_v60 = vsub.f32 %v10285_v1, %v2504_v2  ;;  %v4436_v1 = vmul.f32 %v8810_v62, %v10282_v9  ;;  %v4538_v9 = vsel %vm667_vm0, %v4434_v27, 0.0  ;;  %v10364_v54 = vld [vmem:[%s13797_s5] ss:$0 sm:$0xff] }
 0x2a2   : > { %v3510_v0 = vsel %vm1937_vm1, %v10322_v39, 0.0  ;;  %v10332_v53 = vpop.eup %8548  ;;  %8558 = vpow2.f32 %v2796_v40  ;;  %v2360_v38 = vmax.f32 %v2358_v19, %v2359_v3  ;;  %v4546_v2 = vrot.slane %v4545_v10, 4 }
 0x2a3   : > { %v8551_v31 = vpop.eup %8550  ;;  %v3511_v6 = vrot.slane %v3510_v0, 4  ;;  %v3391_v23 = vsel %vm1937_vm1, %v10332_v53, 0.0  ;;  %v2930_v59 = vmul.f32 1.442695, %v2746_v60  ;;  %v4552_v18 = vsel %vm667_vm0, %v4436_v1, 0.0  ;;  %v463_v1 = vld [vmem:[%s9158_s26 + $0x130] sm:$0xff] }
 0x2a4   : > { %4291 = vperm.xlu2 %8248, %v3885_v13   ;;  %v3867_v57 = vmul.f32 %v8551_v31, %v10266_v20  ;;  %v10353_v61 = vpop.eup %8552  ;;  %v3392_v48 = vrot.slane %v3391_v23, 4  ;;  %v1091_v20 = vadd.f32 %v10364_v54, %v1090_v21  ;;  %v8813_v13 = vld [vmem:[%s9158_s26 + $0x20] sm:$0xff]  ;;  %v5269_v21 = vld [vmem:[%s13799_s7 + $0x18] sm:$0xff]  ;;  %v4539_v36 = vrot.slane %v4538_v9, 4  ;;  %v5267_v31 = vld [vmem:[%s13799_s7 + $0x8] sm:$0xff]  ;;  %v1096_v62 = vpop.f32.mrf.mxu0 }
 0x2a5   : > { %v10348_v32 = vpop.permute.xlu1 %4266  ;;  %v10356_v24 = vpop.eup %8554  ;;  %v10358_v58 = vadd.f32 %v3511_v6, %v3510_v0  ;;  %8560 = vpow2.f32 %v2930_v59  ;;  %v4438_v0 = vmul.f32 %v8813_v13, %v10298_v22  ;;  %v10384_v63 = vsel %vm1937_vm1, %v10353_v61, 0.0  ;;  %5514 = vmatpush.msrb.mxu1 %v5269_v21  ;;  %v5266_v59 = vld [vmem:[%s13799_s7] sm:$0xff]  ;;  %v8815_v13 = vld [vmem:[%s9158_s26 + $0x30] sm:$0xff] }
 0x2a6   : > { %v10339_v52 = vpop.xlane.xlu2 %1600  ;;  %13911 = vst [vmem:[#allocation39_spill] sm:$0xff] %v10348_v32  ;;  %v10372_v55 = vpop.eup %8556  ;;  %v3393_v56 = vadd.f32 %v3392_v48, %v3391_v23  ;;  %v3076_v34 = vsel %vm1937_vm1, %v10356_v24, 0.0  ;;  %v4553_v19 = vrot.slane %v4552_v18, 4  ;;  %v1340_v60 = vmax.f32 %v1091_v20, 0.0  ;;  %v8814_v20 = vld [vmem:[%s9158_s26 + $0x28] sm:$0xff]  ;;  %8031 = vmatmul.msk.f32.gmra.mxu0 %vm667_vm0, %v463_v1 }
 0x2a7   : > { %13910 = vst [vmem:[#allocation38_spill] sm:$0xff] %v10339_v52  ;;  %v10394_v6 = vsel %vm1937_vm1, %v10372_v55, 0.0  ;;  %8562 = vpow2.f32 %v2926_v51  ;;  %v2361_v5 = vrot.slane %v2360_v38, 2  ;;  %5515 = vmatpush.msrb.mxu1 %v5268_v29  ;;  %v3385_v23 = vrot.slane %v10384_v63, 4  ;;  %v10413_v21 = vld [vmem:[%s13798_s6] ss:$0 sm:$0xff] }
 0x2a8   : > { %v3077_v46 = vrot.slane %v3076_v34, 4  ;;  %v4547_v27 = vadd.f32 %v4546_v2, %v4545_v10  ;;  %v4566_v40 = vsel %vm667_vm0, %v4438_v0, 0.0  ;;  %v3394_v48 = vrot.slane %v3393_v56, 2 }
 0x2a9   : > { %v4540_v51 = vadd.f32 %v4539_v36, %v4538_v9  ;;  %v1097_v45 = vadd.f32 %v10364_v54, %v1096_v62  ;;  %5516 = vmatpush.msrb.mxu1 %v5267_v31  ;;  %v4560_v44 = vrot.slane %v4559_v12, 4  ;;  %v4554_v2 = vadd.f32 %v4553_v19, %v4552_v18 }
 0x2aa   : > { %v1448_v29 = vmul.f32 %v10413_v21, %v1340_v60  ;;  %v2362_v22 = vmax.f32 %v2360_v38, %v2361_v5  ;;  %v4567_v9 = vrot.slane %v4566_v40, 4  ;;  %v3078_v19 = vadd.f32 %v3077_v46, %v3076_v34 }
 0x2ab   : > { %5517 = vmatpush.msrb.mxu1 %v5266_v59  ;;  %v4548_v31 = vrot.slane %v4547_v27, 2  ;;  %v4541_v60 = vrot.slane %v4540_v51, 2  ;;  %v3395_v5 = vadd.f32 %v3394_v48, %v3393_v56  ;;  %v3063_v28 = vrot.slane %v10394_v6, 4  ;;  %v464_v56 = vld [vmem:[%s9158_s26 + $0x138] sm:$0xff] }
 0x2ac   : > { %4201 = vperm.xlu2 %8248, %v3867_v57   ;;  %v10403_v57 = vpop.eup %8558  ;;  %v1614_v59 = vsel %vm667_vm0, %v1448_v29, 0.0  ;;  %v2363_v34 = vrot.slane %v2362_v22, 1  ;;  %v4568_v46 = vadd.f32 %v4567_v9, %v4566_v40  ;;  %v3079_v48 = vrot.slane %v3078_v19, 2 }
 0x2ad   : > { %v3942_v3 = vpop.permute.xlu1 %3941  ;;  %v10407_v10 = vpop.eup %8560  ;;  %v3069_v18 = vsel %vm1937_vm1, %v10403_v57, 0.0  ;;  %v4549_v41 = vadd.f32 %v4548_v31, %v4547_v27  ;;  %v4542_v29 = vadd.f32 %v4541_v60, %v4540_v51  ;;  %v13913_v27 = vrot.slane %v10358_v58, 2 }
 0x2ae   : > { %v3947_v26 = vpop.permute.xlu2 %3946  ;;  %v4439_v47 = vmul.f32 %v8814_v20, %v3942_v3  ;;  %v1342_v3 = vmax.f32 %v1097_v45, 0.0  ;;  %v10420_v62 = vpop.eup %8562  ;;  %v3538_v20 = vsel %vm1937_vm1, %v10407_v10, 0.0  ;;  %v4555_v45 = vrot.slane %v4554_v2, 2  ;;  %8032 = vmatmul.msk.f32.gmra.mxu0 %vm667_vm0, %v464_v56 }
 0x2af   : > { %v4440_v0 = vmul.f32 %v8815_v13, %v3947_v26  ;;  %v3070_v13 = vrot.slane %v3069_v18, 4  ;;  %v3539_v16 = vrot.slane %v3538_v20, 4  ;;  %v4569_v52 = vrot.slane %v4568_v46, 2 }
 0x2b0   : > { %v4573_v36 = vsel %vm667_vm0, %v4439_v47, 0.0  ;;  %v1450_v38 = vmul.f32 %v10413_v21, %v1342_v3  ;;  %v4561_v47 = vadd.f32 %v4560_v44, %v4559_v12  ;;  %v3386_v12 = vadd.f32 %v3385_v23, %v10384_v63 }
 0x2b1   : > { %v4574_v26 = vrot.slane %v4573_v36, 4  ;;  %v4580_v1 = vsel %vm667_vm0, %v4440_v0, 0.0  ;;  %v3396_v0 = vrot.slane %v3395_v5, 1  ;;  %v4556_v40 = vadd.f32 %v4555_v45, %v4554_v2 }
 0x2b2   : > { %v1620_v32 = vsel %vm667_vm0, %v1450_v38, 0.0  ;;  %v4581_v44 = vrot.slane %v4580_v1, 4  ;;  %v4562_v3 = vrot.slane %v4561_v47, 2  ;;  %v10433_v9 = vadd.f32 %v3070_v13, %v3069_v18 }
 0x2b3   : > { %v4575_v11 = vadd.f32 %v4574_v26, %v4573_v36  ;;  %v2364_v38 = vmax.f32 %v2362_v22, %v2363_v34  ;;  %v10440_v36 = vadd.f32 %v3063_v28, %v10394_v6  ;;  %v3540_v63 = vadd.f32 %v3539_v16, %v3538_v20  ;;  %v8817_v34 = vld [vmem:[%s9158_s26 + $0x38] sm:$0xff] }
 0x2b4   : > { %1621 = vadd.xlane.f32.xlu0 %v1620_v32  ;;  %v3514_v32 = vadd.f32 %v13913_v27, %v10358_v58  ;;  %v4550_v23 = vrot.slane %v4549_v41, 1  ;;  %v3387_v26 = vrot.slane %v3386_v12, 2  ;;  %v4582_v51 = vadd.f32 %v4581_v44, %v4580_v1 }
 0x2b5   : > { %v10429_v30 = vpop.permute.xlu1 %4176  ;;  %v4576_v31 = vrot.slane %v4575_v11, 2  ;;  %v3397_v60 = vadd.f32 %v3396_v0, %v3395_v5  ;;  %v3080_v2 = vadd.f32 %v3079_v48, %v3078_v19  ;;  %v10444_v22 = vsel %vm1937_vm1, %v10420_v62, 0.0 }
 0x2b6   : > { %13912 = vst [vmem:[#allocation40_spill] sm:$0xff] %v10429_v30  ;;  %v4543_v18 = vrot.slane %v4542_v29, 1  ;;  %v4563_v45 = vadd.f32 %v4562_v3, %v4561_v47  ;;  %v3072_v58 = vrot.slane %v10433_v9, 2  ;;  %v2726_v28 = vsub.f32 %v10325_v8, %v2364_v38  ;;  %v591_v3 = vld [vmem:[%s9553_s21 + $0x1f0] sm:$0xff] }
 0x2b7   : > { %v4570_v6 = vadd.f32 %v4569_v52, %v4568_v46  ;;  %v3515_v16 = vrot.slane %v3514_v32, 1  ;;  %v3541_v20 = vrot.slane %v3540_v63, 2  ;;  %v4551_v1 = vadd.f32 %v4550_v23, %v4549_v41 }
 0x2b8   : > { %v4577_v5 = vadd.f32 %v4576_v31, %v4575_v11  ;;  %v4583_v19 = vrot.slane %v4582_v51, 2  ;;  %8564 = vrcp.f32 %v3397_v60  ;;  %v3081_v48 = vrot.slane %v3080_v2, 1 }
 0x2b9   : > { %v4544_v44 = vadd.f32 %v4543_v18, %v4542_v29  ;;  %v4564_v47 = vrot.slane %v4563_v45, 1  ;;  %v4571_v27 = vrot.slane %v4570_v6, 1  ;;  %v3516_v52 = vadd.f32 %v3515_v16, %v3514_v32 }
 0x2ba   : > { %v3388_v46 = vadd.f32 %v3387_v26, %v3386_v12  ;;  %v2890_v38 = vmul.f32 1.442695, %v2726_v28  ;;  %v1094_v11 = vadd.f32 %v10364_v54, %v10350_v15  ;;  %v4578_v41 = vrot.slane %v4577_v5, 1 }
 0x2bb   : > { %v5379_v31 = vsel %vm5378_vm2, %v4551_v1, %v4544_v44  ;;  %v4584_v60 = vadd.f32 %v4583_v19, %v4582_v51  ;;  %v3542_v29 = vadd.f32 %v3541_v20, %v3540_v63  ;;  %v10455_v18 = vadd.f32 %v10022_v14, %v591_v3 }
 0x2bc   : > { %v4572_v12 = vadd.f32 %v4571_v27, %v4570_v6  ;;  %8566 = vrcp.f32 %v3516_v52  ;;  %v3389_v15 = vrot.slane %v3388_v46, 1  ;;  %v1341_v26 = vmax.f32 %v1094_v11, 0.0  ;;  %v608_v6 = vld [vmem:[%s9553_s21 + $0x278] sm:$0xff] }
 0x2bd   : > { %v3952_v13 = vpop.permute.xlu1 %3951  ;;  %v4579_v28 = vadd.f32 %v4578_v41, %v4577_v5  ;;  %v4585_v51 = vrot.slane %v4584_v60, 1  ;;  %v3543_v14 = vrot.slane %v3542_v29, 1  ;;  %v2372_v20 = vsel %vm1937_vm1, %v10455_v18, -inf }
 0x2be   : > { %v4441_v56 = vmul.f32 %v8817_v34, %v3952_v13  ;;  %v3082_v13 = vadd.f32 %v3081_v48, %v3080_v2  ;;  %v8565_v32 = vpop.eup %8564  ;;  %v3390_v5 = vadd.f32 %v3389_v15, %v3388_v46  ;;  %v3073_v19 = vadd.f32 %v3072_v58, %v10433_v9 }
 0x2bf   : > { %v3869_v2 = vmul.f32 %v8565_v32, %v10332_v53  ;;  %v3544_v3 = vadd.f32 %v3543_v14, %v3542_v29  ;;  %v3525_v27 = vrot.slane %v10444_v22, 4  ;;  %v2373_v52 = vrot.slane %v2372_v20, 4 }
 0x2c0   : > { %v4587_v8 = vsel %vm667_vm0, %v4441_v56, 0.0  ;;  %8568 = vrcp.f32 %v3082_v13  ;;  %v546_v56 = vld [vmem:[%s9553_s21 + $0x88] sm:$0xff]  ;;  %v3074_v11 = vrot.slane %v3073_v19, 1 }
 0x2c1   : > { %v4588_v23 = vrot.slane %v4587_v8, 4  ;;  %8570 = vpow2.f32 %v2890_v38  ;;  %v10473_v46 = vadd.f32 %v10034_v49, %v546_v56  ;;  %v590_v13 = vld [vmem:[%s9553_s21 + $0x1e8] sm:$0xff]  ;;  %v2374_v29 = vmax.f32 %v2372_v20, %v2373_v52 }
 0x2c2   : > { %v8567_v53 = vpop.eup %8566  ;;  %8572 = vrcp.f32 %v3390_v5  ;;  %v3075_v32 = vadd.f32 %v3074_v11, %v3073_v19 }
 0x2c3   : > { %v4589_v34 = vadd.f32 %v4588_v23, %v4587_v8  ;;  %v10470_v8 = vadd.f32 %v10017_v25, %v608_v6  ;;  %v3065_v23 = vrot.slane %v10440_v36, 2  ;;  %8574 = vrcp.f32 %v3544_v3 }
 0x2c4   : > { %8576 = vrcp.f32 %v3075_v32 }
 0x2c5   : > { %v4590_v16 = vrot.slane %v4589_v34, 2  ;;  %v2491_v49 = vsel %vm1937_vm1, %v10470_v8, -inf  ;;  %v3066_v15 = vadd.f32 %v3065_v23, %v10440_v36  ;;  %v544_v23 = vld [vmem:[%s9553_s21 + $0x78] sm:$0xff] }
 0x2c6   : > { %1615 = vadd.xlane.f32.xlu1 %v1614_v59  ;;  %v4557_v59 = vrot.slane %v4556_v40, 1  ;;  %v8569_v58 = vpop.eup %8568 }
 0x2c7   : > { %v4591_v63 = vadd.f32 %v4590_v16, %v4589_v34  ;;  %v10476_v41 = vpop.eup %8570  ;;  %v2057_v34 = vsel %vm1937_vm1, %v10473_v46, -inf  ;;  %v2375_v16 = vrot.slane %v2374_v29, 2 }
 0x2c8   : > { %v4558_v0 = vadd.f32 %v4557_v59, %v4556_v40  ;;  %v4565_v40 = vadd.f32 %v4564_v47, %v4563_v45  ;;  %4211 = vperm.xlu0 %8250, %v3869_v2   ;;  %v1449_v47 = vmul.f32 %v10413_v21, %v1341_v26  ;;  %v8573_v26 = vpop.eup %8572 }
 0x2c9   : > { %v4592_v48 = vrot.slane %v4591_v63, 1  ;;  %v3868_v36 = vmul.f32 %v8573_v26, %v10353_v61  ;;  %v2376_v20 = vmax.f32 %v2374_v29, %v2375_v16 }
 0x2ca   : > { %v5381_v59 = vsel %vm5380_vm3, %v4558_v0, %v5379_v31  ;;  %v4586_v0 = vadd.f32 %v4585_v51, %v4584_v60  ;;  %v1617_v25 = vsel %vm667_vm0, %v1449_v47, 0.0  ;;  %v3886_v60 = vmul.f32 %v8567_v53, %v10322_v39 }
 0x2cb   : > { %v5383_v45 = vsel %vm5382_vm4, %v4565_v40, %v5381_v59  ;;  %v4593_v9 = vadd.f32 %v4592_v48, %v4591_v63  ;;  %v3824_v40 = vmul.f32 %v8569_v58, %v10356_v24  ;;  %v3526_v59 = vadd.f32 %v3525_v27, %v10444_v22  ;;  %v8575_v22 = vpop.eup %8574  ;;  %v545_v48 = vld [vmem:[%s9553_s21 + $0x80] sm:$0xff] }
 0x2cc   : > { %v5385_v1 = vsel %vm5384_vm5, %v4572_v12, %v5383_v45  ;;  %v10491_v39 = vadd.f32 %v10055_v43, %v590_v13  ;;  %v612_v12 = vld [vmem:[%s9553_s21 + $0x298] sm:$0xff]  ;;  %v3398_v24 = vsel %vm1937_vm1, %v10476_v41, 0.0  ;;  %v2058_v51 = vrot.slane %v2057_v34, 4  ;;  %v8577_v53 = vpop.eup %8576 }
 0x2cd   : > { %v5387_v44 = vsel %vm5386_vm6, %v4579_v28, %v5385_v1  ;;  %v2492_v28 = vrot.slane %v2491_v49, 4  ;;  %v3527_v14 = vrot.slane %v3526_v59, 2  ;;  %v10498_v63 = vadd.f32 %v10058_v42, %v612_v12 }
 0x2ce   : > { %v5389_v38 = vsel %vm5388_vm7, %v4586_v0, %v5387_v44  ;;  %v3399_v43 = vrot.slane %v3398_v24, 4  ;;  %v2365_v2 = vsel %vm1937_vm1, %v10491_v39, -inf  ;;  %v3067_v45 = vrot.slane %v3066_v15, 1 }
 0x2cf   : > { %v5391_v31 = vsel %vm5390_vm8, %v4593_v9, %v5389_v38  ;;  %v2493_v6 = vmax.f32 %v2491_v49, %v2492_v28  ;;  %v2059_v1 = vmax.f32 %v2057_v34, %v2058_v51  ;;  %v3890_v5 = vmul.f32 %v8575_v22, %v10407_v10  ;;  %v610_v51 = vld [vmem:[%s9553_s21 + $0x288] sm:$0xff] }
 0x2d0   : > { %8097 = vmatmul.msk.f32.vlgmr.msrb.gmra.mxu1 %vm667_vm0, %v5391_v31  ;;  %3986 = vperm.xlu0 %8250, %v3824_v40   ;;  %v2366_v19 = vrot.slane %v2365_v2, 4  ;;  %v2519_v56 = vsel %vm1937_vm1, %v10498_v63, -inf  ;;  %v3400_v42 = vadd.f32 %v3399_v43, %v3398_v24  ;;  %v3068_v44 = vadd.f32 %v3067_v45, %v3066_v15 }
 0x2d1   : > { %v3528_v47 = vadd.f32 %v3527_v14, %v3526_v59  ;;  %v2494_v0 = vrot.slane %v2493_v6, 2  ;;  %v2377_v3 = vrot.slane %v2376_v20, 1  ;;  %v2060_v61 = vrot.slane %v2059_v1, 2 }
 0x2d2   : > { %v2520_v27 = vrot.slane %v2519_v56, 4  ;;  %v2367_v52 = vmax.f32 %v2365_v2, %v2366_v19  ;;  %v10508_v9 = vadd.f32 %v10082_v17, %v545_v48  ;;  %v3401_v10 = vrot.slane %v3400_v42, 2 }
 0x2d3   : > { %8578 = vrcp.f32 %v3068_v44  ;;  %v3529_v58 = vrot.slane %v3528_v47, 1  ;;  %v3823_v38 = vmul.f32 %v8577_v53, %v10403_v57  ;;  %v2495_v11 = vmax.f32 %v2493_v6, %v2494_v0 }
 0x2d4   : > { %v2378_v31 = vmax.f32 %v2376_v20, %v2377_v3  ;;  %v2050_v13 = vsel %vm1937_vm1, %v10508_v9, -inf  ;;  %v10515_v49 = vadd.f32 %v10159_v4, %v544_v23  ;;  %v2368_v17 = vrot.slane %v2367_v52, 2 }
 0x2d5   : > { %1618 = vadd.xlane.f32.xlu2 %v1617_v25  ;;  %v2061_v25 = vmax.f32 %v2059_v1, %v2060_v61  ;;  %v3530_v29 = vadd.f32 %v3529_v58, %v3528_v47  ;;  %v3402_v40 = vadd.f32 %v3401_v10, %v3400_v42  ;;  %v2496_v59 = vrot.slane %v2495_v11, 1  ;;  %v1099_v42 = vpop.f32.mrf.mxu0 }
 0x2d6   : > { %v2728_v57 = vsub.f32 %v10455_v18, %v2378_v31  ;;  %v2051_v32 = vrot.slane %v2050_v13, 4  ;;  %v2043_v26 = vsel %vm1937_vm1, %v10515_v49, -inf  ;;  %v2369_v28 = vmax.f32 %v2367_v52, %v2368_v17  ;;  %v10540_v31 = vpop.permute.xlu0 %4151 }
 0x2d7   : > { %v2062_v12 = vrot.slane %v2061_v25, 1  ;;  %8580 = vrcp.f32 %v3530_v29  ;;  %v3403_v24 = vrot.slane %v3402_v40, 1  ;;  %v2497_v16 = vmax.f32 %v2495_v11, %v2496_v59  ;;  %13914 = vst [vmem:[#allocation41_spill] sm:$0xff] %v10540_v31 }
 0x2d8   : > { %4316 = vperm.xlu0 %8250, %v3890_v5   ;;  %v2894_v22 = vmul.f32 1.442695, %v2728_v57  ;;  %v2052_v14 = vmax.f32 %v2050_v13, %v2051_v32  ;;  %v2044_v45 = vrot.slane %v2043_v26, 4  ;;  %v2370_v18 = vrot.slane %v2369_v28, 1 }
 0x2d9   : > { %v8579_v34 = vpop.eup %8578  ;;  %v2063_v43 = vmax.f32 %v2061_v25, %v2062_v12  ;;  %v2745_v6 = vsub.f32 %v10470_v8, %v2497_v16  ;;  %v10524_v20 = vadd.f32 %v10185_v50, %v610_v51  ;;  %v592_v50 = vld [vmem:[%s9553_s21 + $0x1f8] sm:$0xff]  ;;  %v1100_v12 = vadd.f32 %v10364_v54, %v1099_v42 }
 0x2da   : > { %v3822_v4 = vmul.f32 %v8579_v34, %v10372_v55  ;;  %8582 = vpow2.f32 %v2894_v22  ;;  %v2053_v5 = vrot.slane %v2052_v14, 2  ;;  %v2371_v48 = vmax.f32 %v2369_v28, %v2370_v18 }
 0x2db   : > { %v2683_v55 = vsub.f32 %v10473_v46, %v2063_v43  ;;  %v2928_v44 = vmul.f32 1.442695, %v2745_v6  ;;  %v2505_v47 = vsel %vm1937_vm1, %v10524_v20, -inf  ;;  %v10535_v10 = vadd.f32 %v10221_v7, %v592_v50 }
 0x2dc   : > { %v2054_v53 = vmax.f32 %v2052_v14, %v2053_v5  ;;  %v2727_v46 = vsub.f32 %v10491_v39, %v2371_v48  ;;  %v2506_v52 = vrot.slane %v2505_v47, 4  ;;  %v1343_v43 = vmax.f32 %v1100_v12, 0.0  ;;  %v466_v5 = vld [vmem:[%s9158_s26 + $0x148] sm:$0xff] }
 0x2dd   : > { %v8581_v1 = vpop.eup %8580  ;;  %v2804_v0 = vmul.f32 1.442695, %v2683_v55  ;;  %v2379_v39 = vsel %vm1937_vm1, %v10535_v10, -inf  ;;  %v10544_v13 = vpop.f32.mrf.mxu0 }
 0x2de   : > { %v3888_v8 = vmul.f32 %v8581_v1, %v10420_v62  ;;  %v2892_v25 = vmul.f32 1.442695, %v2727_v46  ;;  %v2380_v32 = vrot.slane %v2379_v39, 4  ;;  %v10559_v14 = vpop.permute.xlu0 %4256 }
 0x2df   : > { %4296 = vperm.xlu1 %8249, %v3886_v60   ;;  %v2521_v60 = vmax.f32 %v2519_v56, %v2520_v27  ;;  %v2045_v56 = vmax.f32 %v2043_v26, %v2044_v45  ;;  %13915 = vst [vmem:[#allocation42_spill] sm:$0xff] %v10559_v14 }
 0x2e0   : > { %v10531_v27 = vpop.eup %8582  ;;  %v2381_v51 = vmax.f32 %v2379_v39, %v2380_v32 }
 0x2e1   : > { %v2522_v15 = vrot.slane %v2521_v60, 2  ;;  %v2046_v61 = vrot.slane %v2045_v56, 2  ;;  %v3412_v23 = vsel %vm1937_vm1, %v10531_v27, 0.0 }
 0x2e2   : > { %v3413_v17 = vrot.slane %v3412_v23, 4 }
 0x2e3   : > { %v2523_v2 = vmax.f32 %v2521_v60, %v2522_v15  ;;  %v2047_v11 = vmax.f32 %v2045_v56, %v2046_v61  ;;  %v2507_v60 = vmax.f32 %v2505_v47, %v2506_v52  ;;  %v465_v15 = vld [vmem:[%s9158_s26 + $0x140] sm:$0xff]  ;;  %v2382_v56 = vrot.slane %v2381_v51, 2 }
 0x2e4   : > { %v3414_v28 = vadd.f32 %v3413_v17, %v3412_v23  ;;  %8033 = vmatmul.msk.f32.gmra.mxu0 %vm667_vm0, %v465_v15  ;;  %v1451_v47 = vmul.f32 %v10413_v21, %v1343_v43 }
 0x2e5   : > { %v2524_v19 = vrot.slane %v2523_v2, 1  ;;  %v2048_v59 = vrot.slane %v2047_v11, 1  ;;  %v2508_v57 = vrot.slane %v2507_v60, 2  ;;  %v2383_v61 = vmax.f32 %v2381_v51, %v2382_v56  ;;  %v594_v51 = vld [vmem:[%s9553_s21 + $0x208] sm:$0xff] }
 0x2e6   : > { %v3415_v18 = vrot.slane %v3414_v28, 2 }
 0x2e7   : > { %4206 = vperm.xlu1 %8249, %v3868_v36   ;;  %v3404_v36 = vadd.f32 %v3403_v24, %v3402_v40  ;;  %v2525_v3 = vmax.f32 %v2523_v2, %v2524_v19  ;;  %v2049_v24 = vmax.f32 %v2047_v11, %v2048_v59  ;;  %v1105_v2 = vpop.f32.mrf.mxu0  ;;  %v2384_v17 = vrot.slane %v2383_v61, 1 }
 0x2e8   : > { %v1106_v6 = vadd.f32 %v10364_v54, %v1105_v2 }
 0x2e9   : > { %8584 = vrcp.f32 %v3404_v36  ;;  %v2749_v62 = vsub.f32 %v10498_v63, %v2525_v3  ;;  %v2681_v1 = vsub.f32 %v10515_v49, %v2049_v24  ;;  %v3416_v49 = vadd.f32 %v3415_v18, %v3414_v28 }
 0x2ea   : > { %8586 = vpow2.f32 %v2928_v44  ;;  %v1345_v42 = vmax.f32 %v1106_v6, 0.0  ;;  %v10595_v18 = vadd.f32 %v10088_v33, %v594_v51  ;;  %v593_v51 = vld [vmem:[%s9553_s21 + $0x200] sm:$0xff] }
 0x2eb   : > { %8588 = vpow2.f32 %v2804_v0  ;;  %v2936_v40 = vmul.f32 1.442695, %v2749_v62  ;;  %v2800_v0 = vmul.f32 1.442695, %v2681_v1  ;;  %v1623_v62 = vsel %vm667_vm0, %v1451_v47, 0.0 }
 0x2ec   : > { %8590 = vpow2.f32 %v2892_v25  ;;  %8034 = vmatmul.msk.f32.gmra.mxu0 %vm667_vm0, %v466_v5  ;;  %v3417_v25 = vrot.slane %v3416_v49, 1  ;;  %v2393_v47 = vsel %vm1937_vm1, %v10595_v18, -inf }
 0x2ed   : > { %3976 = vperm.xlu2 %8248, %v3822_v4   ;;  %8592 = vpow2.f32 %v2936_v40  ;;  %v2509_v4 = vmax.f32 %v2507_v60, %v2508_v57  ;;  %v467_v60 = vld [vmem:[%s9158_s26 + $0x150] sm:$0xff] }
 0x2ee   : > { %v3418_v32 = vadd.f32 %v3417_v25, %v3416_v49 }
 0x2ef   : > { %3981 = vperm.xlu1 %8249, %v3823_v38   ;;  %v8585_v58 = vpop.eup %8584  ;;  %v2055_v38 = vrot.slane %v2054_v53, 1  ;;  %v2510_v19 = vrot.slane %v2509_v4, 1 }
 0x2f0   : > { %v3870_v7 = vmul.f32 %v8585_v58, %v10476_v41  ;;  %v10547_v63 = vpop.eup %8586 }
 0x2f1   : > { %v2056_v29 = vmax.f32 %v2054_v53, %v2055_v38  ;;  %v10549_v34 = vpop.eup %8588  ;;  %v3531_v26 = vsel %vm1937_vm1, %v10547_v63, 0.0  ;;  %v1453_v53 = vmul.f32 %v10413_v21, %v1345_v42  ;;  %v2511_v3 = vmax.f32 %v2509_v4, %v2510_v19  ;;  %v10576_v38 = vpop.xlane.xlu0 %1594 }
 0x2f2   : > { %v3097_v16 = vsel %vm1937_vm1, %v10549_v34, 0.0  ;;  %v3532_v22 = vrot.slane %v3531_v26, 4  ;;  %v10561_v45 = vpop.eup %8590 }
 0x2f3   : > { %v2682_v41 = vsub.f32 %v10508_v9, %v2056_v29  ;;  %v3098_v9 = vrot.slane %v3097_v16, 4  ;;  %v10566_v55 = vpop.eup %8592  ;;  %v3405_v44 = vsel %vm1937_vm1, %v10561_v45, 0.0  ;;  %v1629_v46 = vsel %vm667_vm0, %v1453_v53, 0.0 }
 0x2f4   : > { %v3533_v48 = vadd.f32 %v3532_v22, %v3531_v26  ;;  %v3559_v50 = vsel %vm1937_vm1, %v10566_v55, 0.0  ;;  %v3406_v58 = vrot.slane %v3405_v44, 4  ;;  %8035 = vmatmul.msk.f32.gmra.mxu0 %vm667_vm0, %v467_v60  ;;  %v2385_v26 = vmax.f32 %v2383_v61, %v2384_v17 }
 0x2f5   : > { %4306 = vperm.xlu2 %8248, %v3888_v8   ;;  %v2802_v36 = vmul.f32 1.442695, %v2682_v41  ;;  %v3099_v8 = vadd.f32 %v3098_v9, %v3097_v16  ;;  %v3560_v23 = vrot.slane %v3559_v50, 4 }
 0x2f6   : > { %v3534_v52 = vrot.slane %v3533_v48, 2  ;;  %v3407_v29 = vadd.f32 %v3406_v58, %v3405_v44  ;;  %v2729_v2 = vsub.f32 %v10535_v10, %v2385_v26  ;;  %v621_v44 = vld [vmem:[%s9553_s21 + $0x2e0] sm:$0xff] }
 0x2f7   : > { %8594 = vpow2.f32 %v2802_v36  ;;  %v3100_v11 = vrot.slane %v3099_v8, 2  ;;  %v3561_v57 = vadd.f32 %v3560_v23, %v3559_v50  ;;  %v1103_v36 = vadd.f32 %v10364_v54, %v10544_v13 }
 0x2f8   : > { %8596 = vpow2.f32 %v2800_v0  ;;  %v3535_v40 = vadd.f32 %v3534_v52, %v3533_v48  ;;  %v3408_v41 = vrot.slane %v3407_v29, 2  ;;  %v2896_v48 = vmul.f32 1.442695, %v2729_v2 }
 0x2f9   : > { %v3101_v59 = vadd.f32 %v3100_v11, %v3099_v8  ;;  %v3562_v4 = vrot.slane %v3561_v57, 2  ;;  %8598 = vrcp.f32 %v3418_v32  ;;  %v10589_v22 = vpop.permute.xlu0 %4361  ;;  %v1344_v8 = vmax.f32 %v1103_v36, 0.0 }
 0x2fa   : > { %v3536_v24 = vrot.slane %v3535_v40, 1  ;;  %13916 = vst [vmem:[#allocation43_spill] sm:$0xff] %v10589_v22  ;;  %v3409_v6 = vadd.f32 %v3408_v41, %v3407_v29  ;;  %v10606_v49 = vadd.f32 %v9751_v35, %v621_v44  ;;  %v2394_v50 = vrot.slane %v2393_v47, 4 }
 0x2fb   : > { %v3102_v16 = vrot.slane %v3101_v59, 1  ;;  %v3563_v5 = vadd.f32 %v3562_v4, %v3561_v57  ;;  %v1452_v61 = vmul.f32 %v10413_v21, %v1344_v8 }
 0x2fc   : > { %v3537_v9 = vadd.f32 %v3536_v24, %v3535_v40  ;;  %v3410_v10 = vrot.slane %v3409_v6, 1  ;;  %v2582_v35 = vsel %vm1937_vm1, %v10606_v49, -inf  ;;  %v2395_v60 = vmax.f32 %v2393_v47, %v2394_v50  ;;  %v549_v40 = vld [vmem:[%s9553_s21 + $0xa0] sm:$0xff]  ;;  %v13918_v24 = vld [vmem:[#allocation14_spill] sm:$0xff] }
 0x2fd   : > { %4216 = vperm.xlu2 %8248, %v3870_v7   ;;  %v10580_v39 = vpop.eup %8594  ;;  %v2747_v7 = vsub.f32 %v10524_v20, %v2511_v3  ;;  %v3103_v19 = vadd.f32 %v3102_v16, %v3101_v59  ;;  %v3564_v54 = vrot.slane %v3563_v5, 1  ;;  %v1626_v21 = vsel %vm667_vm0, %v1452_v61, 0.0  ;;  %v548_v61 = vld [vmem:[%s9553_s21 + $0x98] sm:$0xff] }
 0x2fe   : > { %v3090_v12 = vsel %vm1937_vm1, %v10580_v39, 0.0  ;;  %v10586_v28 = vpop.eup %8596 }
 0x2ff   : > { %v2932_v15 = vmul.f32 1.442695, %v2747_v7  ;;  %v3091_v20 = vrot.slane %v3090_v12, 4  ;;  %v3083_v43 = vsel %vm1937_vm1, %v10586_v28, 0.0  ;;  %v8599_v56 = vpop.eup %8598  ;;  %v3565_v11 = vadd.f32 %v3564_v54, %v3563_v5 }
 0x300   : > { %v3084_v42 = vrot.slane %v3083_v43, 4  ;;  %v3872_v13 = vmul.f32 %v8599_v56, %v10531_v27  ;;  %v13920_v56 = vld [vmem:[#allocation17_spill] sm:$0xff] }
 0x301   : > { %8600 = vpow2.f32 %v2932_v15  ;;  %v3092_v1 = vadd.f32 %v3091_v20, %v3090_v12  ;;  %v10608_v3 = vpop.permute.xlu0 %4166  ;;  %v2583_v12 = vrot.slane %v2582_v35, 4  ;;  %v2396_v15 = vrot.slane %v2395_v60, 2 }
 0x302   : > { %1630 = vadd.xlane.f32.xlu0 %v1629_v46  ;;  %8602 = vrcp.f32 %v3537_v9  ;;  %v3085_v0 = vadd.f32 %v3084_v42, %v3083_v43  ;;  %13917 = vst [vmem:[#allocation44_spill] sm:$0xff] %v10608_v3  ;;  %v3411_v46 = vadd.f32 %v3410_v10, %v3409_v6  ;;  %v10628_v20 = vadd.f32 %v13918_v24, %v549_v40  ;;  %v13922_v24 = vld [vmem:[#allocation28_spill] sm:$0xff] }
 0x303   : > { %v3093_v53 = vrot.slane %v3092_v1, 2  ;;  %8604 = vrcp.f32 %v3103_v19  ;;  %v2584_v2 = vmax.f32 %v2582_v35, %v2583_v12  ;;  %v2397_v9 = vmax.f32 %v2395_v60, %v2396_v15  ;;  %v13921_v35 = vld [vmem:[#allocation19_spill] sm:$0xff] }
 0x304   : > { %8606 = vpow2.f32 %v2896_v48  ;;  %v3086_v25 = vrot.slane %v3085_v0, 2  ;;  %v2078_v19 = vsel %vm1937_vm1, %v10628_v20, -inf  ;;  %v10638_v42 = vadd.f32 %v13920_v56, %v593_v51 }
 0x305   : > { %v3094_v58 = vadd.f32 %v3093_v53, %v3092_v1  ;;  %8608 = vrcp.f32 %v3411_v46  ;;  %v2585_v47 = vrot.slane %v2584_v2, 2  ;;  %v2398_v10 = vrot.slane %v2397_v9, 1 }
 0x306   : > { %8610 = vrcp.f32 %v3565_v11  ;;  %v3087_v26 = vadd.f32 %v3086_v25, %v3085_v0  ;;  %v2079_v53 = vrot.slane %v2078_v19, 4  ;;  %v2386_v50 = vsel %vm1937_vm1, %v10638_v42, -inf }
 0x307   : > { %v10602_v33 = vpop.eup %8600  ;;  %v3095_v29 = vrot.slane %v3094_v58, 1  ;;  %v10648_v25 = vadd.f32 %v13921_v35, %v548_v61  ;;  %v622_v61 = vld [vmem:[%s9553_s21 + $0x2e8] sm:$0xff] }
 0x308   : > { %v3545_v52 = vsel %vm1937_vm1, %v10602_v33, 0.0  ;;  %v8603_v27 = vpop.eup %8602  ;;  %v3088_v6 = vrot.slane %v3087_v26, 1  ;;  %v13927_v35 = vld [vmem:[#allocation9_spill] sm:$0xff] }
 0x309   : > { %v8605_v23 = vpop.eup %8604  ;;  %v3546_v7 = vrot.slane %v3545_v52, 4  ;;  %v3889_v32 = vmul.f32 %v8603_v27, %v10547_v63  ;;  %v3096_v4 = vadd.f32 %v3095_v29, %v3094_v58  ;;  %v10633_v63 = vpop.permute.xlu0 %4271  ;;  %v547_v29 = vld [vmem:[%s9553_s21 + $0x90] sm:$0xff] }
 0x30a   : > { %v10621_v59 = vpop.eup %8606  ;;  %v3827_v57 = vmul.f32 %v8605_v23, %v10549_v34  ;;  %13919 = vst [vmem:[#allocation14_spill] sm:$0xff] %v10633_v63  ;;  %v3089_v0 = vadd.f32 %v3088_v6, %v3087_v26  ;;  %v2387_v23 = vrot.slane %v2386_v50, 4  ;;  %v2071_v26 = vsel %vm1937_vm1, %v10648_v25, -inf }
 0x30b   : > { %v3547_v41 = vadd.f32 %v3546_v7, %v3545_v52  ;;  %v3419_v16 = vsel %vm1937_vm1, %v10621_v59, 0.0  ;;  %v8609_v34 = vpop.eup %8608  ;;  %8612 = vrcp.f32 %v3096_v4 }
 0x30c   : > { %v8611_v43 = vpop.eup %8610  ;;  %v3420_v5 = vrot.slane %v3419_v16, 4  ;;  %v3871_v44 = vmul.f32 %v8609_v34, %v10561_v45  ;;  %v2399_v45 = vmax.f32 %v2397_v9, %v2398_v10  ;;  %8614 = vrcp.f32 %v3089_v0  ;;  %v10662_v9 = vpop.permute.xlu2 %4276 }
 0x30d   : > { %v3548_v1 = vrot.slane %v3547_v41, 2  ;;  %v3893_v48 = vmul.f32 %v8611_v43, %v10566_v55  ;;  %v2586_v55 = vmax.f32 %v2584_v2, %v2585_v47  ;;  %v2388_v12 = vmax.f32 %v2386_v50, %v2387_v23  ;;  %13924 = vst [vmem:[#allocation19_spill] sm:$0xff] %v10662_v9 }
 0x30e   : > { %v2731_v40 = vsub.f32 %v10595_v18, %v2399_v45  ;;  %v2072_v2 = vrot.slane %v2071_v26, 4 }
 0x30f   : > { %v3549_v54 = vadd.f32 %v3548_v1, %v3547_v41  ;;  %v2587_v7 = vrot.slane %v2586_v55, 1  ;;  %v2389_v43 = vrot.slane %v2388_v12, 2 }
 0x310   : > { %v2900_v34 = vmul.f32 1.442695, %v2731_v40  ;;  %v2073_v47 = vmax.f32 %v2071_v26, %v2072_v2 }
 0x311   : > { %v10645_v46 = vpop.xlane.xlu0 %1603  ;;  %v8613_v52 = vpop.eup %8612  ;;  %v3550_v11 = vrot.slane %v3549_v54, 1 }
 0x312   : > { %v3826_v60 = vmul.f32 %v8613_v52, %v10580_v39  ;;  %v2588_v39 = vmax.f32 %v2586_v55, %v2587_v7  ;;  %v2074_v55 = vrot.slane %v2073_v47, 2 }
 0x313   : > { %v3551_v15 = vadd.f32 %v3550_v11, %v3549_v54  ;;  %v13925_v54 = vld [vmem:[#allocation30_spill] sm:$0xff] }
 0x314   : > { %v10683_v23 = vpop.permute.xlu2 %4186 }
 0x315   : > { %8616 = vrcp.f32 %v3551_v15  ;;  %13926 = vst [vmem:[#allocation28_spill] sm:$0xff] %v10683_v23  ;;  %v13947_v23 = vld [vmem:[#allocation7_spill] sm:$0xff] }
 0x316   : > { %4226 = vperm.xlu0 %8250, %v3872_v13   ;;  %v3421_v13 = vadd.f32 %v3420_v5, %v3419_v16  ;;  %v10658_v16 = vadd.f32 %v13922_v24, %v547_v29  ;;  %v2758_v5 = vsub.f32 %v10606_v49, %v2588_v39  ;;  %8618 = vpow2.f32 %v2900_v34  ;;  %v10696_v34 = vpop.xlane.xlu1 %1606 }
 0x318   : > { %v3422_v27 = vrot.slane %v3421_v13, 2  ;;  %v2064_v1 = vsel %vm1937_vm1, %v10658_v16, -inf }
 0x319   : > { %1624 = vadd.xlane.f32.xlu1 %v1623_v62  ;;  %v611_v62 = vld [vmem:[%s9553_s21 + $0x290] sm:$0xff]  ;;  %v2065_v10 = vrot.slane %v2064_v1, 4 }
 0x31a   : > { %v10617_v17 = vadd.f32 %v10107_v37, %v611_v62  ;;  %v2080_v62 = vmax.f32 %v2078_v19, %v2079_v53  ;;  %v613_v19 = vld [vmem:[%s9553_s21 + $0x2a0] sm:$0xff] }
 0x31b   : > { %v10655_v41 = vpop.f32.mrf.mxu0  ;;  %v2066_v45 = vmax.f32 %v2064_v1, %v2065_v10  ;;  %v10705_v1 = vld [vmem:[%s13797_s5] ss:$0 sm:$0xff] }
 0x31c   : > { %v2512_v37 = vsel %vm1937_vm1, %v10617_v17, -inf }
 0x31d   : > { %v2513_v36 = vrot.slane %v2512_v37, 4  ;;  %v2067_v40 = vrot.slane %v2066_v45, 2 }
 0x31e   : > { %4001 = vperm.xlu0 %8250, %v3827_v57   ;;  %v2081_v57 = vrot.slane %v2080_v62, 2 }
 0x31f   : > { %v2514_v8 = vmax.f32 %v2512_v37, %v2513_v36  ;;  %v8615_v37 = vpop.eup %8614  ;;  %v10660_v36 = vpop.permute.xlu0 %4181  ;;  %v2068_v39 = vmax.f32 %v2066_v45, %v2067_v40 }
 0x320   : > { %v2082_v51 = vmax.f32 %v2080_v62, %v2081_v57  ;;  %13923 = vst [vmem:[#allocation17_spill] sm:$0xff] %v10660_v36  ;;  %v3825_v6 = vmul.f32 %v8615_v37, %v10586_v28  ;;  %v8617_v53 = vpop.eup %8616  ;;  %v2954_v28 = vmul.f32 1.442695, %v2758_v5 }
 0x321   : > { %v2515_v58 = vrot.slane %v2514_v8, 2  ;;  %v3891_v62 = vmul.f32 %v8617_v53, %v10602_v33  ;;  %v2075_v33 = vmax.f32 %v2073_v47, %v2074_v55  ;;  %v2069_v47 = vrot.slane %v2068_v39, 1 }
 0x322   : > { %v2083_v56 = vrot.slane %v2082_v51, 1 }
 0x323   : > { %v10672_v50 = vpop.f32.mrf.mxu0 }
 0x324   : > { %v2084_v0 = vmax.f32 %v2082_v51, %v2083_v56 }
 0x326   : > { %1627 = vadd.xlane.f32.xlu2 %v1626_v21  ;;  %4331 = vperm.xlu0 %8250, %v3893_v48   ;;  %v2516_v21 = vmax.f32 %v2514_v8, %v2515_v58  ;;  %v10676_v58 = vpop.eup %8618 }
 0x328   : > { %v2517_v4 = vrot.slane %v2516_v21, 1 }
 0x32a   : > { %v2518_v48 = vmax.f32 %v2516_v21, %v2517_v4  ;;  %v3433_v21 = vsel %vm1937_vm1, %v10676_v58, 0.0 }
 0x32b   : > { %v3434_v15 = vrot.slane %v3433_v21, 4 }
 0x32c   : > { %v2748_v49 = vsub.f32 %v10617_v17, %v2518_v48  ;;  %v2686_v17 = vsub.f32 %v10628_v20, %v2084_v0  ;;  %v2076_v20 = vrot.slane %v2075_v33, 1  ;;  %v1109_v0 = vadd.f32 %v10705_v1, %v10655_v41  ;;  %v10729_v41 = vpop.permute.xlu1 %4281 }
 0x32d   : > { %v3435_v5 = vadd.f32 %v3434_v15, %v3433_v21  ;;  %13929 = vst [vmem:[#allocation9_spill] sm:$0xff] %v10729_v41  ;;  %v624_v15 = vld [vmem:[%s9553_s21 + $0x2f8] sm:$0xff] }
 0x32e   : > { %v2934_v7 = vmul.f32 1.442695, %v2748_v49  ;;  %v2810_v26 = vmul.f32 1.442695, %v2686_v17  ;;  %v2077_v56 = vmax.f32 %v2075_v33, %v2076_v20 }
 0x330   : > { %v2685_v55 = vsub.f32 %v10648_v25, %v2077_v56 }
 0x332   : > { %4311 = vperm.xlu1 %8249, %v3889_v32   ;;  %v3423_v32 = vadd.f32 %v3422_v27, %v3421_v13  ;;  %v10670_v13 = vadd.f32 %v13925_v54, %v613_v19  ;;  %v10681_v27 = vpop.permute.xlu0 %3956 }
 0x334   : > { %v3424_v18 = vrot.slane %v3423_v32, 1  ;;  %v2526_v11 = vsel %vm1937_vm1, %v10670_v13, -inf }
 0x335   : > { %v2527_v57 = vrot.slane %v2526_v11, 4 }
 0x336   : > { %v3425_v8 = vadd.f32 %v3424_v18, %v3423_v32  ;;  %v1114_v18 = vpop.f32.mrf.mxu0 }
 0x337   : > { %v2528_v4 = vmax.f32 %v2526_v11, %v2527_v57  ;;  %v2070_v11 = vmax.f32 %v2068_v39, %v2069_v47  ;;  %v2808_v57 = vmul.f32 1.442695, %v2685_v55 }
 0x338   : > { %8620 = vrcp.f32 %v3425_v8 }
 0x339   : > { %8622 = vpow2.f32 %v2954_v28  ;;  %v2529_v8 = vrot.slane %v2528_v4, 2  ;;  %v3436_v28 = vrot.slane %v3435_v5, 2 }
 0x33a   : > { %4221 = vperm.xlu1 %8249, %v3871_v44   ;;  %v2390_v44 = vmax.f32 %v2388_v12, %v2389_v43  ;;  %8624 = vpow2.f32 %v2934_v7  ;;  %v468_v43 = vld [vmem:[%s9158_s26 + $0x158] sm:$0xff]  ;;  %v10711_v48 = vpop.permute.xlu0 %4286 }
 0x33b   : > { %8036 = vmatmul.msk.f32.gmra.mxu0 %vm667_vm0, %v468_v43  ;;  %8626 = vpow2.f32 %v2810_v26  ;;  %13928 = vst [vmem:[#allocation30_spill] sm:$0xff] %v10711_v48  ;;  %v3437_v21 = vadd.f32 %v3436_v28, %v3435_v5  ;;  %v2684_v26 = vsub.f32 %v10658_v16, %v2070_v11 }
 0x33c   : > { %v2391_v52 = vrot.slane %v2390_v44, 1 }
 0x33e   : > { %3991 = vperm.xlu2 %8248, %v3825_v6   ;;  %v2392_v29 = vmax.f32 %v2390_v44, %v2391_v52  ;;  %v8621_v32 = vpop.eup %8620  ;;  %v10700_v6 = vpop.xlane.xlu2 %1609  ;;  %v469_v52 = vld [vmem:[%s9158_s26 + $0x160] sm:$0xff] }
 0x33f   : > { %v10694_v24 = vpop.eup %8622  ;;  %v3873_v51 = vmul.f32 %v8621_v32, %v10621_v59 }
 0x340   : > { %v2730_v37 = vsub.f32 %v10638_v42, %v2392_v29  ;;  %v1115_v42 = vadd.f32 %v10705_v1, %v1114_v18  ;;  %v3622_v59 = vsel %vm1937_vm1, %v10694_v24, 0.0  ;;  %v10713_v10 = vpop.eup %8624  ;;  %v1346_v29 = vmax.f32 %v1109_v0, 0.0 }
 0x341   : > { %v3623_v54 = vrot.slane %v3622_v59, 4  ;;  %v10725_v45 = vpop.eup %8626 }
 0x342   : > { %3996 = vperm.xlu1 %8249, %v3826_v60   ;;  %v10686_v60 = vadd.f32 %v13927_v35, %v622_v61  ;;  %v2898_v19 = vmul.f32 1.442695, %v2730_v37  ;;  %v1348_v44 = vmax.f32 %v1115_v42, 0.0  ;;  %v10720_v61 = vld [vmem:[%s13798_s6] ss:$0 sm:$0xff]  ;;  %v2530_v35 = vmax.f32 %v2528_v4, %v2529_v8  ;;  %v10735_v32 = vpop.xlane.xlu0 %1612  ;;  %v13930_v42 = vld [vmem:[#allocation6_spill] sm:$0xff] }
 0x343   : > { %8037 = vmatmul.msk.f32.gmra.mxu0 %vm667_vm0, %v469_v52  ;;  %v3624_v7 = vadd.f32 %v3623_v54, %v3622_v59  ;;  %v3118_v40 = vsel %vm1937_vm1, %v10725_v45, 0.0  ;;  %v1454_v43 = vmul.f32 %v10720_v61, %v1346_v29  ;;  %v10746_v5 = vadd.f32 %v13930_v42, %v624_v15 }
 0x344   : > { %v2589_v12 = vsel %vm1937_vm1, %v10686_v60, -inf  ;;  %v1456_v49 = vmul.f32 %v10720_v61, %v1348_v44  ;;  %8628 = vpow2.f32 %v2898_v19  ;;  %v2531_v37 = vrot.slane %v2530_v35, 1 }
 0x345   : > { %v2590_v2 = vrot.slane %v2589_v12, 4  ;;  %v3625_v4 = vrot.slane %v3624_v7, 2  ;;  %v3119_v18 = vrot.slane %v3118_v40, 4  ;;  %8630 = vpow2.f32 %v2808_v57 }
 0x346   : > { %4321 = vperm.xlu2 %8248, %v3891_v62   ;;  %v3552_v62 = vsel %vm1937_vm1, %v10713_v10, 0.0  ;;  %v1638_v33 = vsel %vm667_vm0, %v1456_v49, 0.0  ;;  %v2806_v19 = vmul.f32 1.442695, %v2684_v26  ;;  %v2532_v56 = vmax.f32 %v2530_v35, %v2531_v37 }
 0x347   : > { %v2591_v53 = vmax.f32 %v2589_v12, %v2590_v2  ;;  %v3553_v25 = vrot.slane %v3552_v62, 4  ;;  %v10737_v12 = vpop.permute.xlu2 %3961  ;;  %v470_v2 = vld [vmem:[%s9158_s26 + $0x168] sm:$0xff]  ;;  %v3626_v47 = vadd.f32 %v3625_v4, %v3624_v7  ;;  %v3120_v8 = vadd.f32 %v3119_v18, %v3118_v40 }
 0x348   : > { %v1632_v28 = vsel %vm667_vm0, %v1454_v43, 0.0  ;;  %v2603_v0 = vsel %vm1937_vm1, %v10746_v5, -inf  ;;  %8632 = vpow2.f32 %v2806_v19  ;;  %v2750_v55 = vsub.f32 %v10670_v13, %v2532_v56  ;;  %v552_v56 = vld [vmem:[%s9553_s21 + $0xb8] sm:$0xff] }
 0x349   : > { %v2592_v17 = vrot.slane %v2591_v53, 2  ;;  %v3554_v59 = vadd.f32 %v3553_v25, %v3552_v62  ;;  %v3627_v7 = vrot.slane %v3626_v47, 1  ;;  %v3121_v29 = vrot.slane %v3120_v8, 2 }
 0x34a   : > { %v10741_v20 = vpop.eup %8628  ;;  %v10759_v35 = vpop.permute.xlu0 %4196  ;;  %v2938_v40 = vmul.f32 1.442695, %v2750_v55  ;;  %v1112_v42 = vadd.f32 %v10705_v1, %v10672_v50  ;;  %v13935_v55 = vld [vmem:[#allocation25_spill] sm:$0xff] }
 0x34b   : > { %v2593_v39 = vmax.f32 %v2591_v53, %v2592_v17  ;;  %v3426_v16 = vsel %vm1937_vm1, %v10741_v20, 0.0  ;;  %8038 = vmatmul.msk.f32.gmra.mxu0 %vm667_vm0, %v470_v2  ;;  %v10751_v53 = vpop.permute.xlu1 %4191  ;;  %v3555_v49 = vrot.slane %v3554_v59, 2  ;;  %v10757_v62 = vpop.eup %8630  ;;  %13932 = vst [vmem:[#allocation45_spill] sm:$0xff] %v10759_v35  ;;  %v3122_v37 = vadd.f32 %v3121_v29, %v3120_v8 }
 0x34c   : > { %13931 = vst [vmem:[#allocation6_spill] sm:$0xff] %v10751_v53  ;;  %v3427_v52 = vrot.slane %v3426_v16, 4  ;;  %v3111_v57 = vsel %vm1937_vm1, %v10757_v62, 0.0 }
 0x34d   : > { %v2594_v44 = vrot.slane %v2593_v39, 1  ;;  %v3112_v18 = vrot.slane %v3111_v57, 4 }
 0x34e   : > { %4231 = vperm.xlu2 %8248, %v3873_v51   ;;  %v3438_v51 = vrot.slane %v3437_v21, 1  ;;  %v3428_v25 = vadd.f32 %v3427_v52, %v3426_v16  ;;  %v10766_v15 = vpop.eup %8632  ;;  %v3123_v16 = vrot.slane %v3122_v37, 1  ;;  %v1347_v52 = vmax.f32 %v1112_v42, 0.0 }
 0x34f   : > { %v2595_v11 = vmax.f32 %v2593_v39, %v2594_v44  ;;  %v10761_v17 = vpop.permute.xlu2 %4291  ;;  %v3628_v39 = vadd.f32 %v3627_v7, %v3626_v47  ;;  %v620_v44 = vld [vmem:[%s9553_s21 + $0x2d8] sm:$0xff]  ;;  %v3113_v8 = vadd.f32 %v3112_v18, %v3111_v57 }
 0x350   : > { %1639 = vadd.xlane.f32.xlu0 %v1638_v33  ;;  %v3439_v54 = vadd.f32 %v3438_v51, %v3437_v21  ;;  %13933 = vst [vmem:[#allocation46_spill] sm:$0xff] %v10761_v17  ;;  %v2604_v21 = vrot.slane %v2603_v0, 4  ;;  %v3556_v33 = vadd.f32 %v3555_v49, %v3554_v59  ;;  %v3429_v51 = vrot.slane %v3428_v25, 2 }
 0x351   : > { %v2759_v13 = vsub.f32 %v10686_v60, %v2595_v11  ;;  %v3104_v60 = vsel %vm1937_vm1, %v10766_v15, 0.0  ;;  %v10782_v11 = vadd.f32 %v13935_v55, %v552_v56 }
 0x352   : > { %8634 = vrcp.f32 %v3439_v54  ;;  %v2605_v26 = vmax.f32 %v2603_v0, %v2604_v21  ;;  %v3557_v4 = vrot.slane %v3556_v33, 1  ;;  %v3430_v47 = vadd.f32 %v3429_v51, %v3428_v25  ;;  %v10776_v54 = vpop.permute.xlu0 %3971  ;;  %v13936_v21 = vld [vmem:[#allocation5_spill] sm:$0xff] }
 0x353   : > { %8636 = vpow2.f32 %v2938_v40  ;;  %v10768_v2 = vpop.permute.xlu1 %3966  ;;  %v2956_v59 = vmul.f32 1.442695, %v2759_v13  ;;  %v3105_v50 = vrot.slane %v3104_v60, 4  ;;  %v10787_v29 = vadd.f32 %v13936_v21, %v620_v44 }
 0x354   : > { %v2606_v19 = vrot.slane %v2605_v26, 2  ;;  %8638 = vrcp.f32 %v3628_v39  ;;  %v3558_v49 = vadd.f32 %v3557_v4, %v3556_v33  ;;  %v3124_v40 = vadd.f32 %v3123_v16, %v3122_v37  ;;  %v614_v33 = vld [vmem:[%s9553_s21 + $0x2a8] sm:$0xff] }
 0x355   : > { %8640 = vpow2.f32 %v2956_v59  ;;  %v3431_v57 = vrot.slane %v3430_v47, 1  ;;  %v3114_v13 = vrot.slane %v3113_v8, 2  ;;  %v3106_v39 = vadd.f32 %v3105_v50, %v3104_v60  ;;  %v13937_v60 = vld [vmem:[#allocation21_spill] sm:$0xff] }
 0x356   : > { %v2607_v25 = vmax.f32 %v2605_v26, %v2606_v19  ;;  %8642 = vrcp.f32 %v3558_v49  ;;  %v1455_v51 = vmul.f32 %v10720_v61, %v1347_v52  ;;  %v2575_v26 = vsel %vm1937_vm1, %v10787_v29, -inf }
 0x357   : > { %8644 = vrcp.f32 %v3124_v40  ;;  %v3115_v59 = vadd.f32 %v3114_v13, %v3113_v8  ;;  %v10802_v19 = vadd.f32 %v13937_v60, %v614_v33  ;;  %v3432_v44 = vadd.f32 %v3431_v57, %v3430_v47 }
 0x358   : > { %v8635_v43 = vpop.eup %8634  ;;  %v2608_v37 = vrot.slane %v2607_v25, 1  ;;  %v1635_v52 = vsel %vm667_vm0, %v1455_v51, 0.0  ;;  %v2576_v40 = vrot.slane %v2575_v26, 4 }
 0x359   : > { %v3875_v0 = vmul.f32 %v8635_v43, %v10676_v58  ;;  %v10784_v7 = vpop.eup %8636  ;;  %v2099_v43 = vsel %vm1937_vm1, %v10782_v11, -inf  ;;  %v3116_v33 = vrot.slane %v3115_v59, 1  ;;  %v2533_v60 = vsel %vm1937_vm1, %v10802_v19, -inf }
 0x35a   : > { %v8639_v58 = vpop.eup %8638  ;;  %v3566_v18 = vsel %vm1937_vm1, %v10784_v7, 0.0  ;;  %v2100_v50 = vrot.slane %v2099_v43, 4  ;;  %v10808_v21 = vpop.permute.xlu0 %4301  ;;  %v2609_v13 = vmax.f32 %v2607_v25, %v2608_v37  ;;  %8646 = vrcp.f32 %v3432_v44 }
 0x35b   : > { %v10790_v4 = vpop.xlane.xlu1 %1615  ;;  %v10799_v42 = vpop.eup %8640  ;;  %v3902_v56 = vmul.f32 %v8639_v58, %v10694_v24  ;;  %v3567_v49 = vrot.slane %v3566_v18, 4  ;;  %13938 = vst [vmem:[#allocation25_spill] sm:$0xff] %v10808_v21  ;;  %v3117_v21 = vadd.f32 %v3116_v33, %v3115_v59 }
 0x35c   : > { %v8643_v55 = vpop.eup %8642  ;;  %v3629_v8 = vsel %vm1937_vm1, %v10799_v42, 0.0  ;;  %v2101_v58 = vmax.f32 %v2099_v43, %v2100_v50  ;;  %v2761_v25 = vsub.f32 %v10746_v5, %v2609_v13 }
 0x35d   : > { %v8645_v24 = vpop.eup %8644  ;;  %v3568_v57 = vadd.f32 %v3567_v49, %v3566_v18  ;;  %v3892_v53 = vmul.f32 %v8643_v55, %v10713_v10  ;;  %v3630_v17 = vrot.slane %v3629_v8, 4  ;;  %8648 = vrcp.f32 %v3117_v21  ;;  %v551_v55 = vld [vmem:[%s9553_s21 + $0xb0] sm:$0xff] }
 0x35e   : > { %v3830_v37 = vmul.f32 %v8645_v24, %v10725_v45  ;;  %v2102_v44 = vrot.slane %v2101_v58, 2  ;;  %v13941_v21 = vld [vmem:[#allocation26_spill] sm:$0xff] }
 0x360   : > { %v2103_v5 = vmax.f32 %v2101_v58, %v2102_v44 }
 0x362   : > { %v10819_v18 = vpop.xlane.xlu0 %1621  ;;  %v2104_v24 = vrot.slane %v2103_v5, 1 }
 0x363   : > { %v10814_v51 = vpop.permute.xlu1 %4296 }
 0x364   : > { %4241 = vperm.xlu0 %8250, %v3875_v0   ;;  %v3107_v0 = vrot.slane %v3106_v39, 2  ;;  %13939 = vst [vmem:[#allocation5_spill] sm:$0xff] %v10814_v51 }
 0x366   : > { %v3108_v47 = vadd.f32 %v3107_v0, %v3106_v39  ;;  %v8647_v39 = vpop.eup %8646 }
 0x367   : > { %v3874_v59 = vmul.f32 %v8647_v39, %v10741_v20 }
 0x368   : > { %v3109_v35 = vrot.slane %v3108_v47, 1 }
 0x36a   : > { %v3110_v45 = vadd.f32 %v3109_v35, %v3108_v47  ;;  %v625_v35 = vld [vmem:[%s9553_s21 + $0x300] sm:$0xff] }
 0x36c   : > { %1633 = vadd.xlane.f32.xlu1 %v1632_v28  ;;  %v10778_v28 = vpop.permute.xlu2 %4201  ;;  %4376 = vperm.xlu0 %8250, %v3902_v56   ;;  %v2577_v56 = vmax.f32 %v2575_v26, %v2576_v40  ;;  %v3631_v26 = vadd.f32 %v3630_v17, %v3629_v8  ;;  %v10823_v40 = vpop.permute.xlu1 %4206  ;;  %v10827_v8 = vadd.f32 %v13941_v21, %v551_v55 }
 0x36d   : > { %13934 = vst [vmem:[#allocation47_spill] sm:$0xff] %v10778_v28  ;;  %v2534_v28 = vrot.slane %v2533_v60, 4  ;;  %v8649_v17 = vpop.eup %8648 }
 0x36e   : > { %v2578_v10 = vrot.slane %v2577_v56, 2  ;;  %13940 = vst [vmem:[#allocation21_spill] sm:$0xff] %v10823_v40  ;;  %v3632_v13 = vrot.slane %v3631_v26, 2  ;;  %v3829_v39 = vmul.f32 %v8649_v17, %v10757_v62 }
 0x36f   : > { %v2535_v0 = vmax.f32 %v2533_v60, %v2534_v28  ;;  %v550_v60 = vld [vmem:[%s9553_s21 + $0xa8] sm:$0xff] }
 0x370   : > { %v2579_v33 = vmax.f32 %v2577_v56, %v2578_v10  ;;  %v3633_v20 = vadd.f32 %v3632_v13, %v3631_v26  ;;  %v8820_v26 = vld [vmem:[%s9158_s26 + $0x48] sm:$0xff] }
 0x371   : > { %v2536_v50 = vrot.slane %v2535_v0, 2 }
 0x372   : > { %v2580_v56 = vrot.slane %v2579_v33, 1  ;;  %v3634_v62 = vrot.slane %v3633_v20, 1 }
 0x373   : > { %v2537_v47 = vmax.f32 %v2535_v0, %v2536_v50  ;;  %v2092_v0 = vsel %vm1937_vm1, %v10827_v8, -inf  ;;  %v10847_v50 = vpop.f32.mrf.mxu0 }
 0x374   : > { %v10804_v16 = vpop.xlane.xlu2 %1618  ;;  %4016 = vperm.xlu0 %8250, %v3830_v37   ;;  %v2581_v17 = vmax.f32 %v2579_v33, %v2580_v56  ;;  %v2093_v21 = vrot.slane %v2092_v0, 4  ;;  %v8823_v56 = vld [vmem:[%s9158_s26 + $0x60] sm:$0xff]  ;;  %v3635_v40 = vadd.f32 %v3634_v62, %v3633_v20 }
 0x375   : > { %v2538_v13 = vrot.slane %v2537_v47, 1 }
 0x376   : > { %v2094_v51 = vmax.f32 %v2092_v0, %v2093_v21 }
 0x377   : > { %1636 = vadd.xlane.f32.xlu2 %v1635_v52  ;;  %v3569_v52 = vrot.slane %v3568_v57, 2 }
 0x379   : > { %v3570_v49 = vadd.f32 %v3569_v52, %v3568_v57  ;;  %v13942_v57 = vld [vmem:[#allocation31_spill] sm:$0xff]  ;;  %v2105_v52 = vmax.f32 %v2103_v5, %v2104_v24 }
 0x37a   : > { %v10831_v58 = vadd.f32 %v13942_v57, %v550_v60  ;;  %v8821_v5 = vld [vmem:[%s9158_s26 + $0x50] sm:$0xff]  ;;  %v8822_v60 = vld [vmem:[%s9158_s26 + $0x40] sm:$0xff] }
 0x37b   : > { %v3571_v28 = vrot.slane %v3570_v49, 1  ;;  %v4442_v24 = vmul.f32 %v8822_v60, %v10681_v27  ;;  %v8825_v60 = vld [vmem:[%s9158_s26 + $0x68] sm:$0xff]  ;;  %v10875_v21 = vpop.f32.mrf.mxu0 }
 0x37c   : > { %v3977_v43 = vpop.permute.xlu2 %3976 }
 0x37d   : > { %v3572_v44 = vadd.f32 %v3571_v28, %v3570_v49  ;;  %v4444_v49 = vmul.f32 %v8821_v5, %v10768_v2  ;;  %v2085_v28 = vsel %vm1937_vm1, %v10831_v58, -inf  ;;  %v4446_v5 = vmul.f32 %v8823_v56, %v3977_v43 }
 0x37e   : > { %v2086_v27 = vrot.slane %v2085_v28, 4 }
 0x37f   : > { %v4608_v33 = vsel %vm667_vm0, %v4444_v49, 0.0 }
 0x380   : > { %v2087_v20 = vmax.f32 %v2085_v28, %v2086_v27 }
 0x384   : > { %v10835_v37 = vpop.permute.xlu2 %4306 }
 0x385   : > { %4326 = vperm.xlu1 %8249, %v3892_v53   ;;  %v2960_v53 = vmul.f32 1.442695, %v2761_v25  ;;  %v10833_v25 = vpop.permute.xlu0 %4211  ;;  %13944 = vst [vmem:[#allocation31_spill] sm:$0xff] %v10835_v37 }
 0x386   : > { %13943 = vst [vmem:[#allocation26_spill] sm:$0xff] %v10833_v25 }
 0x387   : > { %8650 = vpow2.f32 %v2960_v53  ;;  %v13945_v53 = vld [vmem:[#allocation12_spill] sm:$0xff] }
 0x388   : > { %8652 = vrcp.f32 %v3110_v45  ;;  %v10841_v45 = vadd.f32 %v13945_v53, %v625_v35  ;;  %v3982_v35 = vpop.permute.xlu1 %3981 }
 0x389   : > { %8654 = vrcp.f32 %v3572_v44  ;;  %v4447_v37 = vmul.f32 %v8825_v60, %v3982_v35  ;;  %v4622_v35 = vsel %vm667_vm0, %v4446_v5, 0.0 }
 0x38a   : > { %v2610_v57 = vsel %vm1937_vm1, %v10841_v45, -inf  ;;  %8656 = vrcp.f32 %v3635_v40  ;;  %v2088_v40 = vrot.slane %v2087_v20, 2 }
 0x38b   : > { %v4629_v62 = vsel %vm667_vm0, %v4447_v37, 0.0 }
 0x38c   : > { %v10869_v43 = vpop.permute.xlu2 %4216  ;;  %v4630_v27 = vrot.slane %v4629_v62, 4 }
 0x38d   : > { %4236 = vperm.xlu1 %8249, %v3874_v59   ;;  %v10838_v10 = vpop.eup %8650  ;;  %v4443_v59 = vmul.f32 %v8820_v26, %v10737_v12  ;;  %v2689_v12 = vsub.f32 %v10782_v11, %v2105_v52  ;;  %v2539_v26 = vmax.f32 %v2537_v47, %v2538_v13  ;;  %v4594_v11 = vsel %vm667_vm0, %v4442_v24, 0.0  ;;  %v8824_v52 = vld [vmem:[%s9158_s26 + $0x58] sm:$0xff]  ;;  %v3987_v13 = vpop.permute.xlu0 %3986  ;;  %13946 = vst [vmem:[#allocation12_spill] sm:$0xff] %v10869_v43 }
 0x38e   : > { %v8653_v55 = vpop.eup %8652  ;;  %v3643_v2 = vsel %vm1937_vm1, %v10838_v10, 0.0  ;;  %v4445_v44 = vmul.f32 %v8824_v52, %v10776_v54  ;;  %v2611_v47 = vrot.slane %v2610_v57, 4  ;;  %v4595_v56 = vrot.slane %v4594_v11, 4 }
 0x38f   : > { %v3828_v53 = vmul.f32 %v8653_v55, %v10766_v15  ;;  %v2816_v25 = vmul.f32 1.442695, %v2689_v12  ;;  %v2757_v15 = vsub.f32 %v10787_v29, %v2581_v17  ;;  %v4609_v55 = vrot.slane %v4608_v33, 4  ;;  %v8655_v49 = vpop.eup %8654  ;;  %v623_v29 = vld [vmem:[%s9553_s21 + $0x2f0] sm:$0xff] }
 0x390   : > { %v3644_v24 = vrot.slane %v3643_v2, 4  ;;  %v2751_v54 = vsub.f32 %v10802_v19, %v2539_v26  ;;  %v4615_v0 = vsel %vm667_vm0, %v4445_v44, 0.0  ;;  %v2095_v17 = vrot.slane %v2094_v51, 2 }
 0x391   : > { %4006 = vperm.xlu2 %8248, %v3828_v53   ;;  %8658 = vpow2.f32 %v2816_v25  ;;  %v8826_v53 = vld [vmem:[%s9158_s26 + $0x70] sm:$0xff]  ;;  %v4610_v60 = vadd.f32 %v4609_v55, %v4608_v33  ;;  %v4623_v43 = vrot.slane %v4622_v35, 4  ;;  %v3894_v19 = vmul.f32 %v8655_v49, %v10784_v7  ;;  %v8657_v33 = vpop.eup %8656 }
 0x392   : > { %v4448_v52 = vmul.f32 %v8826_v53, %v3987_v13  ;;  %v2940_v26 = vmul.f32 1.442695, %v2751_v54  ;;  %v4596_v5 = vadd.f32 %v4595_v56, %v4594_v11  ;;  %v4616_v28 = vrot.slane %v4615_v0, 4 }
 0x393   : > { %v2952_v44 = vmul.f32 1.442695, %v2757_v15  ;;  %v10881_v37 = vadd.f32 %v13947_v23, %v623_v29  ;;  %v2612_v41 = vmax.f32 %v2610_v57, %v2611_v47  ;;  %v3645_v30 = vadd.f32 %v3644_v24, %v3643_v2 }
 0x394   : > { %v2096_v25 = vmax.f32 %v2094_v51, %v2095_v17  ;;  %v4611_v55 = vrot.slane %v4610_v60, 2  ;;  %v4624_v13 = vadd.f32 %v4623_v43, %v4622_v35  ;;  %8660 = vpow2.f32 %v2940_v26  ;;  %v1123_v17 = vpop.f32.mrf.mxu0 }
 0x395   : > { %4011 = vperm.xlu1 %8249, %v3829_v39   ;;  %v4601_v39 = vsel %vm667_vm0, %v4443_v59, 0.0  ;;  %v4597_v15 = vrot.slane %v4596_v5, 2  ;;  %v4617_v23 = vadd.f32 %v4616_v28, %v4615_v0  ;;  %v4631_v49 = vadd.f32 %v4630_v27, %v4629_v62  ;;  %v627_v62 = vld [vmem:[%s9553_s21 + $0x310] sm:$0xff] }
 0x396   : > { %v4602_v59 = vrot.slane %v4601_v39, 4  ;;  %8662 = vpow2.f32 %v2952_v44  ;;  %v2613_v57 = vrot.slane %v2612_v41, 2  ;;  %v2089_v47 = vmax.f32 %v2087_v20, %v2088_v40 }
 0x397   : > { %v10886_v11 = vpop.eup %8658  ;;  %v10890_v51 = vsel %vm1937_vm1, %v10881_v37, -inf  ;;  %v3646_v24 = vrot.slane %v3645_v30, 2  ;;  %v2097_v54 = vrot.slane %v2096_v25, 1  ;;  %v4612_v35 = vadd.f32 %v4611_v55, %v4610_v60 }
 0x398   : > { %v4603_v12 = vadd.f32 %v4602_v59, %v4601_v39  ;;  %v4636_v59 = vsel %vm667_vm0, %v4448_v52, 0.0  ;;  %v3139_v56 = vsel %vm1937_vm1, %v10886_v11, 0.0  ;;  %v4625_v29 = vrot.slane %v4624_v13, 2 }
 0x399   : > { %4336 = vperm.xlu2 %8248, %v3894_v19   ;;  %v10884_v7 = vpop.xlane.xlu2 %1627  ;;  %v4637_v2 = vrot.slane %v4636_v59, 4  ;;  %v3903_v0 = vmul.f32 %v8657_v33, %v10799_v42  ;;  %v4598_v53 = vadd.f32 %v4597_v15, %v4596_v5  ;;  %v4618_v52 = vrot.slane %v4617_v23, 2  ;;  %v13948_v33 = vld [vmem:[#allocation8_spill] sm:$0xff] }
 0x39a   : > { %v4604_v39 = vrot.slane %v4603_v12, 2  ;;  %v4632_v20 = vrot.slane %v4631_v49, 2  ;;  %v1124_v19 = vadd.f32 %v10705_v1, %v1123_v17  ;;  %v2597_v26 = vrot.slane %v10890_v51, 4 }
 0x39b   : > { %v2614_v28 = vmax.f32 %v2612_v41, %v2613_v57  ;;  %v2090_v27 = vrot.slane %v2089_v47, 1  ;;  %v4638_v44 = vadd.f32 %v4637_v2, %v4636_v59  ;;  %v2098_v40 = vmax.f32 %v2096_v25, %v2097_v54 }
 0x39c   : > { %v4605_v43 = vadd.f32 %v4604_v39, %v4603_v12  ;;  %v10898_v12 = vpop.eup %8660  ;;  %v3140_v60 = vrot.slane %v3139_v56, 4  ;;  %v1351_v55 = vmax.f32 %v1124_v19, 0.0  ;;  %v3647_v5 = vadd.f32 %v3646_v24, %v3645_v30  ;;  %v8827_v19 = vld [vmem:[%s9158_s26 + $0x78] sm:$0xff] }
 0x39d   : > { %v10900_v42 = vpop.eup %8662  ;;  %v10903_v15 = vadd.f32 %v13948_v33, %v627_v62  ;;  %v4613_v17 = vrot.slane %v4612_v35, 1  ;;  %v4626_v9 = vadd.f32 %v4625_v29, %v4624_v13  ;;  %v4599_v41 = vrot.slane %v4598_v53, 1 }
 0x39e   : > { %v4606_v39 = vrot.slane %v4605_v43, 1  ;;  %v4619_v57 = vadd.f32 %v4618_v52, %v4617_v23  ;;  %v4633_v59 = vadd.f32 %v4632_v20, %v4631_v49  ;;  %v1459_v2 = vmul.f32 %v10720_v61, %v1351_v55 }
 0x39f   : > { %v3573_v25 = vsel %vm1937_vm1, %v10898_v12, 0.0  ;;  %v2091_v54 = vmax.f32 %v2089_v47, %v2090_v27  ;;  %v2688_v30 = vsub.f32 %v10827_v8, %v2098_v40  ;;  %v3141_v24 = vadd.f32 %v3140_v60, %v3139_v56 }
 0x3a0   : > { %v4607_v62 = vadd.f32 %v4606_v39, %v4605_v43  ;;  %v1647_v33 = vsel %vm667_vm0, %v1459_v2, 0.0  ;;  %v4614_v13 = vadd.f32 %v4613_v17, %v4612_v35  ;;  %v4627_v29 = vrot.slane %v4626_v9, 1 }
 0x3a1   : > { %4381 = vperm.xlu2 %8248, %v3903_v0   ;;  %v3992_v48 = vpop.permute.xlu2 %3991  ;;  %v4639_v0 = vrot.slane %v4638_v44, 2  ;;  %v1118_v23 = vadd.f32 %v10705_v1, %v10847_v50  ;;  %v4600_v52 = vadd.f32 %v4599_v41, %v4598_v53  ;;  %v4620_v20 = vrot.slane %v4619_v57, 1  ;;  %1648 = vadd.xlane.f32.xlu0 %v1647_v33 }
 0x3a2   : > { %v4449_v63 = vmul.f32 %v8827_v19, %v3992_v48  ;;  %v4634_v55 = vrot.slane %v4633_v59, 1  ;;  %v3648_v27 = vrot.slane %v3647_v5, 1  ;;  %v2615_v36 = vrot.slane %v2614_v28, 1 }
 0x3a3   : > { %v2624_v48 = vsel %vm1937_vm1, %v10903_v15, -inf  ;;  %v4640_v8 = vadd.f32 %v4639_v0, %v4638_v44  ;;  %v2687_v43 = vsub.f32 %v10831_v58, %v2091_v54  ;;  %v3142_v56 = vrot.slane %v3141_v24, 2 }
 0x3a4   : > { %v4643_v49 = vsel %vm667_vm0, %v4449_v63, 0.0  ;;  %v5392_v35 = vsel %vm5378_vm2, %v4607_v62, %v4600_v52  ;;  %v5586_v63 = vld [vmem:[%s13801_s9 + $0x78] sm:$0xff]  ;;  %v3574_v50 = vrot.slane %v3573_v25, 4  ;;  %v4628_v53 = vadd.f32 %v4627_v29, %v4626_v9 }
 0x3a5   : > { %v4644_v47 = vrot.slane %v4643_v49, 4  ;;  %v1349_v60 = vmax.f32 %v1118_v23, 0.0  ;;  %v5393_v39 = vsel %vm5380_vm3, %v4614_v13, %v5392_v35  ;;  %5642 = vmatpush.msrb.mxu2 %v5586_v63  ;;  %v2814_v17 = vmul.f32 1.442695, %v2688_v30  ;;  %v626_v23 = vld [vmem:[%s9553_s21 + $0x308] sm:$0xff] }
 0x3a6   : > { %v4621_v44 = vadd.f32 %v4620_v20, %v4619_v57  ;;  %v4635_v41 = vadd.f32 %v4634_v55, %v4633_v59  ;;  %v3615_v58 = vsel %vm1937_vm1, %v10900_v42, 0.0  ;;  %v2598_v54 = vmax.f32 %v10890_v51, %v2597_v26  ;;  %v13949_v20 = vld [vmem:[#allocation10_spill] sm:$0xff] }
 0x3a7   : > { %v4645_v40 = vadd.f32 %v4644_v47, %v4643_v49  ;;  %v2616_v0 = vmax.f32 %v2614_v28, %v2615_v36  ;;  %v4641_v19 = vrot.slane %v4640_v8, 1  ;;  %v3143_v62 = vadd.f32 %v3142_v56, %v3141_v24 }
 0x3a8   : > { %v5394_v9 = vsel %vm5382_vm4, %v4621_v44, %v5393_v39  ;;  %v3649_v29 = vadd.f32 %v3648_v27, %v3647_v5  ;;  %v2625_v49 = vrot.slane %v2624_v48, 4  ;;  %v2812_v13 = vmul.f32 1.442695, %v2687_v43  ;;  %v555_v43 = vld [vmem:[%s9553_s21 + $0xd0] sm:$0xff] }
 0x3a9   : > { %v4646_v2 = vrot.slane %v4645_v40, 2  ;;  %v1457_v30 = vmul.f32 %v10720_v61, %v1349_v60  ;;  %v5395_v57 = vsel %vm5384_vm5, %v4628_v53, %v5394_v9  ;;  %v3575_v59 = vadd.f32 %v3574_v50, %v3573_v25  ;;  %v628_v53 = vld [vmem:[%s9553_s21 + $0x318] sm:$0xff]  ;;  %v13950_v60 = vld [vmem:[#allocation38_spill] sm:$0xff] }
 0x3aa   : > { %8664 = vpow2.f32 %v2814_v17  ;;  %v5396_v51 = vsel %vm5386_vm6, %v4635_v41, %v5395_v57  ;;  %v3616_v36 = vrot.slane %v3615_v58, 4  ;;  %v2599_v26 = vrot.slane %v2598_v54, 2 }
 0x3ab   : > { %v4647_v33 = vadd.f32 %v4646_v2, %v4645_v40  ;;  %v2762_v28 = vsub.f32 %v10841_v45, %v2616_v0  ;;  %v4642_v24 = vadd.f32 %v4641_v19, %v4640_v8  ;;  %v10932_v5 = vadd.f32 %v13949_v20, %v626_v23  ;;  %v630_v2 = vld [vmem:[%s9553_s21 + $0x328] sm:$0xff] }
 0x3ac   : > { %v3144_v55 = vrot.slane %v3143_v62, 1  ;;  %8666 = vrcp.f32 %v3649_v29  ;;  %v2626_v27 = vmax.f32 %v2624_v48, %v2625_v49  ;;  %v1641_v56 = vsel %vm667_vm0, %v1457_v30, 0.0 }
 0x3ad   : > { %v4648_v52 = vrot.slane %v4647_v33, 1  ;;  %8668 = vpow2.f32 %v2812_v13  ;;  %v5397_v25 = vsel %vm5388_vm7, %v4642_v24, %v5396_v51  ;;  %v3576_v35 = vrot.slane %v3575_v59, 2  ;;  %v13952_v13 = vld [vmem:[#allocation11_spill] sm:$0xff] }
 0x3ae   : > { %v3617_v45 = vadd.f32 %v3616_v36, %v3615_v58  ;;  %v2962_v8 = vmul.f32 1.442695, %v2762_v28  ;;  %v2600_v50 = vmax.f32 %v2598_v54, %v2599_v26  ;;  %v10943_v48 = vadd.f32 %v13950_v60, %v555_v43 }
 0x3af   : > { %v4649_v47 = vadd.f32 %v4648_v52, %v4647_v33  ;;  %v3145_v39 = vadd.f32 %v3144_v55, %v3143_v62  ;;  %v2617_v17 = vsel %vm1937_vm1, %v10932_v5, -inf  ;;  %v2627_v44 = vrot.slane %v2626_v27, 2  ;;  %v13951_v33 = vld [vmem:[#allocation15_spill] sm:$0xff] }
 0x3b0   : > { %v10939_v63 = vpop.eup %8664  ;;  %v3577_v0 = vadd.f32 %v3576_v35, %v3575_v59  ;;  %v3618_v19 = vrot.slane %v3617_v45, 2  ;;  %8670 = vpow2.f32 %v2962_v8  ;;  %v10951_v9 = vadd.f32 %v13951_v33, %v628_v53 }
 0x3b1   : > { %v5398_v40 = vsel %vm5390_vm8, %v4649_v47, %v5397_v25  ;;  %v3132_v54 = vsel %vm1937_vm1, %v10939_v63, 0.0  ;;  %v2601_v29 = vrot.slane %v2600_v50, 1  ;;  %v2618_v62 = vrot.slane %v2617_v17, 4 }
 0x3b2   : > { %8098 = vmatmul.msk.f32.gmra.mxu1 %vm667_vm0, %v5398_v40  ;;  %v8667_v41 = vpop.eup %8666  ;;  %v2120_v23 = vsel %vm1937_vm1, %v10943_v48, -inf  ;;  %8672 = vrcp.f32 %v3145_v39  ;;  %v2628_v49 = vmax.f32 %v2626_v27, %v2627_v44  ;;  %v10958_v30 = vadd.f32 %v13952_v13, %v630_v2 }
 0x3b3   : > { %v10948_v58 = vpop.eup %8668  ;;  %v1121_v57 = vadd.f32 %v10705_v1, %v10875_v21  ;;  %v3905_v59 = vmul.f32 %v8667_v41, %v10838_v10  ;;  %v3578_v52 = vrot.slane %v3577_v0, 1  ;;  %v3133_v36 = vrot.slane %v3132_v54, 4  ;;  %v558_v41 = vld [vmem:[%s9553_s21 + $0xe8] sm:$0xff] }
 0x3b4   : > { %v3125_v51 = vsel %vm1937_vm1, %v10948_v58, 0.0  ;;  %v3619_v26 = vadd.f32 %v3618_v19, %v3617_v45  ;;  %v2631_v28 = vsel %vm1937_vm1, %v10951_v9, -inf  ;;  %v2121_v24 = vrot.slane %v2120_v23, 4  ;;  %v629_v45 = vld [vmem:[%s9553_s21 + $0x320] sm:$0xff] }
 0x3b5   : > { %4391 = vperm.xlu0 %8250, %v3905_v59   ;;  %v2602_v20 = vmax.f32 %v2600_v50, %v2601_v29  ;;  %v2619_v55 = vmax.f32 %v2617_v17, %v2618_v62  ;;  %v2629_v27 = vrot.slane %v2628_v49, 1  ;;  %v2645_v1 = vsel %vm1937_vm1, %v10958_v30, -inf }
 0x3b6   : > { %v10967_v47 = vpop.eup %8670  ;;  %v3126_v10 = vrot.slane %v3125_v51, 4  ;;  %v1350_v21 = vmax.f32 %v1121_v57, 0.0  ;;  %v2632_v25 = vrot.slane %v2631_v28, 4  ;;  %v3579_v35 = vadd.f32 %v3578_v52, %v3577_v0  ;;  %v13953_v0 = vld [vmem:[#allocation13_spill] sm:$0xff] }
 0x3b7   : > { %v3620_v40 = vrot.slane %v3619_v26, 1  ;;  %v2122_v8 = vmax.f32 %v2120_v23, %v2121_v24  ;;  %v2760_v50 = vsub.f32 %v10881_v37, %v2602_v20  ;;  %v3650_v53 = vsel %vm1937_vm1, %v10967_v47, 0.0 }
 0x3b8   : > { %v8673_v43 = vpop.eup %8672  ;;  %v2620_v60 = vrot.slane %v2619_v55, 2  ;;  %v2646_v39 = vrot.slane %v2645_v1, 4  ;;  %v2630_v17 = vmax.f32 %v2628_v49, %v2629_v27  ;;  %v3127_v44 = vadd.f32 %v3126_v10, %v3125_v51 }
 0x3b9   : > { %v1458_v2 = vmul.f32 %v10720_v61, %v1350_v21  ;;  %v3833_v19 = vmul.f32 %v8673_v43, %v10886_v11  ;;  %v2633_v33 = vmax.f32 %v2631_v28, %v2632_v25  ;;  %8674 = vrcp.f32 %v3579_v35  ;;  %v561_v25 = vld [vmem:[%s9553_s21 + $0x100] sm:$0xff] }
 0x3ba   : > { %v2123_v62 = vrot.slane %v2122_v8, 2  ;;  %v2958_v37 = vmul.f32 1.442695, %v2760_v50  ;;  %v3651_v23 = vrot.slane %v3650_v53, 4  ;;  %v2647_v13 = vmax.f32 %v2645_v1, %v2646_v39  ;;  %v553_v35 = vld [vmem:[%s9553_s21 + $0xc0] sm:$0xff] }
 0x3bb   : > { %v10983_v49 = vadd.f32 %v10700_v6, %v558_v41  ;;  %v2621_v57 = vmax.f32 %v2619_v55, %v2620_v60  ;;  %v2764_v61 = vsub.f32 %v10903_v15, %v2630_v17  ;;  %v3128_v11 = vrot.slane %v3127_v44, 2 }
 0x3bc   : > { %v1644_v59 = vsel %vm667_vm0, %v1458_v2, 0.0  ;;  %v2634_v52 = vrot.slane %v2633_v33, 2  ;;  %v3621_v28 = vadd.f32 %v3620_v40, %v3619_v26  ;;  %v2124_v24 = vmax.f32 %v2122_v8, %v2123_v62  ;;  %v11000_v8 = vpop.f32.mrf.mxu0 }
 0x3bd   : > { %4031 = vperm.xlu0 %8250, %v3833_v19   ;;  %v3652_v15 = vadd.f32 %v3651_v23, %v3650_v53  ;;  %v2648_v20 = vrot.slane %v2647_v13, 2  ;;  %v2141_v55 = vsel %vm1937_vm1, %v10983_v49, -inf  ;;  %8676 = vpow2.f32 %v2958_v37  ;;  %v13955_v19 = vld [vmem:[#allocation23_spill] sm:$0xff] }
 0x3be   : > { %v2622_v27 = vrot.slane %v2621_v57, 1  ;;  %v3129_v1 = vadd.f32 %v3128_v11, %v3127_v44  ;;  %v2966_v10 = vmul.f32 1.442695, %v2764_v61  ;;  %v2635_v21 = vmax.f32 %v2633_v33, %v2634_v52 }
 0x3bf   : > { %1642 = vadd.xlane.f32.xlu1 %v1641_v56  ;;  %v3134_v56 = vadd.f32 %v3133_v36, %v3132_v54  ;;  %v10979_v54 = vadd.f32 %v13953_v0, %v629_v45  ;;  %v8675_v6 = vpop.eup %8674  ;;  %8678 = vrcp.f32 %v3621_v28  ;;  %v2125_v40 = vrot.slane %v2124_v24, 1 }
 0x3c0   : > { %v2142_v45 = vrot.slane %v2141_v55, 4  ;;  %v3895_v50 = vmul.f32 %v8675_v6, %v10898_v12  ;;  %v3653_v53 = vrot.slane %v3652_v15, 2  ;;  %v2649_v60 = vmax.f32 %v2647_v13, %v2648_v20 }
 0x3c1   : > { %v3135_v29 = vrot.slane %v3134_v56, 2  ;;  %v2638_v51 = vsel %vm1937_vm1, %v10979_v54, -inf  ;;  %v2623_v39 = vmax.f32 %v2621_v57, %v2622_v27  ;;  %v3130_v44 = vrot.slane %v3129_v1, 1  ;;  %v5587_v57 = vld [vmem:[%s13801_s9 + $0x80] sm:$0xff] }
 0x3c2   : > { %v2639_v26 = vrot.slane %v2638_v51, 4  ;;  %v11010_v41 = vadd.f32 %v10804_v16, %v561_v25  ;;  %v2636_v2 = vrot.slane %v2635_v21, 1  ;;  %v11016_v12 = vadd.f32 %v10576_v38, %v553_v35  ;;  %v5582_v38 = vld [vmem:[%s13801_s9 + $0x58] sm:$0xff]  ;;  %5698 = vmatpush.msrb.mxu3 %v5587_v57  ;;  %v554_v35 = vld [vmem:[%s9553_s21 + $0xc8] sm:$0xff] }
 0x3c3   : > { %v3136_v36 = vadd.f32 %v3135_v29, %v3134_v56  ;;  %v631_v56 = vld [vmem:[%s9553_s21 + $0x330] sm:$0xff]  ;;  %v11018_v29 = vpop.eup %8676  ;;  %8680 = vpow2.f32 %v2966_v10  ;;  %v2126_v62 = vmax.f32 %v2124_v24, %v2125_v40  ;;  %v2143_v37 = vmax.f32 %v2141_v55, %v2142_v45  ;;  %v5572_v10 = vld [vmem:[%s13801_s9 + $0x8] sm:$0xff]  ;;  %v633_v40 = vld [vmem:[%s11042_s27] sm:$0xff] }
 0x3c4   : > { %v2640_v17 = vmax.f32 %v2638_v51, %v2639_v26  ;;  %v11013_v33 = vadd.f32 %v13955_v19, %v631_v56  ;;  %v3654_v13 = vadd.f32 %v3653_v53, %v3652_v15  ;;  %v2650_v16 = vrot.slane %v2649_v60, 1  ;;  %v5577_v24 = vld [vmem:[%s13801_s9 + $0x30] sm:$0xff]  ;;  %5699 = vmatpush.msrb.mxu3 %v5582_v38  ;;  %v13956_v19 = vld [vmem:[#allocation37_spill] sm:$0xff] }
 0x3c5   : > { %v3137_v43 = vrot.slane %v3136_v36, 1  ;;  %v8679_v23 = vpop.eup %8678  ;;  %v2763_v61 = vsub.f32 %v10932_v5, %v2623_v39  ;;  %v3131_v52 = vadd.f32 %v3130_v44, %v3129_v1  ;;  %v2637_v51 = vmax.f32 %v2635_v21, %v2636_v2  ;;  %v564_v1 = vld [vmem:[%s9553_s21 + $0x118] sm:$0xff] }
 0x3c6   : > { %v2641_v11 = vrot.slane %v2640_v17, 2  ;;  %v2106_v28 = vsel %vm1937_vm1, %v11016_v12, -inf  ;;  %v3636_v5 = vsel %vm1937_vm1, %v11018_v29, 0.0  ;;  %v2692_v6 = vsub.f32 %v10943_v48, %v2126_v62  ;;  %v11055_v48 = vpop.f32.mrf.mxu0  ;;  %5700 = vmatpush.msrb.mxu3 %v5577_v24 }
 0x3c7   : > { %v3138_v0 = vadd.f32 %v3137_v43, %v3136_v36  ;;  %v2652_v36 = vsel %vm1937_vm1, %v11013_v33, -inf  ;;  %v2144_v15 = vrot.slane %v2143_v37, 2  ;;  %v3901_v20 = vmul.f32 %v8679_v23, %v10900_v42  ;;  %v11068_v23 = vpop.permute.xlu2 %4321 }
 0x3c8   : > { %v3655_v55 = vrot.slane %v3654_v13, 1  ;;  %v2651_v27 = vmax.f32 %v2649_v60, %v2650_v16  ;;  %v2642_v43 = vmax.f32 %v2640_v17, %v2641_v11  ;;  %v2653_v25 = vrot.slane %v2652_v36, 4  ;;  %5701 = vmatpush.msrb.mxu3 %v5572_v10  ;;  %13957 = vst [vmem:[#allocation7_spill] sm:$0xff] %v11068_v23 }
 0x3c9   : > { %8682 = vrcp.f32 %v3138_v0  ;;  %v11052_v21 = vpop.eup %8680  ;;  %v2107_v56 = vrot.slane %v2106_v28, 4  ;;  %v3637_v42 = vrot.slane %v3636_v5, 4  ;;  %v2964_v45 = vmul.f32 1.442695, %v2763_v61  ;;  %8123 = vmatmul.msk.f32.vlgmr.msrb.gmra.mxu3 %vm667_vm0, %v633_v40 }
 0x3ca   : > { %1645 = vadd.xlane.f32.xlu2 %v1644_v59  ;;  %v2162_v59 = vsel %vm1937_vm1, %v11010_v41, -inf  ;;  %8684 = vrcp.f32 %v3131_v52  ;;  %v2822_v53 = vmul.f32 1.442695, %v2692_v6  ;;  %v2145_v60 = vmax.f32 %v2143_v37, %v2144_v15  ;;  %v11071_v52 = vpop.permute.xlu0 %4316 }
 0x3cb   : > { %v2163_v26 = vrot.slane %v2162_v59, 4  ;;  %v11060_v39 = vadd.f32 %v10884_v7, %v564_v1  ;;  %v3664_v44 = vsel %vm1937_vm1, %v11052_v21, 0.0  ;;  %v2767_v2 = vsub.f32 %v10958_v30, %v2651_v27  ;;  %13958 = vst [vmem:[#allocation8_spill] sm:$0xff] %v11071_v52 }
 0x3cc   : > { %v11066_v0 = vadd.f32 %v13956_v19, %v554_v35  ;;  %v2654_v37 = vmax.f32 %v2652_v36, %v2653_v25  ;;  %v2108_v16 = vmax.f32 %v2106_v28, %v2107_v56  ;;  %v3656_v7 = vadd.f32 %v3655_v55, %v3654_v13  ;;  %v556_v19 = vld [vmem:[%s9553_s21 + $0xd8] sm:$0xff] }
 0x3cd   : > { %v2164_v62 = vmax.f32 %v2162_v59, %v2163_v26  ;;  %v3638_v57 = vadd.f32 %v3637_v42, %v3636_v5  ;;  %8686 = vpow2.f32 %v2964_v45  ;;  %v2146_v11 = vrot.slane %v2145_v60, 1  ;;  %v632_v42 = vld [vmem:[%s9553_s21 + $0x338] sm:$0xff] }
 0x3ce   : > { %8688 = vpow2.f32 %v2822_v53  ;;  %v2183_v30 = vsel %vm1937_vm1, %v11060_v39, -inf  ;;  %v2972_v24 = vmul.f32 1.442695, %v2767_v2  ;;  %v2113_v36 = vsel %vm1937_vm1, %v11066_v0, -inf  ;;  %v1132_v1 = vpop.f32.mrf.mxu0  ;;  %v11092_v53 = vld [vmem:[%s13797_s5] ss:$0 sm:$0xff] }
 0x3cf   : > { %v8683_v17 = vpop.eup %8682  ;;  %v2165_v28 = vrot.slane %v2164_v62, 2  ;;  %v2655_v5 = vrot.slane %v2654_v37, 2  ;;  %v2109_v6 = vrot.slane %v2108_v16, 2  ;;  %8690 = vrcp.f32 %v3656_v7 }
 0x3d0   : > { %v8685_v61 = vpop.eup %8684  ;;  %v3832_v59 = vmul.f32 %v8683_v17, %v10939_v63  ;;  %v2184_v15 = vrot.slane %v2183_v30, 4  ;;  %v3639_v55 = vrot.slane %v3638_v57, 2  ;;  %v2114_v27 = vrot.slane %v2113_v36, 4  ;;  %v11079_v63 = vpop.xlane.xlu1 %1624 }
 0x3d1   : > { %v2147_v26 = vmax.f32 %v2145_v60, %v2146_v11  ;;  %v2110_v40 = vmax.f32 %v2108_v16, %v2109_v6  ;;  %v1133_v60 = vadd.f32 %v11092_v53, %v1132_v1 }
 0x3d2   : > { %v2185_v45 = vmax.f32 %v2183_v30, %v2184_v15  ;;  %v2115_v2 = vmax.f32 %v2113_v36, %v2114_v27 }
 0x3d3   : > { %v11081_v10 = vpop.eup %8686  ;;  %v1354_v36 = vmax.f32 %v1133_v60, 0.0 }
 0x3d4   : > { %v11083_v56 = vpop.eup %8688 }
 0x3d5   : > { %v8691_v17 = vpop.eup %8690  ;;  %v3160_v16 = vsel %vm1937_vm1, %v11083_v56, 0.0 }
 0x3d6   : > { %v3161_v6 = vrot.slane %v3160_v16, 4 }
 0x3d8   : > { %4341 = vperm.xlu1 %8249, %v3895_v50   ;;  %v2765_v50 = vsub.f32 %v10951_v9, %v2637_v51  ;;  %v2643_v9 = vrot.slane %v2642_v43, 1  ;;  %v3665_v51 = vrot.slane %v3664_v44, 4 }
 0x3da   : > { %v2968_v38 = vmul.f32 1.442695, %v2765_v50  ;;  %v2644_v13 = vmax.f32 %v2642_v43, %v2643_v9  ;;  %v3666_v25 = vadd.f32 %v3665_v51, %v3664_v44  ;;  %v2166_v43 = vmax.f32 %v2164_v62, %v2165_v28  ;;  %v11087_v50 = vpop.permute.xlu2 %4231  ;;  %v11099_v62 = vpop.xlane.xlu0 %1630 }
 0x3db   : > { %13959 = vst [vmem:[#allocation10_spill] sm:$0xff] %v11087_v50  ;;  %v11095_v44 = vadd.f32 %v3639_v55, %v3638_v57  ;;  %v3657_v9 = vsel %vm1937_vm1, %v11081_v10, 0.0  ;;  %v13960_v57 = vld [vmem:[#allocation16_spill] sm:$0xff]  ;;  %v11113_v51 = vadd.f32 %v10645_v46, %v556_v19  ;;  %v3906_v28 = vmul.f32 %v8691_v17, %v10967_v47  ;;  %v567_v46 = vld [vmem:[%s9553_s21 + $0x130] sm:$0xff] }
 0x3dc   : > { %8692 = vpow2.f32 %v2968_v38  ;;  %v2766_v35 = vsub.f32 %v10979_v54, %v2644_v13  ;;  %v2695_v54 = vsub.f32 %v10983_v49, %v2147_v26  ;;  %v2167_v7 = vrot.slane %v2166_v43, 1 }
 0x3dd   : > { %8694 = vpow2.f32 %v2972_v24  ;;  %v11108_v30 = vadd.f32 %v13960_v57, %v632_v42  ;;  %v2186_v24 = vrot.slane %v2185_v45, 2  ;;  %v3658_v55 = vrot.slane %v3657_v9, 4  ;;  %v559_v57 = vld [vmem:[%s9553_s21 + $0xf0] sm:$0xff] }
 0x3de   : > { %v2828_v15 = vmul.f32 1.442695, %v2695_v54  ;;  %v2168_v1 = vmax.f32 %v2166_v43, %v2167_v7  ;;  %v2127_v17 = vsel %vm1937_vm1, %v11113_v51, -inf  ;;  %v11131_v43 = vld [vmem:[%s13798_s6] ss:$0 sm:$0xff]  ;;  %v3162_v7 = vadd.f32 %v3161_v6, %v3160_v16  ;;  %v11148_v6 = vld [vmem:[%s11042_s27 + $0x8] sm:$0xff] }
 0x3df   : > { %v2659_v60 = vsel %vm1937_vm1, %v11108_v30, -inf  ;;  %v1462_v19 = vmul.f32 %v11131_v43, %v1354_v36  ;;  %13963 = vst [vmem:[#allocation11_spill] sm:$0xff] %v11148_v6  ;;  %8124 = vmatmul.msk.f32.gmra.mxu3 %vm667_vm0, %v11148_v6 }
 0x3e0   : > { %4371 = vperm.xlu1 %8249, %v3901_v20   ;;  %v3831_v20 = vmul.f32 %v8685_v61, %v10948_v58  ;;  %v2656_v58 = vmax.f32 %v2654_v37, %v2655_v5  ;;  %v3667_v37 = vrot.slane %v3666_v25, 2  ;;  %v2970_v61 = vmul.f32 1.442695, %v2766_v35 }
 0x3e1   : > { %v2116_v5 = vrot.slane %v2115_v2, 2 }
 0x3e2   : > { %4021 = vperm.xlu2 %8248, %v3831_v20   ;;  %v11105_v38 = vpop.eup %8692  ;;  %v2657_v11 = vrot.slane %v2656_v58, 1  ;;  %v11117_v20 = vpop.permute.xlu1 %4311  ;;  %v3668_v27 = vadd.f32 %v3667_v37, %v3666_v25  ;;  %8696 = vpow2.f32 %v2970_v61  ;;  %v2187_v25 = vmax.f32 %v2185_v45, %v2186_v24 }
 0x3e3   : > { %v11110_v49 = vpop.eup %8694  ;;  %13961 = vst [vmem:[#allocation38_spill] sm:$0xff] %v11117_v20  ;;  %v3671_v26 = vsel %vm1937_vm1, %v11105_v38, 0.0  ;;  %v2117_v37 = vmax.f32 %v2115_v2, %v2116_v5  ;;  %8698 = vpow2.f32 %v2828_v15  ;;  %v2698_v45 = vsub.f32 %v11010_v41, %v2168_v1  ;;  %v11141_v13 = vpop.permute.xlu0 %4226  ;;  %v5581_v41 = vld [vmem:[%s13801_s9 + $0x50] sm:$0xff] }
 0x3e4   : > { %v3685_v35 = vsel %vm1937_vm1, %v11110_v49, 0.0  ;;  %v2658_v47 = vmax.f32 %v2656_v58, %v2657_v11  ;;  %v3672_v61 = vrot.slane %v3671_v26, 4  ;;  %13962 = vst [vmem:[#allocation15_spill] sm:$0xff] %v11141_v13  ;;  %v2188_v36 = vrot.slane %v2187_v25, 1  ;;  %5643 = vmatpush.msrb.mxu2 %v5581_v41 }
 0x3e5   : > { %v3686_v11 = vrot.slane %v3685_v35, 4  ;;  %v3163_v1 = vrot.slane %v3162_v7, 2 }
 0x3e6   : > { %v2768_v16 = vsub.f32 %v11013_v33, %v2658_v47  ;;  %v11161_v47 = vadd.f32 %v3672_v61, %v3671_v26  ;;  %v2189_v26 = vmax.f32 %v2187_v25, %v2188_v36 }
 0x3e7   : > { %v3687_v50 = vadd.f32 %v3686_v11, %v3685_v35 }
 0x3e8   : > { %4026 = vperm.xlu1 %8249, %v3832_v59   ;;  %v2111_v59 = vrot.slane %v2110_v40, 1  ;;  %v11153_v15 = vpop.eup %8696  ;;  %v2974_v52 = vmul.f32 1.442695, %v2768_v16 }
 0x3ea   : > { %4396 = vperm.xlu2 %8248, %v3906_v28   ;;  %v2112_v42 = vmax.f32 %v2110_v40, %v2111_v59  ;;  %v1637_v54 = vpop.xlane.xlu2 %1636  ;;  %v11136_v40 = vadd.f32 %v3658_v55, %v3657_v9  ;;  %v2660_v59 = vrot.slane %v2659_v60, 4  ;;  %v2128_v28 = vrot.slane %v2127_v17, 4 }
 0x3eb   : > { %v11134_v58 = vadd.f32 %v1637_v54, %v567_v46  ;;  %v1656_v9 = vsel %vm667_vm0, %v1462_v19, 0.0  ;;  %v2118_v55 = vrot.slane %v2117_v37, 1  ;;  %v11156_v46 = vadd.f32 %v10735_v32, %v559_v57  ;;  %v11163_v54 = vpop.eup %8698  ;;  %v557_v32 = vld [vmem:[%s9553_s21 + $0xe0] sm:$0xff]  ;;  %v11166_v57 = vpop.permute.xlu1 %4221 }
 0x3ec   : > { %v2690_v24 = vsub.f32 %v11016_v12, %v2112_v42  ;;  %v3669_v12 = vrot.slane %v3668_v27, 1  ;;  %1657 = vadd.xlane.f32.xlu0 %v1656_v9  ;;  %v3660_v33 = vrot.slane %v11136_v40, 2  ;;  %v2834_v42 = vmul.f32 1.442695, %v2698_v45  ;;  %13964 = vst [vmem:[#allocation13_spill] sm:$0xff] %v11166_v57 }
 0x3ed   : > { %v2204_v2 = vsel %vm1937_vm1, %v11134_v58, -inf  ;;  %v2661_v20 = vmax.f32 %v2659_v60, %v2660_v59  ;;  %v2129_v13 = vmax.f32 %v2127_v17, %v2128_v28  ;;  %v11170_v9 = vsel %vm1937_vm1, %v11153_v15, 0.0 }
 0x3ee   : > { %v2205_v5 = vrot.slane %v2204_v2, 4  ;;  %v2818_v23 = vmul.f32 1.442695, %v2690_v24  ;;  %v2119_v45 = vmax.f32 %v2117_v37, %v2118_v55  ;;  %v2148_v35 = vsel %vm1937_vm1, %v11156_v46, -inf  ;;  %v11180_v24 = vld [vmem:[%s11042_s27 + $0x10] sm:$0xff]  ;;  %v11186_v55 = vpop.permute.xlu0 %4001 }
 0x3ef   : > { %v3670_v60 = vadd.f32 %v3669_v12, %v3668_v27  ;;  %v11175_v11 = vadd.f32 %v10696_v34, %v557_v32  ;;  %v3181_v17 = vsel %vm1937_vm1, %v11163_v54, 0.0  ;;  %8700 = vpow2.f32 %v2834_v42  ;;  %13965 = vst [vmem:[#allocation23_spill] sm:$0xff] %v11180_v24  ;;  %v560_v12 = vld [vmem:[%s9553_s21 + $0xf8] sm:$0xff]  ;;  %8125 = vmatmul.msk.f32.gmra.mxu3 %vm667_vm0, %v11180_v24 }
 0x3f0   : > { %v2206_v19 = vmax.f32 %v2204_v2, %v2205_v5  ;;  %v3164_v2 = vadd.f32 %v3163_v1, %v3162_v7  ;;  %v3688_v28 = vrot.slane %v3687_v50, 2  ;;  %v2662_v25 = vrot.slane %v2661_v20, 2  ;;  %v562_v7 = vld [vmem:[%s9553_s21 + $0x108] sm:$0xff] }
 0x3f1   : > { %8702 = vpow2.f32 %v2818_v23  ;;  %v2130_v37 = vrot.slane %v2129_v13, 2  ;;  %v2149_v16 = vrot.slane %v2148_v35, 4  ;;  %v2701_v27 = vsub.f32 %v11060_v39, %v2189_v26 }
 0x3f2   : > { %v2207_v61 = vrot.slane %v2206_v19, 2  ;;  %8704 = vpow2.f32 %v2974_v52  ;;  %v2691_v34 = vsub.f32 %v11066_v0, %v2119_v45  ;;  %v3165_v5 = vrot.slane %v3164_v2, 1 }
 0x3f3   : > { %v3182_v41 = vrot.slane %v3181_v17, 4  ;;  %8706 = vrcp.f32 %v3670_v60  ;;  %v2134_v23 = vsel %vm1937_vm1, %v11175_v11, -inf  ;;  %v11193_v52 = vadd.f32 %v10819_v18, %v562_v7 }
 0x3f4   : > { %v2208_v59 = vmax.f32 %v2206_v19, %v2207_v61  ;;  %v1127_v39 = vadd.f32 %v11092_v53, %v11000_v8  ;;  %v11198_v0 = vadd.f32 %v3660_v33, %v11136_v40  ;;  %v3689_v42 = vadd.f32 %v3688_v28, %v3687_v50  ;;  %v11209_v50 = vpop.permute.xlu1 %3996 }
 0x3f5   : > { %v2663_v19 = vmax.f32 %v2661_v20, %v2662_v25  ;;  %v2131_v32 = vmax.f32 %v2129_v13, %v2130_v37  ;;  %v11200_v26 = vpop.eup %8700  ;;  %v3674_v61 = vrot.slane %v11161_v47, 2  ;;  %v2150_v45 = vmax.f32 %v2148_v35, %v2149_v16  ;;  %13966 = vst [vmem:[#allocation37_spill] sm:$0xff] %v11209_v50  ;;  %v5576_v13 = vld [vmem:[%s13801_s9 + $0x28] sm:$0xff]  ;;  %v11220_v25 = vld [vmem:[%s11042_s27 + $0x18] sm:$0xff] }
 0x3f6   : > { %v2209_v36 = vrot.slane %v2208_v59, 1  ;;  %v11204_v60 = vadd.f32 %v10790_v4, %v560_v12  ;;  %v2840_v18 = vmul.f32 1.442695, %v2701_v27  ;;  %v3679_v8 = vrot.slane %v11170_v9, 4  ;;  %13967 = vst [vmem:[#allocation16_spill] sm:$0xff] %v11220_v25  ;;  %5644 = vmatpush.msrb.mxu2 %v5576_v13  ;;  %v565_v13 = vld [vmem:[%s9553_s21 + $0x120] sm:$0xff] }
 0x3f7   : > { %v11206_v7 = vpop.eup %8702  ;;  %v2135_v40 = vrot.slane %v2134_v23, 4  ;;  %v3183_v33 = vadd.f32 %v3182_v41, %v3181_v17  ;;  %v2169_v4 = vsel %vm1937_vm1, %v11193_v52, -inf  ;;  %v1352_v35 = vmax.f32 %v1127_v39, 0.0  ;;  %8126 = vmatmul.msk.f32.gmra.mxu3 %vm667_vm0, %v11220_v25 }
 0x3f8   : > { %v2210_v1 = vmax.f32 %v2208_v59, %v2209_v36  ;;  %v2820_v59 = vmul.f32 1.442695, %v2691_v34  ;;  %v11214_v20 = vpop.eup %8704  ;;  %v3166_v37 = vadd.f32 %v3165_v5, %v3164_v2  ;;  %v3690_v16 = vrot.slane %v3689_v42, 1 }
 0x3f9   : > { %v8707_v17 = vpop.eup %8706  ;;  %v2664_v27 = vrot.slane %v2663_v19, 1  ;;  %v2132_v36 = vrot.slane %v2131_v32, 1  ;;  %v3202_v34 = vsel %vm1937_vm1, %v11200_v26, 0.0  ;;  %v3146_v41 = vsel %vm1937_vm1, %v11206_v7, 0.0 }
 0x3fa   : > { %v2704_v28 = vsub.f32 %v11134_v58, %v2210_v1  ;;  %v2151_v12 = vrot.slane %v2150_v45, 2  ;;  %v2155_v39 = vsel %vm1937_vm1, %v11204_v60, -inf  ;;  %8708 = vpow2.f32 %v2840_v18  ;;  %v11236_v18 = vpop.permute.xlu0 %4331 }
 0x3fb   : > { %8710 = vpow2.f32 %v2820_v59  ;;  %v2136_v58 = vmax.f32 %v2134_v23, %v2135_v40  ;;  %v3184_v2 = vrot.slane %v3183_v33, 2  ;;  %v2170_v5 = vrot.slane %v2169_v4, 4  ;;  %13968 = vst [vmem:[#allocation48_spill] sm:$0xff] %v11236_v18 }
 0x3fc   : > { %v3203_v1 = vrot.slane %v3202_v34, 4  ;;  %v1460_v57 = vmul.f32 %v11131_v43, %v1352_v35  ;;  %v2846_v3 = vmul.f32 1.442695, %v2704_v28  ;;  %8712 = vrcp.f32 %v3166_v37  ;;  %v11244_v6 = vpop.xlane.xlu1 %1633 }
 0x3fd   : > { %v11234_v22 = vsel %vm1937_vm1, %v11214_v20, 0.0  ;;  %v2133_v14 = vmax.f32 %v2131_v32, %v2132_v36  ;;  %v2156_v31 = vrot.slane %v2155_v39, 4  ;;  %v3908_v23 = vmul.f32 %v8707_v17, %v11052_v21  ;;  %v11249_v21 = vld [vmem:[%s11042_s27 + $0x20] sm:$0xff] }
 0x3fe   : > { %v2665_v59 = vmax.f32 %v2663_v19, %v2664_v27  ;;  %v3147_v40 = vrot.slane %v3146_v41, 4  ;;  %v2152_v25 = vmax.f32 %v2150_v45, %v2151_v12  ;;  %v1130_v24 = vadd.f32 %v11092_v53, %v11055_v48 }
 0x3ff   : > { %v2137_v35 = vrot.slane %v2136_v58, 2  ;;  %v2171_v28 = vmax.f32 %v2169_v4, %v2170_v5  ;;  %v11242_v37 = vadd.f32 %v11099_v62, %v565_v13  ;;  %v3691_v32 = vadd.f32 %v3690_v16, %v3689_v42  ;;  %8127 = vmatmul.msk.f32.gmra.mxu3 %vm667_vm0, %v11249_v21 }
 0x400   : > { %4406 = vperm.xlu0 %8250, %v3908_v23   ;;  %v11246_v36 = vpop.eup %8708  ;;  %v3185_v18 = vadd.f32 %v3184_v2, %v3183_v33  ;;  %v3204_v50 = vadd.f32 %v3203_v1, %v3202_v34  ;;  %8714 = vpow2.f32 %v2846_v3  ;;  %v1650_v19 = vsel %vm667_vm0, %v1460_v57, 0.0 }
 0x401   : > { %v11252_v48 = vpop.eup %8710  ;;  %v11255_v53 = vadd.f32 %v3674_v61, %v11161_v47  ;;  %v11258_v62 = vadd.f32 %v3679_v8, %v11170_v9  ;;  %v2693_v42 = vsub.f32 %v11113_v51, %v2133_v14  ;;  %v2157_v45 = vmax.f32 %v2155_v39, %v2156_v31  ;;  %v568_v9 = vld [vmem:[%s9553_s21 + $0x138] sm:$0xff] }
 0x402   : > { %v8713_v4 = vpop.eup %8712  ;;  %v2769_v3 = vsub.f32 %v11108_v30, %v2665_v59  ;;  %v2153_v17 = vrot.slane %v2152_v25, 1  ;;  %v1353_v16 = vmax.f32 %v1130_v24, 0.0  ;;  %v2138_v27 = vmax.f32 %v2136_v58, %v2137_v35  ;;  %v1640_v8 = vpop.xlane.xlu0 %1639 }
 0x403   : > { %v2172_v57 = vrot.slane %v2171_v28, 2  ;;  %v2190_v34 = vsel %vm1937_vm1, %v11242_v37, -inf  ;;  %v3223_v47 = vsel %vm1937_vm1, %v11246_v36, 0.0  ;;  %v3148_v31 = vadd.f32 %v3147_v40, %v3146_v41 }
 0x404   : > { %v3186_v14 = vrot.slane %v3185_v18, 1  ;;  %v3205_v51 = vrot.slane %v3204_v50, 2  ;;  %8716 = vrcp.f32 %v3691_v32  ;;  %v3153_v30 = vsel %vm1937_vm1, %v11252_v48, 0.0  ;;  %v11278_v40 = vpop.permute.xlu1 %4326 }
 0x405   : > { %v2824_v24 = vmul.f32 1.442695, %v2693_v42  ;;  %v2158_v61 = vrot.slane %v2157_v45, 2  ;;  %v3836_v12 = vmul.f32 %v8713_v4, %v11083_v56  ;;  %v2191_v58 = vrot.slane %v2190_v34, 4  ;;  %v563_v56 = vld [vmem:[%s9553_s21 + $0x110] sm:$0xff]  ;;  %v11282_v42 = vld [vmem:[%s11042_s27 + $0x28] sm:$0xff] }
 0x406   : > { %v11273_v39 = vpop.eup %8714  ;;  %v3224_v2 = vrot.slane %v3223_v47, 4  ;;  %v11275_v5 = vadd.f32 %v1640_v8, %v568_v9  ;;  %v1461_v41 = vmul.f32 %v11131_v43, %v1353_v16  ;;  %v2976_v1 = vmul.f32 1.442695, %v2769_v3 }
 0x407   : > { %v2154_v13 = vmax.f32 %v2152_v25, %v2153_v17  ;;  %v2139_v23 = vrot.slane %v2138_v27, 1  ;;  %v2173_v59 = vmax.f32 %v2171_v28, %v2172_v57  ;;  %v3149_v35 = vrot.slane %v3148_v31, 2  ;;  %8128 = vmatmul.msk.f32.gmra.mxu3 %vm667_vm0, %v11282_v42 }
 0x408   : > { %4046 = vperm.xlu0 %8250, %v3836_v12   ;;  %v3154_v32 = vrot.slane %v3153_v30, 4  ;;  %v3187_v4 = vadd.f32 %v3186_v14, %v3185_v18  ;;  %8718 = vpow2.f32 %v2824_v24  ;;  %v2159_v33 = vmax.f32 %v2157_v45, %v2158_v61 }
 0x409   : > { %v3244_v9 = vsel %vm1937_vm1, %v11273_v39, 0.0  ;;  %v13969_v43 = vrot.slane %v11095_v44, 1  ;;  %v2192_v3 = vmax.f32 %v2190_v34, %v2191_v58  ;;  %v3225_v17 = vadd.f32 %v3224_v2, %v3223_v47 }
 0x40a   : > { %v8717_v28 = vpop.eup %8716  ;;  %v2211_v16 = vsel %vm1937_vm1, %v11275_v5, -inf  ;;  %v2696_v57 = vsub.f32 %v11156_v46, %v2154_v13  ;;  %v2140_v18 = vmax.f32 %v2138_v27, %v2139_v23  ;;  %v2174_v14 = vrot.slane %v2173_v59, 1 }
 0x40b   : > { %v3642_v25 = vadd.f32 %v13969_v43, %v11095_v44  ;;  %v11294_v45 = vadd.f32 %v11079_v63, %v563_v56  ;;  %v3245_v24 = vrot.slane %v3244_v9, 4  ;;  %8720 = vrcp.f32 %v3187_v4 }
 0x40c   : > { %8722 = vpow2.f32 %v2976_v1  ;;  %v3150_v34 = vadd.f32 %v3149_v35, %v3148_v31  ;;  %v2212_v47 = vrot.slane %v2211_v16, 4  ;;  %v3911_v61 = vmul.f32 %v8717_v28, %v11110_v49  ;;  %v11306_v49 = vld [vmem:[%s11042_s27 + $0x30] sm:$0xff]  ;;  %v11310_v4 = vpop.permute.xlu1 %4236 }
 0x40d   : > { %v2160_v46 = vrot.slane %v2159_v33, 1  ;;  %v2193_v27 = vrot.slane %v2192_v3, 2  ;;  %v3226_v8 = vrot.slane %v3225_v17, 2  ;;  %8724 = vrcp.f32 %v3642_v25 }
 0x40e   : > { %v11299_v63 = vpop.eup %8718  ;;  %v2830_v12 = vmul.f32 1.442695, %v2696_v57  ;;  %v2694_v58 = vsub.f32 %v11175_v11, %v2140_v18  ;;  %v2176_v2 = vsel %vm1937_vm1, %v11294_v45, -inf  ;;  %v3662_v31 = vrot.slane %v11198_v0, 1 }
 0x40f   : > { %v3246_v1 = vadd.f32 %v3245_v24, %v3244_v9  ;;  %v3676_v23 = vrot.slane %v11255_v53, 1  ;;  %v3681_v35 = vrot.slane %v11258_v62, 2  ;;  %v2213_v56 = vmax.f32 %v2211_v16, %v2212_v47  ;;  %8129 = vmatmul.msk.f32.gmra.mxu3 %vm667_vm0, %v11306_v49 }
 0x410   : > { %4421 = vperm.xlu0 %8250, %v3911_v61   ;;  %v2194_v43 = vmax.f32 %v2192_v3, %v2193_v27  ;;  %v2177_v25 = vrot.slane %v2176_v2, 4  ;;  %v3227_v28 = vadd.f32 %v3226_v8, %v3225_v17  ;;  %v13970_v9 = vrot.slane %v11234_v22, 4  ;;  %v566_v27 = vld [vmem:[%s9553_s21 + $0x128] sm:$0xff] }
 0x411   : > { %v8721_v11 = vpop.eup %8720  ;;  %8726 = vpow2.f32 %v2830_v12  ;;  %v3663_v3 = vadd.f32 %v3662_v31, %v11198_v0  ;;  %v3167_v17 = vsel %vm1937_vm1, %v11299_v63, 0.0  ;;  %v11331_v31 = vld [vmem:[%s11042_s27 + $0x38] sm:$0xff] }
 0x412   : > { %1651 = vadd.xlane.f32.xlu1 %v1650_v19  ;;  %v3206_v19 = vadd.f32 %v3205_v51, %v3204_v50  ;;  %v1653_v50 = vsel %vm667_vm0, %v1461_v41, 0.0  ;;  %v3155_v51 = vadd.f32 %v3154_v32, %v3153_v30  ;;  %v2175_v30 = vmax.f32 %v2173_v59, %v2174_v14 }
 0x413   : > { %1654 = vadd.xlane.f32.xlu2 %v1653_v50  ;;  %v3151_v32 = vrot.slane %v3150_v34, 1  ;;  %v2161_v59 = vmax.f32 %v2159_v33, %v2160_v46  ;;  %v11312_v50 = vpop.eup %8722  ;;  %v3694_v57 = vadd.f32 %v13970_v9, %v11234_v22  ;;  %v3247_v33 = vrot.slane %v3246_v1, 2 }
 0x414   : > { %v3207_v44 = vrot.slane %v3206_v19, 1  ;;  %v3156_v41 = vrot.slane %v3155_v51, 2  ;;  %v2699_v18 = vsub.f32 %v11193_v52, %v2175_v30  ;;  %v8725_v16 = vpop.eup %8724  ;;  %v3839_v22 = vmul.f32 %v8721_v11, %v11163_v54 }
 0x415   : > { %v3152_v24 = vadd.f32 %v3151_v32, %v3150_v34  ;;  %v2697_v47 = vsub.f32 %v11204_v60, %v2161_v59  ;;  %v2195_v52 = vrot.slane %v2194_v43, 1  ;;  %v2178_v61 = vmax.f32 %v2176_v2, %v2177_v25 }
 0x416   : > { %v3208_v13 = vadd.f32 %v3207_v44, %v3206_v19  ;;  %v2826_v19 = vmul.f32 1.442695, %v2694_v58  ;;  %v3157_v14 = vadd.f32 %v3156_v41, %v3155_v51  ;;  %v2214_v44 = vrot.slane %v2213_v56, 2  ;;  %v11328_v58 = vpop.permute.xlu0 %4241 }
 0x417   : > { %v3228_v46 = vrot.slane %v3227_v28, 1  ;;  %v3695_v8 = vrot.slane %v3694_v57, 2  ;;  %v3699_v51 = vsel %vm1937_vm1, %v11312_v50, 0.0  ;;  %v2836_v0 = vmul.f32 1.442695, %v2699_v18  ;;  %v11334_v60 = vpop.eup %8726  ;;  %v11342_v18 = vpop.permute.xlu1 %4011  ;;  %8130 = vmatmul.msk.f32.gmra.mxu3 %vm667_vm0, %v11331_v31 }
 0x418   : > { %8728 = vrcp.f32 %v3208_v13  ;;  %4061 = vperm.xlu0 %8250, %v3839_v22   ;;  %v3168_v12 = vrot.slane %v3167_v17, 4  ;;  %v3248_v30 = vadd.f32 %v3247_v33, %v3246_v1  ;;  %v3904_v54 = vmul.f32 %v8725_v16, %v11018_v29  ;;  %v11340_v29 = vpop.permute.xlu2 %4006 }
 0x419   : > { %8730 = vpow2.f32 %v2826_v19  ;;  %v3158_v34 = vrot.slane %v3157_v14, 1  ;;  %v2215_v2 = vmax.f32 %v2213_v56, %v2214_v44  ;;  %v11337_v41 = vadd.f32 %v11244_v6, %v566_v27 }
 0x41a   : > { %8732 = vrcp.f32 %v3663_v3  ;;  %v2832_v32 = vmul.f32 1.442695, %v2697_v47  ;;  %v2196_v11 = vmax.f32 %v2194_v43, %v2195_v52  ;;  %v2179_v59 = vrot.slane %v2178_v61, 2 }
 0x41b   : > { %8734 = vrcp.f32 %v3152_v24  ;;  %v3229_v25 = vadd.f32 %v3228_v46, %v3227_v28  ;;  %v3682_v1 = vadd.f32 %v3681_v35, %v11258_v62  ;;  %v3696_v9 = vadd.f32 %v3695_v8, %v3694_v57 }
 0x41c   : > { %v3700_v19 = vrot.slane %v3699_v51, 4  ;;  %8736 = vpow2.f32 %v2836_v0  ;;  %v3169_v6 = vadd.f32 %v3168_v12, %v3167_v17  ;;  %v3188_v56 = vsel %vm1937_vm1, %v11334_v60, 0.0  ;;  %v569_v12 = vld [vmem:[%s9553_s21 + $0x140] sm:$0xff] }
 0x41d   : > { %v3249_v16 = vrot.slane %v3248_v30, 1  ;;  %8738 = vrcp.f32 %v3229_v25  ;;  %v2216_v62 = vrot.slane %v2215_v2, 1  ;;  %v2197_v35 = vsel %vm1937_vm1, %v11337_v41, -inf }
 0x41e   : > { %v8729_v13 = vpop.eup %8728  ;;  %v3159_v57 = vadd.f32 %v3158_v34, %v3157_v14  ;;  %8740 = vpow2.f32 %v2832_v32  ;;  %v2702_v3 = vsub.f32 %v11242_v37, %v2196_v11  ;;  %v2180_v17 = vmax.f32 %v2178_v61, %v2179_v59  ;;  %v11360_v14 = vld [vmem:[%s11042_s27 + $0x40] sm:$0xff] }
 0x41f   : > { %v11348_v43 = vpop.eup %8730  ;;  %v3842_v28 = vmul.f32 %v8729_v13, %v11200_v26  ;;  %v3677_v44 = vadd.f32 %v3676_v23, %v11255_v53  ;;  %v3683_v24 = vrot.slane %v3682_v1, 1  ;;  %v3701_v47 = vadd.f32 %v3700_v19, %v3699_v51  ;;  %v11365_v51 = vpop.permute.xlu0 %4376  ;;  %8131 = vmatmul.msk.f32.gmra.mxu3 %vm667_vm0, %v11360_v14 }
 0x420   : > { %v8733_v33 = vpop.eup %8732  ;;  %v3189_v52 = vrot.slane %v3188_v56, 4  ;;  %v3174_v46 = vsel %vm1937_vm1, %v11348_v43, 0.0  ;;  %v2198_v26 = vrot.slane %v2197_v35, 4  ;;  %v3250_v27 = vadd.f32 %v3249_v16, %v3248_v30 }
 0x421   : > { %v8735_v22 = vpop.eup %8734  ;;  %4076 = vperm.xlu0 %8250, %v3842_v28   ;;  %v3697_v37 = vrot.slane %v3696_v9, 1  ;;  %v3170_v61 = vrot.slane %v3169_v6, 2  ;;  %v2217_v0 = vmax.f32 %v2215_v2, %v2216_v62  ;;  %8742 = vrcp.f32 %v3159_v57  ;;  %v11376_v28 = vpop.permute.xlu2 %4336 }
 0x422   : > { %v11362_v8 = vpop.eup %8736  ;;  %v2842_v23 = vmul.f32 1.442695, %v2702_v3  ;;  %8744 = vrcp.f32 %v3677_v44  ;;  %v3907_v34 = vmul.f32 %v8733_v33, %v11081_v10  ;;  %v3702_v13 = vrot.slane %v3701_v47, 2 }
 0x423   : > { %v8739_v53 = vpop.eup %8738  ;;  %v3175_v32 = vrot.slane %v3174_v46, 4  ;;  %v3834_v30 = vmul.f32 %v8735_v22, %v11206_v7  ;;  %v3684_v59 = vadd.f32 %v3683_v24, %v3682_v1  ;;  %v3190_v25 = vadd.f32 %v3189_v52, %v3188_v56 }
 0x424   : > { %v11371_v2 = vpop.eup %8740  ;;  %v2199_v19 = vmax.f32 %v2197_v35, %v2198_v26  ;;  %8746 = vrcp.f32 %v3250_v27  ;;  %v3171_v62 = vadd.f32 %v3170_v61, %v3169_v6  ;;  %v2705_v10 = vsub.f32 %v11275_v5, %v2217_v0 }
 0x425   : > { %v3845_v57 = vmul.f32 %v8739_v53, %v11246_v36  ;;  %v3698_v7 = vadd.f32 %v3697_v37, %v3696_v9  ;;  %v3209_v1 = vsel %vm1937_vm1, %v11362_v8, 0.0  ;;  %8748 = vpow2.f32 %v2842_v23  ;;  %v11386_v9 = vld [vmem:[%s11042_s27 + $0x48] sm:$0xff] }
 0x426   : > { %v3703_v3 = vadd.f32 %v3702_v13, %v3701_v47  ;;  %v3176_v6 = vadd.f32 %v3175_v32, %v3174_v46  ;;  %v3195_v5 = vsel %vm1937_vm1, %v11371_v2, 0.0  ;;  %v3191_v22 = vrot.slane %v3190_v25, 2 }
 0x427   : > { %v8743_v33 = vpop.eup %8742  ;;  %v2200_v24 = vrot.slane %v2199_v19, 2  ;;  %8750 = vrcp.f32 %v3684_v59  ;;  %v3172_v52 = vrot.slane %v3171_v62, 1  ;;  %v3210_v26 = vrot.slane %v3209_v1, 4  ;;  %8132 = vmatmul.msk.f32.gmra.mxu3 %vm667_vm0, %v11386_v9  ;;  %v11395_v13 = vpop.permute.xlu0 %4016 }
 0x428   : > { %v8745_v36 = vpop.eup %8744  ;;  %v3196_v37 = vrot.slane %v3195_v5, 4  ;;  %8752 = vrcp.f32 %v3698_v7  ;;  %v3835_v47 = vmul.f32 %v8743_v33, %v11252_v48  ;;  %v3704_v46 = vrot.slane %v3703_v3, 1 }
 0x429   : > { %4091 = vperm.xlu0 %8250, %v3845_v57   ;;  %v3177_v0 = vrot.slane %v3176_v6, 2  ;;  %v3211_v32 = vadd.f32 %v3210_v26, %v3209_v1  ;;  %v3173_v48 = vadd.f32 %v3172_v52, %v3171_v62  ;;  %v11405_v57 = vpop.permute.xlu2 %4381 }
 0x42a   : > { %v8747_v27 = vpop.eup %8746  ;;  %13971 = vst [vmem:[#allocation49_spill] sm:$0xff] %v11405_v57  ;;  %v3705_v7 = vadd.f32 %v3704_v46, %v3703_v3 }
 0x42b   : > { %4386 = vperm.xlu1 %8249, %v3904_v54   ;;  %v2181_v54 = vrot.slane %v2180_v17, 1  ;;  %4036 = vperm.xlu2 %8248, %v3834_v30   ;;  %v11393_v23 = vpop.eup %8748  ;;  %v3212_v33 = vrot.slane %v3211_v32, 2 }
 0x42d   : > { %v2182_v56 = vmax.f32 %v2180_v17, %v2181_v54  ;;  %v2848_v17 = vmul.f32 1.442695, %v2705_v10  ;;  %v3192_v54 = vadd.f32 %v3191_v22, %v3190_v25  ;;  %v8751_v30 = vpop.eup %8750  ;;  %v3178_v25 = vadd.f32 %v3177_v0, %v3176_v6 }
 0x42e   : > { %v3230_v10 = vsel %vm1937_vm1, %v11393_v23, 0.0  ;;  %v8753_v1 = vpop.eup %8752 }
 0x42f   : > { %v2700_v61 = vsub.f32 %v11294_v45, %v2182_v56  ;;  %8754 = vpow2.f32 %v2848_v17  ;;  %v3848_v45 = vmul.f32 %v8747_v27, %v11273_v39  ;;  %v11408_v56 = vld [vmem:[%s11042_s27 + $0x50] sm:$0xff]  ;;  %v3912_v52 = vmul.f32 %v8753_v1, %v11214_v20  ;;  %v11417_v17 = vpop.xlane.xlu0 %1648  ;;  %v570_v27 = vld [vmem:[%s9553_s21 + $0x148] sm:$0xff] }
 0x430   : > { %8756 = vrcp.f32 %v3173_v48  ;;  %8133 = vmatmul.msk.f32.gmra.mxu3 %vm667_vm0, %v11408_v56 }
 0x431   : > { %v2838_v59 = vmul.f32 1.442695, %v2700_v61  ;;  %4106 = vperm.xlu0 %8250, %v3848_v45  }
 0x432   : > { %v1643_v11 = vpop.xlane.xlu1 %1642 }
 0x433   : > { %v11373_v16 = vadd.f32 %v1643_v11, %v569_v12  ;;  %4401 = vperm.xlu1 %8249, %v3907_v34   ;;  %v3909_v12 = vmul.f32 %v8745_v36, %v11105_v38  ;;  %v2201_v34 = vmax.f32 %v2199_v19, %v2200_v24  ;;  %v3197_v11 = vadd.f32 %v3196_v37, %v3195_v5  ;;  %v11401_v38 = vld [vmem:[%s13800_s8] ss:$0 sm:$0xff]  ;;  %v5519_v19 = vpop.f32.mrf.mxu1 }
 0x434   : > { %v3910_v5 = vmul.f32 %v8751_v30, %v11153_v15  ;;  %v3231_v36 = vrot.slane %v3230_v10, 4  ;;  %8758 = vpow2.f32 %v2838_v59  ;;  %v3179_v24 = vrot.slane %v3178_v25, 1 }
 0x435   : > { %v2218_v35 = vsel %vm1937_vm1, %v11373_v16, -inf  ;;  %4411 = vperm.xlu2 %8248, %v3909_v12   ;;  %v2202_v62 = vrot.slane %v2201_v34, 1  ;;  %v3198_v6 = vrot.slane %v3197_v11, 2  ;;  %v11412_v22 = vpop.eup %8754  ;;  %8760 = vrcp.f32 %v3705_v7 }
 0x436   : > { %v2219_v44 = vrot.slane %v2218_v35, 4  ;;  %v3213_v15 = vadd.f32 %v3212_v33, %v3211_v32  ;;  %v3232_v46 = vadd.f32 %v3231_v36, %v3230_v10  ;;  %v3251_v0 = vsel %vm1937_vm1, %v11412_v22, 0.0  ;;  %v8757_v12 = vpop.eup %8756  ;;  %v8830_v36 = vld [vmem:[%s9158_s26 + $0x88] sm:$0xff] }
 0x437   : > { %v2203_v26 = vmax.f32 %v2201_v34, %v2202_v62  ;;  %v3199_v61 = vadd.f32 %v3198_v6, %v3197_v11  ;;  %v3180_v45 = vadd.f32 %v3179_v24, %v3178_v25  ;;  %v3252_v59 = vrot.slane %v3251_v0, 4  ;;  %v11437_v62 = vld [vmem:[%s11042_s27 + $0x58] sm:$0xff]  ;;  %v5585_v6 = vld [vmem:[%s13801_s9 + $0x70] sm:$0xff] }
 0x438   : > { %v2220_v53 = vmax.f32 %v2218_v35, %v2219_v44  ;;  %v3193_v35 = vrot.slane %v3192_v54, 1  ;;  %v5520_v44 = vadd.f32 %v11401_v38, %v5519_v19  ;;  %v3214_v11 = vrot.slane %v3213_v15, 1  ;;  %8134 = vmatmul.msk.f32.gmra.mxu3 %vm667_vm0, %v11437_v62 }
 0x439   : > { %v2703_v32 = vsub.f32 %v11337_v41, %v2203_v26  ;;  %v3200_v19 = vrot.slane %v3199_v61, 1  ;;  %v3233_v10 = vrot.slane %v3232_v46, 2  ;;  %v3837_v25 = vmul.f32 %v8757_v12, %v11299_v63  ;;  %v5590_v63 = vld [vmem:[%s13801_s9 + $0x98] sm:$0xff]  ;;  %v11456_v12 = vpop.permute.xlu0 %4391 }
 0x43a   : > { %v2221_v39 = vrot.slane %v2220_v53, 2  ;;  %v3194_v37 = vadd.f32 %v3193_v35, %v3192_v54  ;;  %v11425_v48 = vpop.eup %8758  ;;  %v5571_v35 = vld [vmem:[%s13801_s9] sm:$0xff]  ;;  %v4451_v24 = vmul.f32 %v8830_v36, %v11186_v55  ;;  %5866 = vmatpush.msra.mxu3 %v5590_v63  ;;  %13973 = vst [vmem:[#allocation51_spill] sm:$0xff] %v11456_v12  ;;  %v3215_v55 = vadd.f32 %v3214_v11, %v3213_v15 }
 0x43b   : > { %4041 = vperm.xlu1 %8249, %v3835_v47   ;;  %v11420_v47 = vmax.f32 %v5520_v44, 0.0  ;;  %v8761_v30 = vpop.eup %8760  ;;  %v3216_v7 = vsel %vm1937_vm1, %v11425_v48, 0.0  ;;  %5645 = vmatpush.msrb.mxu2 %v5571_v35  ;;  %v3234_v26 = vadd.f32 %v3233_v10, %v3232_v46  ;;  %v13812_v10 = vmov 6   ;;  %v5575_v15 = vld [vmem:[%s13801_s9 + $0x20] sm:$0xff] }
 0x43c   : > { %v2222_v3 = vmax.f32 %v2220_v53, %v2221_v39  ;;  %v13814_v53 = vmov 5   ;;  %8762 = vrcp.f32 %v3194_v37  ;;  %v3913_v44 = vmul.f32 %v8761_v30, %v11312_v50  ;;  %v571_v37 = vld [vmem:[%s9553_s21 + $0x150] sm:$0xff]  ;;  %v5580_v50 = vld [vmem:[%s13801_s9 + $0x48] sm:$0xff]  ;;  %5867 = vmatpush.msra.mxu3 %v5585_v6  ;;  %v13977_v12 = vld [vmem:[#allocation16_spill] sm:$0xff] }
 0x43d   : > { %4426 = vperm.xlu2 %8248, %v3912_v52   ;;  %13972 = vst [vmem:[#allocation50_spill] sm:$0xff] %v11420_v47  ;;  %8255 = vset.pattern.permute.xlu0 %v13814_v53  ;;  %v1646_v34 = vpop.xlane.xlu2 %1645  ;;  %8764 = vrcp.f32 %v3180_v45  ;;  %v3201_v45 = vadd.f32 %v3200_v19, %v3199_v61  ;;  %v13974_v30 = vld [vmem:[#allocation37_spill] sm:$0xff] }
 0x43e   : > { %v2223_v20 = vrot.slane %v2222_v3, 1  ;;  %6470 = vperm.xlu0 %8255, %v11420_v47   ;;  %v11429_v54 = vadd.f32 %v1646_v34, %v570_v27  ;;  %v3217_v27 = vrot.slane %v3216_v7, 4  ;;  %v11479_v19 = vld [vmem:[%s11042_s27 + $0x60] sm:$0xff]  ;;  %5868 = vmatpush.msra.mxu3 %v5580_v50 }
 0x440   : > { %v2225_v39 = vsel %vm1937_vm1, %v11429_v54, -inf  ;;  %v2224_v41 = vmax.f32 %v2222_v3, %v2223_v20  ;;  %v3253_v3 = vadd.f32 %v3252_v59, %v3251_v0  ;;  %v11459_v20 = vld [vmem:[%s11042_s27] sm:$0xff]  ;;  %5869 = vmatpush.msra.mxu3 %v5575_v15 }
 0x441   : > { %v2226_v1 = vrot.slane %v2225_v39, 4  ;;  %8110 = vmatmul.msk.f32.vlgmr.msrb.gmra.mxu2 %vm667_vm0, %v11459_v20  ;;  %8135 = vmatmul.msk.f32.gmra.mxu3 %vm667_vm0, %v11479_v19 }
 0x442   : > { %v8763_v0 = vpop.eup %8762  ;;  %v2706_v34 = vsub.f32 %v11373_v16, %v2224_v41  ;;  %v3254_v16 = vrot.slane %v3253_v3, 2  ;;  %v3235_v41 = vrot.slane %v3234_v26, 1 }
 0x443   : > { %4416 = vperm.xlu1 %8249, %v3910_v5   ;;  %v2844_v5 = vmul.f32 1.442695, %v2703_v32  ;;  %v2227_v52 = vmax.f32 %v2225_v39, %v2226_v1  ;;  %v8832_v32 = vld [vmem:[%s9158_s26 + $0x80] sm:$0xff]  ;;  %v8765_v11 = vpop.eup %8764  ;;  %v4657_v39 = vsel %vm667_vm0, %v4451_v24, 0.0  ;;  %v3218_v1 = vadd.f32 %v3217_v27, %v3216_v7  ;;  %v8834_v27 = vld [vmem:[%s9158_s26 + $0x98] sm:$0xff] }
 0x444   : > { %v4450_v59 = vmul.f32 %v8832_v32, %v13974_v30  ;;  %v3840_v35 = vmul.f32 %v8763_v0, %v11334_v60  ;;  %v2850_v6 = vmul.f32 1.442695, %v2706_v34  ;;  %v4658_v24 = vrot.slane %v4657_v39, 4  ;;  %v8835_v0 = vld [vmem:[%s9158_s26 + $0xa0] sm:$0xff]  ;;  %v13975_v30 = vld [vmem:[#allocation11_spill] sm:$0xff] }
 0x445   : > { %4051 = vperm.xlu2 %8248, %v3837_v25   ;;  %v2228_v46 = vrot.slane %v2227_v52, 2  ;;  %8766 = vpow2.f32 %v2844_v5  ;;  %v11475_v25 = vadd.f32 %v11417_v17, %v571_v37  ;;  %v8833_v5 = vld [vmem:[%s9158_s26 + $0x90] sm:$0xff]  ;;  %v4022_v17 = vpop.permute.xlu2 %4021  ;;  %v3838_v60 = vmul.f32 %v8765_v11, %v11348_v43 }
 0x446   : > { %8256 = vset.pattern.permute.xlu0 %v13812_v10  ;;  %8768 = vrcp.f32 %v3215_v55  ;;  %v4452_v63 = vmul.f32 %v8833_v5, %v11340_v29  ;;  %v3255_v7 = vadd.f32 %v3254_v16, %v3253_v3  ;;  %v4453_v29 = vmul.f32 %v8834_v27, %v11342_v18 }
 0x447   : > { %v2229_v61 = vmax.f32 %v2227_v52, %v2228_v46  ;;  %6600 = vperm.xlu0 %8256, %v11420_v47   ;;  %8770 = vrcp.f32 %v3201_v45  ;;  %v4650_v52 = vsel %vm667_vm0, %v4450_v59, 0.0  ;;  %v2232_v37 = vsel %vm1937_vm1, %v11475_v25, -inf  ;;  %v8836_v46 = vld [vmem:[%s9158_s26 + $0xa8] sm:$0xff] }
 0x448   : > { %v4454_v34 = vmul.f32 %v8835_v0, %v11395_v13  ;;  %v4455_v45 = vmul.f32 %v8836_v46, %v4022_v17  ;;  %v3236_v32 = vadd.f32 %v3235_v41, %v3234_v26  ;;  %v3219_v43 = vrot.slane %v3218_v1, 2  ;;  %v4032_v13 = vpop.permute.xlu0 %4031  ;;  %v8837_v17 = vld [vmem:[%s9158_s26 + $0xb8] sm:$0xff]  ;;  %v8838_v0 = vld [vmem:[%s9158_s26 + $0xb0] sm:$0xff] }
 0x449   : > { %8111 = vmatmul.msk.f32.gmra.mxu2 %vm667_vm0, %v13975_v30  ;;  %v4664_v18 = vsel %vm667_vm0, %v4452_v63, 0.0  ;;  %8772 = vpow2.f32 %v2850_v6  ;;  %v11503_v15 = vadd.f32 %v4658_v24, %v4657_v39  ;;  %v4651_v11 = vrot.slane %v4650_v52, 4  ;;  %8162 = vmatmul.msk.f32.vlgmr.msra.gmra.mxu3 %vm667_vm0, %v11459_v20 }
 0x44a   : > { %v11442_v33 = vpop.permute.xlu1 %4341  ;;  %v2233_v16 = vrot.slane %v2232_v37, 4  ;;  %v4671_v41 = vsel %vm667_vm0, %v4453_v29, 0.0  ;;  %v4665_v39 = vrot.slane %v4664_v18, 4  ;;  %v4685_v63 = vsel %vm667_vm0, %v4455_v45, 0.0 }
 0x44b   : > { %4431 = vperm.xlu1 %8249, %v3913_v44   ;;  %v2230_v44 = vrot.slane %v2229_v61, 1  ;;  %v11494_v55 = vpop.eup %8766  ;;  %8774 = vrcp.f32 %v3236_v32  ;;  %v3220_v6 = vadd.f32 %v3219_v43, %v3218_v1  ;;  %v4457_v24 = vmul.f32 %v8837_v17, %v4032_v13 }
 0x44c   : > { %v8769_v59 = vpop.eup %8768  ;;  %v3237_v26 = vsel %vm1937_vm1, %v11494_v55, 0.0  ;;  %v4672_v29 = vrot.slane %v4671_v41, 4  ;;  %v4652_v30 = vadd.f32 %v4651_v11, %v4650_v52  ;;  %v4686_v43 = vrot.slane %v4685_v63, 4 }
 0x44d   : > { %v2231_v50 = vmax.f32 %v2229_v61, %v2230_v44  ;;  %4066 = vperm.xlu2 %8248, %v3840_v35   ;;  %v8771_v61 = vpop.eup %8770  ;;  %v3256_v35 = vrot.slane %v3255_v7, 1  ;;  %v13808_v44 = vmov 7   ;;  %v3238_v32 = vrot.slane %v3237_v26, 4 }
 0x44e   : > { %v3841_v46 = vmul.f32 %v8771_v61, %v11371_v2  ;;  %v4660_v20 = vrot.slane %v11503_v15, 2  ;;  %v3221_v61 = vrot.slane %v3220_v6, 1  ;;  %v4673_v52 = vadd.f32 %v4672_v29, %v4671_v41 }
 0x44f   : > { %v2707_v3 = vsub.f32 %v11429_v54, %v2231_v50  ;;  %8257 = vset.pattern.permute.xlu0 %v13808_v44  ;;  %v4678_v54 = vsel %vm667_vm0, %v4454_v34, 0.0  ;;  %v2234_v50 = vmax.f32 %v2232_v37, %v2233_v16  ;;  %v11518_v45 = vpop.eup %8772  ;;  %v13976_v37 = vld [vmem:[#allocation23_spill] sm:$0xff]  ;;  %v4699_v16 = vsel %vm667_vm0, %v4457_v24, 0.0 }
 0x450   : > { %6730 = vperm.xlu0 %8257, %v11420_v47   ;;  %v4679_v1 = vrot.slane %v4678_v54, 4  ;;  %v4687_v17 = vadd.f32 %v4686_v43, %v4685_v63  ;;  %v3222_v53 = vadd.f32 %v3221_v61, %v3220_v6 }
 0x451   : > { %v2852_v5 = vmul.f32 1.442695, %v2707_v3  ;;  %v4666_v3 = vadd.f32 %v4665_v39, %v4664_v18  ;;  %8112 = vmatmul.msk.f32.gmra.mxu2 %vm667_vm0, %v13976_v37  ;;  %v8775_v13 = vpop.eup %8774  ;;  %v2235_v11 = vrot.slane %v2234_v50, 2  ;;  %v4653_v39 = vrot.slane %v4652_v30, 2 }
 0x452   : > { %v11484_v36 = vpop.permute.xlu1 %4371  ;;  %v4688_v44 = vrot.slane %v4687_v17, 2 }
 0x453   : > { %4056 = vperm.xlu1 %8249, %v3838_v60   ;;  %8776 = vpow2.f32 %v2852_v5  ;;  %v3843_v60 = vmul.f32 %v8769_v59, %v11362_v8  ;;  %v3257_v59 = vadd.f32 %v3256_v35, %v3255_v7  ;;  %v3258_v5 = vsel %vm1937_vm1, %v11518_v45, 0.0 }
 0x454   : > { %v3239_v7 = vadd.f32 %v3238_v32, %v3237_v26  ;;  %v4680_v35 = vadd.f32 %v4679_v1, %v4678_v54  ;;  %v3259_v41 = vrot.slane %v3258_v5, 4  ;;  %v4661_v26 = vadd.f32 %v4660_v20, %v11503_v15  ;;  %v8839_v32 = vld [vmem:[%s11042_s27 + $0x8] sm:$0xff] }
 0x455   : > { %4081 = vperm.xlu2 %8248, %v3843_v60   ;;  %v4667_v60 = vrot.slane %v4666_v3, 2  ;;  %8778 = vrcp.f32 %v3257_v59  ;;  %v4674_v54 = vrot.slane %v4673_v52, 2  ;;  %v2236_v63 = vmax.f32 %v2234_v50, %v2235_v11  ;;  %8163 = vmatmul.msk.f32.gmra.mxu3 %vm667_vm0, %v8839_v32 }
 0x456   : > { %v4654_v1 = vadd.f32 %v4653_v39, %v4652_v30  ;;  %v4681_v43 = vrot.slane %v4680_v35, 2  ;;  %v3240_v59 = vrot.slane %v3239_v7, 2  ;;  %8780 = vrcp.f32 %v3222_v53  ;;  %v574_v53 = vld [vmem:[%s9553_s21 + $0x168] sm:$0xff] }
 0x457   : > { %v4675_v50 = vadd.f32 %v4674_v54, %v4673_v52  ;;  %v4662_v30 = vrot.slane %v4661_v26, 1  ;;  %v4689_v39 = vadd.f32 %v4688_v44, %v4687_v17 }
 0x458   : > { %v4682_v11 = vadd.f32 %v4681_v43, %v4680_v35 }
 0x459   : > { %v11527_v18 = vpop.eup %8776  ;;  %8113 = vmatmul.msk.f32.gmra.mxu2 %vm667_vm0, %v13977_v12  ;;  %v4663_v35 = vadd.f32 %v4662_v30, %v4661_v26  ;;  %v4690_v17 = vrot.slane %v4689_v39, 1 }
 0x45a   : > { %v4027_v27 = vpop.permute.xlu1 %4026  ;;  %v3265_v24 = vsel %vm1937_vm1, %v11527_v18, 0.0 }
 0x45b   : > { %v4456_v34 = vmul.f32 %v8838_v0, %v4027_v27  ;;  %4071 = vperm.xlu1 %8249, %v3841_v46   ;;  %v4700_v27 = vrot.slane %v4699_v16, 4  ;;  %v13810_v0 = vmov 8   ;;  %v3266_v29 = vrot.slane %v3265_v24, 4  ;;  %v8779_v20 = vpop.eup %8778 }
 0x45c   : > { %8258 = vset.pattern.permute.xlu0 %v13810_v0  ;;  %v4668_v0 = vadd.f32 %v4667_v60, %v4666_v3  ;;  %v13978_v60 = vmov 0  }
 0x45d   : > { %v4692_v8 = vsel %vm667_vm0, %v4456_v34, 0.0  ;;  %6860 = vperm.xlu0 %8258, %v11420_v47   ;;  %v3846_v34 = vmul.f32 %v8775_v13, %v11393_v23  ;;  %v3267_v37 = vadd.f32 %v3266_v29, %v3265_v24  ;;  %v4701_v10 = vadd.f32 %v4700_v27, %v4699_v16  ;;  %v8781_v29 = vpop.eup %8780 }
 0x45e   : > { %v4693_v2 = vrot.slane %v4692_v8, 4  ;;  %v3260_v23 = vadd.f32 %v3259_v41, %v3258_v5  ;;  %v4655_v13 = vrot.slane %v4654_v1, 1  ;;  %v3241_v24 = vadd.f32 %v3240_v59, %v3239_v7  ;;  %v8840_v41 = vld [vmem:[%s11042_s27 + $0x10] sm:$0xff] }
 0x45f   : > { %4096 = vperm.xlu2 %8248, %v3846_v34   ;;  %v4669_v3 = vrot.slane %v4668_v0, 1  ;;  %v4702_v16 = vrot.slane %v4701_v10, 2  ;;  %v3849_v5 = vmul.f32 %v8779_v20, %v11412_v22  ;;  %v4676_v27 = vrot.slane %v4675_v50, 1  ;;  %8164 = vmatmul.msk.f32.gmra.mxu3 %vm667_vm0, %v8840_v41  ;;  %v1658_v43 = vpop.xlane.xlu0 %1657 }
 0x460   : > { %v4694_v46 = vadd.f32 %v4693_v2, %v4692_v8  ;;  %v3268_v8 = vrot.slane %v3267_v37, 2  ;;  %v2237_v2 = vrot.slane %v2236_v63, 1  ;;  %v3261_v61 = vrot.slane %v3260_v23, 2 }
 0x461   : > { %v4656_v44 = vadd.f32 %v4655_v13, %v4654_v1  ;;  %v4683_v7 = vrot.slane %v4682_v11, 1  ;;  %v3242_v34 = vrot.slane %v3241_v24, 1  ;;  %v4670_v54 = vadd.f32 %v4669_v3, %v4668_v0  ;;  %8114 = vmatmul.msk.f32.gmra.mxu2 %vm667_vm0, %v11249_v21 }
 0x462   : > { %v4695_v15 = vrot.slane %v4694_v46, 2  ;;  %v3269_v6 = vadd.f32 %v3268_v8, %v3267_v37  ;;  %v2238_v52 = vmax.f32 %v2236_v63, %v2237_v2  ;;  %v4703_v32 = vadd.f32 %v4702_v16, %v4701_v10  ;;  %v8841_v16 = vld [vmem:[%s11042_s27 + $0x18] sm:$0xff] }
 0x463   : > { %v3262_v22 = vadd.f32 %v3261_v61, %v3260_v23  ;;  %v1878_v37 = vadd.f32 %v1658_v43, %v574_v53  ;;  %v3844_v59 = vmul.f32 %v8781_v29, %v11425_v48  ;;  %v4677_v8 = vadd.f32 %v4676_v27, %v4675_v50  ;;  %v8842_v29 = vld [vmem:[%s11042_s27 + $0x20] sm:$0xff] }
 0x464   : > { %v4696_v12 = vadd.f32 %v4695_v15, %v4694_v46  ;;  %v3270_v46 = vrot.slane %v3269_v6, 1  ;;  %v2708_v26 = vsub.f32 %v11475_v25, %v2238_v52  ;;  %v5399_v1 = vsel %vm5378_vm2, %v4663_v35, %v4656_v44 }
 0x465   : > { %8259 = vset.pattern.permute.xlu0 %v13978_v60  ;;  %v4684_v15 = vadd.f32 %v4683_v7, %v4682_v11  ;;  %v4691_v20 = vadd.f32 %v4690_v17, %v4689_v39  ;;  %v2253_v10 = vsel %vm1937_vm1, %v1878_v37, -inf  ;;  %4086 = vperm.xlu1 %8249, %v3844_v59   ;;  %v3243_v30 = vadd.f32 %v3242_v34, %v3241_v24 }
 0x466   : > { %5912 = vperm.xlu0 %8259, %v11420_v47   ;;  %v4697_v63 = vrot.slane %v4696_v12, 1  ;;  %v2254_v0 = vrot.slane %v2253_v10, 4  ;;  %v3271_v2 = vadd.f32 %v3270_v46, %v3269_v6  ;;  %v3263_v21 = vrot.slane %v3262_v22, 1 }
 0x467   : > { %4111 = vperm.xlu2 %8248, %v3849_v5   ;;  %v4704_v13 = vrot.slane %v4703_v32, 1  ;;  %v5400_v3 = vsel %vm5380_vm3, %v4670_v54, %v5399_v1  ;;  %v2854_v48 = vmul.f32 1.442695, %v2708_v26  ;;  %8165 = vmatmul.msk.f32.gmra.mxu3 %vm667_vm0, %v8841_v16  ;;  %v13818_v11 = vmov 1  }
 0x468   : > { %v4698_v23 = vadd.f32 %v4697_v63, %v4696_v12  ;;  %v2255_v50 = vmax.f32 %v2253_v10, %v2254_v0  ;;  %8782 = vrcp.f32 %v3271_v2  ;;  %v5401_v25 = vsel %vm5382_vm4, %v4677_v8, %v5400_v3  ;;  %v11582_v8 = vpop.permute.xlu2 %4396  ;;  %v572_v3 = vld [vmem:[%s9553_s21 + $0x158] sm:$0xff] }
 0x469   : > { %8784 = vrcp.f32 %v3243_v30  ;;  %v5402_v39 = vsel %vm5384_vm5, %v4684_v15, %v5401_v25  ;;  %v4705_v6 = vadd.f32 %v4704_v13, %v4703_v32  ;;  %8115 = vmatmul.msk.f32.gmra.mxu2 %vm667_vm0, %v11282_v42  ;;  %v3264_v5 = vadd.f32 %v3263_v21, %v3262_v22  ;;  %13979 = vst [vmem:[#allocation37_spill] sm:$0xff] %v11582_v8 }
 0x46a   : > { %v2256_v24 = vrot.slane %v2255_v50, 2  ;;  %v5403_v61 = vsel %vm5386_vm6, %v4691_v20, %v5402_v39  ;;  %8786 = vpow2.f32 %v2854_v48  ;;  %v13822_v32 = vmov 2   ;;  %v573_v20 = vld [vmem:[%s9553_s21 + $0x160] sm:$0xff]  ;;  %s9024_s21 = smov 96  }
 0x46b   : > { %v5404_v12 = vsel %vm5388_vm7, %v4698_v23, %v5403_v61  ;;  %8788 = vrcp.f32 %v3264_v5  ;;  %v13820_v63 = vmov 3  }
 0x46c   : > { %v2257_v27 = vmax.f32 %v2255_v50, %v2256_v24  ;;  %v5405_v52 = vsel %vm5390_vm8, %v4705_v6, %v5404_v12  ;;  %v13816_v50 = vmov 4  }
 0x46d   : > { %8099 = vmatmul.msk.f32.gmra.mxu1 %vm667_vm0, %v5405_v52 }
 0x46e   : > { %v8783_v53 = vpop.eup %8782  ;;  %v2258_v41 = vrot.slane %v2257_v27, 1 }
 0x46f   : > { %8251 = vset.pattern.permute.xlu2 %v13818_v11  ;;  %v8785_v35 = vpop.eup %8784  ;;  %v3851_v44 = vmul.f32 %v8783_v53, %v11527_v18  ;;  %8166 = vmatmul.msk.f32.gmra.mxu3 %vm667_vm0, %v8842_v29 }
 0x470   : > { %6002 = vperm.xlu2 %8251, %v11420_v47   ;;  %v2259_v7 = vmax.f32 %v2257_v27, %v2258_v41  ;;  %v3847_v17 = vmul.f32 %v8785_v35, %v11494_v55  ;;  %v11568_v34 = vpop.eup %8786 }
 0x471   : > { %4121 = vperm.xlu0 %8259, %v3851_v44   ;;  %8116 = vmatmul.msk.f32.gmra.mxu2 %vm667_vm0, %v11306_v49  ;;  %v8789_v46 = vpop.eup %8788  ;;  %v3272_v55 = vsel %vm1937_vm1, %v11568_v34, 0.0 }
 0x472   : > { %v2711_v54 = vsub.f32 %v1878_v37, %v2259_v7  ;;  %4101 = vperm.xlu1 %8249, %v3847_v17   ;;  %v3273_v43 = vrot.slane %v3272_v55, 4  ;;  %v3850_v22 = vmul.f32 %v8789_v46, %v11518_v45 }
 0x474   : > { %v2860_v18 = vmul.f32 1.442695, %v2711_v54  ;;  %v3274_v59 = vadd.f32 %v3273_v43, %v3272_v55 }
 0x476   : > { %8790 = vpow2.f32 %v2860_v18  ;;  %v3275_v1 = vrot.slane %v3274_v59, 2  ;;  %v11611_v18 = vpop.permute.xlu0 %4406 }
 0x477   : > { %8167 = vmatmul.msk.f32.gmra.mxu3 %vm667_vm0, %v11282_v42  ;;  %13982 = vst [vmem:[#allocation16_spill] sm:$0xff] %v11611_v18 }
 0x478   : > { %8252 = vset.pattern.permute.xlu2 %v13822_v32  ;;  %v3276_v10 = vadd.f32 %v3275_v1, %v3274_v59 }
 0x479   : > { %6132 = vperm.xlu2 %8252, %v11420_v47   ;;  %8117 = vmatmul.msk.f32.gmra.mxu2 %vm667_vm0, %v11331_v31 }
 0x47a   : > { %4116 = vperm.xlu1 %8249, %v3850_v22   ;;  %v3277_v23 = vrot.slane %v3276_v10, 1 }
 0x47c   : > { %v8791_v37 = vpop.eup %8790  ;;  %v3278_v12 = vadd.f32 %v3277_v23, %v3276_v10 }
 0x47d   : > { %v3293_v45 = vsel %vm1937_vm1, %v8791_v37, 0.0 }
 0x47e   : > { %v3294_v26 = vrot.slane %v3293_v45, 4  ;;  %8792 = vrcp.f32 %v3278_v12 }
 0x47f   : > { %8168 = vmatmul.msk.f32.gmra.mxu3 %vm667_vm0, %v11306_v49 }
 0x480   : > { %v3295_v15 = vadd.f32 %v3294_v26, %v3293_v45 }
 0x481   : > { %8253 = vset.pattern.permute.xlu2 %v13820_v63  ;;  %8118 = vmatmul.msk.f32.gmra.mxu2 %vm667_vm0, %v11360_v14  ;;  %v8855_v63 = vld [vmem:[%s9158_s26 + $0xf8] sm:$0xff] }
 0x482   : > { %6262 = vperm.xlu2 %8253, %v11420_v47   ;;  %v3296_v42 = vrot.slane %v3295_v15, 2 }
 0x484   : > { %v3297_v30 = vadd.f32 %v3296_v42, %v3295_v15  ;;  %v8793_v7 = vpop.eup %8792  ;;  %v5522_v15 = vpop.f32.mrf.mxu1 }
 0x485   : > { %v1652_v48 = vpop.xlane.xlu1 %1651  ;;  %v3852_v46 = vmul.f32 %v8793_v7, %v11568_v34  ;;  %v4047_v42 = vpop.permute.xlu0 %4046 }
 0x486   : > { %v1655_v0 = vpop.xlane.xlu2 %1654  ;;  %v1876_v49 = vadd.f32 %v1652_v48, %v572_v3  ;;  %v3298_v25 = vrot.slane %v3297_v30, 1  ;;  %v11631_v48 = vpop.f32.mrf.mxu3 }
 0x487   : > { %v1877_v2 = vadd.f32 %v1655_v0, %v573_v20  ;;  %8169 = vmatmul.msk.f32.gmra.mxu3 %vm667_vm0, %v11331_v31  ;;  %13986 = vst [vmem:[#allocation55_spill] sm:$0xff] %v11631_v48 }
 0x488   : > { %v2239_v39 = vsel %vm1937_vm1, %v1876_v49, -inf  ;;  %v3299_v27 = vadd.f32 %v3298_v25, %v3297_v30 }
 0x489   : > { %v2246_v21 = vsel %vm1937_vm1, %v1877_v2, -inf  ;;  %8119 = vmatmul.msk.f32.gmra.mxu2 %vm667_vm0, %v11386_v9  ;;  %v2240_v6 = vrot.slane %v2239_v39, 4 }
 0x48a   : > { %v2247_v13 = vrot.slane %v2246_v21, 4  ;;  %8254 = vset.pattern.permute.xlu2 %v13816_v50  ;;  %8794 = vrcp.f32 %v3299_v27  ;;  %v13989_v27 = vmov 5  }
 0x48b   : > { %6392 = vperm.xlu2 %8254, %v11420_v47   ;;  %v2241_v31 = vmax.f32 %v2239_v39, %v2240_v6 }
 0x48c   : > { %v2248_v16 = vmax.f32 %v2246_v21, %v2247_v13 }
 0x48d   : > { %v2242_v53 = vrot.slane %v2241_v31, 2 }
 0x48e   : > { %v2249_v24 = vrot.slane %v2248_v16, 2  ;;  %v11600_v61 = vpop.permute.xlu2 %4036 }
 0x48f   : > { %8170 = vmatmul.msk.f32.gmra.mxu3 %vm667_vm0, %v11360_v14  ;;  %v2243_v35 = vmax.f32 %v2241_v31, %v2242_v53 }
 0x490   : > { %v2250_v5 = vmax.f32 %v2248_v16, %v2249_v24  ;;  %v8795_v43 = vpop.eup %8794  ;;  %v11636_v16 = vpop.permute.xlu0 %4421 }
 0x491   : > { %8120 = vmatmul.msk.f32.gmra.mxu2 %vm667_vm0, %v11408_v56  ;;  %v2244_v29 = vrot.slane %v2243_v35, 1  ;;  %v3855_v45 = vmul.f32 %v8795_v43, %v8791_v37  ;;  %13987 = vst [vmem:[#allocation56_spill] sm:$0xff] %v11636_v16 }
 0x492   : > { %v2251_v52 = vrot.slane %v2250_v5, 1 }
 0x493   : > { %8260 = vset.pattern.permute.xlu2 %v13978_v60  ;;  %v2245_v55 = vmax.f32 %v2243_v35, %v2244_v29  ;;  %v13991_v35 = vld [vmem:[#allocation18_spill] sm:$0xff] }
 0x494   : > { %v2252_v41 = vmax.f32 %v2250_v5, %v2251_v52  ;;  %4126 = vperm.xlu2 %8260, %v3852_v46   ;;  %v11641_v52 = vpop.f32.mrf.mxu3 }
 0x495   : > { %v2709_v22 = vsub.f32 %v1876_v49, %v2245_v55  ;;  %13990 = vst [vmem:[#allocation58_spill] sm:$0xff] %v11641_v52  ;;  %v13992_v55 = vld [vmem:[#allocation34_spill] sm:$0xff] }
 0x496   : > { %v2710_v17 = vsub.f32 %v1877_v2, %v2252_v41  ;;  %v11609_v54 = vpop.permute.xlu2 %4411  ;;  %v8844_v41 = vld [vmem:[%s9158_s26 + $0x210] sm:$0xff] }
 0x497   : > { %13981 = vst [vmem:[#allocation23_spill] sm:$0xff] %v11609_v54  ;;  %8171 = vmatmul.msk.f32.gmra.mxu3 %vm667_vm0, %v11386_v9  ;;  %v2856_v59 = vmul.f32 1.442695, %v2709_v22  ;;  %v5523_v9 = vadd.f32 %v11401_v38, %v5522_v15  ;;  %v4500_v7 = vmul.f32 %v8844_v41, %v13991_v35  ;;  %v8852_v41 = vld [vmem:[%s9158_s26 + $0x170] sm:$0xff] }
 0x498   : > { %v2858_v14 = vmul.f32 1.442695, %v2710_v17  ;;  %v8845_v17 = vld [vmem:[%s9158_s26 + $0xc0] sm:$0xff]  ;;  %v4062_v22 = vpop.permute.xlu0 %4061 }
 0x499   : > { %8121 = vmatmul.msk.f32.gmra.mxu2 %vm667_vm0, %v11437_v62  ;;  %v11629_v3 = vmax.f32 %v5523_v9, 0.0  ;;  %v4458_v29 = vmul.f32 %v8845_v17, %v11600_v61  ;;  %v5000_v9 = vsel %vm667_vm0, %v4500_v7, 0.0 }
 0x49a   : > { %8796 = vpow2.f32 %v2858_v14  ;;  %v8846_v14 = vld [vmem:[%s9158_s26 + $0x2b0] sm:$0xff] }
 0x49b   : > { %8798 = vpow2.f32 %v2856_v59  ;;  %13985 = vst [vmem:[#allocation54_spill] sm:$0xff] %v11629_v3  ;;  %v4520_v43 = vmul.f32 %v8846_v14, %v13992_v55  ;;  %v4706_v61 = vsel %vm667_vm0, %v4458_v29, 0.0 }
 0x49c   : > { %4141 = vperm.xlu2 %8260, %v3855_v45   ;;  %v8847_v45 = vld [vmem:[%s9158_s26 + $0xd0] sm:$0xff] }
 0x49d   : > { %v11605_v44 = vpop.permute.xlu1 %4386  ;;  %v4460_v15 = vmul.f32 %v8847_v45, %v4047_v42 }
 0x49e   : > { %13980 = vst [vmem:[#allocation11_spill] sm:$0xff] %v11605_v44  ;;  %v11620_v1 = vpop.permute.xlu2 %4426 }
 0x49f   : > { %13984 = vst [vmem:[#allocation53_spill] sm:$0xff] %v11620_v1  ;;  %8172 = vmatmul.msk.f32.gmra.mxu3 %vm667_vm0, %v11408_v56  ;;  %v8857_v1 = vld [vmem:[%s9158_s26 + $0x108] sm:$0xff] }
 0x4a0   : > { %v8797_v34 = vpop.eup %8796 }
 0x4a1   : > { %v3286_v20 = vsel %vm1937_vm1, %v8797_v34, 0.0  ;;  %v8799_v37 = vpop.eup %8798  ;;  %8122 = vmatmul.msk.f32.gmra.mxu2 %vm667_vm0, %v11479_v19 }
 0x4a2   : > { %v3287_v10 = vrot.slane %v3286_v20, 4  ;;  %v3279_v2 = vsel %vm1937_vm1, %v8799_v37, 0.0 }
 0x4a3   : > { %v3280_v23 = vrot.slane %v3279_v2, 4 }
 0x4a4   : > { %v3288_v0 = vadd.f32 %v3287_v10, %v3286_v20  ;;  %5917 = vperm.xlu2 %8260, %v11629_v3  }
 0x4a5   : > { %v11616_v26 = vpop.permute.xlu1 %4401  ;;  %v3281_v25 = vadd.f32 %v3280_v23, %v3279_v2  ;;  %v5140_v2 = vsel %vm667_vm0, %v4520_v43, 0.0  ;;  %v5001_v23 = vrot.slane %v5000_v9, 4 }
 0x4a6   : > { %13983 = vst [vmem:[#allocation52_spill] sm:$0xff] %v11616_v26  ;;  %v3289_v21 = vrot.slane %v3288_v0, 2  ;;  %v4052_v13 = vpop.permute.xlu2 %4051 }
 0x4a7   : > { %v3282_v56 = vrot.slane %v3281_v25, 2  ;;  %8173 = vmatmul.msk.f32.gmra.mxu3 %vm667_vm0, %v11437_v62  ;;  %v8843_v62 = vld [vmem:[%s9158_s26 + $0xc8] sm:$0xff] }
 0x4a8   : > { %v3290_v49 = vadd.f32 %v3289_v21, %v3288_v0 }
 0x4a9   : > { %v3283_v39 = vadd.f32 %v3282_v56, %v3281_v25  ;;  %v8849_v25 = vld [vmem:[%s9158_s26 + $0xe8] sm:$0xff]  ;;  %v4707_v56 = vrot.slane %v4706_v61, 4 }
 0x4aa   : > { %v3291_v38 = vrot.slane %v3290_v49, 1 }
 0x4ab   : > { %v3284_v12 = vrot.slane %v3283_v39, 1  ;;  %v4708_v55 = vadd.f32 %v4707_v56, %v4706_v61 }
 0x4ac   : > { %v3292_v24 = vadd.f32 %v3291_v38, %v3290_v49  ;;  %8265 = vset.pattern.permute.xlu2 %v13989_v27  ;;  %v4720_v49 = vsel %vm667_vm0, %v4460_v15, 0.0  ;;  %v4463_v38 = vmul.f32 %v8849_v25, %v4062_v22  ;;  %v8853_v15 = vld [vmem:[%s9158_s26 + $0xe0] sm:$0xff] }
 0x4ad   : > { %v4042_v30 = vpop.permute.xlu1 %4041  ;;  %v3285_v31 = vadd.f32 %v3284_v12, %v3283_v39  ;;  %6474 = vperm.xlu2 %8265, %v11629_v3   ;;  %v13994_v39 = vmov 6   ;;  %v8850_v12 = vld [vmem:[%s9158_s26 + $0xf0] sm:$0xff]  ;;  %v4721_v17 = vrot.slane %v4720_v49, 4 }
 0x4ae   : > { %v4067_v5 = vpop.permute.xlu2 %4066  ;;  %8800 = vrcp.f32 %v3292_v24  ;;  %v4459_v53 = vmul.f32 %v8843_v62, %v4042_v30  ;;  %v5141_v24 = vrot.slane %v5140_v2, 4  ;;  %v8851_v62 = vld [vmem:[%s9158_s26 + $0x2b8] sm:$0xff]  ;;  %v4741_v14 = vsel %vm667_vm0, %v4463_v38, 0.0 }
 0x4af   : > { %8802 = vrcp.f32 %v3285_v31  ;;  %8174 = vmatmul.msk.f32.gmra.mxu3 %vm667_vm0, %v11479_v19  ;;  %v4464_v31 = vmul.f32 %v8850_v12, %v4067_v5  ;;  %v4742_v61 = vrot.slane %v4741_v14, 4  ;;  %v13997_v12 = vmov 7  }
 0x4b0   : > { %v4713_v20 = vsel %vm667_vm0, %v4459_v53, 0.0  ;;  %v5142_v22 = vadd.f32 %v5141_v24, %v5140_v2  ;;  %v4709_v2 = vrot.slane %v4708_v55, 2 }
 0x4b1   : > { %v4714_v42 = vrot.slane %v4713_v20, 4  ;;  %v4748_v45 = vsel %vm667_vm0, %v4464_v31, 0.0 }
 0x4b2   : > { %v5143_v56 = vrot.slane %v5142_v22, 2 }
 0x4b3   : > { %v4715_v29 = vadd.f32 %v4714_v42, %v4713_v20  ;;  %v11681_v20 = vpop.permute.xlu0 %4076 }
 0x4b4   : > { %v8801_v46 = vpop.eup %8800  ;;  %v11693_v47 = vadd.f32 %v5143_v56, %v5142_v22  ;;  %v13999_v56 = vld [vmem:[#allocation41_spill] sm:$0xff] }
 0x4b5   : > { %v11638_v6 = vpop.permute.xlu1 %4416  ;;  %v3854_v59 = vmul.f32 %v8801_v46, %v8797_v34  ;;  %v8803_v0 = vpop.eup %8802  ;;  %v8848_v34 = vld [vmem:[%s9158_s26 + $0xd8] sm:$0xff]  ;;  %8266 = vset.pattern.permute.xlu2 %v13994_v39  ;;  %v5002_v46 = vadd.f32 %v5001_v23, %v5000_v9  ;;  %v4722_v9 = vadd.f32 %v4721_v17, %v4720_v49  ;;  %v4716_v42 = vrot.slane %v4715_v29, 2 }
 0x4b6   : > { %13988 = vst [vmem:[#allocation57_spill] sm:$0xff] %v11638_v6  ;;  %v11655_v10 = vpop.permute.xlu2 %4081  ;;  %v4461_v30 = vmul.f32 %v8848_v34, %v4052_v13  ;;  %v3853_v21 = vmul.f32 %v8803_v0, %v8799_v37  ;;  %6604 = vperm.xlu2 %8266, %v11629_v3   ;;  %v13995_v13 = vld [vmem:[#allocation20_spill] sm:$0xff]  ;;  %v4749_v23 = vrot.slane %v4748_v45, 4 }
 0x4b7   : > { %4136 = vperm.xlu0 %8259, %v3854_v59   ;;  %v4521_v53 = vmul.f32 %v8851_v62, %v13995_v13  ;;  %v13996_v37 = vld [vmem:[#allocation24_spill] sm:$0xff]  ;;  %v5003_v38 = vrot.slane %v5002_v46, 2  ;;  %v4717_v17 = vadd.f32 %v4716_v42, %v4715_v29 }
 0x4b8   : > { %4131 = vperm.xlu1 %8249, %v3853_v21   ;;  %v4480_v35 = vmul.f32 %v8852_v41, %v13996_v37  ;;  %v4727_v7 = vsel %vm667_vm0, %v4461_v30, 0.0  ;;  %v8854_v13 = vld [vmem:[%s9158_s26 + $0x180] sm:$0xff]  ;;  %v4723_v37 = vrot.slane %v4722_v9, 2 }
 0x4b9   : > { %v4728_v59 = vrot.slane %v4727_v7, 4  ;;  %v5147_v34 = vsel %vm667_vm0, %v4521_v53, 0.0  ;;  %v13998_v53 = vld [vmem:[#allocation22_spill] sm:$0xff]  ;;  %v5004_v50 = vadd.f32 %v5003_v38, %v5002_v46  ;;  %v4718_v29 = vrot.slane %v4717_v17, 1 }
 0x4ba   : > { %v4860_v30 = vsel %vm667_vm0, %v4480_v35, 0.0  ;;  %v5148_v31 = vrot.slane %v5147_v34, 4  ;;  %v4482_v49 = vmul.f32 %v8854_v13, %v13998_v53  ;;  %v4743_v35 = vadd.f32 %v4742_v61, %v4741_v14 }
 0x4bb   : > { %v4729_v24 = vadd.f32 %v4728_v59, %v4727_v7  ;;  %v4861_v62 = vrot.slane %v4860_v30, 4  ;;  %v4750_v7 = vadd.f32 %v4749_v23, %v4748_v45  ;;  %v4092_v61 = vpop.permute.xlu0 %4091  ;;  %v5005_v23 = vrot.slane %v5004_v50, 1 }
 0x4bc   : > { %v5149_v13 = vadd.f32 %v5148_v31, %v5147_v34  ;;  %v4744_v14 = vrot.slane %v4743_v35, 2 }
 0x4bd   : > { %v11657_v19 = vpop.permute.xlu1 %4431  ;;  %v4862_v53 = vadd.f32 %v4861_v62, %v4860_v30  ;;  %v4751_v42 = vrot.slane %v4750_v7, 2  ;;  %v8856_v30 = vld [vmem:[%s9158_s26 + $0x178] sm:$0xff]  ;;  %v14000_v62 = vmov 8  }
 0x4be   : > { %13993 = vst [vmem:[#allocation18_spill] sm:$0xff] %v11657_v19  ;;  %v11674_v43 = vpop.permute.xlu2 %4096  ;;  %8267 = vset.pattern.permute.xlu2 %v13997_v12  ;;  %v5150_v22 = vrot.slane %v5149_v13, 2  ;;  %v4481_v31 = vmul.f32 %v8856_v30, %v13999_v56  ;;  %v4467_v19 = vmul.f32 %v8857_v1, %v11655_v10 }
 0x4bf   : > { %8270 = vset.pattern.permute.xlu0 %v13818_v11  ;;  %6734 = vperm.xlu2 %8267, %v11629_v3   ;;  %v4863_v34 = vrot.slane %v4862_v53, 2 }
 0x4c0   : > { %8261 = vset.pattern.permute.xlu1 %v13818_v11  ;;  %v4730_v11 = vrot.slane %v4729_v24, 2  ;;  %v4769_v6 = vsel %vm667_vm0, %v4467_v19, 0.0 }
 0x4c1   : > { %6006 = vperm.xlu1 %8261, %v11629_v3   ;;  %v4770_v19 = vrot.slane %v4769_v6, 4 }
 0x4c2   : > { %v4731_v38 = vadd.f32 %v4730_v11, %v4729_v24 }
 0x4c5   : > { %v4057_v5 = vpop.permute.xlu1 %4056 }
 0x4c6   : > { %v4462_v0 = vmul.f32 %v8853_v15, %v4057_v5  ;;  %v4710_v5 = vadd.f32 %v4709_v2, %v4708_v55  ;;  %v11690_v59 = vpop.permute.xlu2 %4111 }
 0x4c7   : > { %8268 = vset.pattern.permute.xlu2 %v14000_v62 }
 0x4c8   : > { %v4734_v21 = vsel %vm667_vm0, %v4462_v0, 0.0  ;;  %v4711_v45 = vrot.slane %v4710_v5, 1  ;;  %6864 = vperm.xlu2 %8268, %v11629_v3  }
 0x4c9   : > { %v4735_v25 = vrot.slane %v4734_v21, 4 }
 0x4cb   : > { %v4736_v41 = vadd.f32 %v4735_v25, %v4734_v21  ;;  %v4874_v21 = vsel %vm667_vm0, %v4482_v49, 0.0  ;;  %v4724_v25 = vadd.f32 %v4723_v37, %v4722_v9  ;;  %v11701_v9 = vpop.f32.mrf.mxu2  ;;  %v4745_v37 = vadd.f32 %v4744_v14, %v4743_v35 }
 0x4cc   : > { %14001 = vst [vmem:[#allocation34_spill] sm:$0xff] %v11701_v9  ;;  %v4875_v49 = vrot.slane %v4874_v21, 4  ;;  %v11711_v14 = vadd.f32 %v5150_v22, %v5149_v13 }
 0x4cd   : > { %v4737_v15 = vrot.slane %v4736_v41, 2  ;;  %v4072_v0 = vpop.permute.xlu1 %4071  ;;  %v4725_v24 = vrot.slane %v4724_v25, 1 }
 0x4ce   : > { %v4465_v32 = vmul.f32 %v8855_v63, %v4072_v0  ;;  %v4752_v0 = vadd.f32 %v4751_v42, %v4750_v7  ;;  %v6003_v56 = vpop.permute.xlu2 %6002  ;;  %v4732_v63 = vrot.slane %v4731_v38, 1  ;;  %14004 = vst [vmem:[#allocation24_spill] sm:$0xff] %v11711_v14  ;;  %v4746_v7 = vrot.slane %v4745_v37, 1 }
 0x4cf   : > { %v4738_v2 = vadd.f32 %v4737_v15, %v4736_v41  ;;  %v4719_v41 = vadd.f32 %v4718_v29, %v4717_v17  ;;  %v4712_v15 = vadd.f32 %v4711_v45, %v4710_v5  ;;  %v6053_v16 = vmul.f32 %v6003_v56, %v11701_v9  ;;  %v8859_v45 = vld [vmem:[%s9158_s26 + $0x100] sm:$0xff]  ;;  %v14006_v56 = vld [vmem:[#allocation27_spill] sm:$0xff] }
 0x4d0   : > { %v4755_v55 = vsel %vm667_vm0, %v4465_v32, 0.0  ;;  %v14002_v32 = vmov 2   ;;  %v11709_v17 = vadd.f32 %v5005_v23, %v5004_v50  ;;  %v4867_v29 = vsel %vm667_vm0, %v4481_v31, 0.0  ;;  %v8860_v31 = vld [vmem:[%s9158_s26 + $0x218] sm:$0xff] }
 0x4d1   : > { %v4756_v46 = vrot.slane %v4755_v55, 4  ;;  %8262 = vset.pattern.permute.xlu1 %v14002_v32  ;;  %v4739_v30 = vrot.slane %v4738_v2, 1  ;;  %v4466_v42 = vmul.f32 %v8859_v45, %v11681_v20  ;;  %v5406_v54 = vsel %vm5378_vm2, %v4719_v41, %v4712_v15  ;;  %6079 = vrot.lane.b32.xlu0 %v6053_v16, %s9024_s21  ;;  %v4107_v15 = vpop.permute.xlu0 %4106 }
 0x4d2   : > { %6136 = vperm.xlu1 %8262, %v11629_v3   ;;  %14003 = vst [vmem:[#allocation20_spill] sm:$0xff] %v11709_v17  ;;  %v11720_v50 = vadd.f32 %v4863_v34, %v4862_v53  ;;  %v4726_v10 = vadd.f32 %v4725_v24, %v4724_v25  ;;  %v4753_v13 = vrot.slane %v4752_v0, 1  ;;  %v4876_v22 = vadd.f32 %v4875_v49, %v4874_v21  ;;  %v8861_v25 = vld [vmem:[%s9158_s26 + $0x118] sm:$0xff] }
 0x4d3   : > { %v4757_v11 = vadd.f32 %v4756_v46, %v4755_v55  ;;  %v8858_v55 = vld [vmem:[%s9158_s26 + $0x220] sm:$0xff]  ;;  %v14005_v46 = vld [vmem:[#allocation42_spill] sm:$0xff]  ;;  %v4740_v23 = vadd.f32 %v4739_v30, %v4738_v2  ;;  %v4868_v20 = vrot.slane %v4867_v29, 4  ;;  %v4747_v53 = vadd.f32 %v4746_v7, %v4745_v37 }
 0x4d4   : > { %v4502_v5 = vmul.f32 %v8858_v55, %v14005_v46  ;;  %v4501_v55 = vmul.f32 %v8860_v31, %v14006_v56  ;;  %v4733_v46 = vadd.f32 %v4732_v63, %v4731_v38  ;;  %v5407_v16 = vsel %vm5380_vm3, %v4726_v10, %v5406_v54  ;;  %v8862_v10 = vld [vmem:[%s9158_s26 + $0x120] sm:$0xff] }
 0x4d5   : > { %v4758_v35 = vrot.slane %v4757_v11, 2  ;;  %v4762_v34 = vsel %vm667_vm0, %v4466_v42, 0.0  ;;  %v14007_v2 = vmov 3   ;;  %v14008_v38 = vmov 1  }
 0x4d6   : > { %v5014_v41 = vsel %vm667_vm0, %v4502_v5, 0.0  ;;  %v5408_v21 = vsel %vm5382_vm4, %v4733_v46, %v5407_v16  ;;  %8279 = vset.pattern.permute.xlu2 %v14008_v38  ;;  %v6133_v63 = vpop.permute.xlu2 %6132  ;;  %v4754_v49 = vadd.f32 %v4753_v13, %v4752_v0  ;;  %v4877_v37 = vrot.slane %v4876_v22, 2  ;;  %v8863_v46 = vld [vmem:[%s9158_s26 + $0x130] sm:$0xff] }
 0x4d7   : > { %v4759_v1 = vadd.f32 %v4758_v35, %v4757_v11  ;;  %v4469_v11 = vmul.f32 %v8861_v25, %v4092_v61  ;;  %v5409_v54 = vsel %vm5384_vm5, %v4740_v23, %v5408_v21  ;;  %v5007_v30 = vsel %vm667_vm0, %v4501_v55, 0.0  ;;  %v4087_v56 = vpop.permute.xlu1 %4086 }
 0x4d8   : > { %v6183_v61 = vmul.f32 %v6133_v63, %v11701_v9  ;;  %v5410_v35 = vsel %vm5386_vm6, %v4747_v53, %v5409_v54  ;;  %v14009_v5 = vrot.slane %v11693_v47, 1  ;;  %v4763_v42 = vrot.slane %v4762_v34, 4  ;;  %v8864_v53 = vld [vmem:[%s9158_s26 + $0x110] sm:$0xff]  ;;  %v8866_v54 = vld [vmem:[%s9158_s26 + $0x228] sm:$0xff] }
 0x4d9   : > { %v4760_v45 = vrot.slane %v4759_v1, 1  ;;  %v4470_v0 = vmul.f32 %v8862_v10, %v11674_v43  ;;  %v4869_v13 = vadd.f32 %v4868_v20, %v4867_v29  ;;  %v5015_v23 = vrot.slane %v5014_v41, 4 }
 0x4da   : > { %8263 = vset.pattern.permute.xlu1 %v14007_v2  ;;  %v11740_v7 = vadd.f32 %v14009_v5, %v11693_v47  ;;  %v4783_v31 = vsel %vm667_vm0, %v4469_v11, 0.0  ;;  %6209 = vrot.lane.b32.xlu0 %v6183_v61, %s9025_s29  ;;  %v5008_v47 = vrot.slane %v5007_v30, 4  ;;  %v4771_v16 = vadd.f32 %v4770_v19, %v4769_v6  ;;  %v8865_v11 = vld [vmem:[%s9158_s26 + $0x138] sm:$0xff]  ;;  %v14011_v61 = vld [vmem:[#allocation29_spill] sm:$0xff] }
 0x4db   : > { %6266 = vperm.xlu1 %8263, %v11629_v3   ;;  %v4761_v24 = vadd.f32 %v4760_v45, %v4759_v1  ;;  %v5411_v1 = vsel %vm5388_vm7, %v4754_v49, %v5410_v35  ;;  %v4472_v45 = vmul.f32 %v8863_v46, %v4107_v15  ;;  %v4468_v43 = vmul.f32 %v8864_v53, %v4087_v56  ;;  %v14014_v53 = vld [vmem:[#allocation32_spill] sm:$0xff] }
 0x4dc   : > { %14010 = vst [vmem:[#allocation22_spill] sm:$0xff] %v11740_v7  ;;  %v4865_v20 = vrot.slane %v11720_v50, 1  ;;  %v11753_v25 = vadd.f32 %v4877_v37, %v4876_v22  ;;  %v4473_v21 = vmul.f32 %v8865_v11, %v11690_v59  ;;  %v4764_v63 = vadd.f32 %v4763_v42, %v4762_v34  ;;  %v14012_v22 = vld [vmem:[#allocation43_spill] sm:$0xff]  ;;  %v6471_v59 = vpop.permute.xlu0 %6470 }
 0x4dd   : > { %v5412_v55 = vsel %vm5390_vm8, %v4761_v24, %v5411_v1  ;;  %v4784_v49 = vrot.slane %v4783_v31, 4  ;;  %v4790_v15 = vsel %vm667_vm0, %v4470_v0, 0.0  ;;  %v4776_v6 = vsel %vm667_vm0, %v4468_v43, 0.0  ;;  %v8867_v1 = vld [vmem:[%s9158_s26 + $0x2c8] sm:$0xff] }
 0x4de   : > { %8100 = vmatmul.msk.f32.gmra.mxu1 %vm667_vm0, %v5412_v55  ;;  %v4870_v19 = vrot.slane %v4869_v13, 2  ;;  %v5016_v24 = vadd.f32 %v5015_v23, %v5014_v41  ;;  %v4503_v35 = vmul.f32 %v8866_v54, %v14011_v61  ;;  %v4777_v5 = vrot.slane %v4776_v6, 4  ;;  %v6263_v42 = vpop.permute.xlu2 %6262  ;;  %v8869_v54 = vld [vmem:[%s9158_s26 + $0x190] sm:$0xff] }
 0x4df   : > { %v5009_v10 = vadd.f32 %v5008_v47, %v5007_v30  ;;  %v4523_v37 = vmul.f32 %v8867_v1, %v14012_v22  ;;  %v4804_v56 = vsel %vm667_vm0, %v4472_v45, 0.0  ;;  %v4772_v34 = vrot.slane %v4771_v16, 2  ;;  %v8868_v47 = vld [vmem:[%s9158_s26 + $0x2c0] sm:$0xff] }
 0x4e0   : > { %v14013_v55 = vmov 4   ;;  %v4791_v0 = vrot.slane %v4790_v15, 4  ;;  %v4811_v46 = vsel %vm667_vm0, %v4473_v21, 0.0  ;;  %v4778_v41 = vadd.f32 %v4777_v5, %v4776_v6 }
 0x4e1   : > { %v6313_v23 = vmul.f32 %v6263_v42, %v11701_v9  ;;  %v11769_v30 = vadd.f32 %v4865_v20, %v11720_v50  ;;  %v4522_v43 = vmul.f32 %v8868_v47, %v14014_v53  ;;  %v4765_v45 = vrot.slane %v4764_v63, 2  ;;  %v14015_v9 = vld [vmem:[#allocation44_spill] sm:$0xff] }
 0x4e2   : > { %v4785_v11 = vadd.f32 %v4784_v49, %v4783_v31  ;;  %v5021_v61 = vsel %vm667_vm0, %v4503_v35, 0.0  ;;  %v4805_v1 = vrot.slane %v4804_v56, 4  ;;  %v4779_v21 = vrot.slane %v4778_v41, 2 }
 0x4e3   : > { %8264 = vset.pattern.permute.xlu1 %v14013_v55  ;;  %6339 = vrot.lane.b32.xlu0 %v6313_v23, %s9026_s25  ;;  %v11776_v6 = vadd.f32 %v4870_v19, %v4869_v13  ;;  %v5017_v50 = vrot.slane %v5016_v24, 2  ;;  %v4773_v20 = vadd.f32 %v4772_v34, %v4771_v16  ;;  %v4812_v5 = vrot.slane %v4811_v46, 4  ;;  %v8870_v23 = vld [vmem:[%s9158_s26 + $0x188] sm:$0xff]  ;;  %v14016_v13 = vld [vmem:[#allocation35_spill] sm:$0xff] }
 0x4e4   : > { %6396 = vperm.xlu1 %8264, %v11629_v3   ;;  %v5010_v22 = vrot.slane %v5009_v10, 2  ;;  %v5161_v42 = vsel %vm667_vm0, %v4523_v37, 0.0  ;;  %v4792_v31 = vadd.f32 %v4791_v0, %v4790_v15  ;;  %v4780_v49 = vadd.f32 %v4779_v21, %v4778_v41  ;;  %v4102_v41 = vpop.permute.xlu1 %4101 }
 0x4e5   : > { %v5022_v47 = vrot.slane %v5021_v61, 4  ;;  %v5154_v35 = vsel %vm667_vm0, %v4522_v43, 0.0  ;;  %v4766_v53 = vadd.f32 %v4765_v45, %v4764_v63  ;;  %v4786_v29 = vrot.slane %v4785_v11, 2  ;;  %v8871_v45 = vld [vmem:[%s9158_s26 + $0x128] sm:$0xff] }
 0x4e6   : > { %v4484_v3 = vmul.f32 %v8869_v54, %v14015_v9  ;;  %v4483_v19 = vmul.f32 %v8870_v23, %v14016_v13  ;;  %v4806_v7 = vadd.f32 %v4805_v1, %v4804_v56  ;;  %v6521_v16 = vmul.f32 %v6471_v59, %v11631_v48  ;;  %v11797_v23 = vpop.permute.xlu2 %6392  ;;  %v8872_v13 = vld [vmem:[%s9158_s26 + $0x2d0] sm:$0xff] }
 0x4e7   : > { %v11785_v34 = vadd.f32 %v5017_v50, %v5016_v24  ;;  %v5162_v37 = vrot.slane %v5161_v42, 4  ;;  %v4774_v15 = vrot.slane %v4773_v20, 1  ;;  %v4813_v0 = vadd.f32 %v4812_v5, %v4811_v46  ;;  %v6601_v24 = vpop.permute.xlu0 %6600  ;;  %14017 = vst [vmem:[#allocation41_spill] sm:$0xff] %v11797_v23 }
 0x4e8   : > { %v5155_v21 = vrot.slane %v5154_v35, 4  ;;  %v4793_v43 = vrot.slane %v4792_v31, 2  ;;  %v4781_v63 = vrot.slane %v4780_v49, 1  ;;  %v4471_v14 = vmul.f32 %v8871_v45, %v4102_v41 }
 0x4e9   : > { %v11789_v9 = vadd.f32 %v5010_v22, %v5009_v10  ;;  %v11791_v54 = vadd.f32 %v5022_v47, %v5021_v61  ;;  %v4767_v56 = vrot.slane %v4766_v53, 1  ;;  %v4787_v59 = vadd.f32 %v4786_v29, %v4785_v11 }
 0x4ea   : > { %v4888_v46 = vsel %vm667_vm0, %v4484_v3, 0.0  ;;  %v4881_v1 = vsel %vm667_vm0, %v4483_v19, 0.0  ;;  %v4807_v50 = vrot.slane %v4806_v7, 2  ;;  %v4797_v5 = vsel %vm667_vm0, %v4471_v14, 0.0  ;;  %v5525_v8 = vpop.f32.mrf.mxu1 }
 0x4eb   : > { %v4775_v22 = vadd.f32 %v4774_v15, %v4773_v20  ;;  %v4814_v61 = vrot.slane %v4813_v0, 2  ;;  %v4798_v47 = vrot.slane %v4797_v5, 4  ;;  %v5163_v41 = vadd.f32 %v5162_v37, %v5161_v42  ;;  %v11805_v20 = vld [vmem:[%s13800_s8] ss:$0 sm:$0xff]  ;;  %v8874_v37 = vld [vmem:[%s9158_s26 + $0x198] sm:$0xff] }
 0x4ec   : > { %6547 = vrot.lane.b32.xlu1 %v6521_v16, %s9024_s21  ;;  %v14018_v16 = vld [vmem:[#allocation33_spill] sm:$0xff]  ;;  %v5156_v29 = vadd.f32 %v5155_v21, %v5154_v35  ;;  %v4794_v11 = vadd.f32 %v4793_v43, %v4792_v31  ;;  %v4782_v45 = vadd.f32 %v4781_v63, %v4780_v49  ;;  %v4889_v18 = vrot.slane %v4888_v46, 4  ;;  %14019 = vst [vmem:[#allocation42_spill] sm:$0xff] %v11805_v20  ;;  %v14020_v15 = vld [vmem:[#allocation36_spill] sm:$0xff] }
 0x4ed   : > { %8269 = vset.pattern.permute.xlu1 %v13978_v60  ;;  %v4524_v10 = vmul.f32 %v8872_v13, %v14018_v16  ;;  %v4768_v3 = vadd.f32 %v4767_v56, %v4766_v53  ;;  %v4788_v44 = vrot.slane %v4787_v59, 1  ;;  %v4799_v19 = vadd.f32 %v4798_v47, %v4797_v5  ;;  %v8875_v56 = vld [vmem:[%s9158_s26 + $0x1a8] sm:$0xff]  ;;  %v14023_v5 = vld [vmem:[#allocation39_spill] sm:$0xff] }
 0x4ee   : > { %v4882_v14 = vrot.slane %v4881_v1, 4  ;;  %v4808_v26 = vadd.f32 %v4807_v50, %v4806_v7  ;;  %v6651_v23 = vmul.f32 %v6601_v24, %v11631_v48  ;;  %v5526_v42 = vadd.f32 %v11805_v20, %v5525_v8  ;;  %v14022_v24 = vld [vmem:[#allocation17_spill] sm:$0xff]  ;;  %v8876_v8 = vld [vmem:[%s9158_s26 + $0x230] sm:$0xff] }
 0x4ef   : > { %v5168_v31 = vsel %vm667_vm0, %v4524_v10, 0.0  ;;  %v5413_v49 = vsel %vm5378_vm2, %v4775_v22, %v4768_v3  ;;  %v4815_v35 = vadd.f32 %v4814_v61, %v4813_v0  ;;  %v4800_v53 = vrot.slane %v4799_v19, 2  ;;  %v6731_v3 = vpop.permute.xlu0 %6730 }
 0x4f0   : > { %v4485_v21 = vmul.f32 %v8874_v37, %v14020_v15  ;;  %v4795_v7 = vrot.slane %v4794_v11, 1  ;;  %v5414_v43 = vsel %vm5380_vm3, %v4782_v45, %v5413_v49  ;;  %v11813_v63 = vmax.f32 %v5526_v42, 0.0  ;;  %v8877_v15 = vld [vmem:[%s9158_s26 + $0x238] sm:$0xff] }
 0x4f1   : > { %v4487_v50 = vmul.f32 %v8875_v56, %v14022_v24  ;;  %v4504_v13 = vmul.f32 %v8876_v8, %v14023_v5  ;;  %v4789_v16 = vadd.f32 %v4788_v44, %v4787_v59  ;;  %v4801_v0 = vadd.f32 %v4800_v53, %v4799_v19  ;;  %v14024_v56 = vld [vmem:[#allocation14_spill] sm:$0xff]  ;;  %v11826_v19 = vpop.permute.xlu2 %4126 }
 0x4f2   : > { %14021 = vst [vmem:[#allocation27_spill] sm:$0xff] %v11813_v63  ;;  %v5024_v10 = vrot.slane %v11791_v54, 2  ;;  %v5164_v22 = vrot.slane %v5163_v41, 2  ;;  %v5169_v61 = vrot.slane %v5168_v31, 4  ;;  %v4809_v47 = vrot.slane %v4808_v26, 1  ;;  %6010 = vperm.xlu0 %8270, %v11813_v63  }
 0x4f3   : > { %v5157_v45 = vrot.slane %v5156_v29, 2  ;;  %v4816_v42 = vrot.slane %v4815_v35, 1  ;;  %v5415_v49 = vsel %vm5382_vm4, %v4789_v16, %v5414_v43  ;;  %v4890_v37 = vadd.f32 %v4889_v18, %v4888_v46 }
 0x4f4   : > { %6677 = vrot.lane.b32.xlu1 %v6651_v23, %s9025_s29  ;;  %v4802_v23 = vrot.slane %v4801_v0, 1  ;;  %v4505_v24 = vmul.f32 %v8877_v15, %v14024_v56  ;;  %v4895_v44 = vsel %vm667_vm0, %v4485_v21, 0.0  ;;  %v4796_v59 = vadd.f32 %v4795_v7, %v4794_v11  ;;  %v14027_v56 = vld [vmem:[#allocation19_spill] sm:$0xff] }
 0x4f5   : > { %v4883_v53 = vadd.f32 %v4882_v14, %v4881_v1  ;;  %v4909_v8 = vsel %vm667_vm0, %v4487_v50, 0.0  ;;  %v5028_v5 = vsel %vm667_vm0, %v4504_v13, 0.0  ;;  %v5170_v57 = vadd.f32 %v5169_v61, %v5168_v31  ;;  %v14025_v13 = vld [vmem:[#allocation30_spill] sm:$0xff] }
 0x4f6   : > { %v4803_v20 = vadd.f32 %v4802_v23, %v4801_v0  ;;  %v4810_v17 = vadd.f32 %v4809_v47, %v4808_v26  ;;  %v6781_v43 = vmul.f32 %v6731_v3, %v11631_v48  ;;  %v5416_v18 = vsel %vm5384_vm5, %v4796_v59, %v5415_v49  ;;  %v8878_v26 = vld [vmem:[%s9158_s26 + $0x250] sm:$0xff]  ;;  %v8879_v49 = vld [vmem:[%s9158_s26 + $0x240] sm:$0xff] }
 0x4f7   : > { %v5165_v46 = vadd.f32 %v5164_v22, %v5163_v41  ;;  %v4896_v16 = vrot.slane %v4895_v44, 4  ;;  %v4817_v15 = vadd.f32 %v4816_v42, %v4815_v35  ;;  %v5035_v21 = vsel %vm667_vm0, %v4505_v24, 0.0  ;;  %v14034_v48 = vld [vmem:[#allocation25_spill] sm:$0xff] }
 0x4f8   : > { %v5417_v11 = vsel %vm5386_vm6, %v4803_v20, %v5416_v18  ;;  %v4910_v1 = vrot.slane %v4909_v8, 4  ;;  %v5029_v14 = vrot.slane %v5028_v5, 4  ;;  %v5158_v50 = vadd.f32 %v5157_v45, %v5156_v29 }
 0x4f9   : > { %v5418_v7 = vsel %vm5388_vm7, %v4810_v17, %v5417_v11  ;;  %v4891_v31 = vrot.slane %v4890_v37, 2  ;;  %v4508_v0 = vmul.f32 %v8878_v26, %v14025_v13  ;;  %v14026_v35 = vrot.slane %v11753_v25, 1  ;;  %v11853_v59 = vpop.permute.xlu2 %4141  ;;  %v8880_v26 = vld [vmem:[%s9158_s26 + $0x1a0] sm:$0xff]  ;;  %v8884_v17 = vld [vmem:[%s9158_s26 + $0x268] sm:$0xff] }
 0x4fa   : > { %v5419_v41 = vsel %vm5390_vm8, %v4817_v15, %v5418_v7  ;;  %v5019_v22 = vrot.slane %v11785_v34, 1  ;;  %v5171_v61 = vrot.slane %v5170_v57, 2  ;;  %v4884_v47 = vrot.slane %v4883_v53, 2  ;;  %8271 = vset.pattern.permute.xlu0 %v14002_v32  ;;  %v14029_v13 = vld [vmem:[#allocation9_spill] sm:$0xff]  ;;  %v4117_v32 = vpop.permute.xlu1 %4116 }
 0x4fb   : > { %v11842_v20 = vadd.f32 %v14026_v35, %v11753_v25  ;;  %8101 = vmatmul.msk.f32.gmra.mxu1 %vm667_vm0, %v5419_v41  ;;  %v5012_v29 = vrot.slane %v11789_v9, 1  ;;  %v5036_v45 = vrot.slane %v5035_v21, 4  ;;  %v4897_v3 = vadd.f32 %v4896_v16, %v4895_v44  ;;  %6140 = vperm.xlu0 %8271, %v11813_v63  }
 0x4fc   : > { %6807 = vrot.lane.b32.xlu1 %v6781_v43, %s9026_s25  ;;  %v5025_v25 = vadd.f32 %v5024_v10, %v11791_v54  ;;  %v4911_v42 = vadd.f32 %v4910_v1, %v4909_v8  ;;  %v5030_v23 = vadd.f32 %v5029_v14, %v5028_v5  ;;  %v4506_v24 = vmul.f32 %v8879_v49, %v14027_v56  ;;  %v14028_v54 = vld [vmem:[#allocation40_spill] sm:$0xff]  ;;  %v8881_v14 = vld [vmem:[%s9158_s26 + $0x248] sm:$0xff] }
 0x4fd   : > { %v5166_v43 = vrot.slane %v5165_v46, 1  ;;  %v5159_v18 = vrot.slane %v5158_v50, 1  ;;  %v4892_v15 = vadd.f32 %v4891_v31, %v4890_v37  ;;  %v5056_v11 = vsel %vm667_vm0, %v4508_v0, 0.0 }
 0x4fe   : > { %v11857_v7 = vadd.f32 %v5019_v22, %v11785_v34  ;;  %v5172_v44 = vadd.f32 %v5171_v61, %v5170_v57  ;;  %v4885_v16 = vadd.f32 %v4884_v47, %v4883_v53  ;;  %v4486_v10 = vmul.f32 %v8880_v26, %v14028_v54  ;;  %v8882_v47 = vld [vmem:[%s9158_s26 + $0x1b0] sm:$0xff]  ;;  %v8883_v26 = vld [vmem:[%s9158_s26 + $0x1c0] sm:$0xff] }
 0x4ff   : > { %v11862_v8 = vadd.f32 %v5012_v29, %v11789_v9  ;;  %v5037_v5 = vadd.f32 %v5036_v45, %v5035_v21  ;;  %v4898_v1 = vrot.slane %v4897_v3, 2  ;;  %v4507_v41 = vmul.f32 %v8881_v14, %v14029_v13  ;;  %v14030_v29 = vld [vmem:[#allocation28_spill] sm:$0xff]  ;;  %v14031_v54 = vld [vmem:[#allocation45_spill] sm:$0xff] }
 0x500   : > { %v4912_v37 = vrot.slane %v4911_v42, 2  ;;  %v5031_v31 = vrot.slane %v5030_v23, 2  ;;  %v5057_v0 = vrot.slane %v5056_v11, 4  ;;  %v5042_v34 = vsel %vm667_vm0, %v4506_v24, 0.0 }
 0x501   : > { %v5026_v57 = vrot.slane %v5025_v25, 1  ;;  %v5167_v53 = vadd.f32 %v5166_v43, %v5165_v46  ;;  %v5160_v35 = vadd.f32 %v5159_v18, %v5158_v50  ;;  %v4893_v22 = vrot.slane %v4892_v15, 1  ;;  %v11875_v13 = vpop.permute.xlu2 %5917 }
 0x502   : > { %v5173_v9 = vrot.slane %v5172_v44, 1  ;;  %v4886_v61 = vrot.slane %v4885_v16, 1  ;;  %v4902_v21 = vsel %vm667_vm0, %v4486_v10, 0.0  ;;  %v4488_v45 = vmul.f32 %v8882_v47, %v14030_v29  ;;  %14032 = vst [vmem:[#allocation29_spill] sm:$0xff] %v11875_v13  ;;  %v14045_v13 = vld [vmem:[#allocation21_spill] sm:$0xff] }
 0x503   : > { %v5038_v49 = vrot.slane %v5037_v5, 2  ;;  %v5043_v56 = vrot.slane %v5042_v34, 4  ;;  %v4490_v14 = vmul.f32 %v8883_v26, %v14031_v54  ;;  %v5049_v24 = vsel %vm667_vm0, %v4507_v41, 0.0  ;;  %8272 = vset.pattern.permute.xlu0 %v14007_v2 }
 0x504   : > { %5922 = vperm.xlu1 %8269, %v11813_v63   ;;  %v4899_v46 = vadd.f32 %v4898_v1, %v4897_v3  ;;  %v4913_v50 = vadd.f32 %v4912_v37, %v4911_v42  ;;  %v5032_v43 = vadd.f32 %v5031_v31, %v5030_v23  ;;  %v5058_v18 = vadd.f32 %v5057_v0, %v5056_v11 }
 0x505   : > { %6270 = vperm.xlu0 %8272, %v11813_v63   ;;  %v11878_v10 = vadd.f32 %v5026_v57, %v5025_v25  ;;  %v5462_v47 = vsel %vm5378_vm2, %v5167_v53, %v5160_v35  ;;  %v4903_v29 = vrot.slane %v4902_v21, 4  ;;  %v4511_v26 = vmul.f32 %v8884_v17, %v14034_v48  ;;  %v11889_v53 = vpop.permute.xlu0 %6860 }
 0x506   : > { %v11883_v54 = vadd.f32 %v4893_v22, %v4892_v15  ;;  %v4887_v41 = vadd.f32 %v4886_v61, %v4885_v16  ;;  %v4916_v3 = vsel %vm667_vm0, %v4488_v45, 0.0  ;;  %v5050_v42 = vrot.slane %v5049_v24, 4  ;;  %14035 = vst [vmem:[#allocation32_spill] sm:$0xff] %v11889_v53  ;;  %v14036_v16 = vld [vmem:[#allocation46_spill] sm:$0xff]  ;;  %v14037_v61 = vld [vmem:[#allocation47_spill] sm:$0xff] }
 0x507   : > { %14033 = vst [vmem:[#allocation43_spill] sm:$0xff] %v11878_v10  ;;  %v5174_v23 = vadd.f32 %v5173_v9, %v5172_v44  ;;  %v11886_v11 = vadd.f32 %v5038_v49, %v5037_v5  ;;  %v5044_v1 = vadd.f32 %v5043_v56, %v5042_v34  ;;  %v4930_v25 = vsel %vm667_vm0, %v4490_v14, 0.0  ;;  %v8885_v44 = vld [vmem:[%s9158_s26 + $0x258] sm:$0xff]  ;;  %v8886_v9 = vld [vmem:[%s9158_s26 + $0x1c8] sm:$0xff]  ;;  %v8891_v53 = vld [vmem:[%s9158_s26 + $0x1d0] sm:$0xff] }
 0x508   : > { %v4900_v37 = vrot.slane %v4899_v46, 1  ;;  %v4914_v31 = vrot.slane %v4913_v50, 1  ;;  %v5033_v0 = vrot.slane %v5032_v43, 1  ;;  %v5059_v57 = vrot.slane %v5058_v18, 2  ;;  %v8887_v14 = vld [vmem:[%s9158_s26 + $0x1b8] sm:$0xff] }
 0x509   : > { %v4904_v48 = vadd.f32 %v4903_v29, %v4902_v21  ;;  %v4917_v17 = vrot.slane %v4916_v3, 4  ;;  %v5077_v15 = vsel %vm667_vm0, %v4511_v26, 0.0  ;;  %v4509_v5 = vmul.f32 %v8885_v44, %v14036_v16  ;;  %v14039_v29 = vld [vmem:[#allocation6_spill] sm:$0xff]  ;;  %v14044_v21 = vld [vmem:[#allocation8_spill] sm:$0xff] }
 0x50a   : > { %v11898_v34 = vsel %vm5378_vm2, %v4887_v41, %v11842_v20  ;;  %v4931_v35 = vrot.slane %v4930_v25, 4  ;;  %v5051_v22 = vadd.f32 %v5050_v42, %v5049_v24  ;;  %v4491_v45 = vmul.f32 %v8886_v9, %v14037_v61  ;;  %v6475_v9 = vpop.permute.xlu2 %6474 }
 0x50b   : > { %v11903_v49 = vsel %vm5380_vm3, %v5174_v23, %v5462_v47  ;;  %v5045_v56 = vrot.slane %v5044_v1, 2  ;;  %v4489_v26 = vmul.f32 %v8887_v14, %v14039_v29  ;;  %v11908_v44 = vadd.f32 %v4900_v37, %v4899_v46 }
 0x50c   : > { %8274 = vset.pattern.permute.xlu1 %v13989_v27  ;;  %14038 = vst [vmem:[#allocation44_spill] sm:$0xff] %v11903_v49  ;;  %v11910_v16 = vadd.f32 %v4914_v31, %v4913_v50  ;;  %v11912_v20 = vadd.f32 %v5033_v0, %v5032_v43  ;;  %v5078_v24 = vrot.slane %v5077_v15, 4  ;;  %v5060_v41 = vadd.f32 %v5059_v57, %v5058_v18  ;;  %v8888_v43 = vld [vmem:[%s9158_s26 + $0x1d8] sm:$0xff]  ;;  %v14041_v31 = vld [vmem:[#allocation26_spill] sm:$0xff]  ;;  %v8889_v57 = vld [vmem:[%s9158_s26 + $0x260] sm:$0xff] }
 0x50d   : > { %6478 = vperm.xlu1 %8274, %v11813_v63   ;;  %8273 = vset.pattern.permute.xlu0 %v14013_v55  ;;  %v4905_v47 = vrot.slane %v4904_v48, 2  ;;  %v4918_v42 = vadd.f32 %v4917_v17, %v4916_v3  ;;  %v5063_v23 = vsel %vm667_vm0, %v4509_v5, 0.0  ;;  %v4932_v46 = vadd.f32 %v4931_v35, %v4930_v25  ;;  %v14042_v3 = vld [vmem:[#allocation5_spill] sm:$0xff] }
 0x50e   : > { %14040 = vst [vmem:[#allocation35_spill] sm:$0xff] %v11912_v20  ;;  %6400 = vperm.xlu0 %8273, %v11813_v63   ;;  %v5052_v37 = vrot.slane %v5051_v22, 2  ;;  %v4937_v50 = vsel %vm667_vm0, %v4491_v45, 0.0  ;;  %v4493_v0 = vmul.f32 %v8888_v43, %v14041_v31  ;;  %v5046_v61 = vadd.f32 %v5045_v56, %v5044_v1  ;;  %v8890_v35 = vld [vmem:[%s9158_s26 + $0x280] sm:$0xff]  ;;  %v14046_v31 = vld [vmem:[#allocation31_spill] sm:$0xff] }
 0x50f   : > { %v4923_v18 = vsel %vm667_vm0, %v4489_v26, 0.0  ;;  %v4510_v17 = vmul.f32 %v8889_v57, %v14042_v3  ;;  %v14043_v5 = vrot.slane %v11776_v6, 1  ;;  %v5079_v29 = vadd.f32 %v5078_v24, %v5077_v15  ;;  %v8892_v26 = vld [vmem:[%s9158_s26 + $0x270] sm:$0xff]  ;;  %v11936_v24 = vpop.permute.xlu0 %5912 }
 0x510   : > { %v5064_v25 = vrot.slane %v5063_v23, 4  ;;  %v4514_v45 = vmul.f32 %v8890_v35, %v14044_v21  ;;  %v4492_v55 = vmul.f32 %v8891_v53, %v14045_v13  ;;  %v5061_v43 = vrot.slane %v5060_v41, 1  ;;  %14047 = vst [vmem:[#allocation33_spill] sm:$0xff] %v11936_v24 }
 0x511   : > { %v11926_v14 = vadd.f32 %v14043_v5, %v11776_v6  ;;  %v4906_v1 = vadd.f32 %v4905_v47, %v4904_v48  ;;  %v4938_v56 = vrot.slane %v4937_v50, 4  ;;  %v4512_v2 = vmul.f32 %v8892_v26, %v14046_v31 }
 0x512   : > { %v4919_v57 = vrot.slane %v4918_v42, 2  ;;  %v4933_v3 = vrot.slane %v4932_v46, 2  ;;  %v5053_v6 = vadd.f32 %v5052_v37, %v5051_v22  ;;  %v4951_v15 = vsel %vm667_vm0, %v4493_v0, 0.0  ;;  %v6605_v27 = vpop.permute.xlu2 %6604 }
 0x513   : > { %v5047_v21 = vrot.slane %v5046_v61, 1  ;;  %v4924_v5 = vrot.slane %v4923_v18, 4  ;;  %v5070_v13 = vsel %vm667_vm0, %v4510_v17, 0.0  ;;  %v6522_v53 = vmul.f32 %v6475_v9, %v11641_v52 }
 0x514   : > { %v5080_v48 = vrot.slane %v5079_v29, 2  ;;  %v5065_v47 = vadd.f32 %v5064_v25, %v5063_v23  ;;  %v5098_v35 = vsel %vm667_vm0, %v4514_v45, 0.0  ;;  %v4944_v26 = vsel %vm667_vm0, %v4492_v55, 0.0 }
 0x515   : > { %8275 = vset.pattern.permute.xlu1 %v13994_v39  ;;  %v4907_v31 = vrot.slane %v4906_v1, 1  ;;  %v4939_v22 = vadd.f32 %v4938_v56, %v4937_v50  ;;  %v4952_v37 = vrot.slane %v4951_v15, 4  ;;  %v5084_v0 = vsel %vm667_vm0, %v4512_v2, 0.0 }
 0x516   : > { %6608 = vperm.xlu1 %8275, %v11813_v63   ;;  %6549 = vrot.lane.b32.xlu0 %v6522_v53, %s9024_s21  ;;  %v4920_v24 = vadd.f32 %v4919_v57, %v4918_v42  ;;  %v4934_v39 = vadd.f32 %v4933_v3, %v4932_v46  ;;  %v5054_v49 = vrot.slane %v5053_v6, 1  ;;  %v5071_v17 = vrot.slane %v5070_v13, 4  ;;  %v8893_v57 = vld [vmem:[%s9158_s26 + $0x1e0] sm:$0xff] }
 0x517   : > { %8278 = vset.pattern.permute.xlu0 %v13978_v60  ;;  %v11946_v23 = vadd.f32 %v5061_v43, %v5060_v41  ;;  %v5048_v9 = vadd.f32 %v5047_v21, %v5046_v61  ;;  %v5099_v25 = vrot.slane %v5098_v35, 4  ;;  %v4945_v55 = vrot.slane %v4944_v26, 4  ;;  %v14048_v3 = vld [vmem:[#allocation12_spill] sm:$0xff]  ;;  %v4122_v61 = vpop.permute.xlu0 %4121 }
 0x518   : > { %v5081_v45 = vadd.f32 %v5080_v48, %v5079_v29  ;;  %v5066_v50 = vrot.slane %v5065_v47, 2  ;;  %v4925_v56 = vadd.f32 %v4924_v5, %v4923_v18  ;;  %v5085_v2 = vrot.slane %v5084_v0, 4  ;;  %v8894_v21 = vld [vmem:[%s9158_s26 + $0x140] sm:$0xff] }
 0x519   : > { %v11948_v53 = vadd.f32 %v4907_v31, %v4906_v1  ;;  %v4940_v42 = vrot.slane %v4939_v22, 2  ;;  %v4953_v46 = vadd.f32 %v4952_v37, %v4951_v15  ;;  %v4494_v20 = vmul.f32 %v8893_v57, %v14048_v3 }
 0x51a   : > { %v4921_v10 = vrot.slane %v4920_v24, 1  ;;  %v4935_v60 = vrot.slane %v4934_v39, 1  ;;  %v5055_v41 = vadd.f32 %v5054_v49, %v5053_v6  ;;  %v5072_v43 = vadd.f32 %v5071_v17, %v5070_v13  ;;  %v8895_v13 = vld [vmem:[%s9158_s26 + $0x148] sm:$0xff] }
 0x51b   : > { %v5100_v29 = vadd.f32 %v5099_v25, %v5098_v35  ;;  %v4946_v18 = vadd.f32 %v4945_v55, %v4944_v26  ;;  %v4474_v5 = vmul.f32 %v8894_v21, %v4117_v32  ;;  %v6652_v1 = vmul.f32 %v6605_v27, %v11641_v52  ;;  %v8896_v25 = vld [vmem:[%s9158_s26 + $0x150] sm:$0xff] }
 0x51c   : > { %v5082_v15 = vrot.slane %v5081_v45, 1  ;;  %v5067_v48 = vadd.f32 %v5066_v50, %v5065_v47  ;;  %v4926_v31 = vrot.slane %v4925_v56, 2  ;;  %v5086_v37 = vadd.f32 %v5085_v2, %v5084_v0 }
 0x51d   : > { %v4941_v57 = vadd.f32 %v4940_v42, %v4939_v22  ;;  %v4954_v49 = vrot.slane %v4953_v46, 2  ;;  %v4958_v6 = vsel %vm667_vm0, %v4494_v20, 0.0  ;;  %v4475_v17 = vmul.f32 %v8895_v13, %v4122_v61 }
 0x51e   : > { %8276 = vset.pattern.permute.xlu1 %v13997_v12  ;;  %6679 = vrot.lane.b32.xlu0 %v6652_v1, %s9025_s29  ;;  %v11959_v35 = vadd.f32 %v4921_v10, %v4920_v24  ;;  %v4936_v32 = vadd.f32 %v4935_v60, %v4934_v39  ;;  %v5073_v26 = vrot.slane %v5072_v43, 2  ;;  %v4476_v27 = vmul.f32 %v8896_v25, %v11826_v19  ;;  %v6735_v60 = vpop.permute.xlu2 %6734 }
 0x51f   : > { %6738 = vperm.xlu1 %8276, %v11813_v63   ;;  %v11964_v47 = vsel %vm5378_vm2, %v5055_v41, %v5048_v9  ;;  %v5101_v0 = vrot.slane %v5100_v29, 2  ;;  %v4947_v22 = vrot.slane %v4946_v18, 2  ;;  %v4818_v55 = vsel %vm667_vm0, %v4474_v5, 0.0  ;;  %v8897_v9 = vld [vmem:[%s9158_s26 + $0x1f0] sm:$0xff] }
 0x520   : > { %v11967_v20 = vadd.f32 %v5082_v15, %v5081_v45  ;;  %v11969_v50 = vadd.f32 %v4926_v31, %v4925_v56  ;;  %v5087_v10 = vrot.slane %v5086_v37, 2  ;;  %v4959_v24 = vrot.slane %v4958_v6, 4  ;;  %v14049_v41 = vld [vmem:[#allocation15_spill] sm:$0xff]  ;;  %v8898_v15 = vld [vmem:[%s9158_s26 + $0x168] sm:$0xff] }
 0x521   : > { %v5068_v39 = vrot.slane %v5067_v48, 1  ;;  %v4942_v2 = vrot.slane %v4941_v57, 1  ;;  %v4955_v42 = vadd.f32 %v4954_v49, %v4953_v46  ;;  %v4825_v19 = vsel %vm667_vm0, %v4475_v17, 0.0  ;;  %v8908_v46 = vld [vmem:[%s9158_s26 + $0x290] sm:$0xff] }
 0x522   : > { %v5074_v3 = vadd.f32 %v5073_v26, %v5072_v43  ;;  %v4496_v61 = vmul.f32 %v8897_v9, %v14049_v41  ;;  %v4819_v21 = vrot.slane %v4818_v55, 4  ;;  %v4832_v5 = vsel %vm667_vm0, %v4476_v27, 0.0  ;;  %v8900_v41 = vld [vmem:[%s9158_s26 + $0x208] sm:$0xff] }
 0x523   : > { %v5102_v45 = vadd.f32 %v5101_v0, %v5100_v29  ;;  %v4948_v1 = vadd.f32 %v4947_v22, %v4946_v18  ;;  %v4479_v56 = vmul.f32 %v8898_v15, %v11853_v59  ;;  %v6782_v31 = vmul.f32 %v6735_v60, %v11641_v52 }
 0x524   : > { %v5088_v49 = vadd.f32 %v5087_v10, %v5086_v37  ;;  %v4960_v13 = vadd.f32 %v4959_v24, %v4958_v6  ;;  %v4826_v43 = vrot.slane %v4825_v19, 4  ;;  %v11981_v17 = vadd.f32 %v5068_v39, %v5067_v48 }
 0x525   : > { %v4943_v26 = vadd.f32 %v4942_v2, %v4941_v57  ;;  %v4833_v25 = vrot.slane %v4832_v5, 4  ;;  %v14050_v59 = vrot.slane %v11886_v11, 1  ;;  %v4956_v18 = vrot.slane %v4955_v42, 1  ;;  %v8899_v2 = vld [vmem:[%s9158_s26 + $0x200] sm:$0xff] }
 0x526   : > { %6809 = vrot.lane.b32.xlu0 %v6782_v31, %s9026_s25  ;;  %v4972_v27 = vsel %vm667_vm0, %v4496_v61, 0.0  ;;  %v4820_v37 = vadd.f32 %v4819_v21, %v4818_v55  ;;  %v5428_v48 = vsel %vm5380_vm3, %v11883_v54, %v11898_v34  ;;  %v5103_v6 = vrot.slane %v5102_v45, 1  ;;  %v8901_v31 = vld [vmem:[%s9158_s26 + $0x160] sm:$0xff] }
 0x527   : > { %8277 = vset.pattern.permute.xlu1 %v14000_v62  ;;  %v11987_v29 = vadd.f32 %v14050_v59, %v11886_v11  ;;  %v5075_v57 = vrot.slane %v5074_v3, 1  ;;  %v4949_v0 = vrot.slane %v4948_v1, 1  ;;  %v4853_v22 = vsel %vm667_vm0, %v4479_v56, 0.0 }
 0x528   : > { %6868 = vperm.xlu1 %8277, %v11813_v63   ;;  %v5089_v10 = vrot.slane %v5088_v49, 1  ;;  %v4961_v24 = vrot.slane %v4960_v13, 2  ;;  %v4827_v60 = vadd.f32 %v4826_v43, %v4825_v19  ;;  %v5429_v11 = vsel %vm5382_vm4, %v11908_v44, %v5428_v48 }
 0x529   : > { %v11997_v39 = vsel %vm5378_vm2, %v4943_v26, %v4936_v32  ;;  %v4973_v55 = vrot.slane %v4972_v27, 4  ;;  %v4498_v54 = vmul.f32 %v8899_v2, %v11310_v4  ;;  %v4834_v34 = vadd.f32 %v4833_v25, %v4832_v5  ;;  %v4137_v15 = vpop.permute.xlu0 %4136  ;;  %v14052_v5 = vld [vmem:[#allocation13_spill] sm:$0xff]  ;;  %v14054_v2 = vld [vmem:[#allocation7_spill] sm:$0xff] }
 0x52a   : > { %v12001_v9 = vadd.f32 %v4956_v18, %v4955_v42  ;;  %v4499_v61 = vmul.f32 %v8900_v41, %v11328_v58  ;;  %v4821_v21 = vrot.slane %v4820_v37, 2  ;;  %v4854_v19 = vrot.slane %v4853_v22, 4  ;;  %v8902_v42 = vld [vmem:[%s9158_s26 + $0x1e8] sm:$0xff] }
 0x52b   : > { %v12005_v56 = vadd.f32 %v5103_v6, %v5102_v45  ;;  %v12007_v44 = vadd.f32 %v5075_v57, %v5074_v3  ;;  %v12009_v32 = vadd.f32 %v4949_v0, %v4948_v1  ;;  %v4478_v43 = vmul.f32 %v8901_v31, %v4137_v15  ;;  %v4132_v6 = vpop.permute.xlu1 %4131  ;;  %v8903_v57 = vld [vmem:[%s9158_s26 + $0x298] sm:$0xff] }
 0x52c   : > { %v12012_v26 = vadd.f32 %v5089_v10, %v5088_v49  ;;  %v12014_v4 = vadd.f32 %v4961_v24, %v4960_v13  ;;  %v4495_v58 = vmul.f32 %v8902_v42, %v14052_v5  ;;  %v4828_v25 = vrot.slane %v4827_v60, 2  ;;  %v14053_v0 = vld [vmem:[#allocation48_spill] sm:$0xff]  ;;  %v8904_v24 = vld [vmem:[%s9158_s26 + $0x288] sm:$0xff] }
 0x52d   : > { %v12019_v3 = vadd.f32 %v4973_v55, %v4972_v27  ;;  %v4986_v45 = vsel %vm667_vm0, %v4498_v54, 0.0  ;;  %v4835_v1 = vrot.slane %v4834_v34, 2  ;;  %v4846_v59 = vsel %vm667_vm0, %v4478_v43, 0.0  ;;  %v8905_v15 = vld [vmem:[%s9158_s26 + $0x278] sm:$0xff]  ;;  %v14055_v27 = vld [vmem:[#allocation38_spill] sm:$0xff] }
 0x52e   : > { %14051 = vst [vmem:[#allocation36_spill] sm:$0xff] %v12012_v26  ;;  %v4993_v49 = vsel %vm667_vm0, %v4499_v61, 0.0  ;;  %v4822_v13 = vadd.f32 %v4821_v21, %v4820_v37  ;;  %v4855_v18 = vadd.f32 %v4854_v19, %v4853_v22  ;;  %v4847_v48 = vrot.slane %v4846_v59, 4  ;;  %v8906_v31 = vld [vmem:[%s9158_s26 + $0x158] sm:$0xff] }
 0x52f   : > { %v4517_v10 = vmul.f32 %v8903_v57, %v14053_v0  ;;  %v4515_v41 = vmul.f32 %v8904_v24, %v14054_v2  ;;  %v4513_v55 = vmul.f32 %v8905_v15, %v14055_v27  ;;  %v4477_v54 = vmul.f32 %v8906_v31, %v4132_v6  ;;  %v8907_v15 = vld [vmem:[%s9158_s26 + $0x1f8] sm:$0xff] }
 0x530   : > { %8288 = vset.pattern.permute.xlu1 %v14008_v38  ;;  %v4965_v42 = vsel %vm667_vm0, %v4495_v58, 0.0  ;;  %v4987_v43 = vrot.slane %v4986_v45, 4  ;;  %v4829_v5 = vadd.f32 %v4828_v25, %v4827_v60  ;;  %v4848_v61 = vadd.f32 %v4847_v48, %v4846_v59 }
 0x531   : > { %v4994_v37 = vrot.slane %v4993_v49, 4  ;;  %v4836_v22 = vadd.f32 %v4835_v1, %v4834_v34  ;;  %v4839_v21 = vsel %vm667_vm0, %v4477_v54, 0.0  ;;  %v12035_v19 = vsel %vm5384_vm5, %v11948_v53, %v5429_v11  ;;  %v14056_v53 = vld [vmem:[#allocation10_spill] sm:$0xff] }
 0x532   : > { %v4823_v57 = vrot.slane %v4822_v13, 1  ;;  %v4856_v0 = vrot.slane %v4855_v18, 2  ;;  %v4849_v24 = vrot.slane %v4848_v61, 2  ;;  %v4840_v2 = vrot.slane %v4839_v21, 4 }
 0x533   : > { %v4975_v6 = vrot.slane %v12019_v3, 2  ;;  %v5119_v58 = vsel %vm667_vm0, %v4517_v10, 0.0  ;;  %v5091_v60 = vsel %vm667_vm0, %v4513_v55, 0.0  ;;  %v4966_v25 = vrot.slane %v4965_v42, 4 }
 0x534   : > { %v5105_v34 = vsel %vm667_vm0, %v4515_v41, 0.0  ;;  %v4988_v1 = vadd.f32 %v4987_v43, %v4986_v45  ;;  %v4830_v59 = vrot.slane %v4829_v5, 1  ;;  %v4841_v48 = vadd.f32 %v4840_v2, %v4839_v21  ;;  %v12045_v41 = vpop.f32.mrf.mxu2  ;;  %v6007_v45 = vpop.permute.xlu1 %6006 }
 0x535   : > { %v4497_v11 = vmul.f32 %v8907_v15, %v14056_v53  ;;  %v4995_v27 = vadd.f32 %v4994_v37, %v4993_v49  ;;  %v4837_v31 = vrot.slane %v4836_v22, 1  ;;  %v4850_v54 = vadd.f32 %v4849_v24, %v4848_v61  ;;  %14057 = vst [vmem:[#allocation17_spill] sm:$0xff] %v12045_v41 }
 0x536   : > { %v4516_v52 = vmul.f32 %v8908_v46, %v11278_v40  ;;  %v4824_v63 = vadd.f32 %v4823_v57, %v4822_v13  ;;  %v4857_v38 = vadd.f32 %v4856_v0, %v4855_v18  ;;  %v4842_v10 = vrot.slane %v4841_v48, 2 }
 0x537   : > { %v5120_v62 = vrot.slane %v5119_v58, 4  ;;  %v5106_v55 = vrot.slane %v5105_v34, 4  ;;  %v5092_v12 = vrot.slane %v5091_v60, 4  ;;  %v4967_v26 = vadd.f32 %v4966_v25, %v4965_v42 }
 0x538   : > { %v4989_v43 = vrot.slane %v4988_v1, 2  ;;  %v4831_v21 = vadd.f32 %v4830_v59, %v4829_v5  ;;  %v4843_v2 = vadd.f32 %v4842_v10, %v4841_v48  ;;  %v6054_v49 = vmul.f32 %v6007_v45, %v12045_v41  ;;  %v8909_v48 = vld [vmem:[%s9158_s26 + $0x2a0] sm:$0xff] }
 0x539   : > { %v4979_v61 = vsel %vm667_vm0, %v4497_v11, 0.0  ;;  %v4996_v37 = vrot.slane %v4995_v27, 2  ;;  %v4838_v40 = vadd.f32 %v4837_v31, %v4836_v22  ;;  %v4851_v46 = vrot.slane %v4850_v54, 1 }
 0x53a   : > { %v5112_v13 = vsel %vm667_vm0, %v4516_v52, 0.0  ;;  %v5420_v18 = vsel %vm5378_vm2, %v4831_v21, %v4824_v63  ;;  %v4858_v57 = vrot.slane %v4857_v38, 1  ;;  %v4844_v42 = vrot.slane %v4843_v2, 1  ;;  %6081 = vrot.lane.b32.xlu2 %v6054_v49, %s9024_s21 }
 0x53b   : > { %v4963_v0 = vrot.slane %v12014_v4, 1  ;;  %v5121_v5 = vadd.f32 %v5120_v62, %v5119_v58  ;;  %v5107_v24 = vadd.f32 %v5106_v55, %v5105_v34  ;;  %v4968_v25 = vrot.slane %v4967_v26, 2 }
 0x53c   : > { %v4980_v59 = vrot.slane %v4979_v61, 4  ;;  %v4518_v15 = vmul.f32 %v8909_v48, %v11376_v28  ;;  %v4990_v53 = vadd.f32 %v4989_v43, %v4988_v1  ;;  %v4845_v22 = vadd.f32 %v4844_v42, %v4843_v2  ;;  %v8910_v2 = vld [vmem:[%s9158_s26 + $0x2e0] sm:$0xff] }
 0x53d   : > { %v4976_v11 = vadd.f32 %v4975_v6, %v12019_v3  ;;  %v5113_v52 = vrot.slane %v5112_v13, 4  ;;  %v5421_v63 = vsel %vm5380_vm3, %v4838_v40, %v5420_v18  ;;  %v4852_v31 = vadd.f32 %v4851_v46, %v4850_v54  ;;  %v8911_v18 = vld [vmem:[%s9158_s26 + $0x2a8] sm:$0xff] }
 0x53e   : > { %v5093_v10 = vadd.f32 %v5092_v12, %v5091_v60  ;;  %v4997_v45 = vadd.f32 %v4996_v37, %v4995_v27  ;;  %v4859_v21 = vadd.f32 %v4858_v57, %v4857_v38  ;;  %v5422_v62 = vsel %vm5382_vm4, %v4845_v22, %v5421_v63 }
 0x53f   : > { %v5122_v58 = vrot.slane %v5121_v5, 2  ;;  %v5108_v34 = vrot.slane %v5107_v24, 2  ;;  %v4969_v55 = vadd.f32 %v4968_v25, %v4967_v26  ;;  %v5423_v49 = vsel %vm5384_vm5, %v4852_v31, %v5422_v62 }
 0x540   : > { %v4981_v28 = vadd.f32 %v4980_v59, %v4979_v61  ;;  %v5126_v1 = vsel %vm667_vm0, %v4518_v15, 0.0  ;;  %v4991_v3 = vrot.slane %v4990_v53, 1  ;;  %v5424_v43 = vsel %vm5386_vm6, %v4859_v21, %v5423_v49 }
 0x541   : > { %v4526_v12 = vmul.f32 %v8910_v2, %v11365_v51  ;;  %v5114_v60 = vadd.f32 %v5113_v52, %v5112_v13  ;;  %v5425_v27 = vsel %vm5388_vm7, %v11769_v30, %v5424_v43  ;;  %v5435_v26 = vsel %vm5380_vm3, %v12009_v32, %v11997_v39  ;;  %v8913_v43 = vld [vmem:[%s9158_s26 + $0x2e8] sm:$0xff] }
 0x542   : > { %v4977_v54 = vrot.slane %v4976_v11, 1  ;;  %v4998_v61 = vrot.slane %v4997_v45, 1  ;;  %v5426_v37 = vsel %vm5390_vm8, %v11926_v14, %v5425_v27  ;;  %v4970_v40 = vrot.slane %v4969_v55, 1  ;;  %v14061_v2 = vld [vmem:[#allocation49_spill] sm:$0xff] }
 0x543   : > { %v5127_v46 = vrot.slane %v5126_v1, 4  ;;  %v4519_v51 = vmul.f32 %v8911_v18, %v11442_v33  ;;  %8102 = vmatmul.msk.f32.gmra.mxu1 %vm667_vm0, %v5426_v37  ;;  %v5431_v30 = vsel %vm5386_vm6, %v11910_v16, %v12035_v19  ;;  %v4964_v39 = vadd.f32 %v4963_v0, %v12014_v4  ;;  %v8912_v0 = vld [vmem:[%s9158_s26 + $0x2d8] sm:$0xff]  ;;  %v8914_v27 = vld [vmem:[%s9158_s26 + $0x308] sm:$0xff] }
 0x544   : > { %v6137_v6 = vpop.permute.xlu1 %6136  ;;  %v5094_v32 = vrot.slane %v5093_v10, 2  ;;  %v4982_v13 = vrot.slane %v4981_v28, 2  ;;  %v4992_v57 = vadd.f32 %v4991_v3, %v4990_v53  ;;  %v5123_v14 = vadd.f32 %v5122_v58, %v5121_v5 }
 0x545   : > { %v6184_v38 = vmul.f32 %v6137_v6, %v12045_v41  ;;  %v5109_v42 = vadd.f32 %v5108_v34, %v5107_v24  ;;  %v5182_v25 = vsel %vm667_vm0, %v4526_v12, 0.0  ;;  %v5115_v59 = vrot.slane %v5114_v60, 2 }
 0x546   : > { %v4978_v33 = vadd.f32 %v4977_v54, %v4976_v11  ;;  %v4999_v48 = vadd.f32 %v4998_v61, %v4997_v45  ;;  %v14058_v15 = vrot.slane %v11969_v50, 1  ;;  %v5432_v16 = vsel %vm5388_vm7, %v11959_v35, %v5431_v30  ;;  %v12089_v11 = vpop.permute.xlu0 %6079  ;;  %v14063_v30 = vld [vmem:[#allocation37_spill] sm:$0xff] }
 0x547   : > { %6211 = vrot.lane.b32.xlu2 %v6184_v38, %s9025_s29  ;;  %v4971_v19 = vadd.f32 %v4970_v40, %v4969_v55  ;;  %v5128_v52 = vadd.f32 %v5127_v46, %v5126_v1  ;;  %v5133_v4 = vsel %vm667_vm0, %v4519_v51, 0.0  ;;  %v4525_v5 = vmul.f32 %v8912_v0, %v11484_v36  ;;  %14059 = vst [vmem:[#allocation39_spill] sm:$0xff] %v12089_v11  ;;  %v8915_v51 = vld [vmem:[%s9158_s26 + $0x300] sm:$0xff] }
 0x548   : > { %v4929_v22 = vadd.f32 %v14058_v15, %v11969_v50  ;;  %v4983_v24 = vadd.f32 %v4982_v13, %v4981_v28  ;;  %v5183_v53 = vrot.slane %v5182_v25, 4  ;;  %v5441_v63 = vsel %vm5378_vm2, %v4999_v48, %v4992_v57  ;;  %v14060_v28 = vld [vmem:[#allocation20_spill] sm:$0xff] }
 0x549   : > { %v5436_v31 = vsel %vm5382_vm4, %v12001_v9, %v5435_v26  ;;  %v5124_v50 = vrot.slane %v5123_v14, 1  ;;  %v5110_v45 = vrot.slane %v5109_v42, 1  ;;  %v12093_v35 = vadd.f32 %v5094_v32, %v5093_v10  ;;  %v14062_v26 = vld [vmem:[#allocation52_spill] sm:$0xff] }
 0x54a   : > { %v5116_v21 = vadd.f32 %v5115_v59, %v5114_v60  ;;  %v5134_v58 = vrot.slane %v5133_v4, 4  ;;  %v5433_v36 = vsel %vm5390_vm8, %v4929_v22, %v5432_v16  ;;  %v5449_v55 = vsel %vm5380_vm3, %v11946_v23, %v11964_v47  ;;  %v8917_v22 = vld [vmem:[%s9158_s26 + $0x2f8] sm:$0xff] }
 0x54b   : > { %v5129_v49 = vrot.slane %v5128_v52, 2  ;;  %v5175_v9 = vsel %vm667_vm0, %v4525_v5, 0.0  ;;  %8103 = vmatmul.msk.f32.gmra.mxu1 %vm667_vm0, %v5433_v36  ;;  %v5437_v10 = vsel %vm5384_vm5, %v4964_v39, %v5436_v31  ;;  %v5442_v1 = vsel %vm5380_vm3, %v14060_v28, %v5441_v63  ;;  %v14066_v0 = vld [vmem:[#allocation16_spill] sm:$0xff]  ;;  %v14069_v36 = vld [vmem:[#allocation43_spill] sm:$0xff] }
 0x54c   : > { %v4984_v3 = vrot.slane %v4983_v24, 1  ;;  %v5184_v6 = vadd.f32 %v5183_v53, %v5182_v25  ;;  %v4527_v12 = vmul.f32 %v8913_v43, %v14061_v2  ;;  %v5438_v23 = vsel %vm5386_vm6, %v4971_v19, %v5437_v10  ;;  %v8916_v25 = vld [vmem:[%s9158_s26 + $0x2f0] sm:$0xff]  ;;  %v8920_v10 = vld [vmem:[%s9158_s26 + $0x318] sm:$0xff] }
 0x54d   : > { %v6267_v62 = vpop.permute.xlu1 %6266  ;;  %v12109_v47 = vadd.f32 %v5124_v50, %v5123_v14  ;;  %v5096_v60 = vrot.slane %v12093_v35, 1  ;;  %v5117_v38 = vrot.slane %v5116_v21, 1  ;;  %v4531_v54 = vmul.f32 %v8914_v27, %v14062_v26  ;;  %v14070_v28 = vld [vmem:[#allocation23_spill] sm:$0xff] }
 0x54e   : > { %v6314_v34 = vmul.f32 %v6267_v62, %v12045_v41  ;;  %v5111_v61 = vadd.f32 %v5110_v45, %v5109_v42  ;;  %v5135_v37 = vadd.f32 %v5134_v58, %v5133_v4  ;;  %v5176_v40 = vrot.slane %v5175_v9, 4  ;;  %v14064_v42 = vld [vmem:[#allocation11_spill] sm:$0xff]  ;;  %v12131_v53 = vpop.permute.xlu0 %6209  ;;  %v8919_v62 = vld [vmem:[%s9158_s26 + $0x320] sm:$0xff] }
 0x54f   : > { %v5443_v46 = vsel %vm5382_vm4, %v11862_v8, %v5442_v1  ;;  %v5130_v18 = vadd.f32 %v5129_v49, %v5128_v52  ;;  %v4530_v39 = vmul.f32 %v8915_v51, %v14063_v30  ;;  %v5439_v32 = vsel %vm5388_vm7, %v4978_v33, %v5438_v23  ;;  %v14065_v8 = vld [vmem:[#allocation51_spill] sm:$0xff]  ;;  %14067 = vst [vmem:[#allocation14_spill] sm:$0xff] %v12131_v53  ;;  %v14068_v58 = vld [vmem:[#allocation57_spill] sm:$0xff] }
 0x550   : > { %6341 = vrot.lane.b32.xlu2 %v6314_v34, %s9026_s25  ;;  %v5450_v13 = vsel %vm5382_vm4, %v11981_v17, %v5449_v55  ;;  %v5185_v57 = vrot.slane %v5184_v6, 2  ;;  %v5189_v14 = vsel %vm667_vm0, %v4527_v12, 0.0  ;;  %v4528_v59 = vmul.f32 %v8916_v25, %v14064_v42  ;;  %v8918_v17 = vld [vmem:[%s9158_s26 + $0x310] sm:$0xff] }
 0x551   : > { %v4985_v48 = vadd.f32 %v4984_v3, %v4983_v24  ;;  %v5118_v15 = vadd.f32 %v5117_v38, %v5116_v21  ;;  %v4529_v16 = vmul.f32 %v8917_v22, %v14065_v8  ;;  %v5217_v19 = vsel %vm667_vm0, %v4531_v54, 0.0  ;;  %v14071_v26 = vld [vmem:[#allocation35_spill] sm:$0xff]  ;;  %v8921_v54 = vld [vmem:[%s9158_s26 + $0x328] sm:$0xff] }
 0x552   : > { %v5444_v33 = vsel %vm5384_vm5, %v11857_v7, %v5443_v46  ;;  %v5136_v52 = vrot.slane %v5135_v37, 2  ;;  %v5177_v4 = vadd.f32 %v5176_v40, %v5175_v9  ;;  %v4532_v5 = vmul.f32 %v8918_v17, %v14066_v0  ;;  %v8922_v8 = vld [vmem:[%s9158_s26 + $0x338] sm:$0xff]  ;;  %v14075_v17 = vld [vmem:[#allocation53_spill] sm:$0xff] }
 0x553   : > { %v5440_v24 = vsel %vm5390_vm8, %v4985_v48, %v5439_v32  ;;  %v5455_v63 = vsel %vm5378_vm2, %v5111_v61, %v12005_v56  ;;  %v5131_v31 = vrot.slane %v5130_v18, 1  ;;  %v5190_v50 = vrot.slane %v5189_v14, 4  ;;  %v14072_v61 = vld [vmem:[#allocation56_spill] sm:$0xff] }
 0x554   : > { %v5210_v45 = vsel %vm667_vm0, %v4530_v39, 0.0  ;;  %8104 = vmatmul.msk.f32.gmra.mxu1 %vm667_vm0, %v5440_v24  ;;  %v5196_v7 = vsel %vm667_vm0, %v4528_v59, 0.0  ;;  %v5218_v21 = vrot.slane %v5217_v19, 4  ;;  %v4534_v34 = vmul.f32 %v8919_v62, %v14068_v58 }
 0x555   : > { %v5445_v55 = vsel %vm5386_vm6, %v14069_v36, %v5444_v33  ;;  %v12143_v49 = vadd.f32 %v5185_v57, %v5184_v6  ;;  %v5456_v56 = vsel %vm5380_vm3, %v5118_v15, %v5455_v63  ;;  %v5203_v9 = vsel %vm667_vm0, %v4529_v16, 0.0  ;;  %v14073_v57 = vld [vmem:[#allocation42_spill] sm:$0xff] }
 0x556   : > { %v4533_v1 = vmul.f32 %v8920_v10, %v14070_v28  ;;  %v5211_v3 = vrot.slane %v5210_v45, 4  ;;  %v5137_v43 = vadd.f32 %v5136_v52, %v5135_v37  ;;  %v5178_v2 = vrot.slane %v5177_v4, 2  ;;  %v14074_v16 = vld [vmem:[#allocation18_spill] sm:$0xff] }
 0x557   : > { %v5224_v12 = vsel %vm667_vm0, %v4532_v5, 0.0  ;;  %v12150_v23 = vadd.f32 %v5131_v31, %v5130_v18  ;;  %v5191_v38 = vadd.f32 %v5190_v50, %v5189_v14  ;;  %v5197_v27 = vrot.slane %v5196_v7, 4  ;;  %v8923_v52 = vld [vmem:[%s9158_s26 + $0x330] sm:$0xff] }
 0x558   : > { %v5446_v6 = vsel %vm5388_vm7, %v14071_v26, %v5445_v55  ;;  %v4535_v40 = vmul.f32 %v8921_v54, %v14072_v61  ;;  %v5219_v46 = vadd.f32 %v5218_v21, %v5217_v19  ;;  %v5238_v51 = vsel %vm667_vm0, %v4534_v34, 0.0 }
 0x559   : > { %v5451_v37 = vsel %vm5384_vm5, %v12007_v44, %v5450_v13  ;;  %v5204_v39 = vrot.slane %v5203_v9, 4  ;;  %v5225_v18 = vrot.slane %v5224_v12, 4  ;;  %v5231_v32 = vsel %vm667_vm0, %v4533_v1, 0.0 }
 0x55a   : > { %v5212_v25 = vadd.f32 %v5211_v3, %v5210_v45  ;;  %v5138_v42 = vrot.slane %v5137_v43, 1  ;;  %v5179_v59 = vadd.f32 %v5178_v2, %v5177_v4  ;;  %v5447_v48 = vsel %vm5390_vm8, %v11987_v29, %v5446_v6  ;;  %v12171_v4 = vpop.permute.xlu0 %6339  ;;  %v5588_v29 = vld [vmem:[%s13801_s9 + $0x88] sm:$0xff]  ;;  %v5583_v45 = vld [vmem:[%s13801_s9 + $0x60] sm:$0xff] }
 0x55b   : > { %v5528_v30 = vpop.f32.mrf.mxu1  ;;  %v5198_v15 = vadd.f32 %v5197_v27, %v5196_v7  ;;  %v5239_v22 = vrot.slane %v5238_v51, 4  ;;  %v4537_v19 = vmul.f32 %v8922_v8, %v14074_v16  ;;  %v5245_v13 = vsel %vm667_vm0, %v4535_v40, 0.0  ;;  %14076 = vst [vmem:[#allocation30_spill] sm:$0xff] %v12171_v4  ;;  %5754 = vmatpush.msra.mxu1 %v5588_v29  ;;  %v14077_v2 = vld [vmem:[#allocation36_spill] sm:$0xff]  ;;  %v5573_v27 = vld [vmem:[%s13801_s9 + $0x10] sm:$0xff]  ;;  %v12199_v40 = vpop.f32.mrf.mxu2 }
 0x55c   : > { %v5529_v14 = vadd.f32 %v14073_v57, %v5528_v30  ;;  %8105 = vmatmul.msk.f32.gmra.mxu1 %vm667_vm0, %v5447_v48  ;;  %v5232_v33 = vrot.slane %v5231_v32, 4  ;;  %v4536_v0 = vmul.f32 %v8923_v52, %v14075_v17  ;;  %v5220_v5 = vrot.slane %v5219_v46, 2  ;;  %v14082_v52 = vld [vmem:[#allocation22_spill] sm:$0xff] }
 0x55d   : > { %v5192_v24 = vrot.slane %v5191_v38, 2  ;;  %v5205_v63 = vadd.f32 %v5204_v39, %v5203_v9  ;;  %v5226_v31 = vadd.f32 %v5225_v18, %v5224_v12  ;;  %v5452_v50 = vsel %vm5386_vm6, %v11967_v20, %v5451_v37  ;;  %v5578_v9 = vld [vmem:[%s13801_s9 + $0x38] sm:$0xff]  ;;  %5755 = vmatpush.msra.mxu1 %v5583_v45 }
 0x55e   : > { %v12166_v44 = vmax.f32 %v5529_v14, 0.0  ;;  %v5213_v7 = vrot.slane %v5212_v25, 2  ;;  %v5139_v21 = vadd.f32 %v5138_v42, %v5137_v43  ;;  %v5180_v62 = vrot.slane %v5179_v59, 1 }
 0x55f   : > { %v5097_v58 = vadd.f32 %v5096_v60, %v12093_v35  ;;  %v5246_v34 = vrot.slane %v5245_v13, 4  ;;  %v5199_v36 = vrot.slane %v5198_v15, 2  ;;  %v5240_v55 = vadd.f32 %v5239_v22, %v5238_v51  ;;  %5756 = vmatpush.msra.mxu1 %v5578_v9 }
 0x560   : > { %6014 = vperm.xlu2 %8279, %v12166_v44   ;;  %5927 = vperm.xlu0 %8278, %v12166_v44   ;;  %v5259_v20 = vsel %vm667_vm0, %v4537_v19, 0.0  ;;  %v5233_v10 = vadd.f32 %v5232_v33, %v5231_v32  ;;  %v5252_v28 = vsel %vm667_vm0, %v4536_v0, 0.0  ;;  %v5221_v1 = vadd.f32 %v5220_v5, %v5219_v46 }
 0x561   : > { %v5457_v3 = vsel %vm5382_vm4, %v12109_v47, %v5456_v56  ;;  %v5193_v43 = vadd.f32 %v5192_v24, %v5191_v38  ;;  %v5206_v35 = vrot.slane %v5205_v63, 2  ;;  %v5227_v60 = vrot.slane %v5226_v31, 2  ;;  %5757 = vmatpush.msra.mxu1 %v5573_v27  ;;  %v14083_v24 = vld [vmem:[#allocation44_spill] sm:$0xff] }
 0x562   : > { %v5453_v12 = vsel %vm5388_vm7, %v14077_v2, %v5452_v50  ;;  %v5214_v26 = vadd.f32 %v5213_v7, %v5212_v25  ;;  %v5181_v6 = vadd.f32 %v5180_v62, %v5179_v59  ;;  %v5260_v54 = vrot.slane %v5259_v20, 4  ;;  %v14078_v25 = vld [vmem:[#allocation24_spill] sm:$0xff]  ;;  %v12219_v62 = vpop.permute.xlu1 %6396 }
 0x563   : > { %v5454_v61 = vsel %vm5390_vm8, %v5097_v58, %v5453_v12  ;;  %v5253_v47 = vrot.slane %v5252_v28, 4  ;;  %v5200_v56 = vadd.f32 %v5199_v36, %v5198_v15  ;;  %v5241_v38 = vrot.slane %v5240_v55, 2  ;;  %14084 = vst [vmem:[#allocation19_spill] sm:$0xff] %v12219_v62 }
 0x564   : > { %8106 = vmatmul.msk.f32.gmra.mxu1 %vm667_vm0, %v5454_v61  ;;  %v5458_v46 = vsel %vm5384_vm5, %v12150_v23, %v5457_v3  ;;  %v5247_v51 = vadd.f32 %v5246_v34, %v5245_v13  ;;  %v5234_v30 = vrot.slane %v5233_v10, 2  ;;  %v5222_v37 = vrot.slane %v5221_v1, 1  ;;  %v6011_v39 = vpop.permute.xlu0 %6010 }
 0x565   : > { %v5459_v18 = vsel %vm5386_vm6, %v5139_v21, %v5458_v46  ;;  %v5187_v32 = vrot.slane %v12143_v49, 1  ;;  %v5228_v57 = vadd.f32 %v5227_v60, %v5226_v31  ;;  %v6055_v14 = vmul.f32 %v6011_v39, %v12199_v40 }
 0x566   : > { %v14079_v42 = vrot.slane %v14078_v25, 1  ;;  %v14080_v48 = vmov 2   ;;  %v14081_v15 = vmov 5   ;;  %v5194_v23 = vrot.slane %v5193_v43, 1 }
 0x567   : > { %v5207_v22 = vadd.f32 %v5206_v35, %v5205_v63  ;;  %v5215_v8 = vrot.slane %v5214_v26, 1  ;;  %v5261_v16 = vadd.f32 %v5260_v54, %v5259_v20  ;;  %v5254_v19 = vadd.f32 %v5253_v47, %v5252_v28  ;;  %6083 = vrot.lane.b32.xlu1 %v6055_v14, %s9024_s21 }
 0x568   : > { %v5153_v59 = vadd.f32 %v14079_v42, %v14078_v25  ;;  %8280 = vset.pattern.permute.xlu2 %v14080_v48  ;;  %8301 = vset.pattern.permute.xlu0 %v14081_v15  ;;  %v5201_v13 = vrot.slane %v5200_v56, 1  ;;  %v5242_v33 = vadd.f32 %v5241_v38, %v5240_v55  ;;  %v5460_v17 = vsel %vm5388_vm7, %v14082_v52, %v5459_v18 }
 0x569   : > { %6144 = vperm.xlu2 %8280, %v12166_v44   ;;  %v5248_v0 = vrot.slane %v5247_v51, 2  ;;  %v5235_v5 = vadd.f32 %v5234_v30, %v5233_v10  ;;  %v5223_v29 = vadd.f32 %v5222_v37, %v5221_v1  ;;  %v5464_v31 = vsel %vm5382_vm4, %v5181_v6, %v14083_v24  ;;  %v12273_v24 = vpop.permute.xlu2 %6864 }
 0x56a   : > { %v5188_v63 = vadd.f32 %v5187_v32, %v12143_v49  ;;  %v5229_v50 = vrot.slane %v5228_v57, 1  ;;  %v5195_v45 = vadd.f32 %v5194_v23, %v5193_v43  ;;  %v5216_v7 = vadd.f32 %v5215_v8, %v5214_v26  ;;  %v12236_v39 = vpop.permute.xlu1 %6547  ;;  %v12248_v8 = vld [vmem:[%s13800_s8] ss:$0 sm:$0xff]  ;;  %14092 = vst [vmem:[#allocation45_spill] sm:$0xff] %v12273_v24 }
 0x56b   : > { %v5262_v21 = vrot.slane %v5261_v16, 2  ;;  %v5461_v58 = vsel %vm5390_vm8, %v5153_v59, %v5460_v17  ;;  %v5255_v34 = vrot.slane %v5254_v19, 2  ;;  %v5202_v36 = vadd.f32 %v5201_v13, %v5200_v56  ;;  %14086 = vst [vmem:[#allocation40_spill] sm:$0xff] %v12236_v39 }
 0x56c   : > { %v5243_v55 = vrot.slane %v5242_v33, 1  ;;  %8107 = vmatmul.msk.f32.gmra.mxu1 %vm667_vm0, %v5461_v58  ;;  %v5465_v20 = vsel %vm5384_vm5, %v5188_v63, %v5464_v31  ;;  %v5208_v9 = vrot.slane %v5207_v22, 1  ;;  %v5249_v10 = vadd.f32 %v5248_v0, %v5247_v51  ;;  %v8926_v0 = vld [vmem:[%s11042_s27 + $0x8] sm:$0xff]  ;;  %v8927_v31 = vld [vmem:[%s11042_s27 + $0x10] sm:$0xff] }
 0x56d   : > { %v5236_v28 = vrot.slane %v5235_v5, 1  ;;  %v5469_v49 = vsel %vm5378_vm2, %v5223_v29, %v5216_v7  ;;  %v5230_v1 = vadd.f32 %v5229_v50, %v5228_v57  ;;  %v6141_v3 = vpop.permute.xlu0 %6140  ;;  %v5263_v43 = vadd.f32 %v5262_v21, %v5261_v16  ;;  %v8928_v50 = vld [vmem:[%s11042_s27 + $0x18] sm:$0xff]  ;;  %v12287_v21 = vpop.f32.mrf.mxu3 }
 0x56e   : > { %v6185_v35 = vmul.f32 %v6141_v3, %v12199_v40  ;;  %v5466_v60 = vsel %vm5386_vm6, %v5195_v45, %v5465_v20  ;;  %v14085_v2 = vmov 3   ;;  %v5256_v12 = vadd.f32 %v5255_v34, %v5254_v19  ;;  %14095 = vst [vmem:[#allocation46_spill] sm:$0xff] %v12287_v21  ;;  %v8929_v34 = vld [vmem:[%s11042_s27 + $0x20] sm:$0xff]  ;;  %v8931_v3 = vld [vmem:[%s11042_s27 + $0x30] sm:$0xff] }
 0x56f   : > { %v5244_v27 = vadd.f32 %v5243_v55, %v5242_v33  ;;  %v5467_v26 = vsel %vm5388_vm7, %v5202_v36, %v5466_v60  ;;  %v5470_v6 = vsel %vm5380_vm3, %v5230_v1, %v5469_v49  ;;  %v5250_v54 = vrot.slane %v5249_v10, 1  ;;  %v8925_v33 = vld [vmem:[%s11042_s27] sm:$0xff] }
 0x570   : > { %v5237_v61 = vadd.f32 %v5236_v28, %v5235_v5  ;;  %6213 = vrot.lane.b32.xlu1 %v6185_v35, %s9025_s29  ;;  %v5209_v47 = vadd.f32 %v5208_v9, %v5207_v22  ;;  %v5264_v56 = vrot.slane %v5263_v43, 1  ;;  %v5257_v51 = vrot.slane %v5256_v12, 1  ;;  %v8932_v35 = vld [vmem:[%s11042_s27 + $0x38] sm:$0xff] }
 0x571   : > { %8281 = vset.pattern.permute.xlu2 %v14085_v2  ;;  %v5251_v37 = vadd.f32 %v5250_v54, %v5249_v10  ;;  %v14087_v42 = vmov 4   ;;  %v14090_v17 = vmov 6   ;;  %v14091_v29 = vmov 7   ;;  %v8930_v10 = vld [vmem:[%s11042_s27 + $0x28] sm:$0xff] }
 0x572   : > { %6274 = vperm.xlu2 %8281, %v12166_v44   ;;  %v5468_v38 = vsel %vm5390_vm8, %v5209_v47, %v5467_v26  ;;  %v5471_v46 = vsel %vm5382_vm4, %v5237_v61, %v5470_v6  ;;  %v5265_v32 = vadd.f32 %v5264_v56, %v5263_v43  ;;  %v5258_v14 = vadd.f32 %v5257_v51, %v5256_v12  ;;  %v12252_v19 = vpop.permute.xlu1 %6677  ;;  %v8933_v6 = vld [vmem:[%s11042_s27 + $0x40] sm:$0xff]  ;;  %v8934_v47 = vld [vmem:[%s11042_s27 + $0x48] sm:$0xff] }
 0x573   : > { %v5472_v30 = vsel %vm5384_vm5, %v5244_v27, %v5471_v46  ;;  %14088 = vst [vmem:[#allocation9_spill] sm:$0xff] %v12252_v19  ;;  %v14094_v7 = vmov 8   ;;  %v14097_v20 = vmov 0   ;;  %v14099_v54 = vmov 1   ;;  %v8935_v46 = vld [vmem:[%s11042_s27 + $0x50] sm:$0xff] }
 0x574   : > { %8108 = vmatmul.msk.f32.gmra.mxu1 %vm667_vm0, %v5468_v38  ;;  %v5473_v57 = vsel %vm5386_vm6, %v5251_v37, %v5472_v30 }
 0x575   : > { %v5474_v23 = vsel %vm5388_vm7, %v5258_v14, %v5473_v57  ;;  %v12346_v30 = vpop.f32.mrf.mxu3  ;;  %v12356_v14 = vpop.f32.mrf.mxu2 }
 0x576   : > { %v5475_v22 = vsel %vm5390_vm8, %v5265_v32, %v5474_v23 }
 0x577   : > { %v6271_v18 = vpop.permute.xlu0 %6270 }
 0x578   : > { %v6315_v25 = vmul.f32 %v6271_v18, %v12199_v40  ;;  %v5531_v59 = vpop.f32.mrf.mxu1  ;;  %v8936_v18 = vld [vmem:[%s11042_s27 + $0x58] sm:$0xff] }
 0x579   : > { %v5532_v16 = vadd.f32 %v12248_v8, %v5531_v59 }
 0x57a   : > { %8282 = vset.pattern.permute.xlu2 %v14087_v42  ;;  %6343 = vrot.lane.b32.xlu1 %v6315_v25, %s9026_s25  ;;  %v12261_v52 = vpop.permute.xlu1 %6807  ;;  %v8937_v25 = vld [vmem:[%s11042_s27 + $0x60] sm:$0xff] }
 0x57b   : > { %6404 = vperm.xlu2 %8282, %v12166_v44   ;;  %v12254_v13 = vmax.f32 %v5532_v16, 0.0  ;;  %14089 = vst [vmem:[#allocation28_spill] sm:$0xff] %v12261_v52 }
 0x57c   : > { %8109 = vmatmul.msk.f32.gmra.mxu1 %vm667_vm0, %v5475_v22 }
 0x582   : > { %6018 = vperm.xlu1 %8288, %v12254_v13   ;;  %v12269_v5 = vpop.permute.xlu1 %5922 }
 0x583   : > { %8283 = vset.pattern.permute.xlu2 %v14081_v15 }
 0x584   : > { %6482 = vperm.xlu2 %8283, %v12166_v44   ;;  %8136 = vmatmul.msk.f32.vlgmr.msra.gmra.mxu1 %vm667_vm0, %v8925_v33 }
 0x58a   : > { %8289 = vset.pattern.permute.xlu1 %v14080_v48  ;;  %v6479_v45 = vpop.permute.xlu1 %6478 }
 0x58b   : > { %6148 = vperm.xlu1 %8289, %v12254_v13   ;;  %v6523_v58 = vmul.f32 %v6479_v45, %v12287_v21 }
 0x58c   : > { %8284 = vset.pattern.permute.xlu2 %v14090_v17  ;;  %8137 = vmatmul.msk.f32.gmra.mxu1 %vm667_vm0, %v8926_v0 }
 0x58d   : > { %6612 = vperm.xlu2 %8284, %v12166_v44  }
 0x592   : > { %v6609_v55 = vpop.permute.xlu1 %6608 }
 0x593   : > { %8290 = vset.pattern.permute.xlu1 %v14085_v2  ;;  %v6653_v9 = vmul.f32 %v6609_v55, %v12287_v21 }
 0x594   : > { %8138 = vmatmul.msk.f32.gmra.mxu1 %vm667_vm0, %v8927_v31  ;;  %6278 = vperm.xlu1 %8290, %v12254_v13   ;;  %v12279_v63 = vpop.permute.xlu2 %6081 }
 0x595   : > { %8285 = vset.pattern.permute.xlu2 %v14091_v29  ;;  %14093 = vst [vmem:[#allocation25_spill] sm:$0xff] %v12279_v63 }
 0x596   : > { %6742 = vperm.xlu2 %8285, %v12166_v44  }
 0x59a   : > { %v6739_v49 = vpop.permute.xlu1 %6738 }
 0x59b   : > { %v6783_v1 = vmul.f32 %v6739_v49, %v12287_v21 }
 0x59c   : > { %8139 = vmatmul.msk.f32.gmra.mxu1 %vm667_vm0, %v8928_v50  ;;  %8291 = vset.pattern.permute.xlu1 %v14087_v42 }
 0x59d   : > { %6408 = vperm.xlu1 %8291, %v12254_v13  }
 0x59e   : > { %8286 = vset.pattern.permute.xlu2 %v14094_v7 }
 0x59f   : > { %6872 = vperm.xlu2 %8286, %v12166_v44  }
 0x5a1   : > { %v12293_v36 = vpop.permute.xlu2 %6211 }
 0x5a2   : > { %14096 = vst [vmem:[#allocation47_spill] sm:$0xff] %v12293_v36  ;;  %v12334_v56 = vpop.permute.xlu1 %6868 }
 0x5a3   : > { %14100 = vst [vmem:[#allocation26_spill] sm:$0xff] %v12334_v56 }
 0x5a4   : > { %8140 = vmatmul.msk.f32.gmra.mxu1 %vm667_vm0, %v8929_v34 }
 0x5a5   : > { %8292 = vset.pattern.permute.xlu1 %v14081_v15 }
 0x5a6   : > { %6486 = vperm.xlu1 %8292, %v12254_v13  }
 0x5a7   : > { %6551 = vrot.lane.b32.xlu2 %v6523_v58, %s9024_s21 }
 0x5a8   : > { %8287 = vset.pattern.permute.xlu2 %v14097_v20 }
 0x5aa   : > { %v12304_v28 = vpop.permute.xlu2 %6341 }
 0x5ab   : > { %14098 = vst [vmem:[#allocation6_spill] sm:$0xff] %v12304_v28 }
 0x5ac   : > { %8141 = vmatmul.msk.f32.gmra.mxu1 %vm667_vm0, %v8930_v10 }
 0x5ae   : > { %8293 = vset.pattern.permute.xlu1 %v14090_v17 }
 0x5af   : > { %6681 = vrot.lane.b32.xlu2 %v6653_v9, %s9025_s29  ;;  %6616 = vperm.xlu1 %8293, %v12254_v13  }
 0x5b4   : > { %8142 = vmatmul.msk.f32.gmra.mxu1 %vm667_vm0, %v8931_v3 }
 0x5b7   : > { %6811 = vrot.lane.b32.xlu2 %v6783_v1, %s9026_s25  ;;  %8294 = vset.pattern.permute.xlu1 %v14091_v29 }
 0x5b8   : > { %6746 = vperm.xlu1 %8294, %v12254_v13  }
 0x5ba   : > { %v6015_v43 = vpop.permute.xlu2 %6014 }
 0x5bb   : > { %v6056_v33 = vmul.f32 %v6015_v43, %v12356_v14 }
 0x5bc   : > { %8143 = vmatmul.msk.f32.gmra.mxu1 %vm667_vm0, %v8932_v35 }
 0x5bf   : > { %5932 = vperm.xlu2 %8287, %v12254_v13  }
 0x5c0   : > { %8295 = vset.pattern.permute.xlu1 %v14094_v7  ;;  %v5534_v60 = vpop.f32.mrf.mxu1 }
 0x5c1   : > { %6876 = vperm.xlu1 %8295, %v12254_v13   ;;  %v5535_v27 = vadd.f32 %v12248_v8, %v5534_v60 }
 0x5c3   : > { %v6145_v12 = vpop.permute.xlu2 %6144  ;;  %v12318_v26 = vmax.f32 %v5535_v27, 0.0  ;;  %v12405_v27 = vpop.permute.xlu0 %6400 }
 0x5c4   : > { %8144 = vmatmul.msk.f32.gmra.mxu1 %vm667_vm0, %v8933_v6  ;;  %v6186_v31 = vmul.f32 %v6145_v12, %v12356_v14  ;;  %14104 = vst [vmem:[#allocation31_spill] sm:$0xff] %v12405_v27 }
 0x5c5   : > { %6490 = vperm.xlu0 %8301, %v12318_v26  }
 0x5c7   : > { %8297 = vset.pattern.permute.xlu2 %v14099_v54 }
 0x5c8   : > { %6022 = vperm.xlu2 %8297, %v12318_v26   ;;  %v5537_v57 = vpop.f32.mrf.mxu1 }
 0x5c9   : > { %8296 = vset.pattern.permute.xlu1 %v14097_v20  ;;  %v5538_v59 = vadd.f32 %v12248_v8, %v5537_v57 }
 0x5ca   : > { %5937 = vperm.xlu1 %8296, %v12318_v26  }
 0x5cb   : > { %v12366_v0 = vmax.f32 %v5538_v59, 0.0 }
 0x5cc   : > { %v6275_v61 = vpop.permute.xlu2 %6274  ;;  %8145 = vmatmul.msk.f32.gmra.mxu1 %vm667_vm0, %v8934_v47 }
 0x5cd   : > { %8302 = vset.pattern.permute.xlu0 %v14090_v17  ;;  %v6316_v34 = vmul.f32 %v6275_v61, %v12356_v14 }
 0x5ce   : > { %6620 = vperm.xlu0 %8302, %v12318_v26  }
 0x5d0   : > { %8298 = vset.pattern.permute.xlu2 %v14080_v48 }
 0x5d1   : > { %6152 = vperm.xlu2 %8298, %v12318_v26   ;;  %v5540_v10 = vpop.f32.mrf.mxu1 }
 0x5d2   : > { %8306 = vset.pattern.permute.xlu1 %v14099_v54  ;;  %v5541_v49 = vadd.f32 %v12248_v8, %v5540_v10 }
 0x5d4   : > { %8146 = vmatmul.msk.f32.gmra.mxu1 %vm667_vm0, %v8935_v46  ;;  %v12397_v43 = vmax.f32 %v5541_v49, 0.0  ;;  %v12420_v46 = vpop.permute.xlu0 %6549 }
 0x5d5   : > { %v12336_v38 = vpop.permute.xlu2 %6404  ;;  %14106 = vst [vmem:[#allocation15_spill] sm:$0xff] %v12420_v46 }
 0x5d6   : > { %8303 = vset.pattern.permute.xlu0 %v14091_v29 }
 0x5d7   : > { %6750 = vperm.xlu0 %8303, %v12318_v26  }
 0x5d9   : > { %8299 = vset.pattern.permute.xlu2 %v14085_v2  ;;  %v12344_v51 = vpop.permute.xlu1 %6083  ;;  %v5543_v35 = vpop.f32.mrf.mxu1 }
 0x5da   : > { %6282 = vperm.xlu2 %8299, %v12318_v26   ;;  %v5544_v12 = vadd.f32 %v12248_v8, %v5543_v35 }
 0x5dc   : > { %8147 = vmatmul.msk.f32.gmra.mxu1 %vm667_vm0, %v8936_v18  ;;  %v12410_v6 = vmax.f32 %v5544_v12, 0.0 }
 0x5de   : > { %v6483_v37 = vpop.permute.xlu2 %6482 }
 0x5df   : > { %v6524_v32 = vmul.f32 %v6483_v37, %v12346_v30  ;;  %8304 = vset.pattern.permute.xlu0 %v14094_v7 }
 0x5e0   : > { %6880 = vperm.xlu0 %8304, %v12318_v26  }
 0x5e1   : > { %6553 = vrot.lane.b32.xlu1 %v6524_v32, %s9024_s21  ;;  %v12433_v32 = vpop.permute.xlu0 %6679 }
 0x5e2   : > { %8300 = vset.pattern.permute.xlu2 %v14087_v42  ;;  %v12361_v23 = vpop.permute.xlu1 %6213  ;;  %14109 = vst [vmem:[#allocation7_spill] sm:$0xff] %v12433_v32 }
 0x5e3   : > { %6412 = vperm.xlu2 %8300, %v12318_v26  }
 0x5e4   : > { %8148 = vmatmul.msk.f32.gmra.mxu1 %vm667_vm0, %v8937_v25 }
 0x5e7   : > { %v6613_v22 = vpop.permute.xlu2 %6612 }
 0x5e8   : > { %v6654_v16 = vmul.f32 %v6613_v22, %v12346_v30  ;;  %6085 = vrot.lane.b32.xlu0 %v6056_v33, %s9024_s21  ;;  %v5546_v22 = vpop.f32.mrf.mxu1 }
 0x5e9   : > { %8305 = vset.pattern.permute.xlu0 %v14097_v20  ;;  %v12446_v59 = vpop.permute.xlu0 %6809 }
 0x5ea   : > { %6683 = vrot.lane.b32.xlu1 %v6654_v16, %s9025_s29  ;;  %14110 = vst [vmem:[#allocation38_spill] sm:$0xff] %v12446_v59 }
 0x5eb   : > { %8310 = vset.pattern.permute.xlu2 %v14081_v15 }
 0x5ec   : > { %6494 = vperm.xlu2 %8310, %v12366_v0   ;;  %v12373_v50 = vpop.permute.xlu1 %6343 }
 0x5ed   : > { %14101 = vst [vmem:[#allocation5_spill] sm:$0xff] %v12373_v50 }
 0x5f0   : > { %v6743_v45 = vpop.permute.xlu2 %6742  ;;  %6215 = vrot.lane.b32.xlu0 %v6186_v31, %s9025_s29  ;;  %v5547_v31 = vadd.f32 %v12248_v8, %v5546_v22 }
 0x5f1   : > { %v6784_v58 = vmul.f32 %v6743_v45, %v12346_v30  ;;  %v12458_v45 = vpop.permute.xlu0 %5927 }
 0x5f3   : > { %6813 = vrot.lane.b32.xlu1 %v6784_v58, %s9026_s25  ;;  %v12461_v58 = vmax.f32 %v5547_v31, 0.0  ;;  %v5549_v31 = vpop.f32.mrf.mxu1 }
 0x5f4   : > { %8311 = vset.pattern.permute.xlu2 %v14090_v17  ;;  %v12383_v9 = vpop.permute.xlu1 %6018  ;;  %v5550_v19 = vadd.f32 %v12248_v8, %v5549_v31 }
 0x5f5   : > { %6624 = vperm.xlu2 %8311, %v12366_v0   ;;  %14111 = vst [vmem:[#allocation10_spill] sm:$0xff] %v12461_v58 }
 0x5f6   : > { %v12500_v4 = vmax.f32 %v5550_v19, 0.0 }
 0x5f8   : > { %6345 = vrot.lane.b32.xlu0 %v6316_v34, %s9026_s25 }
 0x5f9   : > { %v12381_v55 = vpop.permute.xlu2 %6872 }
 0x5fb   : > { %6026 = vperm.xlu1 %8306, %v12366_v0   ;;  %v5552_v24 = vpop.f32.mrf.mxu1 }
 0x5fc   : > { %v5553_v53 = vadd.f32 %v12248_v8, %v5552_v24 }
 0x5fd   : > { %8312 = vset.pattern.permute.xlu2 %v14091_v29  ;;  %v12394_v3 = vpop.permute.xlu1 %6148 }
 0x5fe   : > { %6754 = vperm.xlu2 %8312, %v12366_v0   ;;  %v12515_v19 = vmax.f32 %v5553_v53, 0.0 }
 0x600   : > { %5942 = vperm.xlu0 %8305, %v12366_v0  }
 0x601   : > { %v12390_v1 = vpop.permute.xlu2 %6551 }
 0x602   : > { %14102 = vst [vmem:[#allocation8_spill] sm:$0xff] %v12390_v1 }
 0x603   : > { %8307 = vset.pattern.permute.xlu1 %v14080_v48 }
 0x604   : > { %6156 = vperm.xlu1 %8307, %v12366_v0  }
 0x606   : > { %8313 = vset.pattern.permute.xlu2 %v14097_v20  ;;  %v12412_v61 = vpop.permute.xlu1 %6278 }
 0x607   : > { %5947 = vperm.xlu2 %8313, %v12397_v43  }
 0x608   : > { %8314 = vset.pattern.permute.xlu0 %v14099_v54 }
 0x609   : > { %v12401_v60 = vpop.permute.xlu2 %6681  ;;  %6030 = vperm.xlu0 %8314, %v12397_v43  }
 0x60a   : > { %14103 = vst [vmem:[#allocation21_spill] sm:$0xff] %v12401_v60 }
 0x60c   : > { %8308 = vset.pattern.permute.xlu1 %v14085_v2 }
 0x60d   : > { %6286 = vperm.xlu1 %8308, %v12366_v0  }
 0x60f   : > { %8322 = vset.pattern.permute.xlu2 %v14099_v54  ;;  %v12424_v37 = vpop.permute.xlu1 %6408 }
 0x610   : > { %6034 = vperm.xlu2 %8322, %v12410_v6   ;;  %14107 = vst [vmem:[#allocation13_spill] sm:$0xff] %v12424_v37  ;;  %v5555_v37 = vpop.f32.mrf.mxu1 }
 0x611   : > { %v12416_v47 = vpop.permute.xlu2 %6811  ;;  %8315 = vset.pattern.permute.xlu0 %v14080_v48 }
 0x612   : > { %14105 = vst [vmem:[#allocation12_spill] sm:$0xff] %v12416_v47  ;;  %6160 = vperm.xlu0 %8315, %v12397_v43  }
 0x615   : > { %8309 = vset.pattern.permute.xlu1 %v14087_v42 }
 0x616   : > { %6416 = vperm.xlu1 %8309, %v12366_v0  }
 0x618   : > { %8323 = vset.pattern.permute.xlu2 %v14080_v48  ;;  %v12437_v57 = vpop.permute.xlu1 %6486 }
 0x619   : > { %v12427_v18 = vpop.permute.xlu2 %5932  ;;  %6164 = vperm.xlu2 %8323, %v12410_v6  }
 0x61a   : > { %14108 = vst [vmem:[#allocation48_spill] sm:$0xff] %v12427_v18  ;;  %8316 = vset.pattern.permute.xlu0 %v14085_v2  ;;  %v5556_v18 = vadd.f32 %v12248_v8, %v5555_v37 }
 0x61b   : > { %6290 = vperm.xlu0 %8316, %v12397_v43  }
 0x61c   : > { %v12566_v47 = vmax.f32 %v5556_v18, 0.0 }
 0x61e   : > { %8318 = vset.pattern.permute.xlu1 %v14081_v15  ;;  %14116 = vst [vmem:[#allocation11_spill] sm:$0xff] %v12566_v47 }
 0x61f   : > { %6498 = vperm.xlu1 %8318, %v12397_v43  }
 0x621   : > { %8324 = vset.pattern.permute.xlu2 %v14085_v2  ;;  %v12452_v33 = vpop.permute.xlu1 %6616 }
 0x622   : > { %6294 = vperm.xlu2 %8324, %v12410_v6   ;;  %v12440_v25 = vpop.permute.xlu2 %6022 }
 0x623   : > { %8317 = vset.pattern.permute.xlu0 %v14087_v42 }
 0x624   : > { %6420 = vperm.xlu0 %8317, %v12397_v43  }
 0x627   : > { %8319 = vset.pattern.permute.xlu1 %v14090_v17 }
 0x628   : > { %6628 = vperm.xlu1 %8319, %v12397_v43  }
 0x62a   : > { %8325 = vset.pattern.permute.xlu2 %v14087_v42  ;;  %v12467_v10 = vpop.permute.xlu1 %6746 }
 0x62b   : > { %6424 = vperm.xlu2 %8325, %v12410_v6   ;;  %v12450_v16 = vpop.permute.xlu2 %6152 }
 0x62c   : > { %8326 = vset.pattern.permute.xlu0 %v14081_v15 }
 0x62d   : > { %6502 = vperm.xlu0 %8326, %v12410_v6  }
 0x630   : > { %8320 = vset.pattern.permute.xlu1 %v14091_v29 }
 0x631   : > { %6758 = vperm.xlu1 %8320, %v12397_v43  }
 0x633   : > { %8334 = vset.pattern.permute.xlu2 %v14081_v15  ;;  %v12479_v12 = vpop.permute.xlu1 %6876 }
 0x634   : > { %6506 = vperm.xlu2 %8334, %v12461_v58   ;;  %v12465_v34 = vpop.permute.xlu2 %6282  ;;  %14113 = vst [vmem:[#allocation49_spill] sm:$0xff] %v12479_v12 }
 0x635   : > { %8327 = vset.pattern.permute.xlu0 %v14090_v17 }
 0x636   : > { %6632 = vperm.xlu0 %8327, %v12410_v6  }
 0x637   : > { %v12471_v49 = vpop.permute.xlu0 %6490 }
 0x639   : > { %8321 = vset.pattern.permute.xlu1 %v14097_v20 }
 0x63a   : > { %5952 = vperm.xlu1 %8321, %v12410_v6  }
 0x63c   : > { %8335 = vset.pattern.permute.xlu2 %v14090_v17  ;;  %v12493_v39 = vpop.permute.xlu1 %5937 }
 0x63d   : > { %6636 = vperm.xlu2 %8335, %v12461_v58   ;;  %v12477_v35 = vpop.permute.xlu2 %6412 }
 0x63e   : > { %14112 = vst [vmem:[#allocation20_spill] sm:$0xff] %v12477_v35  ;;  %8328 = vset.pattern.permute.xlu0 %v14091_v29 }
 0x63f   : > { %6762 = vperm.xlu0 %8328, %v12410_v6  }
 0x640   : > { %v12483_v22 = vpop.permute.xlu0 %6620 }
 0x642   : > { %8330 = vset.pattern.permute.xlu1 %v14099_v54 }
 0x643   : > { %6038 = vperm.xlu1 %8330, %v12461_v58  }
 0x645   : > { %8336 = vset.pattern.permute.xlu2 %v14091_v29 }
 0x646   : > { %6766 = vperm.xlu2 %8336, %v12461_v58   ;;  %v12489_v52 = vpop.permute.xlu2 %6494 }
 0x647   : > { %8329 = vset.pattern.permute.xlu0 %v14097_v20 }
 0x648   : > { %5957 = vperm.xlu0 %8329, %v12461_v58  }
 0x649   : > { %v12496_v59 = vpop.permute.xlu0 %6750 }
 0x64b   : > { %8331 = vset.pattern.permute.xlu1 %v14080_v48 }
 0x64c   : > { %6168 = vperm.xlu1 %8331, %v12461_v58  }
 0x64e   : > { %8337 = vset.pattern.permute.xlu2 %v14097_v20 }
 0x64f   : > { %5962 = vperm.xlu2 %8337, %v12500_v4   ;;  %v12504_v31 = vpop.permute.xlu2 %6624 }
 0x650   : > { %8338 = vset.pattern.permute.xlu0 %v14099_v54 }
 0x651   : > { %6042 = vperm.xlu0 %8338, %v12500_v4  }
 0x652   : > { %v12511_v11 = vpop.permute.xlu0 %6880 }
 0x653   : > { %v12508_v32 = vpop.permute.xlu1 %6553  ;;  %14114 = vst [vmem:[#allocation52_spill] sm:$0xff] %v12511_v11 }
 0x654   : > { %8332 = vset.pattern.permute.xlu1 %v14085_v2 }
 0x655   : > { %6298 = vperm.xlu1 %8332, %v12461_v58  }
 0x657   : > { %8346 = vset.pattern.permute.xlu2 %v14099_v54 }
 0x658   : > { %6046 = vperm.xlu2 %8346, %v12515_v19   ;;  %v12519_v46 = vpop.permute.xlu2 %6754 }
 0x659   : > { %8339 = vset.pattern.permute.xlu0 %v14080_v48 }
 0x65a   : > { %6172 = vperm.xlu0 %8339, %v12500_v4   ;;  %v12525_v62 = vpop.permute.xlu0 %6085 }
 0x65c   : > { %v12522_v24 = vpop.permute.xlu1 %6683 }
 0x65d   : > { %8333 = vset.pattern.permute.xlu1 %v14087_v42 }
 0x65e   : > { %6428 = vperm.xlu1 %8333, %v12461_v58  }
 0x660   : > { %8347 = vset.pattern.permute.xlu2 %v14080_v48 }
 0x661   : > { %6176 = vperm.xlu2 %8347, %v12515_v19   ;;  %v12531_v53 = vpop.permute.xlu2 %5947 }
 0x662   : > { %14115 = vst [vmem:[#allocation37_spill] sm:$0xff] %v12531_v53  ;;  %8340 = vset.pattern.permute.xlu0 %v14085_v2  ;;  %v12534_v28 = vpop.permute.xlu0 %6215 }
 0x663   : > { %6302 = vperm.xlu0 %8340, %v12500_v4  }
 0x665   : > { %v12537_v36 = vpop.permute.xlu1 %6813 }
 0x666   : > { %8342 = vset.pattern.permute.xlu1 %v14081_v15 }
 0x667   : > { %6510 = vperm.xlu1 %8342, %v12500_v4  }
 0x669   : > { %8348 = vset.pattern.permute.xlu2 %v14085_v2 }
 0x66a   : > { %6306 = vperm.xlu2 %8348, %v12515_v19   ;;  %v12543_v63 = vpop.permute.xlu2 %6034  ;;  %v12545_v41 = vpop.permute.xlu0 %6345 }
 0x66b   : > { %8341 = vset.pattern.permute.xlu0 %v14087_v42 }
 0x66c   : > { %6432 = vperm.xlu0 %8341, %v12500_v4  }
 0x66d   : > { %v12548_v12 = vpop.permute.xlu1 %6026 }
 0x66f   : > { %8343 = vset.pattern.permute.xlu1 %v14090_v17 }
 0x670   : > { %6640 = vperm.xlu1 %8343, %v12500_v4  }
 0x672   : > { %8349 = vset.pattern.permute.xlu2 %v14087_v42  ;;  %v12557_v11 = vpop.permute.xlu0 %5942 }
 0x673   : > { %6436 = vperm.xlu2 %8349, %v12515_v19   ;;  %v12555_v53 = vpop.permute.xlu2 %6164 }
 0x674   : > { %8350 = vset.pattern.permute.xlu0 %v14081_v15 }
 0x675   : > { %6514 = vperm.xlu0 %8350, %v12515_v19  }
 0x676   : > { %v12561_v56 = vpop.permute.xlu1 %6156 }
 0x678   : > { %8344 = vset.pattern.permute.xlu1 %v14091_v29 }
 0x679   : > { %6770 = vperm.xlu1 %8344, %v12500_v4  }
 0x67b   : > { %8358 = vset.pattern.permute.xlu2 %v14081_v15  ;;  %v12572_v60 = vpop.permute.xlu0 %6030 }
 0x67c   : > { %6518 = vperm.xlu2 %8358, %v12566_v47   ;;  %v12570_v35 = vpop.permute.xlu2 %6294 }
 0x67d   : > { %8351 = vset.pattern.permute.xlu0 %v14090_v17 }
 0x67e   : > { %6644 = vperm.xlu0 %8351, %v12515_v19  }
 0x67f   : > { %v12575_v8 = vpop.permute.xlu1 %6286 }
 0x681   : > { %8345 = vset.pattern.permute.xlu1 %v14097_v20 }
 0x682   : > { %5967 = vperm.xlu1 %8345, %v12515_v19  }
 0x684   : > { %8359 = vset.pattern.permute.xlu2 %v14090_v17  ;;  %v12584_v37 = vpop.permute.xlu0 %6160 }
 0x685   : > { %6648 = vperm.xlu2 %8359, %v12566_v47   ;;  %v12582_v15 = vpop.permute.xlu2 %6424 }
 0x686   : > { %14117 = vst [vmem:[#allocation51_spill] sm:$0xff] %v12582_v15  ;;  %8352 = vset.pattern.permute.xlu0 %v14091_v29  ;;  %v12598_v15 = vpop.f32.mrf.mxu2 }
 0x687   : > { %6774 = vperm.xlu0 %8352, %v12515_v19   ;;  %14119 = vst [vmem:[#allocation57_spill] sm:$0xff] %v12598_v15 }
 0x688   : > { %v12587_v18 = vpop.permute.xlu1 %6416 }
 0x689   : > { %14118 = vst [vmem:[#allocation16_spill] sm:$0xff] %v12587_v18 }
 0x68a   : > { %8354 = vset.pattern.permute.xlu1 %v14099_v54  ;;  %v6057_v54 = vmul.f32 %v12383_v9, %v12598_v15  ;;  %v6187_v9 = vmul.f32 %v12394_v3, %v12598_v15  ;;  %v6317_v3 = vmul.f32 %v12412_v61, %v12598_v15 }
 0x68b   : > { %6050 = vperm.xlu1 %8354, %v12566_v47  }
 0x68d   : > { %8360 = vset.pattern.permute.xlu2 %v14091_v29  ;;  %v12596_v1 = vpop.permute.xlu0 %6290  ;;  %v12609_v29 = vpop.f32.mrf.mxu3 }
 0x68e   : > { %6778 = vperm.xlu2 %8360, %v12566_v47   ;;  %v12594_v17 = vpop.permute.xlu2 %6506  ;;  %14120 = vst [vmem:[#allocation43_spill] sm:$0xff] %v12609_v29 }
 0x68f   : > { %8353 = vset.pattern.permute.xlu0 %v14097_v20  ;;  %v6525_v20 = vmul.f32 %v12437_v57, %v12609_v29  ;;  %v6655_v57 = vmul.f32 %v12452_v33, %v12609_v29  ;;  %v6785_v33 = vmul.f32 %v12467_v10, %v12609_v29 }
 0x690   : > { %5972 = vperm.xlu0 %8353, %v12566_v47  }
 0x691   : > { %v12601_v27 = vpop.permute.xlu1 %6498 }
 0x693   : > { %8355 = vset.pattern.permute.xlu1 %v14080_v48 }
 0x694   : > { %6180 = vperm.xlu1 %8355, %v12566_v47  }
 0x695   : > { %v12650_v50 = vpop.f32.mrf.mxu3 }
 0x696   : > { %6087 = vrot.lane.b32.xlu2 %v6057_v54, %s9024_s21  ;;  %v12616_v21 = vpop.permute.xlu0 %6420  ;;  %v6526_v61 = vmul.f32 %v12471_v49, %v12650_v50 }
 0x697   : > { %v12611_v18 = vpop.permute.xlu2 %6636  ;;  %8361 = vset.pattern.permute.xlu2 %v14094_v7  ;;  %14121 = vst [vmem:[#allocation23_spill] sm:$0xff] %v12616_v21 }
 0x698   : > { %6555 = vrot.lane.b32.xlu0 %v6525_v20, %s9024_s21 }
 0x699   : > { %8363 = vset.pattern.permute.xlu0 %v14094_v7 }
 0x69a   : > { %v12619_v48 = vpop.permute.xlu1 %6628 }
 0x69c   : > { %8356 = vset.pattern.permute.xlu1 %v14085_v2  ;;  %v12641_v2 = vpop.f32.mrf.mxu2 }
 0x69d   : > { %6310 = vperm.xlu1 %8356, %v12566_v47   ;;  %v6188_v49 = vmul.f32 %v12450_v16, %v12641_v2  ;;  %v6786_v16 = vmul.f32 %v12496_v59, %v12650_v50 }
 0x69e   : > { %6217 = vrot.lane.b32.xlu2 %v6187_v9, %s9025_s29 }
 0x69f   : > { %v12631_v21 = vpop.permute.xlu0 %6502 }
 0x6a0   : > { %v12629_v54 = vpop.permute.xlu2 %6766  ;;  %6685 = vrot.lane.b32.xlu0 %v6655_v57, %s9025_s29 }
 0x6a3   : > { %v12634_v20 = vpop.permute.xlu1 %6758 }
 0x6a4   : > { %v12660_v10 = vpop.f32.mrf.mxu2 }
 0x6a5   : > { %8357 = vset.pattern.permute.xlu1 %v14087_v42  ;;  %v6058_v42 = vmul.f32 %v12440_v25, %v12641_v2 }
 0x6a6   : > { %6440 = vperm.xlu1 %8357, %v12566_v47   ;;  %6347 = vrot.lane.b32.xlu2 %v6317_v3, %s9026_s25 }
 0x6a8   : > { %6815 = vrot.lane.b32.xlu0 %v6785_v33, %s9026_s25  ;;  %v12648_v57 = vpop.permute.xlu0 %6632  ;;  %v6059_v33 = vmul.f32 %v12548_v12, %v12660_v10 }
 0x6a9   : > { %v12645_v9 = vpop.permute.xlu2 %5962 }
 0x6aa   : > { %14122 = vst [vmem:[#allocation35_spill] sm:$0xff] %v12645_v9 }
 0x6ac   : > { %v12656_v3 = vpop.permute.xlu1 %5952 }
 0x6ad   : > { %14123 = vst [vmem:[#allocation56_spill] sm:$0xff] %v12656_v3 }
 0x6ae   : > { %6089 = vrot.lane.b32.xlu1 %v6058_v42, %s9024_s21  ;;  %6557 = vrot.lane.b32.xlu2 %v6526_v61, %s9024_s21  ;;  %v6656_v42 = vmul.f32 %v12483_v22, %v12650_v50  ;;  %v12687_v22 = vpop.f32.mrf.mxu3 }
 0x6af   : > { %8362 = vset.pattern.permute.xlu1 %v14094_v7  ;;  %v6189_v7 = vmul.f32 %v12561_v56, %v12660_v10  ;;  %14125 = vst [vmem:[#allocation18_spill] sm:$0xff] %v12687_v22  ;;  %v6319_v56 = vmul.f32 %v12575_v8, %v12660_v10 }
 0x6b0   : > { %6091 = vrot.lane.b32.xlu0 %v6059_v33, %s9024_s21  ;;  %v6318_v33 = vmul.f32 %v12465_v34, %v12641_v2  ;;  %v6527_v34 = vmul.f32 %v12489_v52, %v12687_v22  ;;  %v6657_v52 = vmul.f32 %v12504_v31, %v12687_v22 }
 0x6b1   : > { %v12668_v25 = vpop.permute.xlu0 %6762 }
 0x6b2   : > { %v12666_v9 = vpop.permute.xlu2 %6046 }
 0x6b5   : > { %v6039_v61 = vpop.permute.xlu1 %6038 }
 0x6b6   : > { %6219 = vrot.lane.b32.xlu1 %v6188_v49, %s9025_s29  ;;  %6687 = vrot.lane.b32.xlu2 %v6656_v42, %s9025_s29  ;;  %v12694_v42 = vpop.f32.mrf.mxu2 }
 0x6b7   : > { %14126 = vst [vmem:[#allocation53_spill] sm:$0xff] %v12694_v42  ;;  %v6060_v59 = vmul.f32 %v12572_v60, %v12694_v42  ;;  %v6190_v60 = vmul.f32 %v12584_v37, %v12694_v42  ;;  %v6320_v31 = vmul.f32 %v12596_v1, %v12694_v42 }
 0x6b8   : > { %6221 = vrot.lane.b32.xlu0 %v6189_v7, %s9025_s29 }
 0x6ba   : > { %v12685_v3 = vpop.permute.xlu0 %5957 }
 0x6bb   : > { %v12679_v12 = vpop.permute.xlu2 %6176  ;;  %14124 = vst [vmem:[#allocation42_spill] sm:$0xff] %v12685_v3 }
 0x6be   : > { %6349 = vrot.lane.b32.xlu1 %v6318_v33, %s9026_s25  ;;  %v6169_v49 = vpop.permute.xlu1 %6168  ;;  %6817 = vrot.lane.b32.xlu2 %v6786_v16, %s9026_s25  ;;  %v12704_v33 = vpop.f32.mrf.mxu3 }
 0x6bf   : > { %14127 = vst [vmem:[#allocation36_spill] sm:$0xff] %v12704_v33  ;;  %v6528_v16 = vmul.f32 %v12601_v27, %v12704_v33  ;;  %v6787_v27 = vmul.f32 %v12519_v46, %v12687_v22 }
 0x6c0   : > { %6351 = vrot.lane.b32.xlu0 %v6319_v56, %s9026_s25 }
 0x6c3   : > { %v6043_v29 = vpop.permute.xlu0 %6042 }
 0x6c4   : > { %v12700_v7 = vpop.permute.xlu2 %6306 }
 0x6c6   : > { %6559 = vrot.lane.b32.xlu1 %v6527_v34, %s9024_s21  ;;  %6093 = vrot.lane.b32.xlu2 %v6060_v59, %s9024_s21  ;;  %v6658_v34 = vmul.f32 %v12619_v48, %v12704_v33  ;;  %v6788_v48 = vmul.f32 %v12634_v20, %v12704_v33 }
 0x6c7   : > { %v6299_v8 = vpop.permute.xlu1 %6298 }
 0x6c8   : > { %6561 = vrot.lane.b32.xlu0 %v6528_v16, %s9024_s21  ;;  %v12730_v16 = vpop.f32.mrf.mxu2 }
 0x6c9   : > { %14130 = vst [vmem:[#allocation44_spill] sm:$0xff] %v12730_v16  ;;  %v6061_v1 = vmul.f32 %v12543_v63, %v12730_v16  ;;  %v6191_v63 = vmul.f32 %v12555_v53, %v12730_v16 }
 0x6cc   : > { %v6173_v15 = vpop.permute.xlu0 %6172 }
 0x6cd   : > { %v12713_v56 = vpop.permute.xlu2 %6436 }
 0x6ce   : > { %14128 = vst [vmem:[#allocation24_spill] sm:$0xff] %v12713_v56  ;;  %6689 = vrot.lane.b32.xlu1 %v6657_v52, %s9025_s29  ;;  %6223 = vrot.lane.b32.xlu2 %v6190_v60, %s9025_s29 }
 0x6d0   : > { %v12719_v59 = vpop.permute.xlu1 %6428  ;;  %6691 = vrot.lane.b32.xlu0 %v6658_v34, %s9025_s29  ;;  %v12735_v34 = vpop.f32.mrf.mxu3 }
 0x6d1   : > { %14129 = vst [vmem:[#allocation22_spill] sm:$0xff] %v12719_v59  ;;  %v6529_v46 = vmul.f32 %v12631_v21, %v12735_v34  ;;  %v6659_v21 = vmul.f32 %v12648_v57, %v12735_v34  ;;  %v6789_v53 = vmul.f32 %v12668_v25, %v12735_v34 }
 0x6d2   : > { %14131 = vst [vmem:[#allocation59_spill] sm:$0xff] %v12735_v34 }
 0x6d5   : > { %v6303_v52 = vpop.permute.xlu0 %6302 }
 0x6d6   : > { %v12726_v37 = vpop.permute.xlu2 %6518  ;;  %6819 = vrot.lane.b32.xlu1 %v6787_v27, %s9026_s25  ;;  %6353 = vrot.lane.b32.xlu2 %v6320_v31, %s9026_s25  ;;  %v12743_v27 = vpop.f32.mrf.mxu2 }
 0x6d7   : > { %v6062_v20 = vmul.f32 %v6039_v61, %v12743_v27  ;;  %v6322_v57 = vmul.f32 %v6299_v8, %v12743_v27 }
 0x6d8   : > { %6821 = vrot.lane.b32.xlu0 %v6788_v48, %s9026_s25  ;;  %v12765_v42 = vpop.f32.mrf.mxu3 }
 0x6d9   : > { %v6511_v60 = vpop.permute.xlu1 %6510  ;;  %14133 = vst [vmem:[#allocation61_spill] sm:$0xff] %v12765_v42 }
 0x6de   : > { %6095 = vrot.lane.b32.xlu1 %v6061_v1, %s9024_s21  ;;  %6563 = vrot.lane.b32.xlu2 %v6529_v46, %s9024_s21  ;;  %v12748_v33 = vpop.permute.xlu0 %6432  ;;  %v6192_v1 = vmul.f32 %v6169_v49, %v12743_v27 }
 0x6df   : > { %v12745_v31 = vpop.permute.xlu2 %6648  ;;  %14132 = vst [vmem:[#allocation60_spill] sm:$0xff] %v12748_v33 }
 0x6e0   : > { %6097 = vrot.lane.b32.xlu0 %v6062_v20, %s9024_s21  ;;  %v6321_v20 = vmul.f32 %v12570_v35, %v12730_v16  ;;  %v6530_v35 = vmul.f32 %v12594_v17, %v12765_v42  ;;  %v6660_v17 = vmul.f32 %v12611_v18, %v12765_v42 }
 0x6e2   : > { %v6641_v48 = vpop.permute.xlu1 %6640 }
 0x6e6   : > { %6225 = vrot.lane.b32.xlu1 %v6191_v63, %s9025_s29  ;;  %6693 = vrot.lane.b32.xlu2 %v6659_v21, %s9025_s29  ;;  %v12773_v21 = vpop.f32.mrf.mxu2 }
 0x6e7   : > { %v6515_v61 = vpop.permute.xlu0 %6514  ;;  %14135 = vst [vmem:[#allocation63_spill] sm:$0xff] %v12773_v21  ;;  %v6063_v25 = vmul.f32 %v6043_v29, %v12773_v21  ;;  %v6193_v29 = vmul.f32 %v6173_v15, %v12773_v21 }
 0x6e8   : > { %v12758_v46 = vpop.permute.xlu2 %6778  ;;  %6227 = vrot.lane.b32.xlu0 %v6192_v1, %s9025_s29 }
 0x6eb   : > { %v6771_v33 = vpop.permute.xlu1 %6770 }
 0x6ee   : > { %6355 = vrot.lane.b32.xlu1 %v6321_v20, %s9026_s25  ;;  %6823 = vrot.lane.b32.xlu2 %v6789_v53, %s9026_s25  ;;  %v12782_v20 = vpop.f32.mrf.mxu3  ;;  %v12802_v18 = vpop.f32.mrf.mxu2 }
 0x6ef   : > { %14137 = vst [vmem:[#allocation65_spill] sm:$0xff] %v12782_v20  ;;  %v6531_v8 = vmul.f32 %v6511_v60, %v12782_v20  ;;  %v6790_v60 = vmul.f32 %v12629_v54, %v12765_v42  ;;  %v6064_v54 = vmul.f32 %v12666_v9, %v12802_v18  ;;  %v6194_v9 = vmul.f32 %v12679_v12, %v12802_v18 }
 0x6f0   : > { %v12770_v49 = vpop.permute.xlu2 %6087  ;;  %6357 = vrot.lane.b32.xlu0 %v6322_v57, %s9026_s25  ;;  %v6645_v63 = vpop.permute.xlu0 %6644  ;;  %14141 = vst [vmem:[#allocation69_spill] sm:$0xff] %v12802_v18 }
 0x6f1   : > { %14134 = vst [vmem:[#allocation62_spill] sm:$0xff] %v12770_v49 }
 0x6f4   : > { %v12778_v1 = vpop.permute.xlu1 %5967 }
 0x6f5   : > { %14136 = vst [vmem:[#allocation64_spill] sm:$0xff] %v12778_v1 }
 0x6f6   : > { %6565 = vrot.lane.b32.xlu1 %v6530_v35, %s9024_s21  ;;  %6099 = vrot.lane.b32.xlu2 %v6063_v25, %s9024_s21  ;;  %v6661_v35 = vmul.f32 %v6641_v48, %v12782_v20  ;;  %v6791_v48 = vmul.f32 %v6771_v33, %v12782_v20 }
 0x6f8   : > { %v12785_v53 = vpop.permute.xlu2 %6217  ;;  %6567 = vrot.lane.b32.xlu0 %v6531_v8, %s9024_s21  ;;  %v6323_v8 = vmul.f32 %v6303_v52, %v12773_v21  ;;  %v9027_v21 = vmov 9  }
 0x6f9   : > { %14138 = vst [vmem:[#allocation66_spill] sm:$0xff] %v12785_v53  ;;  %v6775_v57 = vpop.permute.xlu0 %6774 }
 0x6fd   : > { %v6051_v34 = vpop.permute.xlu1 %6050 }
 0x6fe   : > { %6695 = vrot.lane.b32.xlu1 %v6660_v17, %s9025_s29  ;;  %6229 = vrot.lane.b32.xlu2 %v6193_v29, %s9025_s29  ;;  %v12810_v29 = vpop.f32.mrf.mxu3 }
 0x6ff   : > { %14143 = vst [vmem:[#allocation71_spill] sm:$0xff] %v12810_v29  ;;  %v6532_v52 = vmul.f32 %v6515_v61, %v12810_v29  ;;  %v6662_v61 = vmul.f32 %v6645_v63, %v12810_v29  ;;  %v6792_v12 = vmul.f32 %v6775_v57, %v12810_v29 }
 0x700   : > { %v12794_v25 = vpop.permute.xlu2 %6347  ;;  %6697 = vrot.lane.b32.xlu0 %v6661_v35, %s9025_s29 }
 0x701   : > { %14139 = vst [vmem:[#allocation67_spill] sm:$0xff] %v12794_v25  ;;  %v12930_v25 = vpop.f32.mrf.mxu1 }
 0x702   : > { %v12800_v16 = vpop.permute.xlu0 %5972  ;;  %14177 = vst [vmem:[#allocation100_spill] sm:$0xff] %v12930_v25 }
 0x703   : > { %14140 = vst [vmem:[#allocation68_spill] sm:$0xff] %v12800_v16  ;;  %v12817_v16 = vpop.f32.mrf.mxu2 }
 0x704   : > { %14145 = vst [vmem:[#allocation73_spill] sm:$0xff] %v12817_v16 }
 0x706   : > { %6825 = vrot.lane.b32.xlu1 %v6790_v60, %s9026_s25  ;;  %v6181_v15 = vpop.permute.xlu1 %6180  ;;  %6359 = vrot.lane.b32.xlu2 %v6323_v8, %s9026_s25  ;;  %v6065_v60 = vmul.f32 %v6051_v34, %v12817_v16 }
 0x708   : > { %v12807_v17 = vpop.permute.xlu2 %6557  ;;  %6827 = vrot.lane.b32.xlu0 %v6791_v48, %s9026_s25 }
 0x709   : > { %14142 = vst [vmem:[#allocation70_spill] sm:$0xff] %v12807_v17 }
 0x70a   : > { %v12815_v35 = vpop.permute.xlu0 %6555 }
 0x70b   : > { %14144 = vst [vmem:[#allocation72_spill] sm:$0xff] %v12815_v35 }
 0x70e   : > { %6101 = vrot.lane.b32.xlu1 %v6064_v54, %s9024_s21  ;;  %6569 = vrot.lane.b32.xlu2 %v6532_v52, %s9024_s21  ;;  %v6195_v54 = vmul.f32 %v6181_v15, %v12817_v16 }
 0x70f   : > { %v6311_v33 = vpop.permute.xlu1 %6310 }
 0x710   : > { %v12822_v8 = vpop.permute.xlu2 %6687  ;;  %6103 = vrot.lane.b32.xlu0 %v6065_v60, %s9024_s21  ;;  %v6324_v60 = vmul.f32 %v12700_v7, %v12802_v18 }
 0x711   : > { %14146 = vst [vmem:[#allocation74_spill] sm:$0xff] %v12822_v8 }
 0x712   : > { %v12828_v48 = vpop.permute.xlu0 %6685 }
 0x713   : > { %14147 = vst [vmem:[#allocation75_spill] sm:$0xff] %v12828_v48 }
 0x716   : > { %6231 = vrot.lane.b32.xlu1 %v6194_v9, %s9025_s29  ;;  %6699 = vrot.lane.b32.xlu2 %v6662_v61, %s9025_s29  ;;  %v6325_v9 = vmul.f32 %v6311_v33, %v12817_v16 }
 0x718   : > { %v12833_v52 = vpop.permute.xlu1 %6440  ;;  %v12835_v34 = vpop.permute.xlu2 %6817  ;;  %6233 = vrot.lane.b32.xlu0 %v6195_v54, %s9025_s29 }
 0x719   : > { %14148 = vst [vmem:[#allocation76_spill] sm:$0xff] %v12833_v52 }
 0x71a   : > { %14149 = vst [vmem:[#allocation77_spill] sm:$0xff] %v12835_v34  ;;  %v12841_v63 = vpop.permute.xlu0 %6815 }
 0x71b   : > { %14150 = vst [vmem:[#allocation78_spill] sm:$0xff] %v12841_v63  ;;  %v14158_v63 = vld [vmem:[#allocation54_spill] sm:$0xff] }
 0x71e   : > { %6361 = vrot.lane.b32.xlu1 %v6324_v60, %s9026_s25  ;;  %6829 = vrot.lane.b32.xlu2 %v6792_v12, %s9026_s25  ;;  %v12860_v60 = vpop.f32.mrf.mxu3 }
 0x71f   : > { %14153 = vst [vmem:[#allocation81_spill] sm:$0xff] %v12860_v60  ;;  %v6533_v33 = vmul.f32 %v12726_v37, %v12860_v60  ;;  %v6663_v20 = vmul.f32 %v12745_v31, %v12860_v60  ;;  %v6793_v48 = vmul.f32 %v12758_v46, %v12860_v60  ;;  %v14160_v31 = vld [vmem:[#allocation27_spill] sm:$0xff] }
 0x720   : > { %v12846_v15 = vpop.permute.xlu1 %6089  ;;  %v12848_v61 = vpop.permute.xlu2 %6093  ;;  %6363 = vrot.lane.b32.xlu0 %v6325_v9, %s9026_s25 }
 0x721   : > { %14151 = vst [vmem:[#allocation79_spill] sm:$0xff] %v12848_v61 }
 0x722   : > { %v12851_v54 = vpop.permute.xlu0 %6091 }
 0x726   : > { %6888 = vperm.xlu1 %8362, %v12397_v43   ;;  %6884 = vperm.xlu2 %8361, %v12366_v0  }
 0x728   : > { %v12855_v7 = vpop.permute.xlu1 %6219  ;;  %v12857_v57 = vpop.permute.xlu2 %6223  ;;  %6892 = vperm.xlu0 %8363, %v12410_v6  }
 0x729   : > { %14152 = vst [vmem:[#allocation80_spill] sm:$0xff] %v12857_v57 }
 0x72a   : > { %v12864_v12 = vpop.permute.xlu0 %6221 }
 0x72e   : > { %6571 = vrot.lane.b32.xlu1 %v6533_v33, %s9024_s21  ;;  %6896 = vperm.xlu2 %8361, %v12461_v58  }
 0x730   : > { %v12868_v9 = vpop.permute.xlu1 %6349  ;;  %v12870_v52 = vpop.permute.xlu2 %6353  ;;  %6904 = vperm.xlu0 %8363, %v12515_v19  }
 0x731   : > { %14154 = vst [vmem:[#allocation82_spill] sm:$0xff] %v12870_v52 }
 0x732   : > { %v12875_v16 = vpop.permute.xlu0 %6351 }
 0x733   : > { %14155 = vst [vmem:[#allocation83_spill] sm:$0xff] %v12875_v16 }
 0x736   : > { %6701 = vrot.lane.b32.xlu1 %v6663_v20, %s9025_s29  ;;  %6908 = vperm.xlu2 %8361, %v12566_v47  }
 0x738   : > { %v12879_v37 = vpop.permute.xlu1 %6559  ;;  %v12881_v33 = vpop.permute.xlu2 %6563  ;;  %8365 = vset.pattern.permute.xlu0 %v9027_v21 }
 0x739   : > { %14156 = vst [vmem:[#allocation84_spill] sm:$0xff] %v12879_v37  ;;  %6942 = vperm.xlu0 %8365, %v14158_v63  }
 0x73a   : > { %14157 = vst [vmem:[#allocation85_spill] sm:$0xff] %v12881_v33  ;;  %v12886_v52 = vpop.permute.xlu0 %6561 }
 0x73b   : > { %14159 = vst [vmem:[#allocation54_spill] sm:$0xff] %v12886_v52  ;;  %v14167_v52 = vld [vmem:[#allocation50_spill] sm:$0xff] }
 0x73e   : > { %6831 = vrot.lane.b32.xlu1 %v6793_v48, %s9026_s25  ;;  %8366 = vset.pattern.permute.xlu2 %v9027_v21 }
 0x73f   : > { %6946 = vperm.xlu2 %8366, %v14160_v31  }
 0x740   : > { %v12890_v20 = vpop.permute.xlu1 %6689  ;;  %v12892_v35 = vpop.permute.xlu2 %6693 }
 0x741   : > { %14161 = vst [vmem:[#allocation86_spill] sm:$0xff] %v12890_v20  ;;  %6962 = vperm.xlu0 %8365, %v12366_v0   ;;  %v9028_v20 = vmov 10  }
 0x742   : > { %14162 = vst [vmem:[#allocation87_spill] sm:$0xff] %v12892_v35  ;;  %v12895_v33 = vpop.permute.xlu0 %6691 }
 0x743   : > { %14163 = vst [vmem:[#allocation88_spill] sm:$0xff] %v12895_v33 }
 0x746   : > { %6900 = vperm.xlu1 %8362, %v12500_v4  }
 0x747   : > { %6954 = vperm.xlu2 %8366, %v12254_v13  }
 0x748   : > { %v12899_v46 = vpop.permute.xlu1 %6819  ;;  %v12901_v60 = vpop.permute.xlu2 %6823 }
 0x749   : > { %14164 = vst [vmem:[#allocation89_spill] sm:$0xff] %v12899_v46  ;;  %6974 = vperm.xlu0 %8365, %v12461_v58  }
 0x74a   : > { %14165 = vst [vmem:[#allocation90_spill] sm:$0xff] %v12901_v60  ;;  %v12904_v48 = vpop.permute.xlu0 %6821 }
 0x74b   : > { %14166 = vst [vmem:[#allocation91_spill] sm:$0xff] %v12904_v48 }
 0x74e   : > { %8364 = vset.pattern.permute.xlu1 %v9027_v21 }
 0x74f   : > { %6938 = vperm.xlu1 %8364, %v14167_v52   ;;  %6966 = vperm.xlu2 %8366, %v12397_v43  }
 0x750   : > { %v12908_v35 = vpop.permute.xlu1 %6095  ;;  %v12910_v33 = vpop.permute.xlu2 %6099 }
 0x751   : > { %14168 = vst [vmem:[#allocation50_spill] sm:$0xff] %v12908_v35  ;;  %6986 = vperm.xlu0 %8365, %v12566_v47  }
 0x752   : > { %14169 = vst [vmem:[#allocation92_spill] sm:$0xff] %v12910_v33  ;;  %v12913_v57 = vpop.permute.xlu0 %6097 }
 0x753   : > { %14170 = vst [vmem:[#allocation93_spill] sm:$0xff] %v12913_v57 }
 0x757   : > { %6950 = vperm.xlu1 %8364, %v12166_v44   ;;  %6978 = vperm.xlu2 %8366, %v12500_v4  }
 0x758   : > { %v12917_v60 = vpop.permute.xlu1 %6225  ;;  %v12919_v48 = vpop.permute.xlu2 %6229 }
 0x759   : > { %14171 = vst [vmem:[#allocation94_spill] sm:$0xff] %v12917_v60  ;;  %8368 = vset.pattern.permute.xlu0 %v9028_v20 }
 0x75a   : > { %14172 = vst [vmem:[#allocation95_spill] sm:$0xff] %v12919_v48  ;;  %v12921_v21 = vpop.permute.xlu0 %6227 }
 0x75b   : > { %14173 = vst [vmem:[#allocation96_spill] sm:$0xff] %v12921_v21 }
 0x75f   : > { %6958 = vperm.xlu1 %8364, %v12318_v26   ;;  %8369 = vset.pattern.permute.xlu2 %v9028_v20 }
 0x760   : > { %v12924_v61 = vpop.permute.xlu1 %6355  ;;  %v12926_v35 = vpop.permute.xlu2 %6359 }
 0x761   : > { %14174 = vst [vmem:[#allocation97_spill] sm:$0xff] %v12924_v61  ;;  %v12944_v61 = vpop.f32.mrf.mxu1 }
 0x762   : > { %14175 = vst [vmem:[#allocation98_spill] sm:$0xff] %v12926_v35  ;;  %v12928_v33 = vpop.permute.xlu0 %6357 }
 0x763   : > { %14176 = vst [vmem:[#allocation99_spill] sm:$0xff] %v12928_v33 }
 0x767   : > { %6970 = vperm.xlu1 %8364, %v12410_v6  }
 0x768   : > { %v12933_v53 = vpop.permute.xlu1 %6565  ;;  %v12935_v49 = vpop.permute.xlu2 %6569 }
 0x769   : > { %14178 = vst [vmem:[#allocation101_spill] sm:$0xff] %v12933_v53  ;;  %v12952_v46 = vpop.f32.mrf.mxu1 }
 0x76a   : > { %14179 = vst [vmem:[#allocation102_spill] sm:$0xff] %v12935_v49  ;;  %v12937_v60 = vpop.permute.xlu0 %6567 }
 0x76b   : > { %14180 = vst [vmem:[#allocation103_spill] sm:$0xff] %v12937_v60 }
 0x76f   : > { %6982 = vperm.xlu1 %8364, %v12515_v19  }
 0x770   : > { %v12940_v48 = vpop.permute.xlu1 %6695  ;;  %v12942_v56 = vpop.permute.xlu2 %6699 }
 0x771   : > { %14181 = vst [vmem:[#allocation104_spill] sm:$0xff] %v12940_v48  ;;  %v12962_v48 = vpop.f32.mrf.mxu1 }
 0x772   : > { %14182 = vst [vmem:[#allocation105_spill] sm:$0xff] %v12942_v56  ;;  %v12946_v35 = vpop.permute.xlu0 %6697 }
 0x773   : > { %14183 = vst [vmem:[#allocation106_spill] sm:$0xff] %v12946_v35 }
 0x777   : > { %8367 = vset.pattern.permute.xlu1 %v9028_v20 }
 0x778   : > { %v12948_v29 = vpop.permute.xlu1 %6825  ;;  %v12950_v34 = vpop.permute.xlu2 %6829 }
 0x779   : > { %14184 = vst [vmem:[#allocation107_spill] sm:$0xff] %v12948_v29  ;;  %v12970_v29 = vpop.f32.mrf.mxu1 }
 0x77a   : > { %14185 = vst [vmem:[#allocation108_spill] sm:$0xff] %v12950_v34  ;;  %v12954_v53 = vpop.permute.xlu0 %6827 }
 0x77b   : > { %14186 = vst [vmem:[#allocation109_spill] sm:$0xff] %v12954_v53 }
 0x780   : > { %v12956_v49 = vpop.permute.xlu1 %6101  ;;  %v12958_v60 = vpop.permute.xlu2 %6884 }
 0x781   : > { %14187 = vst [vmem:[#allocation110_spill] sm:$0xff] %v12956_v49  ;;  %v12978_v49 = vpop.f32.mrf.mxu1 }
 0x782   : > { %14188 = vst [vmem:[#allocation111_spill] sm:$0xff] %v12958_v60  ;;  %v12960_v59 = vpop.permute.xlu0 %6103 }
 0x783   : > { %14189 = vst [vmem:[#allocation112_spill] sm:$0xff] %v12960_v59 }
 0x788   : > { %v12964_v56 = vpop.permute.xlu1 %6231  ;;  %v12966_v42 = vpop.permute.xlu2 %6896 }
 0x789   : > { %14190 = vst [vmem:[#allocation113_spill] sm:$0xff] %v12964_v56 }
 0x78a   : > { %14191 = vst [vmem:[#allocation114_spill] sm:$0xff] %v12966_v42  ;;  %v12968_v35 = vpop.permute.xlu0 %6233 }
 0x78b   : > { %14192 = vst [vmem:[#allocation115_spill] sm:$0xff] %v12968_v35  ;;  %v12986_v35 = vpop.f32.mrf.mxu1 }
 0x790   : > { %v12972_v34 = vpop.permute.xlu1 %6361  ;;  %v12974_v8 = vpop.permute.xlu2 %6908 }
 0x791   : > { %14193 = vst [vmem:[#allocation116_spill] sm:$0xff] %v12972_v34 }
 0x792   : > { %14194 = vst [vmem:[#allocation117_spill] sm:$0xff] %v12974_v8  ;;  %v12976_v53 = vpop.permute.xlu0 %6363 }
 0x793   : > { %14195 = vst [vmem:[#allocation118_spill] sm:$0xff] %v12976_v53  ;;  %v12992_v8 = vpop.f32.mrf.mxu1 }
 0x798   : > { %v12980_v60 = vpop.permute.xlu1 %6888 }
 0x799   : > { %14196 = vst [vmem:[#allocation119_spill] sm:$0xff] %v12980_v60  ;;  %v6947_v59 = vpop.permute.xlu2 %6946 }
 0x79a   : > { %v6991_v33 = vmul.f32 %v6947_v59, %v12952_v46  ;;  %v12983_v56 = vpop.permute.xlu0 %6892 }
 0x79b   : > { %14197 = vst [vmem:[#allocation120_spill] sm:$0xff] %v12983_v56  ;;  %v13000_v21 = vpop.f32.mrf.mxu1 }
 0x79c   : > { %7019 = vrot.lane.b32.xlu0 %v6991_v33, %s9024_s21  ;;  %14202 = vst [vmem:[#allocation125_spill] sm:$0xff] %v13000_v21 }
 0x7a0   : > { %v12988_v42 = vpop.permute.xlu1 %6571 }
 0x7a1   : > { %14198 = vst [vmem:[#allocation121_spill] sm:$0xff] %v12988_v42  ;;  %v6955_v56 = vpop.permute.xlu2 %6954 }
 0x7a2   : > { %v12990_v34 = vpop.permute.xlu0 %6904  ;;  %v6993_v42 = vmul.f32 %v6955_v56, %v12970_v29 }
 0x7a3   : > { %14199 = vst [vmem:[#allocation122_spill] sm:$0xff] %v12990_v34  ;;  %v13006_v37 = vpop.f32.mrf.mxu1 }
 0x7a8   : > { %v12994_v53 = vpop.permute.xlu1 %6701 }
 0x7a9   : > { %14200 = vst [vmem:[#allocation123_spill] sm:$0xff] %v12994_v53  ;;  %v6967_v53 = vpop.permute.xlu2 %6966 }
 0x7aa   : > { %v6996_v20 = vmul.f32 %v6967_v53, %v12992_v8 }
 0x7ab   : > { %v6943_v60 = vpop.permute.xlu0 %6942 }
 0x7ac   : > { %v6990_v59 = vmul.f32 %v6943_v60, %v12944_v61 }
 0x7ae   : > { %7017 = vrot.lane.b32.xlu1 %v6990_v59, %s9024_s21 }
 0x7b0   : > { %v12998_v33 = vpop.permute.xlu1 %6831 }
 0x7b1   : > { %14201 = vst [vmem:[#allocation124_spill] sm:$0xff] %v12998_v33  ;;  %v6979_v57 = vpop.permute.xlu2 %6978  ;;  %v13012_v33 = vpop.f32.mrf.mxu1 }
 0x7b2   : > { %v6999_v56 = vmul.f32 %v6979_v57, %v13012_v33 }
 0x7b3   : > { %v6963_v17 = vpop.permute.xlu0 %6962 }
 0x7b6   : > { %7023 = vrot.lane.b32.xlu1 %v6993_v42, %s9024_s21 }
 0x7b8   : > { %v13004_v34 = vpop.permute.xlu1 %6900 }
 0x7b9   : > { %14203 = vst [vmem:[#allocation126_spill] sm:$0xff] %v13004_v34 }
 0x7bb   : > { %v6975_v57 = vpop.permute.xlu0 %6974 }
 0x7be   : > { %7029 = vrot.lane.b32.xlu1 %v6996_v20, %s9024_s21  ;;  %v6995_v20 = vmul.f32 %v6963_v17, %v12986_v35 }
 0x7c1   : > { %v6939_v60 = vpop.permute.xlu1 %6938 }
 0x7c2   : > { %v6989_v59 = vmul.f32 %v6939_v60, %v12930_v25 }
 0x7c3   : > { %v6987_v17 = vpop.permute.xlu0 %6986 }
 0x7c4   : > { %7015 = vrot.lane.b32.xlu2 %v6989_v59, %s9024_s21  ;;  %v13023_v59 = vpop.f32.mrf.mxu1 }
 0x7c6   : > { %7035 = vrot.lane.b32.xlu1 %v6999_v56, %s9024_s21 }
 0x7c9   : > { %v6951_v42 = vpop.permute.xlu1 %6950 }
 0x7ca   : > { %v6992_v34 = vmul.f32 %v6951_v42, %v12962_v48  ;;  %v6998_v42 = vmul.f32 %v6975_v57, %v13006_v37 }
 0x7cc   : > { %7021 = vrot.lane.b32.xlu2 %v6992_v34, %s9024_s21 }
 0x7ce   : > { %7068 = vperm.xlu1 %8367, %v14167_v52  }
 0x7d1   : > { %v6959_v53 = vpop.permute.xlu1 %6958 }
 0x7d2   : > { %v6994_v60 = vmul.f32 %v6959_v53, %v12978_v49  ;;  %v13031_v53 = vpop.f32.mrf.mxu1 }
 0x7d4   : > { %7025 = vrot.lane.b32.xlu0 %v6994_v60, %s9024_s21  ;;  %7027 = vrot.lane.b32.xlu2 %v6995_v20, %s9024_s21  ;;  %v7001_v60 = vmul.f32 %v6987_v17, %v13031_v53 }
 0x7d6   : > { %7080 = vperm.xlu1 %8367, %v12166_v44  }
 0x7d9   : > { %v6971_v56 = vpop.permute.xlu1 %6970 }
 0x7da   : > { %v6997_v34 = vmul.f32 %v6971_v56, %v13000_v21 }
 0x7dc   : > { %7031 = vrot.lane.b32.xlu0 %v6997_v34, %s9024_s21  ;;  %7033 = vrot.lane.b32.xlu2 %v6998_v42, %s9024_s21 }
 0x7de   : > { %7088 = vperm.xlu1 %8367, %v12318_v26  }
 0x7e1   : > { %v6983_v20 = vpop.permute.xlu1 %6982 }
 0x7e2   : > { %v7000_v1 = vmul.f32 %v6983_v20, %v13023_v59 }
 0x7e4   : > { %7037 = vrot.lane.b32.xlu0 %v7000_v1, %s9024_s21  ;;  %7039 = vrot.lane.b32.xlu2 %v7001_v60, %s9024_s21 }
 0x7e6   : > { %7100 = vperm.xlu1 %8367, %v12410_v6  }
 0x7ec   : > { %7072 = vperm.xlu0 %8368, %v14158_v63   ;;  %7076 = vperm.xlu2 %8369, %v14160_v31  }
 0x7ee   : > { %7112 = vperm.xlu1 %8367, %v12515_v19  }
 0x7f4   : > { %7092 = vperm.xlu0 %8368, %v12366_v0   ;;  %7084 = vperm.xlu2 %8369, %v12254_v13  }
 0x7fc   : > { %7104 = vperm.xlu0 %8368, %v12461_v58   ;;  %7096 = vperm.xlu2 %8369, %v12397_v43  }
 0x804   : > { %7116 = vperm.xlu0 %8368, %v12566_v47   ;;  %7108 = vperm.xlu2 %8369, %v12500_v4  }
 0x80e   : > { %v13063_v18 = vpop.permute.xlu0 %7019 }
 0x81e   : > { %v13047_v1 = vpop.permute.xlu2 %7015 }
 0x81f   : > { %14204 = vst [vmem:[#allocation127_spill] sm:$0xff] %v13047_v1 }
 0x820   : > { %v13049_v57 = vpop.permute.xlu1 %7017 }
 0x821   : > { %14205 = vst [vmem:[#allocation128_spill] sm:$0xff] %v13049_v57 }
 0x826   : > { %v13051_v56 = vpop.permute.xlu2 %7021 }
 0x828   : > { %v13053_v42 = vpop.permute.xlu1 %7023 }
 0x829   : > { %14206 = vst [vmem:[#allocation129_spill] sm:$0xff] %v13053_v42 }
 0x82e   : > { %v13055_v34 = vpop.permute.xlu2 %7027 }
 0x82f   : > { %14207 = vst [vmem:[#allocation130_spill] sm:$0xff] %v13055_v34  ;;  %v9029_v34 = vmov 11  }
 0x830   : > { %v13057_v17 = vpop.permute.xlu1 %7029  ;;  %8371 = vset.pattern.permute.xlu0 %v9029_v34  ;;  %8370 = vset.pattern.permute.xlu1 %v9029_v34 }
 0x831   : > { %14208 = vst [vmem:[#allocation131_spill] sm:$0xff] %v13057_v17  ;;  %8372 = vset.pattern.permute.xlu2 %v9029_v34 }
 0x836   : > { %v13059_v20 = vpop.permute.xlu2 %7033 }
 0x837   : > { %14209 = vst [vmem:[#allocation132_spill] sm:$0xff] %v13059_v20 }
 0x838   : > { %v13061_v60 = vpop.permute.xlu1 %7035 }
 0x839   : > { %14210 = vst [vmem:[#allocation133_spill] sm:$0xff] %v13061_v60 }
 0x83e   : > { %v13065_v22 = vpop.permute.xlu2 %7039 }
 0x83f   : > { %14211 = vst [vmem:[#allocation134_spill] sm:$0xff] %v13065_v22 }
 0x840   : > { %v7069_v16 = vpop.permute.xlu1 %7068 }
 0x841   : > { %v7119_v1 = vmul.f32 %v7069_v16, %v12930_v25 }
 0x843   : > { %7145 = vrot.lane.b32.xlu2 %v7119_v1, %s9025_s29 }
 0x846   : > { %v7077_v57 = vpop.permute.xlu2 %7076  ;;  %v13069_v3 = vpop.permute.xlu0 %7025 }
 0x847   : > { %v7121_v42 = vmul.f32 %v7077_v57, %v12952_v46  ;;  %v13081_v57 = vpop.f32.mrf.mxu3 }
 0x848   : > { %v7081_v60 = vpop.permute.xlu1 %7080  ;;  %14213 = vst [vmem:[#allocation136_spill] sm:$0xff] %v13081_v57  ;;  %v5589_v57 = vld [vmem:[%s13801_s9 + $0x90] sm:$0xff] }
 0x849   : > { %7149 = vrot.lane.b32.xlu0 %v7121_v42, %s9025_s29  ;;  %v7122_v17 = vmul.f32 %v7081_v60, %v12962_v48  ;;  %5810 = vmatpush.msra.mxu2 %v5589_v57 }
 0x84b   : > { %7151 = vrot.lane.b32.xlu2 %v7122_v17, %s9025_s29 }
 0x84e   : > { %v13075_v22 = vpop.permute.xlu0 %7031  ;;  %v7085_v17 = vpop.permute.xlu2 %7084 }
 0x84f   : > { %14212 = vst [vmem:[#allocation135_spill] sm:$0xff] %v13075_v22  ;;  %v13087_v22 = vpop.f32.mrf.mxu3 }
 0x850   : > { %v7089_v16 = vpop.permute.xlu1 %7088  ;;  %14214 = vst [vmem:[#allocation137_spill] sm:$0xff] %v13087_v22 }
 0x851   : > { %v7124_v1 = vmul.f32 %v7089_v16, %v12978_v49 }
 0x853   : > { %7155 = vrot.lane.b32.xlu0 %v7124_v1, %s9025_s29 }
 0x856   : > { %v13079_v25 = vpop.permute.xlu0 %7037  ;;  %v7097_v22 = vpop.permute.xlu2 %7096 }
 0x858   : > { %v7101_v20 = vpop.permute.xlu1 %7100 }
 0x859   : > { %v7127_v42 = vmul.f32 %v7101_v20, %v13000_v21 }
 0x85b   : > { %7161 = vrot.lane.b32.xlu0 %v7127_v42, %s9025_s29  ;;  %v7123_v42 = vmul.f32 %v7085_v17, %v12970_v29 }
 0x85e   : > { %v7073_v34 = vpop.permute.xlu0 %7072  ;;  %v7109_v17 = vpop.permute.xlu2 %7108 }
 0x85f   : > { %v7120_v60 = vmul.f32 %v7073_v34, %v12944_v61 }
 0x860   : > { %v7113_v16 = vpop.permute.xlu1 %7112 }
 0x861   : > { %7147 = vrot.lane.b32.xlu1 %v7120_v60, %s9025_s29  ;;  %v7130_v1 = vmul.f32 %v7113_v16, %v13023_v59  ;;  %v5877_v60 = vpop.f32.mrf.mxu3 }
 0x863   : > { %7167 = vrot.lane.b32.xlu0 %v7130_v1, %s9025_s29  ;;  %v7126_v1 = vmul.f32 %v7097_v22, %v12992_v8 }
 0x866   : > { %v7093_v20 = vpop.permute.xlu0 %7092 }
 0x867   : > { %v7125_v34 = vmul.f32 %v7093_v20, %v12986_v35 }
 0x869   : > { %7153 = vrot.lane.b32.xlu1 %v7123_v42, %s9025_s29  ;;  %7157 = vrot.lane.b32.xlu2 %v7125_v34, %s9025_s29  ;;  %v5880_v57 = vpop.f32.mrf.mxu3  ;;  %v7129_v42 = vmul.f32 %v7109_v17, %v13012_v33  ;;  %v5579_v17 = vld [vmem:[%s13801_s9 + $0x40] sm:$0xff] }
 0x86b   : > { %7202 = vperm.xlu0 %8371, %v14158_v63  }
 0x86e   : > { %v7105_v16 = vpop.permute.xlu0 %7104 }
 0x86f   : > { %v7128_v21 = vmul.f32 %v7105_v16, %v13006_v37  ;;  %v5978_v16 = vmul.f32 %v12458_v45, %v12356_v14  ;;  %v5574_v14 = vld [vmem:[%s13801_s9 + $0x18] sm:$0xff] }
 0x871   : > { %7159 = vrot.lane.b32.xlu1 %v7126_v1, %s9025_s29  ;;  %7163 = vrot.lane.b32.xlu2 %v7128_v21, %s9025_s29  ;;  %v13108_v22 = vpop.f32.mrf.mxu3  ;;  %v5584_v1 = vld [vmem:[%s13801_s9 + $0x68] sm:$0xff] }
 0x872   : > { %5811 = vmatpush.msra.mxu2 %v5584_v1  ;;  %v8939_v1 = vld [vmem:[%s11042_s27 + $0x8] sm:$0xff] }
 0x873   : > { %7222 = vperm.xlu0 %8371, %v12366_v0  }
 0x874   : > { %5812 = vmatpush.msra.mxu2 %v5579_v17 }
 0x876   : > { %v7117_v20 = vpop.permute.xlu0 %7116  ;;  %5813 = vmatpush.msra.mxu2 %v5574_v14 }
 0x877   : > { %v7131_v34 = vmul.f32 %v7117_v20, %v13031_v53  ;;  %v5991_v20 = vadd.f32 %v5978_v16, %v5880_v57  ;;  %v6446_v57 = vmul.f32 %v12336_v38, %v12346_v30  ;;  %v8940_v38 = vld [vmem:[%s11042_s27 + $0x10] sm:$0xff]  ;;  %v5977_v30 = vmul.f32 %v12269_v5, %v12199_v40  ;;  %v8941_v40 = vld [vmem:[%s11042_s27 + $0x18] sm:$0xff] }
 0x879   : > { %7165 = vrot.lane.b32.xlu1 %v7129_v42, %s9025_s29  ;;  %7169 = vrot.lane.b32.xlu2 %v7131_v34, %s9025_s29  ;;  %v5886_v21 = vpop.f32.mrf.mxu3  ;;  %v6121_v45 = vadd.f32 %v12525_v62, %v5991_v20  ;;  %v5990_v20 = vadd.f32 %v5977_v30, %v5877_v60  ;;  %v14215_v60 = vld [vmem:[#allocation5_spill] sm:$0xff] }
 0x87b   : > { %7234 = vperm.xlu0 %8371, %v12461_v58   ;;  %v6251_v34 = vadd.f32 %v12534_v28, %v6121_v45  ;;  %v6120_v14 = vadd.f32 %v12344_v51, %v5990_v20  ;;  %v5980_v45 = vmul.f32 %v12493_v39, %v12641_v2  ;;  %v14217_v39 = vld [vmem:[#allocation31_spill] sm:$0xff] }
 0x87d   : > { %v6381_v58 = vadd.f32 %v12545_v41, %v6251_v34  ;;  %v6250_v5 = vadd.f32 %v12361_v23, %v6120_v14  ;;  %v8942_v23 = vld [vmem:[%s11042_s27 + $0x20] sm:$0xff] }
 0x87f   : > { %v6459_v62 = vadd.f32 %v6446_v57, %v6381_v58  ;;  %v6380_v51 = vadd.f32 %v14215_v60, %v6250_v5  ;;  %v14225_v60 = vld [vmem:[#allocation16_spill] sm:$0xff] }
 0x881   : > { %7198 = vperm.xlu1 %8370, %v14167_v52   ;;  %7206 = vperm.xlu2 %8372, %v14160_v31   ;;  %v5889_v42 = vpop.f32.mrf.mxu3  ;;  %v6589_v28 = vadd.f32 %v12508_v32, %v6459_v62  ;;  %v6914_v32 = vmul.f32 %v12381_v55, %v12962_v48  ;;  %v5981_v55 = vmul.f32 %v12557_v11, %v12660_v10 }
 0x883   : > { %7246 = vperm.xlu0 %8371, %v12566_v47   ;;  %v8938_v47 = vld [vmem:[%s11042_s27] sm:$0xff]  ;;  %v6719_v41 = vadd.f32 %v12522_v24, %v6589_v28  ;;  %v14216_v28 = vld [vmem:[#allocation46_spill] sm:$0xff] }
 0x884   : > { %8149 = vmatmul.msk.f32.vlgmr.msra.gmra.mxu2 %vm667_vm0, %v8938_v47  ;;  %v6445_v2 = vmul.f32 %v14217_v39, %v14216_v28  ;;  %v14227_v28 = vld [vmem:[#allocation69_spill] sm:$0xff]  ;;  %v14228_v39 = vld [vmem:[#allocation64_spill] sm:$0xff] }
 0x885   : > { %v6849_v58 = vadd.f32 %v12537_v36, %v6719_v41 }
 0x887   : > { %v6927_v24 = vadd.f32 %v6914_v32, %v6849_v58  ;;  %v14218_v32 = vld [vmem:[#allocation8_spill] sm:$0xff] }
 0x889   : > { %7210 = vperm.xlu1 %8370, %v12166_v44   ;;  %7214 = vperm.xlu2 %8372, %v12254_v13   ;;  %v13136_v16 = vpop.f32.mrf.mxu3  ;;  %v7057_v57 = vadd.f32 %v13051_v56, %v6927_v24  ;;  %v5994_v56 = vadd.f32 %v5981_v55, %v5889_v42  ;;  %v14219_v24 = vld [vmem:[#allocation21_spill] sm:$0xff]  ;;  %v14220_v42 = vld [vmem:[#allocation20_spill] sm:$0xff]  ;;  %v14224_v55 = vld [vmem:[#allocation18_spill] sm:$0xff] }
 0x88a   : > { %v6448_v14 = vmul.f32 %v14220_v42, %v12650_v50  ;;  %v8943_v50 = vld [vmem:[%s11042_s27 + $0x28] sm:$0xff] }
 0x88b   : > { %v6124_v58 = vadd.f32 %v12851_v54, %v5994_v56  ;;  %v14229_v56 = vld [vmem:[#allocation70_spill] sm:$0xff] }
 0x88c   : > { %8150 = vmatmul.msk.f32.gmra.mxu2 %vm667_vm0, %v8939_v1  ;;  %v5993_v1 = vadd.f32 %v5980_v45, %v5886_v21  ;;  %v14222_v45 = vld [vmem:[#allocation83_spill] sm:$0xff] }
 0x88d   : > { %v6254_v20 = vadd.f32 %v12864_v12, %v6124_v58 }
 0x88e   : > { %v6123_v41 = vadd.f32 %v12846_v15, %v5993_v1 }
 0x890   : > { %v6253_v30 = vadd.f32 %v12855_v7, %v6123_v41  ;;  %v14221_v7 = vld [vmem:[#allocation42_spill] sm:$0xff] }
 0x891   : > { %7218 = vperm.xlu1 %8370, %v12318_v26   ;;  %7226 = vperm.xlu2 %8372, %v12397_v43   ;;  %v13144_v47 = vpop.f32.mrf.mxu3  ;;  %v5984_v54 = vmul.f32 %v14221_v7, %v12743_v27  ;;  %v14234_v7 = vld [vmem:[#allocation99_spill] sm:$0xff] }
 0x892   : > { %v6383_v21 = vadd.f32 %v12868_v9, %v6253_v30  ;;  %v14226_v9 = vld [vmem:[#allocation26_spill] sm:$0xff]  ;;  %v14230_v30 = vld [vmem:[#allocation93_spill] sm:$0xff] }
 0x893   : > { %v6913_v12 = vmul.f32 %v14226_v9, %v12952_v46  ;;  %v14240_v9 = vld [vmem:[#allocation22_spill] sm:$0xff] }
 0x894   : > { %8151 = vmatmul.msk.f32.gmra.mxu2 %vm667_vm0, %v8940_v38  ;;  %v6458_v38 = vadd.f32 %v6445_v2, %v6380_v51  ;;  %v6461_v5 = vadd.f32 %v6448_v14, %v6383_v21  ;;  %v6449_v51 = vmul.f32 %v14225_v60, %v14224_v55  ;;  %v5986_v2 = vmul.f32 %v14228_v39, %v14227_v28  ;;  %v14238_v60 = vld [vmem:[#allocation48_spill] sm:$0xff]  ;;  %v14242_v39 = vld [vmem:[#allocation110_spill] sm:$0xff] }
 0x896   : > { %v6588_v11 = vadd.f32 %v14218_v32, %v6458_v38  ;;  %v6591_v38 = vadd.f32 %v14229_v56, %v6461_v5  ;;  %v14231_v32 = vld [vmem:[#allocation84_spill] sm:$0xff] }
 0x898   : > { %v6718_v15 = vadd.f32 %v14219_v24, %v6588_v11 }
 0x899   : > { %7230 = vperm.xlu1 %8370, %v12410_v6   ;;  %7238 = vperm.xlu2 %8372, %v12500_v4   ;;  %v5898_v34 = vpop.f32.mrf.mxu3 }
 0x89a   : > { %v5997_v1 = vadd.f32 %v5984_v54, %v5898_v34  ;;  %v14232_v34 = vld [vmem:[#allocation96_spill] sm:$0xff] }
 0x89c   : > { %8152 = vmatmul.msk.f32.gmra.mxu2 %vm667_vm0, %v8941_v40  ;;  %v6127_v58 = vadd.f32 %v14230_v30, %v5997_v1  ;;  %v14239_v1 = vld [vmem:[#allocation61_spill] sm:$0xff] }
 0x89d   : > { %v13146_v17 = vpop.permute.xlu2 %7145 }
 0x89e   : > { %v6257_v21 = vadd.f32 %v14232_v34, %v6127_v58  ;;  %v14246_v34 = vld [vmem:[#allocation101_spill] sm:$0xff] }
 0x8a0   : > { %v6387_v54 = vadd.f32 %v14234_v7, %v6257_v21  ;;  %v14250_v7 = vld [vmem:[#allocation24_spill] sm:$0xff] }
 0x8a1   : > { %7242 = vperm.xlu1 %8370, %v12515_v19   ;;  %v13176_v10 = vpop.f32.mrf.mxu3 }
 0x8a4   : > { %8153 = vmatmul.msk.f32.gmra.mxu2 %vm667_vm0, %v8942_v23 }
 0x8a5   : > { %v7152_v62 = vpop.permute.xlu2 %7151 }
 0x8a6   : > { %v13163_v36 = vadd.f32 %v7152_v62, %v7057_v57  ;;  %v6384_v57 = vadd.f32 %v14222_v45, %v6254_v20  ;;  %v14223_v62 = vld [vmem:[#allocation12_spill] sm:$0xff]  ;;  %v14235_v45 = vld [vmem:[#allocation111_spill] sm:$0xff] }
 0x8a7   : > { %v6848_v40 = vadd.f32 %v14223_v62, %v6718_v15  ;;  %v14233_v15 = vld [vmem:[#allocation86_spill] sm:$0xff] }
 0x8a8   : > { %v6462_v41 = vadd.f32 %v6449_v51, %v6384_v57  ;;  %v6917_v57 = vmul.f32 %v14235_v45, %v12986_v35  ;;  %v14236_v62 = vld [vmem:[#allocation74_spill] sm:$0xff] }
 0x8a9   : > { %v5904_v27 = vpop.f32.mrf.mxu3  ;;  %v6926_v23 = vadd.f32 %v6913_v12, %v6848_v40  ;;  %v6721_v5 = vadd.f32 %v14236_v62, %v6591_v38  ;;  %v14237_v40 = vld [vmem:[#allocation57_spill] sm:$0xff]  ;;  %v6452_v12 = vmul.f32 %v14240_v9, %v14239_v1  ;;  %v14251_v45 = vld [vmem:[#allocation62_spill] sm:$0xff] }
 0x8aa   : > { %v6592_v11 = vadd.f32 %v14231_v32, %v6462_v41  ;;  %v5999_v24 = vadd.f32 %v5986_v2, %v5904_v27  ;;  %v5979_v51 = vmul.f32 %v14238_v60, %v14237_v40  ;;  %v8944_v41 = vld [vmem:[%s11042_s27 + $0x30] sm:$0xff]  ;;  %v14243_v27 = vld [vmem:[#allocation113_spill] sm:$0xff]  ;;  %v14245_v32 = vld [vmem:[#allocation52_spill] sm:$0xff] }
 0x8ab   : > { %v7056_v20 = vadd.f32 %v13063_v18, %v6926_v23  ;;  %v14241_v18 = vld [vmem:[#allocation89_spill] sm:$0xff]  ;;  %v14252_v40 = vld [vmem:[#allocation104_spill] sm:$0xff]  ;;  %v14254_v9 = vld [vmem:[#allocation66_spill] sm:$0xff] }
 0x8ac   : > { %8154 = vmatmul.msk.f32.gmra.mxu2 %vm667_vm0, %v8943_v50  ;;  %v6722_v42 = vadd.f32 %v14233_v15, %v6592_v11  ;;  %v6129_v2 = vadd.f32 %v14242_v39, %v5999_v24  ;;  %v6465_v50 = vadd.f32 %v6452_v12, %v6387_v54  ;;  %v14244_v38 = vld [vmem:[#allocation77_spill] sm:$0xff]  ;;  %v5992_v23 = vadd.f32 %v5979_v51, %v13108_v22  ;;  %v14248_v24 = vld [vmem:[#allocation130_spill] sm:$0xff] }
 0x8ad   : > { %v6851_v58 = vadd.f32 %v14244_v38, %v6721_v5  ;;  %v6916_v11 = vmul.f32 %v14245_v32, %v12978_v49  ;;  %v14253_v22 = vld [vmem:[#allocation114_spill] sm:$0xff]  ;;  %v14258_v38 = vld [vmem:[#allocation67_spill] sm:$0xff] }
 0x8ae   : > { %v6852_v28 = vadd.f32 %v14241_v18, %v6722_v42  ;;  %v6259_v56 = vadd.f32 %v14243_v27, %v6129_v2  ;;  %v6595_v21 = vadd.f32 %v14246_v34, %v6465_v50  ;;  %v6122_v62 = vadd.f32 %v14251_v45, %v5992_v23  ;;  %v14255_v18 = vld [vmem:[#allocation107_spill] sm:$0xff]  ;;  %v14257_v50 = vld [vmem:[#allocation37_spill] sm:$0xff] }
 0x8af   : > { %v6920_v60 = vmul.f32 %v14253_v22, %v13006_v37  ;;  %v6929_v51 = vadd.f32 %v6916_v11, %v6851_v58  ;;  %v14259_v11 = vld [vmem:[#allocation43_spill] sm:$0xff]  ;;  %v14260_v34 = vld [vmem:[#allocation13_spill] sm:$0xff] }
 0x8b0   : > { %v6930_v30 = vadd.f32 %v6917_v57, %v6852_v28  ;;  %v6725_v5 = vadd.f32 %v14252_v40, %v6595_v21  ;;  %v6252_v12 = vadd.f32 %v14254_v9, %v6122_v62  ;;  %v6447_v21 = vmul.f32 %v14260_v34, %v14259_v11  ;;  %v14263_v45 = vld [vmem:[#allocation79_spill] sm:$0xff]  ;;  %v14266_v9 = vld [vmem:[#allocation72_spill] sm:$0xff]  ;;  %v14273_v11 = vld [vmem:[#allocation78_spill] sm:$0xff] }
 0x8b1   : > { %v7059_v2 = vadd.f32 %v13069_v3, %v6929_v51  ;;  %v8946_v51 = vld [vmem:[%s11042_s27 + $0x40] sm:$0xff] }
 0x8b2   : > { %v7060_v42 = vadd.f32 %v14248_v24, %v6930_v30  ;;  %v6855_v28 = vadd.f32 %v14255_v18, %v6725_v5  ;;  %v8945_v30 = vld [vmem:[%s11042_s27 + $0x38] sm:$0xff]  ;;  %v6382_v23 = vadd.f32 %v14258_v38, %v6252_v12 }
 0x8b3   : > { %v14262_v24 = vld [vmem:[#allocation132_spill] sm:$0xff] }
 0x8b4   : > { %8155 = vmatmul.msk.f32.gmra.mxu2 %vm667_vm0, %v8944_v41  ;;  %v14256_v41 = vld [vmem:[#allocation53_spill] sm:$0xff]  ;;  %v6933_v58 = vadd.f32 %v6920_v60, %v6855_v28  ;;  %v14265_v5 = vld [vmem:[#allocation80_spill] sm:$0xff]  ;;  %v14268_v28 = vld [vmem:[#allocation82_spill] sm:$0xff] }
 0x8b5   : > { %v5982_v27 = vmul.f32 %v14257_v50, %v14256_v41  ;;  %v14270_v50 = vld [vmem:[#allocation108_spill] sm:$0xff] }
 0x8b6   : > { %v7063_v3 = vadd.f32 %v14262_v24, %v6933_v58 }
 0x8bb   : > { %v7150_v14 = vpop.permute.xlu0 %7149 }
 0x8bc   : > { %v13205_v55 = vadd.f32 %v7150_v14, %v7056_v20  ;;  %v14247_v20 = vld [vmem:[#allocation116_spill] sm:$0xff]  ;;  %v14249_v14 = vld [vmem:[#allocation71_spill] sm:$0xff]  ;;  %8156 = vmatmul.msk.f32.gmra.mxu2 %vm667_vm0, %v8945_v30 }
 0x8bd   : > { %v6389_v15 = vadd.f32 %v14247_v20, %v6259_v56  ;;  %v6454_v54 = vmul.f32 %v14250_v7, %v14249_v14  ;;  %v14261_v20 = vld [vmem:[#allocation102_spill] sm:$0xff]  ;;  %v6460_v7 = vadd.f32 %v6447_v21, %v6382_v23  ;;  %v14272_v30 = vld [vmem:[#allocation23_spill] sm:$0xff] }
 0x8bf   : > { %v6467_v39 = vadd.f32 %v6454_v54, %v6389_v15  ;;  %v6590_v12 = vadd.f32 %v14266_v9, %v6460_v7 }
 0x8c1   : > { %v6597_v15 = vadd.f32 %v14261_v20, %v6467_v39 }
 0x8c3   : > { %v7158_v57 = vpop.permute.xlu2 %7157 }
 0x8c4   : > { %v13229_v1 = vadd.f32 %v7158_v57, %v7060_v42  ;;  %v5995_v42 = vadd.f32 %v5982_v27, %v13136_v16  ;;  %v14264_v57 = vld [vmem:[#allocation105_spill] sm:$0xff]  ;;  %8157 = vmatmul.msk.f32.gmra.mxu2 %vm667_vm0, %v8946_v51  ;;  %v14267_v16 = vld [vmem:[#allocation122_spill] sm:$0xff] }
 0x8c5   : > { %v7156_v56 = vpop.permute.xlu0 %7155  ;;  %v6727_v40 = vadd.f32 %v14264_v57, %v6597_v15  ;;  %v6922_v18 = vmul.f32 %v14267_v16, %v13023_v59  ;;  %v14274_v15 = vld [vmem:[#allocation49_spill] sm:$0xff]  ;;  %v14278_v16 = vld [vmem:[#allocation119_spill] sm:$0xff] }
 0x8c6   : > { %v13239_v32 = vadd.f32 %v7156_v56, %v7059_v2  ;;  %v6125_v62 = vadd.f32 %v14263_v45, %v5995_v42  ;;  %v14269_v2 = vld [vmem:[#allocation75_spill] sm:$0xff]  ;;  %v14271_v56 = vld [vmem:[#allocation36_spill] sm:$0xff]  ;;  %v6915_v24 = vmul.f32 %v14274_v15, %v12970_v29 }
 0x8c7   : > { %v6720_v41 = vadd.f32 %v14269_v2, %v6590_v12  ;;  %v6857_v27 = vadd.f32 %v14270_v50, %v6727_v40  ;;  %v6450_v38 = vmul.f32 %v14272_v30, %v14271_v56  ;;  %v14276_v40 = vld [vmem:[#allocation129_spill] sm:$0xff]  ;;  %v14279_v2 = vld [vmem:[#allocation91_spill] sm:$0xff] }
 0x8c8   : > { %v6255_v22 = vadd.f32 %v14265_v5, %v6125_v62  ;;  %v14275_v62 = vld [vmem:[#allocation54_spill] sm:$0xff]  ;;  %v8949_v15 = vld [vmem:[%s11042_s27 + $0x58] sm:$0xff] }
 0x8c9   : > { %v6850_v34 = vadd.f32 %v14273_v11, %v6720_v41  ;;  %v6935_v21 = vadd.f32 %v6922_v18, %v6857_v27  ;;  %v6918_v18 = vmul.f32 %v14278_v16, %v12992_v8  ;;  %v8948_v27 = vld [vmem:[%s11042_s27 + $0x50] sm:$0xff] }
 0x8ca   : > { %v6385_v39 = vadd.f32 %v14268_v28, %v6255_v22  ;;  %v14277_v22 = vld [vmem:[#allocation88_spill] sm:$0xff] }
 0x8cb   : > { %v7164_v14 = vpop.permute.xlu2 %7163  ;;  %v6928_v7 = vadd.f32 %v6915_v24, %v6850_v34 }
 0x8cc   : > { %v13246_v54 = vadd.f32 %v7164_v14, %v7063_v3  ;;  %v6463_v20 = vadd.f32 %v6450_v38, %v6385_v39  ;;  %v7065_v3 = vadd.f32 %v13079_v25, %v6935_v21  ;;  %v8947_v14 = vld [vmem:[%s11042_s27 + $0x48] sm:$0xff]  ;;  %v9030_v39 = vmov 12   ;;  %v14280_v38 = vld [vmem:[#allocation131_spill] sm:$0xff] }
 0x8cd   : > { %v13251_v60 = vpop.permute.xlu0 %7161  ;;  %8158 = vmatmul.msk.f32.gmra.mxu2 %vm667_vm0, %v8947_v14  ;;  %v7058_v5 = vadd.f32 %v14276_v40, %v6928_v7  ;;  %8373 = vset.pattern.permute.xlu1 %v9030_v39  ;;  %v8950_v14 = vld [vmem:[%s11042_s27 + $0x60] sm:$0xff]  ;;  %s8965_s27 = sshra.s32 %s7895_s12, 4  ;;  %s8966_s27 = int_to_ptr.hbm [resolvable:$true] %s8965_s27 }
 0x8ce   : > { %v6593_v57 = vadd.f32 %v14275_v62, %v6463_v20  ;;  %8374 = vset.pattern.permute.xlu0 %v9030_v39  ;;  %8375 = vset.pattern.permute.xlu2 %v9030_v39  ;;  %p8972_p1 = scmp.lt.s32.totalorder %s8966_s27, %s13802_s10 }
 0x8d0   : > { %v6723_v51 = vadd.f32 %v14277_v22, %v6593_v57  ;;  %v14281_v57 = vld [vmem:[#allocation100_spill] sm:$0xff] }
 0x8d2   : > { %v6853_v41 = vadd.f32 %v14279_v2, %v6723_v51 }
 0x8d3   : > { %v13263_v23 = vpop.permute.xlu1 %7147  ;;  %v13265_v58 = vpop.permute.xlu2 %7169 }
 0x8d4   : > { %v6931_v56 = vadd.f32 %v6918_v18, %v6853_v41 }
 0x8d5   : > { %v7168_v42 = vpop.permute.xlu0 %7167  ;;  %8159 = vmatmul.msk.f32.gmra.mxu2 %vm667_vm0, %v8948_v27 }
 0x8d6   : > { %v13273_v45 = vadd.f32 %v7168_v42, %v7065_v3  ;;  %v7061_v11 = vadd.f32 %v14280_v38, %v6931_v56  ;;  %v14285_v56 = vld [vmem:[#allocation63_spill] sm:$0xff] }
 0x8db   : > { %v7154_v9 = vpop.permute.xlu1 %7153  ;;  %v7207_v12 = vpop.permute.xlu2 %7206 }
 0x8dc   : > { %v13280_v25 = vadd.f32 %v7154_v9, %v7058_v5  ;;  %v7251_v28 = vmul.f32 %v7207_v12, %v12952_v46 }
 0x8dd   : > { %v7203_v50 = vpop.permute.xlu0 %7202  ;;  %8160 = vmatmul.msk.f32.gmra.mxu2 %vm667_vm0, %v8949_v15 }
 0x8de   : > { %7279 = vrot.lane.b32.xlu0 %v7251_v28, %s9026_s25  ;;  %v7250_v30 = vmul.f32 %v7203_v50, %v12944_v61  ;;  %v14282_v28 = vld [vmem:[#allocation125_spill] sm:$0xff]  ;;  %v14284_v50 = vld [vmem:[#allocation11_spill] sm:$0xff] }
 0x8e0   : > { %7277 = vrot.lane.b32.xlu1 %v7250_v30, %s9026_s25  ;;  %v14286_v30 = vld [vmem:[#allocation35_spill] sm:$0xff] }
 0x8e1   : > { %v5985_v38 = vmul.f32 %v14286_v30, %v14285_v56  ;;  %v14296_v56 = vld [vmem:[#allocation118_spill] sm:$0xff] }
 0x8e3   : > { %v7160_v46 = vpop.permute.xlu1 %7159  ;;  %v7215_v34 = vpop.permute.xlu2 %7214  ;;  %v5998_v15 = vadd.f32 %v5985_v38, %v13176_v10 }
 0x8e4   : > { %v13290_v21 = vadd.f32 %v7160_v46, %v7061_v11  ;;  %v7253_v20 = vmul.f32 %v7215_v34, %v12970_v29 }
 0x8e5   : > { %8161 = vmatmul.msk.f32.gmra.mxu2 %vm667_vm0, %v8950_v14  ;;  %v7223_v51 = vpop.permute.xlu0 %7222 }
 0x8e6   : > { %v7255_v9 = vmul.f32 %v7223_v51, %v12986_v35 }
 0x8e8   : > { %7283 = vrot.lane.b32.xlu1 %v7253_v20, %s9026_s25 }
 0x8eb   : > { %v13296_v24 = vpop.permute.xlu1 %7165  ;;  %v7227_v3 = vpop.permute.xlu2 %7226 }
 0x8ec   : > { %v7256_v42 = vmul.f32 %v7227_v3, %v12992_v8  ;;  %v14287_v3 = vld [vmem:[#allocation73_spill] sm:$0xff] }
 0x8ed   : > { %v7235_v16 = vpop.permute.xlu0 %7234 }
 0x8f0   : > { %7289 = vrot.lane.b32.xlu1 %v7256_v42, %s9026_s25  ;;  %v14288_v42 = vld [vmem:[#allocation68_spill] sm:$0xff] }
 0x8f1   : > { %v5987_v14 = vmul.f32 %v14288_v42, %v14287_v3  ;;  %v14299_v42 = vld [vmem:[#allocation81_spill] sm:$0xff] }
 0x8f3   : > { %v7199_v7 = vpop.permute.xlu1 %7198  ;;  %v7239_v62 = vpop.permute.xlu2 %7238 }
 0x8f4   : > { %v7249_v40 = vmul.f32 %v7199_v7, %v14281_v57  ;;  %v7259_v29 = vmul.f32 %v7239_v62, %v13012_v33  ;;  %v5907_v7 = vpop.f32.mrf.mxu3 }
 0x8f5   : > { %v7247_v2 = vpop.permute.xlu0 %7246 }
 0x8f6   : > { %7275 = vrot.lane.b32.xlu2 %v7249_v40, %s9026_s25  ;;  %v7261_v35 = vmul.f32 %v7247_v2, %v13031_v53  ;;  %v14289_v40 = vld [vmem:[#allocation92_spill] sm:$0xff] }
 0x8f8   : > { %7295 = vrot.lane.b32.xlu1 %v7259_v29, %s9026_s25  ;;  %v6128_v29 = vadd.f32 %v14289_v40, %v5998_v15  ;;  %v14298_v15 = vld [vmem:[#allocation56_spill] sm:$0xff]  ;;  %v14301_v40 = vld [vmem:[#allocation103_spill] sm:$0xff] }
 0x8fb   : > { %v7211_v5 = vpop.permute.xlu1 %7210 }
 0x8fc   : > { %v7252_v22 = vmul.f32 %v7211_v5, %v12962_v48  ;;  %v7258_v48 = vmul.f32 %v7235_v16, %v13006_v37  ;;  %v9031_v37 = vmov 13   ;;  %v6000_v5 = vadd.f32 %v5987_v14, %v5907_v7  ;;  %v14300_v14 = vld [vmem:[#allocation76_spill] sm:$0xff] }
 0x8fd   : > { %v6455_v7 = vmul.f32 %v14300_v14, %v14299_v42  ;;  %v14310_v14 = vld [vmem:[#allocation97_spill] sm:$0xff] }
 0x8fe   : > { %7281 = vrot.lane.b32.xlu2 %v7252_v22, %s9026_s25  ;;  %v14290_v22 = vld [vmem:[#allocation95_spill] sm:$0xff] }
 0x8ff   : > { %v6258_v51 = vadd.f32 %v14290_v22, %v6128_v29 }
 0x900   : > { %7328 = vperm.xlu1 %8373, %v14167_v52  }
 0x903   : > { %v7219_v8 = vpop.permute.xlu1 %7218 }
 0x904   : > { %v7254_v12 = vmul.f32 %v7219_v8, %v12978_v49 }
 0x906   : > { %7285 = vrot.lane.b32.xlu0 %v7254_v12, %s9026_s25  ;;  %7287 = vrot.lane.b32.xlu2 %v7255_v9, %s9026_s25  ;;  %v14291_v9 = vld [vmem:[#allocation98_spill] sm:$0xff] }
 0x907   : > { %v13339_v27 = vpop.f32.mrf.mxu2  ;;  %v6388_v12 = vadd.f32 %v14291_v9, %v6258_v51  ;;  %v14303_v9 = vld [vmem:[#allocation121_spill] sm:$0xff] }
 0x908   : > { %7340 = vperm.xlu1 %8373, %v12166_v44  }
 0x90b   : > { %v7231_v18 = vpop.permute.xlu1 %7230 }
 0x90c   : > { %v7257_v39 = vmul.f32 %v7231_v18, %v14282_v28 }
 0x90e   : > { %7291 = vrot.lane.b32.xlu0 %v7257_v39, %s9026_s25  ;;  %7293 = vrot.lane.b32.xlu2 %v7258_v48, %s9026_s25  ;;  %v14293_v48 = vld [vmem:[#allocation65_spill] sm:$0xff]  ;;  %v14294_v39 = vld [vmem:[#allocation60_spill] sm:$0xff] }
 0x90f   : > { %v13346_v11 = vpop.f32.mrf.mxu2  ;;  %v6453_v2 = vmul.f32 %v14294_v39, %v14293_v48 }
 0x910   : > { %7348 = vperm.xlu1 %8373, %v12318_v26  }
 0x913   : > { %v7243_v49 = vpop.permute.xlu1 %7242 }
 0x914   : > { %v7260_v41 = vmul.f32 %v7243_v49, %v13023_v59  ;;  %v14283_v59 = vld [vmem:[#allocation10_spill] sm:$0xff]  ;;  %v14295_v49 = vld [vmem:[#allocation115_spill] sm:$0xff] }
 0x916   : > { %7297 = vrot.lane.b32.xlu0 %v7260_v41, %s9026_s25  ;;  %7299 = vrot.lane.b32.xlu2 %v7261_v35, %s9026_s25 }
 0x917   : > { %v13365_v18 = vpop.f32.mrf.mxu2 }
 0x918   : > { %7360 = vperm.xlu1 %8373, %v12410_v6  }
 0x91e   : > { %7332 = vperm.xlu0 %8374, %v14158_v63   ;;  %7336 = vperm.xlu2 %8375, %v14160_v31  }
 0x91f   : > { %v13391_v48 = vpop.f32.mrf.mxu2 }
 0x920   : > { %7372 = vperm.xlu1 %8373, %v12515_v19  }
 0x926   : > { %7352 = vperm.xlu0 %8374, %v12366_v0   ;;  %7344 = vperm.xlu2 %8375, %v12254_v13  }
 0x928   : > { %8377 = vset.pattern.permute.xlu1 %v9031_v37 }
 0x929   : > { %7410 = vperm.xlu1 %8377, %v14158_v63  }
 0x92e   : > { %7364 = vperm.xlu0 %8374, %v14283_v59   ;;  %7356 = vperm.xlu2 %8375, %v12397_v43  }
 0x931   : > { %7422 = vperm.xlu1 %8377, %v12254_v13  }
 0x936   : > { %7376 = vperm.xlu0 %8374, %v14284_v50   ;;  %7368 = vperm.xlu2 %8375, %v12500_v4  }
 0x939   : > { %7430 = vperm.xlu1 %8377, %v12366_v0  }
 0x93e   : > { %8378 = vset.pattern.permute.xlu0 %v9031_v37  ;;  %8376 = vset.pattern.permute.xlu2 %v9031_v37  ;;  %v6466_v37 = vadd.f32 %v6453_v2, %v6388_v12  ;;  %v14305_v2 = vld [vmem:[#allocation50_spill] sm:$0xff] }
 0x93f   : > { %7414 = vperm.xlu0 %8378, %v14160_v31   ;;  %7406 = vperm.xlu2 %8376, %v14167_v52  }
 0x940   : > { %v6596_v29 = vadd.f32 %v14301_v40, %v6466_v37  ;;  %v14307_v37 = vld [vmem:[#allocation123_spill] sm:$0xff]  ;;  %v14312_v40 = vld [vmem:[#allocation133_spill] sm:$0xff] }
 0x941   : > { %7442 = vperm.xlu1 %8377, %v14283_v59  }
 0x947   : > { %7434 = vperm.xlu0 %8378, %v12397_v43   ;;  %7418 = vperm.xlu2 %8376, %v12166_v44  }
 0x949   : > { %7454 = vperm.xlu1 %8377, %v14284_v50  }
 0x94f   : > { %7446 = vperm.xlu0 %8378, %v12500_v4   ;;  %7426 = vperm.xlu2 %8376, %v12318_v26  }
 0x950   : > { %v13350_v46 = vpop.permute.xlu2 %7275  ;;  %v7280_v34 = vpop.permute.xlu0 %7279 }
 0x951   : > { %v13353_v20 = vadd.f32 %v7280_v34, %v13205_v55  ;;  %v14292_v55 = vld [vmem:[#allocation112_spill] sm:$0xff] }
 0x952   : > { %v13358_v62 = vpop.permute.xlu1 %7277  ;;  %v6130_v16 = vadd.f32 %v14292_v55, %v6000_v5  ;;  %v14297_v34 = vld [vmem:[#allocation44_spill] sm:$0xff]  ;;  %v14304_v55 = vld [vmem:[#allocation126_spill] sm:$0xff] }
 0x953   : > { %v5983_v3 = vmul.f32 %v14298_v15, %v14297_v34  ;;  %v14309_v34 = vld [vmem:[#allocation124_spill] sm:$0xff] }
 0x954   : > { %v6260_v35 = vadd.f32 %v14295_v49, %v6130_v16  ;;  %v6921_v16 = vmul.f32 %v14304_v55, %v13012_v33 }
 0x955   : > { %v5996_v51 = vadd.f32 %v5983_v3, %v13144_v47  ;;  %v14308_v47 = vld [vmem:[#allocation94_spill] sm:$0xff] }
 0x956   : > { %v6390_v30 = vadd.f32 %v14296_v56, %v6260_v35  ;;  %v14306_v35 = vld [vmem:[#allocation109_spill] sm:$0xff] }
 0x957   : > { %7438 = vperm.xlu2 %8376, %v12410_v6   ;;  %v6126_v49 = vadd.f32 %v14305_v2, %v5996_v51  ;;  %v14314_v51 = vld [vmem:[#allocation59_spill] sm:$0xff]  ;;  %v13412_v2 = vpop.f32.mrf.mxu2 }
 0x958   : > { %v7282_v8 = vpop.permute.xlu2 %7281  ;;  %v6468_v5 = vadd.f32 %v6455_v7, %v6390_v30  ;;  %v14311_v7 = vld [vmem:[#allocation117_spill] sm:$0xff] }
 0x959   : > { %v13368_v10 = vadd.f32 %v7282_v8, %v13163_v36  ;;  %v14302_v8 = vld [vmem:[#allocation106_spill] sm:$0xff]  ;;  %v6256_v30 = vadd.f32 %v14308_v47, %v6126_v49  ;;  %v14319_v47 = vld [vmem:[#allocation87_spill] sm:$0xff] }
 0x95a   : > { %v7284_v41 = vpop.permute.xlu1 %7283  ;;  %v6598_v12 = vadd.f32 %v14303_v9, %v6468_v5 }
 0x95b   : > { %v13375_v38 = vadd.f32 %v7284_v41, %v13280_v25  ;;  %v6726_v25 = vadd.f32 %v14302_v8, %v6596_v29  ;;  %v6386_v33 = vadd.f32 %v14310_v14, %v6256_v30  ;;  %v14315_v8 = vld [vmem:[#allocation51_spill] sm:$0xff]  ;;  %v14321_v14 = vld [vmem:[#allocation90_spill] sm:$0xff] }
 0x95c   : > { %v6728_v56 = vadd.f32 %v14307_v37, %v6598_v12 }
 0x95d   : > { %v6856_v41 = vadd.f32 %v14306_v35, %v6726_v25 }
 0x95e   : > { %v6858_v15 = vadd.f32 %v14309_v34, %v6728_v56 }
 0x95f   : > { %7450 = vperm.xlu2 %8376, %v12515_v19   ;;  %v6934_v3 = vadd.f32 %v6921_v16, %v6856_v41  ;;  %v14316_v16 = vld [vmem:[#allocation134_spill] sm:$0xff]  ;;  %v14317_v41 = vld [vmem:[#allocation85_spill] sm:$0xff] }
 0x960   : > { %v7288_v36 = vpop.permute.xlu2 %7287 }
 0x961   : > { %v13384_v22 = vadd.f32 %v7288_v36, %v13229_v1  ;;  %v6923_v36 = vmul.f32 %v14311_v7, %v13031_v53  ;;  %v7064_v29 = vadd.f32 %v14312_v40, %v6934_v3  ;;  %v14323_v40 = vld [vmem:[#allocation135_spill] sm:$0xff] }
 0x962   : > { %v7290_v39 = vpop.permute.xlu1 %7289 }
 0x963   : > { %v13397_v1 = vadd.f32 %v7290_v39, %v13290_v21  ;;  %v6451_v21 = vmul.f32 %v14315_v8, %v14314_v51  ;;  %v6936_v25 = vadd.f32 %v6923_v36, %v6858_v15  ;;  %v7194_v9 = vadd.f32 %v13296_v24, %v7064_v29  ;;  %v14320_v24 = vld [vmem:[#allocation120_spill] sm:$0xff]  ;;  %v13425_v15 = vpop.f32.mrf.mxu2 }
 0x964   : > { %v6919_v34 = vmul.f32 %v14320_v24, %v14282_v28 }
 0x965   : > { %v6464_v55 = vadd.f32 %v6451_v21, %v6386_v33  ;;  %v7066_v39 = vadd.f32 %v14316_v16, %v6936_v25 }
 0x967   : > { %v7196_v53 = vadd.f32 %v13265_v58, %v7066_v39 }
 0x968   : > { %v7294_v42 = vpop.permute.xlu2 %7293 }
 0x969   : > { %v13406_v5 = vadd.f32 %v7294_v42, %v13246_v54  ;;  %v6594_v54 = vadd.f32 %v14317_v41, %v6464_v55 }
 0x96a   : > { %v7296_v12 = vpop.permute.xlu1 %7295 }
 0x96b   : > { %14313 = vst [vmem:[#allocation5_spill] sm:$0xff] %v13406_v5  ;;  %v13414_v49 = vadd.f32 %v7296_v12, %v7194_v9  ;;  %v6724_v30 = vadd.f32 %v14319_v47, %v6594_v54  ;;  %v13441_v25 = vpop.f32.mrf.mxu2 }
 0x96d   : > { %v6854_v33 = vadd.f32 %v14321_v14, %v6724_v30 }
 0x96f   : > { %v6932_v7 = vadd.f32 %v6919_v34, %v6854_v33 }
 0x970   : > { %v7300_v35 = vpop.permute.xlu2 %7299 }
 0x971   : > { %v13418_v37 = vadd.f32 %v7300_v35, %v7196_v53  ;;  %v7062_v29 = vadd.f32 %v14323_v40, %v6932_v7  ;;  %v9032_v7 = vmov 14  }
 0x972   : > { %v13420_v56 = vpop.permute.xlu1 %7328  ;;  %8381 = vset.pattern.permute.xlu0 %v9032_v7  ;;  %8379 = vset.pattern.permute.xlu2 %v9032_v7 }
 0x973   : > { %14318 = vst [vmem:[#allocation46_spill] sm:$0xff] %v13418_v37  ;;  %v7192_v51 = vadd.f32 %v13251_v60, %v7062_v29  ;;  %v13450_v16 = vpop.f32.mrf.mxu2  ;;  %8380 = vset.pattern.permute.xlu1 %v9032_v7  ;;  %v14329_v7 = vld [vmem:[#allocation17_spill] sm:$0xff] }
 0x974   : > { %v14332_v37 = vld [vmem:[#allocation25_spill] sm:$0xff] }
 0x978   : > { %v13427_v3 = vpop.permute.xlu2 %7336  ;;  %v7286_v42 = vpop.permute.xlu0 %7285 }
 0x979   : > { %v13431_v58 = vadd.f32 %v7286_v42, %v13239_v32 }
 0x97a   : > { %v13433_v36 = vpop.permute.xlu1 %7340 }
 0x97b   : > { %14322 = vst [vmem:[#allocation31_spill] sm:$0xff] %v13431_v58  ;;  %v13460_v41 = vpop.f32.mrf.mxu2 }
 0x980   : > { %v13437_v8 = vpop.permute.xlu2 %7344  ;;  %v7292_v28 = vpop.permute.xlu0 %7291 }
 0x981   : > { %v13439_v21 = vadd.f32 %v7292_v28, %v7192_v51 }
 0x982   : > { %v13443_v9 = vpop.permute.xlu1 %7348 }
 0x983   : > { %14324 = vst [vmem:[#allocation8_spill] sm:$0xff] %v13439_v21  ;;  %v13467_v34 = vpop.f32.mrf.mxu2 }
 0x988   : > { %v13445_v12 = vpop.permute.xlu2 %7356  ;;  %v7298_v32 = vpop.permute.xlu0 %7297 }
 0x989   : > { %v13448_v55 = vadd.f32 %v7298_v32, %v13273_v45 }
 0x98a   : > { %v13452_v39 = vpop.permute.xlu1 %7360 }
 0x98b   : > { %14325 = vst [vmem:[#allocation21_spill] sm:$0xff] %v13448_v55  ;;  %v13478_v28 = vpop.f32.mrf.mxu2 }
 0x98c   : > { %14326 = vst [vmem:[#allocation20_spill] sm:$0xff] %v13452_v39 }
 0x990   : > { %v13454_v60 = vpop.permute.xlu2 %7368  ;;  %v13456_v53 = vpop.permute.xlu0 %7332 }
 0x992   : > { %v13458_v35 = vpop.permute.xlu1 %7372 }
 0x993   : > { %14327 = vst [vmem:[#allocation42_spill] sm:$0xff] %v13458_v35 }
 0x998   : > { %v13462_v54 = vpop.permute.xlu0 %7352 }
 0x999   : > { %v7407_v47 = vpop.permute.xlu2 %7406 }
 0x99a   : > { %v7457_v30 = vmul.f32 %v7407_v47, %v13339_v27 }
 0x99b   : > { %v7411_v45 = vpop.permute.xlu1 %7410 }
 0x99c   : > { %7483 = vrot.lane.b32.xlu0 %v7457_v30, %s9024_s21  ;;  %v7458_v24 = vmul.f32 %v7411_v45, %v13346_v11 }
 0x99e   : > { %7485 = vrot.lane.b32.xlu2 %v7458_v24, %s9024_s21 }
 0x9a0   : > { %v13470_v42 = vpop.permute.xlu0 %7364 }
 0x9a1   : > { %v7419_v14 = vpop.permute.xlu2 %7418 }
 0x9a2   : > { %v7460_v33 = vmul.f32 %v7419_v14, %v13391_v48  ;;  %v13483_v14 = vpop.f32.mrf.mxu2 }
 0x9a3   : > { %v7423_v40 = vpop.permute.xlu1 %7422 }
 0x9a4   : > { %7489 = vrot.lane.b32.xlu0 %v7460_v33, %s9024_s21  ;;  %v7461_v29 = vmul.f32 %v7423_v40, %v13412_v2  ;;  %v14330_v40 = vld [vmem:[#allocation29_spill] sm:$0xff] }
 0x9a6   : > { %7491 = vrot.lane.b32.xlu2 %v7461_v29, %s9024_s21  ;;  %v5976_v29 = vmul.f32 %v14330_v40, %v14329_v7 }
 0x9a8   : > { %v13476_v51 = vpop.permute.xlu0 %7376 }
 0x9a9   : > { %14328 = vst [vmem:[#allocation83_spill] sm:$0xff] %v13476_v51  ;;  %v7427_v24 = vpop.permute.xlu2 %7426  ;;  %v14335_v51 = vld [vmem:[#allocation6_spill] sm:$0xff] }
 0x9aa   : > { %v13494_v58 = vpop.f32.mrf.mxu2 }
 0x9ab   : > { %v7431_v32 = vpop.permute.xlu1 %7430  ;;  %14333 = vst [vmem:[#allocation12_spill] sm:$0xff] %v13494_v58 }
 0x9ac   : > { %v7463_v47 = vmul.f32 %v7431_v32, %v13441_v25  ;;  %v14331_v32 = vld [vmem:[#allocation137_spill] sm:$0xff] }
 0x9ad   : > { %v5989_v21 = vadd.f32 %v5976_v29, %v14331_v32  ;;  %v14337_v32 = vld [vmem:[#allocation19_spill] sm:$0xff] }
 0x9ae   : > { %7495 = vrot.lane.b32.xlu0 %v7463_v47, %s9024_s21  ;;  %v7462_v47 = vmul.f32 %v7427_v24, %v13425_v15 }
 0x9af   : > { %v6119_v39 = vadd.f32 %v14332_v37, %v5989_v21 }
 0x9b1   : > { %v7415_v30 = vpop.permute.xlu0 %7414 }
 0x9b2   : > { %v7459_v45 = vmul.f32 %v7415_v30, %v13365_v18 }
 0x9b3   : > { %v7443_v33 = vpop.permute.xlu1 %7442 }
 0x9b4   : > { %7487 = vrot.lane.b32.xlu1 %v7459_v45, %s9024_s21  ;;  %v7466_v55 = vmul.f32 %v7443_v33, %v13467_v34  ;;  %v7439_v45 = vpop.permute.xlu2 %7438  ;;  %v14334_v33 = vld [vmem:[#allocation47_spill] sm:$0xff] }
 0x9b5   : > { %v6249_v40 = vadd.f32 %v14334_v33, %v6119_v39  ;;  %v7465_v21 = vmul.f32 %v7439_v45, %v13460_v41  ;;  %v14338_v39 = vld [vmem:[#allocation34_spill] sm:$0xff]  ;;  %v14342_v45 = vld [vmem:[#allocation39_spill] sm:$0xff] }
 0x9b6   : > { %7501 = vrot.lane.b32.xlu0 %v7466_v55, %s9024_s21 }
 0x9b7   : > { %v6379_v29 = vadd.f32 %v14335_v51, %v6249_v40  ;;  %v14340_v51 = vld [vmem:[#allocation15_spill] sm:$0xff] }
 0x9b9   : > { %v7435_v35 = vpop.permute.xlu0 %7434 }
 0x9ba   : > { %v7464_v30 = vmul.f32 %v7435_v35, %v13450_v16  ;;  %v14336_v35 = vld [vmem:[#allocation58_spill] sm:$0xff] }
 0x9bb   : > { %v7455_v7 = vpop.permute.xlu1 %7454  ;;  %v6444_v37 = vmul.f32 %v14337_v32, %v14336_v35 }
 0x9bc   : > { %7493 = vrot.lane.b32.xlu1 %v7462_v47, %s9024_s21  ;;  %7497 = vrot.lane.b32.xlu2 %v7464_v30, %s9024_s21  ;;  %v7469_v55 = vmul.f32 %v7455_v7, %v13494_v58  ;;  %v14339_v30 = vld [vmem:[#allocation33_spill] sm:$0xff]  ;;  %v7451_v33 = vpop.permute.xlu2 %7450 }
 0x9bd   : > { %v6457_v5 = vadd.f32 %v6444_v37, %v6379_v29  ;;  %v5975_v7 = vmul.f32 %v14339_v30, %v14338_v39  ;;  %v7468_v35 = vmul.f32 %v7451_v33, %v13483_v14  ;;  %v14344_v37 = vld [vmem:[#allocation14_spill] sm:$0xff]  ;;  %v14349_v33 = vld [vmem:[#allocation41_spill] sm:$0xff] }
 0x9be   : > { %7507 = vrot.lane.b32.xlu0 %v7469_v55, %s9024_s21  ;;  %v14341_v55 = vld [vmem:[#allocation136_spill] sm:$0xff] }
 0x9bf   : > { %v6587_v40 = vadd.f32 %v14340_v51, %v6457_v5  ;;  %v5988_v58 = vadd.f32 %v5975_v7, %v14341_v55  ;;  %v14346_v5 = vld [vmem:[#allocation30_spill] sm:$0xff]  ;;  %v14348_v7 = vld [vmem:[#allocation55_spill] sm:$0xff] }
 0x9c0   : > { %v14347_v51 = vld [vmem:[#allocation38_spill] sm:$0xff] }
 0x9c1   : > { %v7447_v24 = vpop.permute.xlu0 %7446  ;;  %v6118_v32 = vadd.f32 %v14342_v45, %v5988_v58  ;;  %v6443_v58 = vmul.f32 %v14349_v33, %v14348_v7  ;;  %v14350_v45 = vld [vmem:[#allocation128_spill] sm:$0xff] }
 0x9c2   : > { %v7467_v47 = vmul.f32 %v7447_v24, %v13478_v28  ;;  %v14343_v24 = vld [vmem:[#allocation7_spill] sm:$0xff] }
 0x9c3   : > { %v6717_v29 = vadd.f32 %v14343_v24, %v6587_v40 }
 0x9c4   : > { %7499 = vrot.lane.b32.xlu1 %v7465_v21, %s9024_s21  ;;  %7503 = vrot.lane.b32.xlu2 %v7467_v47, %s9024_s21  ;;  %v6248_v21 = vadd.f32 %v14344_v37, %v6118_v32  ;;  %v14345_v47 = vld [vmem:[#allocation45_spill] sm:$0xff]  ;;  %v14351_v32 = vld [vmem:[#allocation40_spill] sm:$0xff] }
 0x9c5   : > { %v6912_v39 = vmul.f32 %v14345_v47, %v12944_v61  ;;  %v14352_v37 = vld [vmem:[#allocation9_spill] sm:$0xff]  ;;  %v14353_v47 = vld [vmem:[#allocation32_spill] sm:$0xff] }
 0x9c6   : > { %7544 = vperm.xlu0 %8381, %v14160_v31   ;;  %v6378_v30 = vadd.f32 %v14346_v5, %v6248_v21  ;;  %v6847_v31 = vadd.f32 %v14347_v51, %v6717_v29  ;;  %v7380_v29 = vmul.f32 %v13456_v53, %v13346_v11  ;;  %v6911_v5 = vmul.f32 %v14353_v47, %v14281_v57  ;;  %v14355_v53 = vld [vmem:[#allocation127_spill] sm:$0xff] }
 0x9c8   : > { %v6925_v55 = vadd.f32 %v6912_v39, %v6847_v31  ;;  %v6456_v40 = vadd.f32 %v6443_v58, %v6378_v30  ;;  %v7383_v31 = vmul.f32 %v13437_v8, %v13412_v2  ;;  %v14354_v30 = vld [vmem:[#allocation28_spill] sm:$0xff]  ;;  %v7379_v8 = vmul.f32 %v13420_v56, %v13339_v27 }
 0x9ca   : > { %v6586_v24 = vadd.f32 %v14351_v32, %v6456_v40 }
 0x9cc   : > { %7505 = vrot.lane.b32.xlu1 %v7468_v35, %s9024_s21  ;;  %7536 = vperm.xlu2 %8379, %v14167_v52   ;;  %v7055_v35 = vadd.f32 %v14350_v45, %v6925_v55  ;;  %v6716_v21 = vadd.f32 %v14352_v37, %v6586_v24  ;;  %v14357_v37 = vld [vmem:[#allocation12_spill] sm:$0xff]  ;;  %s8967_s21 = scalar_lea.hbm %s8966_s27, 1 }
 0x9cd   : > { %p8968_p12 = scmp.ne.s32.totalorder %s8966_s27, %s8967_s21  ;;  %p8973_p2 = scmp.lt.s32.totalorder %s8971_s17, %s8967_s21 }
 0x9ce   : > { %7564 = vperm.xlu0 %8381, %v12397_v43   ;;  %v7185_v61 = vadd.f32 %v13263_v23, %v7055_v35  ;;  %v6846_v51 = vadd.f32 %v14354_v30, %v6716_v21  ;;  %v7396_v23 = vadd.f32 %v7383_v31, %v13375_v38  ;;  %v7386_v38 = vmul.f32 %v13445_v12, %v13450_v16  ;;  %v14358_v21 = vld [vmem:[#allocation83_spill] sm:$0xff] }
 0x9cf   : > { %v7385_v12 = vmul.f32 %v13462_v54, %v13441_v25  ;;  %v7391_v47 = vmul.f32 %v14358_v21, %v14357_v37  ;;  %p8969_p13 = pnand %p8968_p12, %p9127_p5  ;;  %p8974_p3 = por %p8973_p2, %p8972_p1 }
 0x9d0   : > { %v7315_v39 = vadd.f32 %v13358_v62, %v7185_v61  ;;  %v6924_v33 = vadd.f32 %v6911_v5, %v6846_v51  ;;  %v7399_v40 = vadd.f32 %v7386_v38, %v13397_v1  ;;  %v7381_v1 = vmul.f32 %v13427_v3, %v13365_v18  ;;  %v14359_v5 = vld [vmem:[#allocation31_spill] sm:$0xff] }
 0x9d1   : > { %p8970_p0 = pneg %p8969_p13 }
 0x9d2   : > { %v7393_v7 = vadd.f32 %v7380_v29, %v7315_v39  ;;  %v7054_v58 = vadd.f32 %v14355_v53, %v6924_v33  ;;  %v14356_v29 = vld [vmem:[#allocation5_spill] sm:$0xff] }
 0x9d3   : > { %p8975_p4 = pnand %p8974_p3, %p8970_p0 }
 0x9d4   : > { %7540 = vperm.xlu1 %8380, %v14158_v63   ;;  %7548 = vperm.xlu2 %8379, %v12166_v44   ;;  %v7184_v57 = vadd.f32 %v13146_v17, %v7054_v58  ;;  %v7382_v17 = vmul.f32 %v13433_v36, %v13391_v48  ;;  %v7398_v36 = vadd.f32 %v7385_v12, %v13384_v22  ;;  %v14360_v22 = vld [vmem:[#allocation20_spill] sm:$0xff]  ;;  %v14363_v58 = vld [vmem:[#allocation42_spill] sm:$0xff] }
 0x9d5   : > { %v7387_v39 = vmul.f32 %v14360_v22, %v13460_v41 }
 0x9d6   : > { %7576 = vperm.xlu0 %8381, %v12500_v4   ;;  %v7314_v62 = vadd.f32 %v13350_v46, %v7184_v57  ;;  %v7389_v46 = vmul.f32 %v13454_v60, %v13478_v28  ;;  %v7395_v56 = vadd.f32 %v7382_v17, %v13368_v10  ;;  %v7388_v60 = vmul.f32 %v13470_v42, %v13467_v34  ;;  %v14361_v42 = vld [vmem:[#allocation46_spill] sm:$0xff] }
 0x9d7   : > { %v7394_v10 = vadd.f32 %v7381_v1, %v13353_v20  ;;  %v7404_v51 = vadd.f32 %v7391_v47, %v14361_v42  ;;  %v7390_v57 = vmul.f32 %v14363_v58, %v13483_v14 }
 0x9d8   : > { %v7392_v55 = vadd.f32 %v7379_v8, %v7314_v62  ;;  %v7402_v45 = vadd.f32 %v7389_v46, %v13414_v49  ;;  %v7384_v49 = vmul.f32 %v13443_v9, %v13425_v15  ;;  %v7401_v54 = vadd.f32 %v7388_v60, %v14356_v29  ;;  %v14364_v8 = vld [vmem:[#allocation21_spill] sm:$0xff] }
 0x9d9   : > { %v7403_v62 = vadd.f32 %v7390_v57, %v14364_v8 }
 0x9da   : > { %v7397_v3 = vadd.f32 %v7384_v49, %v14359_v5  ;;  %v9033_v5 = vmov 15  }
 0x9dc   : > { %7552 = vperm.xlu1 %8380, %v12254_v13   ;;  %7556 = vperm.xlu2 %8379, %v12318_v26  }
 0x9de   : > { %8384 = vset.pattern.permute.xlu0 %v9033_v5 }
 0x9e4   : > { %7560 = vperm.xlu1 %8380, %v12366_v0   ;;  %7568 = vperm.xlu2 %8379, %v12410_v6  }
 0x9ec   : > { %7572 = vperm.xlu1 %8380, %v14283_v59   ;;  %7580 = vperm.xlu2 %8379, %v12515_v19  }
 0x9f4   : > { %7584 = vperm.xlu1 %8380, %v14284_v50   ;;  %8382 = vset.pattern.permute.xlu2 %v9033_v5 }
 0x9f8   : > { %v7486_v35 = vpop.permute.xlu2 %7485 }
 0x9f9   : > { %v13565_v32 = vadd.f32 %v7486_v35, %v7393_v7  ;;  %v14362_v7 = vld [vmem:[#allocation8_spill] sm:$0xff] }
 0x9fa   : > { %v7400_v20 = vadd.f32 %v7387_v39, %v14362_v7 }
 0x9fc   : > { %8383 = vset.pattern.permute.xlu1 %v9033_v5 }
 0xa00   : > { %v7492_v24 = vpop.permute.xlu2 %7491 }
 0xa01   : > { %v13572_v61 = vadd.f32 %v7492_v24, %v7396_v23 }
 0xa0e   : > { %v7484_v31 = vpop.permute.xlu0 %7483 }
 0xa0f   : > { %v13583_v30 = vadd.f32 %v7484_v31, %v7392_v55 }
 0xa16   : > { %v7498_v33 = vpop.permute.xlu2 %7497  ;;  %v7490_v23 = vpop.permute.xlu0 %7489 }
 0xa17   : > { %v13587_v9 = vadd.f32 %v7498_v33, %v7399_v40  ;;  %v13589_v53 = vadd.f32 %v7490_v23, %v7395_v56 }
 0xa1e   : > { %v7504_v38 = vpop.permute.xlu2 %7503 }
 0xa1f   : > { %v13594_v17 = vadd.f32 %v7504_v38, %v7402_v45 }
 0xa20   : > { %v7496_v55 = vpop.permute.xlu0 %7495 }
 0xa21   : > { %v13596_v46 = vadd.f32 %v7496_v55, %v7398_v36 }
 0xa26   : > { %v7488_v35 = vpop.permute.xlu1 %7487  ;;  %v7537_v12 = vpop.permute.xlu2 %7536 }
 0xa27   : > { %v13598_v1 = vadd.f32 %v7488_v35, %v7394_v10  ;;  %v7587_v40 = vmul.f32 %v7537_v12, %v13339_v27 }
 0xa28   : > { %v7502_v56 = vpop.permute.xlu0 %7501 }
 0xa29   : > { %7613 = vrot.lane.b32.xlu0 %v7587_v40, %s9025_s29  ;;  %v13602_v24 = vadd.f32 %v7502_v56, %v7401_v54 }
 0xa2e   : > { %v7494_v60 = vpop.permute.xlu1 %7493  ;;  %v7549_v49 = vpop.permute.xlu2 %7548 }
 0xa2f   : > { %v13604_v29 = vadd.f32 %v7494_v60, %v7397_v3  ;;  %v7590_v45 = vmul.f32 %v7549_v49, %v13391_v48 }
 0xa30   : > { %v7508_v36 = vpop.permute.xlu0 %7507 }
 0xa31   : > { %7619 = vrot.lane.b32.xlu0 %v7590_v45, %s9025_s29  ;;  %v13608_v21 = vadd.f32 %v7508_v36, %v7404_v51 }
 0xa36   : > { %v7500_v10 = vpop.permute.xlu1 %7499  ;;  %v7557_v22 = vpop.permute.xlu2 %7556 }
 0xa37   : > { %v13610_v47 = vadd.f32 %v7500_v10, %v7400_v20  ;;  %v7592_v42 = vmul.f32 %v7557_v22, %v13425_v15 }
 0xa38   : > { %v7545_v54 = vpop.permute.xlu0 %7544 }
 0xa39   : > { %v7589_v31 = vmul.f32 %v7545_v54, %v13365_v18 }
 0xa3b   : > { %7617 = vrot.lane.b32.xlu1 %v7589_v31, %s9025_s29 }
 0xa3e   : > { %v7506_v3 = vpop.permute.xlu1 %7505  ;;  %v7569_v51 = vpop.permute.xlu2 %7568 }
 0xa3f   : > { %v13614_v39 = vadd.f32 %v7506_v3, %v7403_v62  ;;  %v7595_v33 = vmul.f32 %v7569_v51, %v13460_v41 }
 0xa40   : > { %v7565_v8 = vpop.permute.xlu0 %7564 }
 0xa41   : > { %v7594_v55 = vmul.f32 %v7565_v8, %v13450_v16 }
 0xa43   : > { %7623 = vrot.lane.b32.xlu1 %v7592_v42, %s9025_s29 }
 0xa46   : > { %v7541_v7 = vpop.permute.xlu1 %7540  ;;  %v7581_v57 = vpop.permute.xlu2 %7580 }
 0xa47   : > { %v7588_v20 = vmul.f32 %v7541_v7, %v13346_v11  ;;  %v7598_v62 = vmul.f32 %v7581_v57, %v13483_v14 }
 0xa48   : > { %v7577_v12 = vpop.permute.xlu0 %7576 }
 0xa49   : > { %7615 = vrot.lane.b32.xlu2 %v7588_v20, %s9025_s29  ;;  %v7597_v56 = vmul.f32 %v7577_v12, %v13478_v28 }
 0xa4b   : > { %7629 = vrot.lane.b32.xlu1 %v7595_v33, %s9025_s29 }
 0xa4e   : > { %v7553_v23 = vpop.permute.xlu1 %7552 }
 0xa4f   : > { %v7591_v58 = vmul.f32 %v7553_v23, %v13412_v2 }
 0xa51   : > { %7621 = vrot.lane.b32.xlu2 %v7591_v58, %s9025_s29 }
 0xa53   : > { %7635 = vrot.lane.b32.xlu1 %v7598_v62, %s9025_s29 }
 0xa56   : > { %v7561_v38 = vpop.permute.xlu1 %7560 }
 0xa57   : > { %v7593_v35 = vmul.f32 %v7561_v38, %v13441_v25 }
 0xa59   : > { %7625 = vrot.lane.b32.xlu0 %v7593_v35, %s9025_s29  ;;  %7627 = vrot.lane.b32.xlu2 %v7594_v55, %s9025_s29 }
 0xa5b   : > { %7670 = vperm.xlu1 %8383, %v14158_v63   ;;  %v14365_v63 = vld [vmem:[#allocation27_spill] sm:$0xff] }
 0xa5e   : > { %v7573_v40 = vpop.permute.xlu1 %7572 }
 0xa5f   : > { %v7596_v60 = vmul.f32 %v7573_v40, %v13467_v34 }
 0xa61   : > { %7631 = vrot.lane.b32.xlu0 %v7596_v60, %s9025_s29  ;;  %7633 = vrot.lane.b32.xlu2 %v7597_v56, %s9025_s29 }
 0xa63   : > { %7682 = vperm.xlu1 %8383, %v12254_v13  }
 0xa66   : > { %v7585_v49 = vpop.permute.xlu1 %7584 }
 0xa67   : > { %v7599_v45 = vmul.f32 %v7585_v49, %v14357_v37 }
 0xa69   : > { %7637 = vrot.lane.b32.xlu0 %v7599_v45, %s9025_s29  ;;  %7666 = vperm.xlu2 %8382, %v14167_v52   ;;  %s13719_s29 = scalar_lea.vmem %s13795_s3, %s14366_s20  ;;  %s7882_s20 = scalar_lea.sflag [#allocation3], %s399_s18 }
 0xa6a   : > { %v646_v49 = vld [vmem:[%s13719_s29] sm:$0xff] }
 0xa6b   : > { %7690 = vperm.xlu1 %8383, %v12366_v0  }
 0xa71   : > { %7674 = vperm.xlu0 %8384, %v14365_v63   ;;  %7678 = vperm.xlu2 %8382, %v12166_v44  }
 0xa73   : > { %7702 = vperm.xlu1 %8383, %v14283_v59  }
 0xa79   : > { %7694 = vperm.xlu0 %8384, %v12397_v43   ;;  %7686 = vperm.xlu2 %8382, %v12318_v26  }
 0xa7b   : > { %7714 = vperm.xlu1 %8383, %v14284_v50  }
 0xa81   : > { %7706 = vperm.xlu0 %8384, %v12500_v4   ;;  %7698 = vperm.xlu2 %8382, %v12410_v6  }
 0xa89   : > { %7710 = vperm.xlu2 %8382, %v12515_v19  }
 0xa9b   : > { %v7614_v13 = vpop.permute.xlu0 %7613 }
 0xa9c   : > { %v13650_v0 = vadd.f32 %v7614_v13, %v13583_v30 }
 0xaa3   : > { %v7616_v52 = vpop.permute.xlu2 %7615  ;;  %v7620_v44 = vpop.permute.xlu0 %7619 }
 0xaa4   : > { %v13653_v59 = vadd.f32 %v7616_v52, %v13565_v32  ;;  %v13656_v43 = vadd.f32 %v7620_v44, %v13589_v53 }
 0xaab   : > { %v7622_v26 = vpop.permute.xlu2 %7621 }
 0xaac   : > { %v13659_v50 = vadd.f32 %v7622_v26, %v13572_v61 }
 0xaad   : > { %v7618_v4 = vpop.permute.xlu1 %7617 }
 0xaae   : > { %v13662_v6 = vadd.f32 %v7618_v4, %v13598_v1 }
 0xab3   : > { %v7628_v19 = vpop.permute.xlu2 %7627 }
 0xab4   : > { %v13665_v30 = vadd.f32 %v7628_v19, %v13587_v9 }
 0xab5   : > { %v7624_v36 = vpop.permute.xlu1 %7623 }
 0xab6   : > { %v13668_v10 = vadd.f32 %v7624_v36, %v13604_v29  ;;  %v653_v36 = vld [vmem:[%s13719_s29 + $0x38] sm:$0xff] }
 0xabb   : > { %v7634_v32 = vpop.permute.xlu2 %7633 }
 0xabc   : > { %v13671_v53 = vadd.f32 %v7634_v32, %v13594_v17 }
 0xabd   : > { %v7630_v5 = vpop.permute.xlu1 %7629 }
 0xabe   : > { %v13674_v61 = vadd.f32 %v7630_v5, %v13610_v47 }
 0xac3   : > { %v7667_v54 = vpop.permute.xlu2 %7666 }
 0xac4   : > { %v7717_v1 = vmul.f32 %v7667_v54, %v13339_v27 }
 0xac5   : > { %v7636_v31 = vpop.permute.xlu1 %7635 }
 0xac6   : > { %7743 = vrot.lane.b32.xlu0 %v7717_v1, %s9026_s25  ;;  %v13679_v9 = vadd.f32 %v7636_v31, %v13614_v39  ;;  %v656_v1 = vld [vmem:[%s13719_s29 + $0x50] sm:$0xff] }
 0xacb   : > { %v7679_v22 = vpop.permute.xlu2 %7678  ;;  %v7626_v29 = vpop.permute.xlu0 %7625 }
 0xacc   : > { %v7720_v3 = vmul.f32 %v7679_v22, %v13391_v48  ;;  %v13683_v17 = vadd.f32 %v7626_v29, %v13596_v46 }
 0xacd   : > { %v7671_v47 = vpop.permute.xlu1 %7670 }
 0xace   : > { %7749 = vrot.lane.b32.xlu0 %v7720_v3, %s9026_s25  ;;  %v7718_v42 = vmul.f32 %v7671_v47, %v13346_v11  ;;  %v648_v47 = vld [vmem:[%s13719_s29 + $0x10] sm:$0xff] }
 0xad0   : > { %7745 = vrot.lane.b32.xlu2 %v7718_v42, %s9026_s25 }
 0xad3   : > { %v7632_v27 = vpop.permute.xlu0 %7631  ;;  %v7687_v58 = vpop.permute.xlu2 %7686 }
 0xad4   : > { %v13689_v51 = vadd.f32 %v7632_v27, %v13602_v24 }
 0xad5   : > { %v7683_v39 = vpop.permute.xlu1 %7682 }
 0xad6   : > { %v7721_v7 = vmul.f32 %v7683_v39, %v13412_v2 }
 0xad8   : > { %7751 = vrot.lane.b32.xlu2 %v7721_v7, %s9026_s25 }
 0xadb   : > { %v7638_v48 = vpop.permute.xlu0 %7637 }
 0xadc   : > { %v13694_v46 = vadd.f32 %v7638_v48, %v13608_v21  ;;  %v7722_v21 = vmul.f32 %v7687_v58, %v13425_v15  ;;  %v652_v48 = vld [vmem:[%s13719_s29 + $0x30] sm:$0xff] }
 0xadd   : > { %v7691_v20 = vpop.permute.xlu1 %7690 }
 0xade   : > { %v7723_v33 = vmul.f32 %v7691_v20, %v13441_v25  ;;  %v7699_v25 = vpop.permute.xlu2 %7698 }
 0xae0   : > { %7755 = vrot.lane.b32.xlu0 %v7723_v33, %s9026_s25 }
 0xae3   : > { %v7675_v11 = vpop.permute.xlu0 %7674 }
 0xae4   : > { %v7719_v23 = vmul.f32 %v7675_v11, %v13365_v18 }
 0xae5   : > { %v7703_v24 = vpop.permute.xlu1 %7702 }
 0xae6   : > { %7747 = vrot.lane.b32.xlu1 %v7719_v23, %s9026_s25  ;;  %v7726_v2 = vmul.f32 %v7703_v24, %v13467_v34  ;;  %v7725_v34 = vmul.f32 %v7699_v25, %v13460_v41  ;;  %v7711_v15 = vpop.permute.xlu2 %7710  ;;  %v647_v41 = vld [vmem:[%s13719_s29 + $0x8] sm:$0xff] }
 0xae8   : > { %7761 = vrot.lane.b32.xlu0 %v7726_v2, %s9026_s25 }
 0xaeb   : > { %v7695_v57 = vpop.permute.xlu0 %7694 }
 0xaec   : > { %v7724_v8 = vmul.f32 %v7695_v57, %v13450_v16  ;;  %v7728_v16 = vmul.f32 %v7711_v15, %v13483_v14  ;;  %v650_v14 = vld [vmem:[%s13719_s29 + $0x20] sm:$0xff] }
 0xaed   : > { %v7715_v18 = vpop.permute.xlu1 %7714  ;;  %v654_v57 = vld [vmem:[%s13719_s29 + $0x40] sm:$0xff] }
 0xaee   : > { %7753 = vrot.lane.b32.xlu1 %v7722_v21, %s9026_s25  ;;  %7757 = vrot.lane.b32.xlu2 %v7724_v8, %s9026_s25  ;;  %v7729_v62 = vmul.f32 %v7715_v18, %v14357_v37 }
 0xaf0   : > { %7767 = vrot.lane.b32.xlu0 %v7729_v62, %s9026_s25 }
 0xaf3   : > { %v7707_v38 = vpop.permute.xlu0 %7706 }
 0xaf4   : > { %v7727_v55 = vmul.f32 %v7707_v38, %v13478_v28 }
 0xaf6   : > { %7759 = vrot.lane.b32.xlu1 %v7725_v34, %s9026_s25  ;;  %7763 = vrot.lane.b32.xlu2 %v7727_v55, %s9026_s25  ;;  %v658_v34 = vld [vmem:[%s13719_s29 + $0x60] sm:$0xff]  ;;  %v657_v55 = vld [vmem:[%s13719_s29 + $0x58] sm:$0xff] }
 0xafe   : > { %7765 = vrot.lane.b32.xlu1 %v7728_v16, %s9026_s25 }
 0xb2a   : > { %v7746_v28 = vpop.permute.xlu2 %7745 }
 0xb2b   : > { %v7783_v37 = vadd.f32 %v7746_v28, %v13653_v59  ;;  %v649_v59 = vld [vmem:[%s13719_s29 + $0x18] sm:$0xff] }
 0xb2d   : > { %v7796_v35 = vmul.f32 %v7783_v37, %v647_v41 }
 0xb2f   : > { %v7811_v12 = vsel %vm667_vm0, %v7796_v35, 0.0 }
 0xb30   : > { %7812 = vadd.xlane.f32.xlu1 %v7811_v12 }
 0xb32   : > { %v7752_v40 = vpop.permute.xlu2 %7751 }
 0xb33   : > { %v7786_v56 = vadd.f32 %v7752_v40, %v13659_v50 }
 0xb35   : > { %v7799_v60 = vmul.f32 %v7786_v56, %v650_v14 }
 0xb37   : > { %v7820_v63 = vsel %vm667_vm0, %v7799_v60, 0.0 }
 0xb38   : > { %v7744_v45 = vpop.permute.xlu0 %7743  ;;  %7821 = vadd.xlane.f32.xlu1 %v7820_v63 }
 0xb39   : > { %v7782_v13 = vadd.f32 %v7744_v45, %v13650_v0 }
 0xb3b   : > { %v7795_v52 = vmul.f32 %v7782_v13, %v646_v49 }
 0xb3d   : > { %v7808_v44 = vsel %vm667_vm0, %v7795_v52, 0.0 }
 0xb3e   : > { %7809 = vadd.xlane.f32.xlu2 %v7808_v44 }
 0xb40   : > { %v7750_v26 = vpop.permute.xlu0 %7749 }
 0xb41   : > { %v7785_v4 = vadd.f32 %v7750_v26, %v13656_v43 }
 0xb43   : > { %v7798_v19 = vmul.f32 %v7785_v4, %v649_v59 }
 0xb45   : > { %v7817_v50 = vsel %vm667_vm0, %v7798_v19, 0.0 }
 0xb46   : > { %7818 = vadd.xlane.f32.xlu2 %v7817_v50 }
 0xb48   : > { %v7758_v32 = vpop.permute.xlu2 %7757 }
 0xb49   : > { %v7789_v5 = vadd.f32 %v7758_v32, %v13665_v30 }
 0xb4b   : > { %v7802_v0 = vmul.f32 %v7789_v5, %v653_v36 }
 0xb4d   : > { %v7829_v54 = vsel %vm667_vm0, %v7802_v0, 0.0 }
 0xb4e   : > { %7830 = vadd.xlane.f32.xlu1 %v7829_v54 }
 0xb50   : > { %v7764_v31 = vpop.permute.xlu2 %7763 }
 0xb51   : > { %v7792_v22 = vadd.f32 %v7764_v31, %v13671_v53  ;;  %v651_v53 = vld [vmem:[%s13719_s29 + $0x28] sm:$0xff] }
 0xb52   : > { %v7756_v3 = vpop.permute.xlu0 %7755 }
 0xb53   : > { %v7805_v43 = vmul.f32 %v7792_v22, %v656_v1  ;;  %v7788_v39 = vadd.f32 %v7756_v3, %v13683_v17  ;;  %v655_v17 = vld [vmem:[%s13719_s29 + $0x48] sm:$0xff] }
 0xb55   : > { %v7838_v29 = vsel %vm667_vm0, %v7805_v43, 0.0  ;;  %v7801_v11 = vmul.f32 %v7788_v39, %v652_v48 }
 0xb56   : > { %7839 = vadd.xlane.f32.xlu1 %v7838_v29 }
 0xb57   : > { %v7826_v2 = vsel %vm667_vm0, %v7801_v11, 0.0 }
 0xb58   : > { %v7748_v42 = vpop.permute.xlu1 %7747 }
 0xb59   : > { %v7784_v30 = vadd.f32 %v7748_v42, %v13662_v6 }
 0xb5a   : > { %v7762_v20 = vpop.permute.xlu0 %7761 }
 0xb5b   : > { %v7797_v27 = vmul.f32 %v7784_v30, %v648_v47  ;;  %v7791_v24 = vadd.f32 %v7762_v20, %v13689_v51 }
 0xb5d   : > { %v7814_v7 = vsel %vm667_vm0, %v7797_v27, 0.0  ;;  %v7804_v8 = vmul.f32 %v7791_v24, %v655_v17 }
 0xb5e   : > { %7815 = vadd.xlane.f32.xlu0 %v7814_v7 }
 0xb5f   : > { %v7835_v51 = vsel %vm667_vm0, %v7804_v8, 0.0 }
 0xb60   : > { %v7754_v33 = vpop.permute.xlu1 %7753 }
 0xb61   : > { %v7787_v23 = vadd.f32 %v7754_v33, %v13668_v10 }
 0xb62   : > { %v7768_v18 = vpop.permute.xlu0 %7767 }
 0xb63   : > { %v7800_v58 = vmul.f32 %v7787_v23, %v651_v53  ;;  %v7794_v10 = vadd.f32 %v7768_v18, %v13694_v46 }
 0xb65   : > { %v7823_v6 = vsel %vm667_vm0, %v7800_v58, 0.0  ;;  %v7807_v16 = vmul.f32 %v7794_v10, %v658_v34 }
 0xb66   : > { %7824 = vadd.xlane.f32.xlu2 %v7823_v6  ;;  %7827 = vadd.xlane.f32.xlu0 %v7826_v2 }
 0xb68   : > { %v7760_v21 = vpop.permute.xlu1 %7759 }
 0xb69   : > { %v7790_v25 = vadd.f32 %v7760_v21, %v13674_v61  ;;  %v7844_v61 = vsel %vm667_vm0, %v7807_v16, 0.0 }
 0xb6b   : > { %v7803_v62 = vmul.f32 %v7790_v25, %v654_v57 }
 0xb6d   : > { %v7832_v38 = vsel %vm667_vm0, %v7803_v62, 0.0 }
 0xb6e   : > { %7833 = vadd.xlane.f32.xlu2 %v7832_v38  ;;  %7836 = vadd.xlane.f32.xlu0 %v7835_v51 }
 0xb70   : > { %v7766_v15 = vpop.permute.xlu1 %7765 }
 0xb71   : > { %v7793_v41 = vadd.f32 %v7766_v15, %v13679_v9 }
 0xb73   : > { %v7806_v28 = vmul.f32 %v7793_v41, %v657_v55 }
 0xb75   : > { %v7841_v37 = vsel %vm667_vm0, %v7806_v28, 0.0 }
 0xb76   : > { %7842 = vadd.xlane.f32.xlu2 %v7841_v37  ;;  %7845 = vadd.xlane.f32.xlu0 %v7844_v61 }
 0xba3   : > { %v7813_v35 = vpop.xlane.xlu1 %7812 }
 0xbab   : > { %v7822_v40 = vpop.xlane.xlu1 %7821 }
 0xbb1   : > { %v7810_v46 = vpop.xlane.xlu2 %7809 }
 0xbb2   : > { %7847 = vxpose.xlu1.b32.start [1/13] (short) (narrow) %v7810_v46, 8 }
 0xbb9   : > { %v7819_v14 = vpop.xlane.xlu2 %7818 }
 0xbba   : > { %7848 = vxpose.xlu1.b32.cont [2/13] (short) (narrow) %v7813_v35, 8 }
 0xbc1   : > { %v7831_v60 = vpop.xlane.xlu1 %7830 }
 0xbc9   : > { %v7840_v63 = vpop.xlane.xlu1 %7839 }
 0xbd1   : > { %v7816_v12 = vpop.xlane.xlu0 %7815 }
 0xbd2   : > { %7849 = vxpose.xlu1.b32.cont [3/13] (short) (narrow) %v7816_v12, 8 }
 0xbd9   : > { %v7825_v56 = vpop.xlane.xlu2 %7824  ;;  %v7828_v9 = vpop.xlane.xlu0 %7827 }
 0xbda   : > { %7850 = vxpose.xlu1.b32.cont [4/13] (short) (narrow) %v7819_v14, 8 }
 0xbe1   : > { %v7834_v49 = vpop.xlane.xlu2 %7833  ;;  %v7837_v45 = vpop.xlane.xlu0 %7836 }
 0xbe2   : > { %7851 = vxpose.xlu1.b32.cont [5/13] (short) (narrow) %v7822_v40, 8 }
 0xbe9   : > { %v7843_v13 = vpop.xlane.xlu2 %7842  ;;  %v7846_v52 = vpop.xlane.xlu0 %7845 }
 0xbea   : > { %7852 = vxpose.xlu1.b32.cont [6/13] (short) (narrow) %v7825_v56, 8 }
 0xbf2   : > { %7853 = vxpose.xlu1.b32.cont [7/13] (short) (narrow) %v7828_v9, 8 }
 0xbfa   : > { %7854 = vxpose.xlu1.b32.cont [8/13] (short) (narrow) %v7831_v60, 8 }
 0xc02   : > { %7855 = vxpose.xlu1.b32.cont [9/13] (short) (narrow) %v7834_v49, 8 }
 0xc0a   : > { %7856 = vxpose.xlu1.b32.cont [10/13] (short) (narrow) %v7837_v45, 8 }
 0xc12   : > { %7857 = vxpose.xlu1.b32.cont [11/13] (short) (narrow) %v7840_v63, 8 }
 0xc1a   : > { %7858 = vxpose.xlu1.b32.cont [12/13] (short) (narrow) %v7843_v13, 8 }
 0xc22   : > { %7859 = vxpose.xlu1.b32.end [13/13] (short) (narrow) %v7846_v52, 8 }
 0xc66   : > { %v7863_v44 = vpop.trf.xlu1 }
 0xc67   : > { %7880 = vst.msk [vmem:[%s400_s30] sm:$0x1] %vm7879_vm9, %v7863_v44 }
 0xc68   : > { %8978 = shalt.err (!%p8975_p4)
}
 0xc69   : > { %8189 = dma.vmem_to_hbm [thread:$0]  (%p9127_p5), %s7893_s11, 16, %s7895_s12, %s7882_s20  }
 0xc6a PF: > { %p8195_p7 = scmp.ge.s32.totalorder %s9013_s16, 2  ;;  %s7906_s18 = sand.u32 1, %s9001_s13  }
 0xc6b   : > { %s7907_s0 = scalar_lea.sflag [#allocation3], %s7906_s18 }
 0xc6c   : > { %p8192_p8 = pnand %p8195_p7, %p9131_p6 }
 0xc6e   : > { %p8193_p9 = pneg %p8192_p8 }
 0xc70   : > { %8996 = dma.done.wait (%p8193_p9), %s7907_s0, 16  }
 0xc71   : > { %8998 = vsyncadd (%p8193_p9), %s7907_s0, 4294967280  ;;  %p20_p10 = scmp.ge.s32.totalorder %s9114_s19, 4   ;;  %s14367_s13 = smov %s9005_s14 }
 0xc72   : > { %s14368_s14 = smov %s9009_s15  ;;  %s14369_s15 = smov %s9125_s22 }
 0xc73   : > { %s14370_s16 = smov %s9114_s19  ;;  %22 = sbr.rel (!%p20_p10) target bundleno = 5 (0x5), region = 104 }
 0xc78   :  { %7912 = vsyncpa [#allocation3], 1 }
 0xc79   :  { %7914 = vsyncpa [#allocation3 + $0x1], 1 }

</bundles_post_ra>
